<compile_context>
chip_gen: v7x
topology: tpu7x:2x2x1
jax: 0.10.0
libtpu: 0.0.40
codegen_flags: <defaults>
</compile_context>

<pallas_src>
import functools
import math

import jax
import jax.numpy as jnp
from jax import lax
from jax.experimental import pallas as pl
from jax.experimental.pallas import tpu as pltpu


_SINGLE_BLOCK_BYTES = 8 * 1024 * 1024   # operand+output budget for the 1-shot matmul path


def _round_up(x, m):
    return (x + m - 1) // m * m


def _flat2d(t):
    """Reshape to a lane-dense 2D view (last dim a multiple of 128 when possible)."""
    total = t.size
    for lane in (1024, 512, 256, 128):
        if total % lane == 0:
            return t.reshape(total // lane, lane)
    return t.reshape(1, total)


# ----------------------------------------------------------------------------
# Pallas matmul kernels (bf16 operands, f32 accumulation)
# ----------------------------------------------------------------------------

def _small_mm_kernel(*refs, has_bias, slope):
    if has_bias:
        a_ref, b_ref, bias_ref, o_ref = refs
    else:
        a_ref, b_ref, o_ref = refs
        bias_ref = None
    r = jnp.dot(a_ref[...], b_ref[...], preferred_element_type=jnp.float32)
    if bias_ref is not None:
        r = r + bias_ref[...]                      # (M,1) or (1,N) broadcast
    if slope is not None:
        r = jnp.where(r >= 0.0, r, slope * r)
    o_ref[...] = r.astype(o_ref.dtype)


def _tiled_mm_kernel(a_ref, b_ref, bias_ref, o_ref, acc_ref, *, slope):
    @pl.when(pl.program_id(2) == 0)
    def _():
        acc_ref[...] = jnp.zeros_like(acc_ref)

    acc_ref[...] += jnp.dot(a_ref[...], b_ref[...],
                            preferred_element_type=jnp.float32)

    @pl.when(pl.program_id(2) == pl.num_programs(2) - 1)
    def _():
        r = acc_ref[...] + bias_ref[...]
        if slope is not None:
            r = jnp.where(r >= 0.0, r, slope * r)
        o_ref[...] = r.astype(o_ref.dtype)


def matmul_pallas(a, b, bias=None, bias_axis='col', slope=None):
    """out = act(a @ b + bias).  a:(M,K), b:(K,N), bf16 MXU / f32 accum.

    bias_axis='row' -> bias has shape (M,) (per output row, conv channels);
    bias_axis='col' -> bias has shape (N,) (per output column, FC features).
    Everything in this model fits a single VMEM block, so the default path is
    one pallas_call with whole-array blocks (no grid, no HBM padding copies
    beyond tiny M/K alignment).  Larger problems fall back to a 3D tiled grid.
    """
    M, K = a.shape
    K2, N = b.shape
    assert K == K2
    a = a.astype(jnp.bfloat16)
    b = b.astype(jnp.bfloat16)

    # Minimal alignment: M -> multiple of 8 (sublanes), K -> multiple of 16
    # (packed bf16 sublanes of the RHS).  N stays as-is (masked store is fine).
    Mp = _round_up(M, 8)
    Kp = _round_up(K, 16)
    if Mp != M or Kp != K:
        a = jnp.pad(a, ((0, Mp - M), (0, Kp - K)))
    if Kp != K:
        b = jnp.pad(b, ((0, Kp - K), (0, 0)))

    has_bias = bias is not None
    if has_bias:
        bias = bias.astype(jnp.float32)
        if bias_axis == 'row':
            bias2d = jnp.pad(bias.reshape(M, 1), ((0, Mp - M), (0, 0)))
        else:
            bias2d = bias.reshape(1, N)

    single_bytes = a.size * 2 + b.size * 2 + Mp * N * 4
    if single_bytes <= _SINGLE_BLOCK_BYTES:
        args = (a, b, bias2d) if has_bias else (a, b)
        out = pl.pallas_call(
            functools.partial(_small_mm_kernel, has_bias=has_bias, slope=slope),
            out_shape=jax.ShapeDtypeStruct((Mp, N), jnp.float32),
        )(*args)
        return out[:M] if Mp != M else out

    # ---------------- tiled fallback (not reached at these model sizes) ------
    tm = tn = tk = 256
    Mq, Kq, Nq = _round_up(Mp, tm), _round_up(Kp, tk), _round_up(N, tn)
    a_p = jnp.pad(a, ((0, Mq - Mp), (0, Kq - Kp)))
    b_p = jnp.pad(b, ((0, Kq - Kp), (0, Nq - N)))
    if not has_bias:
        bias2d = jnp.zeros((1, Nq), jnp.float32)
        eff_axis = 'col'
    else:
        eff_axis = bias_axis
        if bias_axis == 'row':
            bias2d = jnp.pad(bias2d, ((0, Mq - Mp), (0, 0)))
        else:
            bias2d = jnp.pad(bias2d, ((0, 0), (0, Nq - N)))
    if eff_axis == 'row':
        bias_spec = pl.BlockSpec((tm, 1), lambda i, j, k: (i, 0))
    else:
        bias_spec = pl.BlockSpec((1, tn), lambda i, j, k: (0, j))

    out = pl.pallas_call(
        functools.partial(_tiled_mm_kernel, slope=slope),
        out_shape=jax.ShapeDtypeStruct((Mq, Nq), jnp.float32),
        grid_spec=pltpu.PrefetchScalarGridSpec(
            num_scalar_prefetch=0,
            grid=(Mq // tm, Nq // tn, Kq // tk),
            in_specs=[pl.BlockSpec((tm, tk), lambda i, j, k: (i, k)),
                      pl.BlockSpec((tk, tn), lambda i, j, k: (k, j)),
                      bias_spec],
            out_specs=pl.BlockSpec((tm, tn), lambda i, j, k: (i, j)),
            scratch_shapes=[pltpu.VMEM((tm, tn), jnp.float32)]),
        compiler_params=pltpu.CompilerParams(
            dimension_semantics=("parallel", "parallel", "arbitrary")),
    )(a_p, b_p, bias2d)
    return out[:M, :N]


# ----------------------------------------------------------------------------
# Fused FC_8 mapping network + style FC (single VMEM-resident Pallas kernel)
# ----------------------------------------------------------------------------

def _fc8_style_kernel(x_ref, w8_ref, b8_ref, wl_ref, bl_ref, o_ref,
                      *, n_layers, slope):
    x = x_ref[...]                                         # (Mp, 512) f32
    ms = jnp.mean(x * x, axis=-1, keepdims=True)           # PixelNorm
    x = x * lax.rsqrt(ms + 1e-8)
    for i in range(n_layers):                              # 8 fused FC layers
        w = w8_ref[i]                                      # (512, 512) bf16
        bvec = b8_ref[i]                                   # (1, 512)   f32
        y = jnp.dot(x.astype(jnp.bfloat16), w,
                    preferred_element_type=jnp.float32) + bvec
        x = jnp.where(y >= 0.0, y, slope * y)
    y = jnp.dot(x.astype(jnp.bfloat16), wl_ref[...],
                preferred_element_type=jnp.float32) + bl_ref[...]
    o_ref[...] = jnp.where(y >= 0.0, y, slope * y)


def fc8_style_apply(fc8_params, linear_params, z):
    """PixelNorm -> 8x FC(512,512,lrelu0.2) -> FC(512,out_c,lrelu0.2) fused."""
    N, D = z.shape
    Mp = max(8, _round_up(N, 8))
    x = jnp.zeros((Mp, D), jnp.float32).at[:N].set(z.astype(jnp.float32))
    w8 = jnp.stack([(p['weight'] * p['w_lrmul']).T for p in fc8_params]
                   ).astype(jnp.bfloat16)                      # (8, 512, 512)
    b8 = jnp.stack([p['bias'] * p['b_lrmul'] for p in fc8_params]
                   )[:, None, :].astype(jnp.float32)           # (8, 1, 512)
    wl = (linear_params['weight'] * linear_params['w_lrmul']).T.astype(jnp.bfloat16)
    bl = (linear_params['bias'] * linear_params['b_lrmul']).reshape(1, -1).astype(jnp.float32)
    out_c = wl.shape[1]
    out = pl.pallas_call(
        functools.partial(_fc8_style_kernel, n_layers=len(fc8_params), slope=0.2),
        out_shape=jax.ShapeDtypeStruct((Mp, out_c), jnp.float32),
    )(x, w8, b8, wl, bl)
    return out[:N]


# ----------------------------------------------------------------------------
# Fused selector MLP + pairwise softmax kernel
# ----------------------------------------------------------------------------

def _selector_kernel(y_ref, fcw_ref, w1_ref, b1_ref, w2_ref, b2_ref,
                     o1_ref, o2_ref):
    y = jnp.dot(y_ref[...], fcw_ref[...], preferred_element_type=jnp.float32)
    y = jnp.maximum(y, 0.0).astype(jnp.bfloat16)           # ReLU hidden
    a1 = jnp.dot(y, w1_ref[...], preferred_element_type=jnp.float32) + b1_ref[...]
    a2 = jnp.dot(y, w2_ref[...], preferred_element_type=jnp.float32) + b2_ref[...]
    m = jnp.maximum(a1, a2)                                 # softmax over the pair
    e1 = jnp.exp(a1 - m)
    e2 = jnp.exp(a2 - m)
    inv = pl.reciprocal(e1 + e2, approx=True)               # EUP reciprocal
    o1_ref[...] = e1 * inv
    o2_ref[...] = e2 * inv


def selector_apply(p, x):
    """Selector: avgpool(4x4) -> fc -> 2 attention maps -> softmax weights."""
    N, C, H, W = x.shape
    sa = 4
    y = adaptive_avg_pool_4(x).reshape(N, C * sa * sa)
    Mp = max(8, _round_up(N, 8))
    yp = jnp.zeros((Mp, C * sa * sa), jnp.float32).at[:N].set(y).astype(jnp.bfloat16)
    fcw = p['fc_w'].T.astype(jnp.bfloat16)                  # (C*16, C)
    w1 = p['att1_w'].T.astype(jnp.bfloat16)                 # (C, C*16)
    w2 = p['att2_w'].T.astype(jnp.bfloat16)
    b1 = p['att1_b'].reshape(1, -1).astype(jnp.float32)
    b2 = p['att2_b'].reshape(1, -1).astype(jnp.float32)
    w1o, w2o = pl.pallas_call(
        _selector_kernel,
        out_shape=(jax.ShapeDtypeStruct((Mp, C * sa * sa), jnp.float32),
                   jax.ShapeDtypeStruct((Mp, C * sa * sa), jnp.float32)),
    )(yp, fcw, w1, b1, w2, b2)
    w1o = nearest_upsample(w1o[:N].reshape(N, C, sa, sa), H // sa, W // sa)
    w2o = nearest_upsample(w2o[:N].reshape(N, C, sa, sa), H // sa, W // sa)
    return w1o, w2o


# ----------------------------------------------------------------------------
# Elementwise Pallas kernels
# ----------------------------------------------------------------------------

def _instnorm_kernel(x_ref, o_ref, *, eps, slope):
    x = x_ref[...]
    mean = jnp.mean(x, axis=-1, keepdims=True)
    var = jnp.mean(jnp.square(x - mean), axis=-1, keepdims=True)
    y = (x - mean) * lax.rsqrt(var + eps)
    o_ref[...] = jnp.where(y >= 0.0, y, slope * y)


def instance_norm_lrelu(x, eps=1e-5, slope=0.01):
    """nn.InstanceNorm2d (affine=False) followed by LeakyReLU(0.01)."""
    N, C, H, W = x.shape
    x2 = x.reshape(N * C, H * W).astype(jnp.float32)
    out = pl.pallas_call(
        functools.partial(_instnorm_kernel, eps=eps, slope=slope),
        out_shape=jax.ShapeDtypeStruct(x2.shape, jnp.float32),
    )(x2)
    return out.reshape(N, C, H, W)


def _combine_kernel(o0_ref, o2_ref, w1_ref, w2_ref, out_ref):
    out_ref[...] = o0_ref[...] * w1_ref[...] + o2_ref[...] * w2_ref[...]


def weighted_combine(out0, out2, w1, w2):
    """out = out0*w1 + out2*w2, lane-dense elementwise kernel."""
    shape = out0.shape
    flats = [_flat2d(t.astype(jnp.float32)) for t in (out0, out2, w1, w2)]
    out = pl.pallas_call(
        _combine_kernel,
        out_shape=jax.ShapeDtypeStruct(flats[0].shape, jnp.float32),
    )(*flats)
    return out.reshape(shape)


# ----------------------------------------------------------------------------
# Conv / pooling built on the Pallas matmul (glue = reshapes only)
# ----------------------------------------------------------------------------

def _im2col_t(x, kh, kw, stride, padding):
    """patches with shape (C*kh*kw, N*Ho*Wo): lane-dense GEMM orientation."""
    N, C, H, W = x.shape
    xp = jnp.pad(x, ((0, 0), (0, 0), (padding, padding), (padding, padding)))
    Ho = (H + 2 * padding - kh) // stride + 1
    Wo = (W + 2 * padding - kw) // stride + 1
    cols = []
    for i in range(kh):
        for j in range(kw):
            cols.append(xp[:, :, i:i + stride * Ho:stride, j:j + stride * Wo:stride])
    patches = jnp.stack(cols, axis=2)                   # (N, C, kh*kw, Ho, Wo)
    patches = patches.transpose(1, 2, 0, 3, 4)          # (C, kh*kw, N, Ho, Wo)
    return patches.reshape(C * kh * kw, N * Ho * Wo), Ho, Wo


def conv2d(x, w, b=None, stride=1, padding=0, groups=1):
    N, Cin, H, W = x.shape
    O, Cin_g, kh, kw = w.shape
    assert Cin == Cin_g * groups
    if groups > 1:
        # fold the group loop into one matmul with a block-diagonal weight
        og = O // groups
        w_flat = w.reshape(groups, og, Cin_g * kh * kw)
        wb = jnp.zeros((groups, og, groups, Cin_g * kh * kw), w.dtype)
        gidx = jnp.arange(groups)
        wb = wb.at[gidx, :, gidx, :].set(w_flat)
        w2d = wb.reshape(O, Cin * kh * kw)
    else:
        w2d = w.reshape(O, Cin * kh * kw)
    patches, Ho, Wo = _im2col_t(x, kh, kw, stride, padding)
    out = matmul_pallas(w2d, patches, bias=b, bias_axis='row')   # (O, N*Ho*Wo)
    return out.reshape(O, N, Ho, Wo).transpose(1, 0, 2, 3)


def conv_transpose2d_s2k2(x, w, b):
    """ConvTranspose2d(kernel=2, stride=2).  w: (Cin, Cout, 2, 2)."""
    N, Cin, H, W = x.shape
    Cout = w.shape[1]
    A = x.reshape(N, Cin, H * W).transpose(0, 2, 1).reshape(N * H * W, Cin)
    Bm = w.reshape(Cin, Cout * 4)                    # output cols = Cout*4 (lane-dense)
    bias_cols = None if b is None else jnp.repeat(b, 4)
    out = matmul_pallas(A, Bm, bias=bias_cols, bias_axis='col')
    out = out.reshape(N, H, W, Cout, 2, 2).transpose(0, 3, 1, 4, 2, 5)
    return out.reshape(N, Cout, 2 * H, 2 * W)


def max_pool2(x):
    N, C, H, W = x.shape
    return x.reshape(N, C, H // 2, 2, W // 2, 2).max(axis=(3, 5))


def pixel_shuffle(x, r=2):
    N, C, H, W = x.shape
    Co = C // (r * r)
    x = x.reshape(N, Co, r, r, H, W).transpose(0, 1, 4, 2, 5, 3)
    return x.reshape(N, Co, H * r, W * r)


def adaptive_avg_pool_4(x):
    N, C, H, W = x.shape
    return x.reshape(N, C, 4, H // 4, 4, W // 4).mean(axis=(3, 5))


def nearest_upsample(x, fh, fw):
    return jnp.repeat(jnp.repeat(x, fh, axis=2), fw, axis=3)


# ----------------------------------------------------------------------------
# Sub-module forwards
# ----------------------------------------------------------------------------

def select_apply(p):
    # EqualLinear applied to torch.ones(1): pure broadcast arithmetic (no MXU).
    b = p['bias'] * p['lr_mul']
    s1 = p['weight'][:, 0] * p['scale'] + b
    s2 = p['weight1'][:, 0] * p['scale'] + b
    return s1, s2


def norm2scale(s1, s2):
    n = s1 * s1 + s2 * s2 + 1e-8
    r = lax.rsqrt(n)
    return s1 * r, s2 * r


def apply_noise(p, x):
    N, C, H, W = x.shape
    # torch.cuda.manual_seed(2) is re-issued on every call -> same noise each
    # call in the reference; a fixed jax key reproduces that behaviour.
    noise = jax.random.normal(jax.random.PRNGKey(2), (N, 1, H, W), jnp.float32)
    return x + p['weight'].reshape(1, C, 1, 1) * noise


def selective_conv_apply(p, x, vgg_feature):
    N, C, H, W = x.shape
    # conv4 applied 4 times on the same input with identical weights
    xl = conv2d(x, p['conv4_w'], None, stride=2, padding=0)
    x_L = jnp.concatenate([xl, xl, xl, xl], axis=0)

    # unfold(2,2,2).unfold(3,2,2) -> 4 strided views concatenated on batch dim
    x1_1 = x[:, :, 0::2, 0::2]
    x1_2 = x[:, :, 0::2, 1::2]
    x1_3 = x[:, :, 1::2, 0::2]
    x1_4 = x[:, :, 1::2, 1::2]
    x1 = jnp.concatenate([x1_1, x1_2, x1_3, x1_4], axis=0)
    # TODO(synk): ConvMLPStage_S is not defined in the reference source; treated as identity.
    xx = x1 + x_L
    xx = jnp.concatenate(jnp.split(xx, 4, axis=0), axis=1)          # (N, 4C, H/2, W/2)
    x1_ps = pixel_shuffle(xx, 2)                                    # (N, C, H, W)

    s_input = instance_norm_lrelu(x, eps=1e-5, slope=0.01)          # IN + LeakyReLU

    out0 = conv2d(x1_ps, p['conv3_w'], None, stride=1, padding=0)   # 1x1 conv
    half = out0.shape[1] // 2
    out0a, x12 = out0[:, :half], out0[:, half:]

    style = fc8_style_apply(p['fc8'], p['linear'], vgg_feature)     # fused FC_8 + style FC

    x12 = apply_noise(p['noise'], x12)
    style = style.reshape(N, 2, half, 1, 1)
    x12 = x12 * (style[:, 0] + 1.0) + style[:, 1]
    out0 = jnp.concatenate([out0a, x12], axis=1)

    s1, s2 = select_apply(p['select'])
    s1, s2 = jnp.abs(s1), jnp.abs(s2)
    s1, s2 = norm2scale(s1, s2)
    s1 = s1.reshape(1, out0.shape[1], 1, 1)
    s2 = s2.reshape(1, out0.shape[1], 1, 1)

    out2 = conv2d(s_input, p['conv2_w'], None, stride=1, padding=1)
    out0 = out0 * s1
    out2 = out2 * s2
    out = out0 + out2

    w1, w2 = selector_apply(p['selector'], out)                     # softmaxed weights
    return weighted_combine(out0, out2, w1, w2)


def skup_apply(p, x1, x2, vgg_feature):
    x1 = conv_transpose2d_s2k2(x1, p['up_w'], p['up_b'])
    diffY = x2.shape[2] - x1.shape[2]
    diffX = x2.shape[3] - x1.shape[3]
    # reference pads only top/left (its "right/bottom" pad evaluates to 0)
    x1 = jnp.pad(x1, ((0, 0), (0, 0), (diffY // 2, 0), (diffX // 2, 0)))
    x = jnp.concatenate([x2, x1], axis=1)
    return selective_conv_apply(p['conv'], x, vgg_feature)


def n2_apply(p, x, vgg_feature):
    x1 = conv2d(x, p['conv1_w'], p['conv1_b'], stride=1, padding=0)           # Conv1 1x1
    x1 = conv2d(x1, p['conv_w'], None, stride=1, padding=3, groups=4)         # 7x7 grouped
    x2 = conv2d(max_pool2(x1), p['down2_w'], p['down2_b'], stride=1, padding=1)
    x3 = conv2d(max_pool2(x2), p['down3_w'], p['down3_b'], stride=1, padding=1)
    p1 = skup_apply(p['up1'], x3, x2, vgg_feature)
    p2 = skup_apply(p['up2'], p1, x1, vgg_feature)
    p3 = conv2d(p2, p['up4_w'], p['up4_b'], stride=1, padding=1)
    return p3


# ----------------------------------------------------------------------------
# Deterministic parameter initialization (shapes follow the PyTorch __init__)
# ----------------------------------------------------------------------------

def init_params(key):
    keys = iter(jax.random.split(key, 256))

    def nrm(shape, scale=0.05):
        return jax.random.normal(next(keys), shape, jnp.float32) * scale

    def fc_params(in_c, out_c, gain=math.sqrt(2.0), use_wscale=False, lrmul=1.0):
        he_std = gain * in_c ** (-0.5)
        if use_wscale:
            init_std = 1.0 / lrmul
            w_lrmul = he_std * lrmul
        else:
            init_std = he_std / lrmul
            w_lrmul = lrmul
        return dict(weight=jax.random.normal(next(keys), (out_c, in_c), jnp.float32) * init_std,
                    bias=jnp.zeros((out_c,), jnp.float32),
                    w_lrmul=w_lrmul, b_lrmul=lrmul)

    def selective_conv_params(in_c, out_c):
        sel_in = out_c * 16            # spatial_attention**2 * channel
        sel_mid = sel_in // 16         # reduction = 16
        return dict(
            conv2_w=nrm((out_c, in_c, 3, 3)),
            conv3_w=nrm((out_c, in_c, 1, 1)),
            conv4_w=nrm((in_c, in_c, 2, 2)),
            selector=dict(
                fc_w=nrm((sel_mid, sel_in)),
                att1_w=nrm((sel_in, sel_mid)),
                att1_b=jnp.zeros((sel_in,), jnp.float32),
                att2_w=nrm((sel_in, sel_mid)),
                att2_b=jnp.zeros((sel_in,), jnp.float32)),
            select=dict(weight=nrm((out_c, 1), 1.0),
                        weight1=nrm((out_c, 1), 1.0),
                        bias=jnp.ones((out_c,), jnp.float32),   # bias_init_val=1
                        scale=1.0,                              # 1/sqrt(in_channels=1)*lr_mul
                        lr_mul=1.0),
            fc8=[fc_params(512, 512, gain=math.sqrt(2.0), use_wscale=True, lrmul=0.01)
                 for _ in range(8)],
            linear=fc_params(512, out_c, gain=1.0, use_wscale=False, lrmul=1.0),
            noise=dict(weight=jnp.zeros((out_c // 2,), jnp.float32)))

    def skup_params(in_c, out_c):
        return dict(up_w=nrm((in_c // 2, in_c // 2, 2, 2)),
                    up_b=jnp.zeros((in_c // 2,), jnp.float32),
                    conv=selective_conv_params(in_c, out_c))

    return dict(
        conv1_w=nrm((4, 3, 1, 1)), conv1_b=jnp.zeros((4,), jnp.float32),
        conv_w=nrm((32, 1, 7, 7)),
        down2_w=nrm((64, 32, 3, 3)), down2_b=jnp.zeros((64,), jnp.float32),
        down3_w=nrm((64, 64, 3, 3)), down3_b=jnp.zeros((64,), jnp.float32),
        up1=skup_params(128, 32),
        up2=skup_params(64, 32),
        up4_w=nrm((3, 32, 3, 3)), up4_b=jnp.zeros((3,), jnp.float32))


# ----------------------------------------------------------------------------

if __name__ == "__main__":
    root = jax.random.PRNGKey(0)
    kp, kx, kv = jax.random.split(root, 3)
    params = init_params(kp)

    x = jax.random.normal(kx, (2, 3, 16, 16), jnp.float32)       # NCHW input image
    vgg_feature = jax.random.normal(kv, (2, 512), jnp.float32)   # latent fed to FC_8

    fwd = jax.jit(n2_apply)
    out = fwd(params, x, vgg_feature)
    out = jax.block_until_ready(out)
    assert out.shape == (2, 3, 16, 16), out.shape
    assert bool(jnp.all(jnp.isfinite(out)))
    print("KERNEL_OK")
</pallas_src>

<mosaic_0001>
module attributes {stable_mosaic.version = 11 : i64} {
  func.func @_small_mm_kernel(%arg0: memref<8x16xbf16, #tpu.memory_space<vmem>>, %arg1: memref<16x512xbf16, #tpu.memory_space<vmem>>, %arg2: memref<8x1xf32, #tpu.memory_space<vmem>>, %arg3: memref<8x512xf32, #tpu.memory_space<vmem>>) attributes {dimension_semantics = [], scalar_prefetch = 0 : i64, scratch_operands = 0 : i64, tpu.core_type = #tpu.core_type<tc>} {
    %c0 = arith.constant 0 : index
    %c0_0 = arith.constant 0 : index
    %0 = vector.load %arg0[%c0, %c0_0] : memref<8x16xbf16, #tpu.memory_space<vmem>>, vector<8x16xbf16>
    %c0_1 = arith.constant 0 : index
    %c0_2 = arith.constant 0 : index
    %1 = vector.load %arg1[%c0_1, %c0_2] : memref<16x512xbf16, #tpu.memory_space<vmem>>, vector<16x512xbf16>
    %cst = arith.constant dense<0.000000e+00> : vector<8x512xf32>
    %2 = tpu.matmul %0, %1, %cst {dimension_numbers = #tpu.dot_dimension_numbers<[1], [0], [0], [1], [0, 0, 1, 1], [], []>} : vector<8x16xbf16>, vector<16x512xbf16>, vector<8x512xf32> -> vector<8x512xf32>
    %c0_3 = arith.constant 0 : index
    %c0_4 = arith.constant 0 : index
    %3 = vector.load %arg2[%c0_3, %c0_4] : memref<8x1xf32, #tpu.memory_space<vmem>>, vector<8x1xf32>
    %4 = vector.broadcast %3 : vector<8x1xf32> to vector<8x512xf32>
    %5 = arith.addf %2, %4 : vector<8x512xf32>
    %c0_5 = arith.constant 0 : index
    %c0_6 = arith.constant 0 : index
    %6 = vector.load %arg3[%c0_5, %c0_6] : memref<8x512xf32, #tpu.memory_space<vmem>>, vector<8x512xf32>
    tpu.vector_store %arg3[%c0_5, %c0_6], %5 {strides = array<i32>} : memref<8x512xf32, #tpu.memory_space<vmem>>, vector<8x512xf32>,
    return
  }
}

module attributes {stable_mosaic.version = 11 : i64} {
  func.func @_small_mm_kernel(%arg0: memref<32x208xbf16, #tpu.memory_space<vmem>>, %arg1: memref<208x512xbf16, #tpu.memory_space<vmem>>, %arg2: memref<32x512xf32, #tpu.memory_space<vmem>>) attributes {dimension_semantics = [], scalar_prefetch = 0 : i64, scratch_operands = 0 : i64, tpu.core_type = #tpu.core_type<tc>} {
    %c0 = arith.constant 0 : index
    %c0_0 = arith.constant 0 : index
    %0 = vector.load %arg0[%c0, %c0_0] : memref<32x208xbf16, #tpu.memory_space<vmem>>, vector<32x208xbf16>
    %c0_1 = arith.constant 0 : index
    %c0_2 = arith.constant 0 : index
    %1 = vector.load %arg1[%c0_1, %c0_2] : memref<208x512xbf16, #tpu.memory_space<vmem>>, vector<208x512xbf16>
    %cst = arith.constant dense<0.000000e+00> : vector<32x512xf32>
    %2 = tpu.matmul %0, %1, %cst {dimension_numbers = #tpu.dot_dimension_numbers<[1], [0], [0], [1], [0, 0, 1, 1], [], []>} : vector<32x208xbf16>, vector<208x512xbf16>, vector<32x512xf32> -> vector<32x512xf32>
    %c0_3 = arith.constant 0 : index
    %c0_4 = arith.constant 0 : index
    %3 = vector.load %arg2[%c0_3, %c0_4] : memref<32x512xf32, #tpu.memory_space<vmem>>, vector<32x512xf32>
    tpu.vector_store %arg2[%c0_3, %c0_4], %2 {strides = array<i32>} : memref<32x512xf32, #tpu.memory_space<vmem>>, vector<32x512xf32>,
    return
  }
}

module attributes {stable_mosaic.version = 11 : i64} {
  func.func @_small_mm_kernel(%arg0: memref<64x288xbf16, #tpu.memory_space<vmem>>, %arg1: memref<288x128xbf16, #tpu.memory_space<vmem>>, %arg2: memref<64x1xf32, #tpu.memory_space<vmem>>, %arg3: memref<64x128xf32, #tpu.memory_space<vmem>>) attributes {dimension_semantics = [], scalar_prefetch = 0 : i64, scratch_operands = 0 : i64, tpu.core_type = #tpu.core_type<tc>} {
    %c0 = arith.constant 0 : index
    %c0_0 = arith.constant 0 : index
    %0 = vector.load %arg0[%c0, %c0_0] : memref<64x288xbf16, #tpu.memory_space<vmem>>, vector<64x288xbf16>
    %c0_1 = arith.constant 0 : index
    %c0_2 = arith.constant 0 : index
    %1 = vector.load %arg1[%c0_1, %c0_2] : memref<288x128xbf16, #tpu.memory_space<vmem>>, vector<288x128xbf16>
    %cst = arith.constant dense<0.000000e+00> : vector<64x128xf32>
    %2 = tpu.matmul %0, %1, %cst {dimension_numbers = #tpu.dot_dimension_numbers<[1], [0], [0], [1], [0, 0, 1, 1], [], []>} : vector<64x288xbf16>, vector<288x128xbf16>, vector<64x128xf32> -> vector<64x128xf32>
    %c0_3 = arith.constant 0 : index
    %c0_4 = arith.constant 0 : index
    %3 = vector.load %arg2[%c0_3, %c0_4] : memref<64x1xf32, #tpu.memory_space<vmem>>, vector<64x1xf32>
    %4 = vector.broadcast %3 : vector<64x1xf32> to vector<64x128xf32>
    %5 = arith.addf %2, %4 : vector<64x128xf32>
    %c0_5 = arith.constant 0 : index
    %c0_6 = arith.constant 0 : index
    %6 = vector.load %arg3[%c0_5, %c0_6] : memref<64x128xf32, #tpu.memory_space<vmem>>, vector<64x128xf32>
    tpu.vector_store %arg3[%c0_5, %c0_6], %5 {strides = array<i32>} : memref<64x128xf32, #tpu.memory_space<vmem>>, vector<64x128xf32>,
    return
  }
}

module attributes {stable_mosaic.version = 11 : i64} {
  func.func @_small_mm_kernel(%arg0: memref<64x576xbf16, #tpu.memory_space<vmem>>, %arg1: memref<576x32xbf16, #tpu.memory_space<vmem>>, %arg2: memref<64x1xf32, #tpu.memory_space<vmem>>, %arg3: memref<64x32xf32, #tpu.memory_space<vmem>>) attributes {dimension_semantics = [], scalar_prefetch = 0 : i64, scratch_operands = 0 : i64, tpu.core_type = #tpu.core_type<tc>} {
    %c0 = arith.constant 0 : index
    %c0_0 = arith.constant 0 : index
    %0 = vector.load %arg0[%c0, %c0_0] : memref<64x576xbf16, #tpu.memory_space<vmem>>, vector<64x576xbf16>
    %c0_1 = arith.constant 0 : index
    %c0_2 = arith.constant 0 : index
    %1 = vector.load %arg1[%c0_1, %c0_2] : memref<576x32xbf16, #tpu.memory_space<vmem>>, vector<576x32xbf16>
    %cst = arith.constant dense<0.000000e+00> : vector<64x32xf32>
    %2 = tpu.matmul %0, %1, %cst {dimension_numbers = #tpu.dot_dimension_numbers<[1], [0], [0], [1], [0, 0, 1, 1], [], []>} : vector<64x576xbf16>, vector<576x32xbf16>, vector<64x32xf32> -> vector<64x32xf32>
    %c0_3 = arith.constant 0 : index
    %c0_4 = arith.constant 0 : index
    %3 = vector.load %arg2[%c0_3, %c0_4] : memref<64x1xf32, #tpu.memory_space<vmem>>, vector<64x1xf32>
    %4 = vector.broadcast %3 : vector<64x1xf32> to vector<64x32xf32>
    %5 = arith.addf %2, %4 : vector<64x32xf32>
    %c0_5 = arith.constant 0 : index
    %c0_6 = arith.constant 0 : index
    %6 = vector.load %arg3[%c0_5, %c0_6] : memref<64x32xf32, #tpu.memory_space<vmem>>, vector<64x32xf32>
    tpu.vector_store %arg3[%c0_5, %c0_6], %5 {strides = array<i32>} : memref<64x32xf32, #tpu.memory_space<vmem>>, vector<64x32xf32>,
    return
  }
}

module attributes {stable_mosaic.version = 11 : i64} {
  func.func @_small_mm_kernel(%arg0: memref<32x64xbf16, #tpu.memory_space<vmem>>, %arg1: memref<64x256xbf16, #tpu.memory_space<vmem>>, %arg2: memref<1x256xf32, #tpu.memory_space<vmem>>, %arg3: memref<32x256xf32, #tpu.memory_space<vmem>>) attributes {dimension_semantics = [], scalar_prefetch = 0 : i64, scratch_operands = 0 : i64, tpu.core_type = #tpu.core_type<tc>} {
    %c0 = arith.constant 0 : index
    %c0_0 = arith.constant 0 : index
    %0 = vector.load %arg0[%c0, %c0_0] : memref<32x64xbf16, #tpu.memory_space<vmem>>, vector<32x64xbf16>
    %c0_1 = arith.constant 0 : index
    %c0_2 = arith.constant 0 : index
    %1 = vector.load %arg1[%c0_1, %c0_2] : memref<64x256xbf16, #tpu.memory_space<vmem>>, vector<64x256xbf16>
    %cst = arith.constant dense<0.000000e+00> : vector<32x256xf32>
    %2 = tpu.matmul %0, %1, %cst {dimension_numbers = #tpu.dot_dimension_numbers<[1], [0], [0], [1], [0, 0, 1, 1], [], []>} : vector<32x64xbf16>, vector<64x256xbf16>, vector<32x256xf32> -> vector<32x256xf32>
    %c0_3 = arith.constant 0 : index
    %c0_4 = arith.constant 0 : index
    %3 = vector.load %arg2[%c0_3, %c0_4] : memref<1x256xf32, #tpu.memory_space<vmem>>, vector<1x256xf32>
    %4 = vector.broadcast %3 : vector<1x256xf32> to vector<32x256xf32>
    %5 = arith.addf %2, %4 : vector<32x256xf32>
    %c0_5 = arith.constant 0 : index
    %c0_6 = arith.constant 0 : index
    %6 = vector.load %arg3[%c0_5, %c0_6] : memref<32x256xf32, #tpu.memory_space<vmem>>, vector<32x256xf32>
    tpu.vector_store %arg3[%c0_5, %c0_6], %5 {strides = array<i32>} : memref<32x256xf32, #tpu.memory_space<vmem>>, vector<32x256xf32>,
    return
  }
}

module attributes {stable_mosaic.version = 11 : i64} {
  func.func @_small_mm_kernel(%arg0: memref<128x512xbf16, #tpu.memory_space<vmem>>, %arg1: memref<512x32xbf16, #tpu.memory_space<vmem>>, %arg2: memref<128x32xf32, #tpu.memory_space<vmem>>) attributes {dimension_semantics = [], scalar_prefetch = 0 : i64, scratch_operands = 0 : i64, tpu.core_type = #tpu.core_type<tc>} {
    %c0 = arith.constant 0 : index
    %c0_0 = arith.constant 0 : index
    %0 = vector.load %arg0[%c0, %c0_0] : memref<128x512xbf16, #tpu.memory_space<vmem>>, vector<128x512xbf16>
    %c0_1 = arith.constant 0 : index
    %c0_2 = arith.constant 0 : index
    %1 = vector.load %arg1[%c0_1, %c0_2] : memref<512x32xbf16, #tpu.memory_space<vmem>>, vector<512x32xbf16>
    %cst = arith.constant dense<0.000000e+00> : vector<128x32xf32>
    %2 = tpu.matmul %0, %1, %cst {dimension_numbers = #tpu.dot_dimension_numbers<[1], [0], [0], [1], [0, 0, 1, 1], [], []>} : vector<128x512xbf16>, vector<512x32xbf16>, vector<128x32xf32> -> vector<128x32xf32>
    %c0_3 = arith.constant 0 : index
    %c0_4 = arith.constant 0 : index
    %3 = vector.load %arg2[%c0_3, %c0_4] : memref<128x32xf32, #tpu.memory_space<vmem>>, vector<128x32xf32>
    tpu.vector_store %arg2[%c0_3, %c0_4], %2 {strides = array<i32>} : memref<128x32xf32, #tpu.memory_space<vmem>>, vector<128x32xf32>,
    return
  }
}

module attributes {stable_mosaic.version = 11 : i64} {
  func.func @_small_mm_kernel(%arg0: memref<32x128xbf16, #tpu.memory_space<vmem>>, %arg1: memref<128x128xbf16, #tpu.memory_space<vmem>>, %arg2: memref<32x128xf32, #tpu.memory_space<vmem>>) attributes {dimension_semantics = [], scalar_prefetch = 0 : i64, scratch_operands = 0 : i64, tpu.core_type = #tpu.core_type<tc>} {
    %c0 = arith.constant 0 : index
    %c0_0 = arith.constant 0 : index
    %0 = vector.load %arg0[%c0, %c0_0] : memref<32x128xbf16, #tpu.memory_space<vmem>>, vector<32x128xbf16>
    %c0_1 = arith.constant 0 : index
    %c0_2 = arith.constant 0 : index
    %1 = vector.load %arg1[%c0_1, %c0_2] : memref<128x128xbf16, #tpu.memory_space<vmem>>, vector<128x128xbf16>
    %cst = arith.constant dense<0.000000e+00> : vector<32x128xf32>
    %2 = tpu.matmul %0, %1, %cst {dimension_numbers = #tpu.dot_dimension_numbers<[1], [0], [0], [1], [0, 0, 1, 1], [], []>} : vector<32x128xbf16>, vector<128x128xbf16>, vector<32x128xf32> -> vector<32x128xf32>
    %c0_3 = arith.constant 0 : index
    %c0_4 = arith.constant 0 : index
    %3 = vector.load %arg2[%c0_3, %c0_4] : memref<32x128xf32, #tpu.memory_space<vmem>>, vector<32x128xf32>
    tpu.vector_store %arg2[%c0_3, %c0_4], %2 {strides = array<i32>} : memref<32x128xf32, #tpu.memory_space<vmem>>, vector<32x128xf32>,
    return
  }
}

module attributes {stable_mosaic.version = 11 : i64} {
  func.func @_fc8_style_kernel(%arg0: memref<8x512xf32, #tpu.memory_space<vmem>>, %arg1: memref<8x512x512xbf16, #tpu.memory_space<vmem>>, %arg2: memref<8x1x512xf32, #tpu.memory_space<vmem>>, %arg3: memref<512x32xbf16, #tpu.memory_space<vmem>>, %arg4: memref<1x32xf32, #tpu.memory_space<vmem>>, %arg5: memref<8x32xf32, #tpu.memory_space<vmem>>) attributes {dimension_semantics = [], scalar_prefetch = 0 : i64, scratch_operands = 0 : i64, tpu.core_type = #tpu.core_type<tc>} {
    %c0 = arith.constant 0 : index
    %c0_0 = arith.constant 0 : index
    %0 = vector.load %arg0[%c0, %c0_0] : memref<8x512xf32, #tpu.memory_space<vmem>>, vector<8x512xf32>
    %1 = arith.mulf %0, %0 : vector<8x512xf32>
    %cst = arith.constant dense<0.000000e+00> : vector<8xf32>
    %2 = vector.multi_reduction <add>, %1, %cst [1] : vector<8x512xf32> to vector<8xf32>
    %3 = vector.shape_cast %2 : vector<8xf32> to vector<8x1xf32>
    %cst_1 = arith.constant 5.120000e+02 : f32
    %4 = vector.broadcast %cst_1 : f32 to vector<8x1xf32>
    %5 = arith.divf %3, %4 : vector<8x1xf32>
    %cst_2 = arith.constant 9.99999993E-9 : f32
    %6 = vector.broadcast %cst_2 : f32 to vector<8x1xf32>
    %7 = arith.addf %5, %6 : vector<8x1xf32>
    %8 = math.rsqrt %7 : vector<8x1xf32>
    %9 = vector.broadcast %8 : vector<8x1xf32> to vector<8x512xf32>
    %10 = arith.mulf %0, %9 : vector<8x512xf32>
    %c0_3 = arith.constant 0 : index
    %c0_4 = arith.constant 0 : index
    %c0_5 = arith.constant 0 : index
    %11 = vector.load %arg1[%c0_3, %c0_4, %c0_5] : memref<8x512x512xbf16, #tpu.memory_space<vmem>>, vector<1x512x512xbf16>
    %12 = vector.shape_cast %11 : vector<1x512x512xbf16> to vector<512x512xbf16>
    %c0_6 = arith.constant 0 : index
    %c0_7 = arith.constant 0 : index
    %c0_8 = arith.constant 0 : index
    %13 = vector.load %arg2[%c0_6, %c0_7, %c0_8] : memref<8x1x512xf32, #tpu.memory_space<vmem>>, vector<1x1x512xf32>
    %14 = vector.shape_cast %13 : vector<1x1x512xf32> to vector<1x512xf32>
    %15 = arith.truncf %10 : vector<8x512xf32> to vector<8x512xbf16>
    %cst_9 = arith.constant dense<0.000000e+00> : vector<8x512xf32>
    %16 = tpu.matmul %15, %12, %cst_9 {dimension_numbers = #tpu.dot_dimension_numbers<[1], [0], [0], [1], [0, 0, 1, 1], [], []>} : vector<8x512xbf16>, vector<512x512xbf16>, vector<8x512xf32> -> vector<8x512xf32>
    %17 = vector.broadcast %14 : vector<1x512xf32> to vector<8x512xf32>
    %18 = arith.addf %16, %17 : vector<8x512xf32>
    %cst_10 = arith.constant 0.000000e+00 : f32
    %19 = vector.broadcast %cst_10 : f32 to vector<8x512xf32>
    %20 = arith.cmpf oge, %18, %19 : vector<8x512xf32>
    %cst_11 = arith.constant 2.000000e-01 : f32
    %21 = vector.broadcast %cst_11 : f32 to vector<8x512xf32>
    %22 = arith.mulf %21, %18 : vector<8x512xf32>
    %23 = arith.select %20, %18, %22 : vector<8x512xi1>, vector<8x512xf32>
    %c1 = arith.constant 1 : index
    %c0_12 = arith.constant 0 : index
    %c0_13 = arith.constant 0 : index
    %24 = vector.load %arg1[%c1, %c0_12, %c0_13] : memref<8x512x512xbf16, #tpu.memory_space<vmem>>, vector<1x512x512xbf16>
    %25 = vector.shape_cast %24 : vector<1x512x512xbf16> to vector<512x512xbf16>
    %c1_14 = arith.constant 1 : index
    %c0_15 = arith.constant 0 : index
    %c0_16 = arith.constant 0 : index
    %26 = vector.load %arg2[%c1_14, %c0_15, %c0_16] : memref<8x1x512xf32, #tpu.memory_space<vmem>>, vector<1x1x512xf32>
    %27 = vector.shape_cast %26 : vector<1x1x512xf32> to vector<1x512xf32>
    %28 = arith.truncf %23 : vector<8x512xf32> to vector<8x512xbf16>
    %cst_17 = arith.constant dense<0.000000e+00> : vector<8x512xf32>
    %29 = tpu.matmul %28, %25, %cst_17 {dimension_numbers = #tpu.dot_dimension_numbers<[1], [0], [0], [1], [0, 0, 1, 1], [], []>} : vector<8x512xbf16>, vector<512x512xbf16>, vector<8x512xf32> -> vector<8x512xf32>
    %30 = vector.broadcast %27 : vector<1x512xf32> to vector<8x512xf32>
    %31 = arith.addf %29, %30 : vector<8x512xf32>
    %cst_18 = arith.constant 0.000000e+00 : f32
    %32 = vector.broadcast %cst_18 : f32 to vector<8x512xf32>
    %33 = arith.cmpf oge, %31, %32 : vector<8x512xf32>
    %cst_19 = arith.constant 2.000000e-01 : f32
    %34 = vector.broadcast %cst_19 : f32 to vector<8x512xf32>
    %35 = arith.mulf %34, %31 : vector<8x512xf32>
    %36 = arith.select %33, %31, %35 : vector<8x512xi1>, vector<8x512xf32>
    %c2 = arith.constant 2 : index
    %c0_20 = arith.constant 0 : index
    %c0_21 = arith.constant 0 : index
    %37 = vector.load %arg1[%c2, %c0_20, %c0_21] : memref<8x512x512xbf16, #tpu.memory_space<vmem>>, vector<1x512x512xbf16>
    %38 = vector.shape_cast %37 : vector<1x512x512xbf16> to vector<512x512xbf16>
    %c2_22 = arith.constant 2 : index
    %c0_23 = arith.constant 0 : index
    %c0_24 = arith.constant 0 : index
    %39 = vector.load %arg2[%c2_22, %c0_23, %c0_24] : memref<8x1x512xf32, #tpu.memory_space<vmem>>, vector<1x1x512xf32>
    %40 = vector.shape_cast %39 : vector<1x1x512xf32> to vector<1x512xf32>
    %41 = arith.truncf %36 : vector<8x512xf32> to vector<8x512xbf16>
    %cst_25 = arith.constant dense<0.000000e+00> : vector<8x512xf32>
    %42 = tpu.matmul %41, %38, %cst_25 {dimension_numbers = #tpu.dot_dimension_numbers<[1], [0], [0], [1], [0, 0, 1, 1], [], []>} : vector<8x512xbf16>, vector<512x512xbf16>, vector<8x512xf32> -> vector<8x512xf32>
    %43 = vector.broadcast %40 : vector<1x512xf32> to vector<8x512xf32>
    %44 = arith.addf %42, %43 : vector<8x512xf32>
    %cst_26 = arith.constant 0.000000e+00 : f32
    %45 = vector.broadcast %cst_26 : f32 to vector<8x512xf32>
    %46 = arith.cmpf oge, %44, %45 : vector<8x512xf32>
    %cst_27 = arith.constant 2.000000e-01 : f32
    %47 = vector.broadcast %cst_27 : f32 to vector<8x512xf32>
    %48 = arith.mulf %47, %44 : vector<8x512xf32>
    %49 = arith.select %46, %44, %48 : vector<8x512xi1>, vector<8x512xf32>
    %c3 = arith.constant 3 : index
    %c0_28 = arith.constant 0 : index
    %c0_29 = arith.constant 0 : index
    %50 = vector.load %arg1[%c3, %c0_28, %c0_29] : memref<8x512x512xbf16, #tpu.memory_space<vmem>>, vector<1x512x512xbf16>
    %51 = vector.shape_cast %50 : vector<1x512x512xbf16> to vector<512x512xbf16>
    %c3_30 = arith.constant 3 : index
    %c0_31 = arith.constant 0 : index
    %c0_32 = arith.constant 0 : index
    %52 = vector.load %arg2[%c3_30, %c0_31, %c0_32] : memref<8x1x512xf32, #tpu.memory_space<vmem>>, vector<1x1x512xf32>
    %53 = vector.shape_cast %52 : vector<1x1x512xf32> to vector<1x512xf32>
    %54 = arith.truncf %49 : vector<8x512xf32> to vector<8x512xbf16>
    %cst_33 = arith.constant dense<0.000000e+00> : vector<8x512xf32>
    %55 = tpu.matmul %54, %51, %cst_33 {dimension_numbers = #tpu.dot_dimension_numbers<[1], [0], [0], [1], [0, 0, 1, 1], [], []>} : vector<8x512xbf16>, vector<512x512xbf16>, vector<8x512xf32> -> vector<8x512xf32>
    %56 = vector.broadcast %53 : vector<1x512xf32> to vector<8x512xf32>
    %57 = arith.addf %55, %56 : vector<8x512xf32>
    %cst_34 = arith.constant 0.000000e+00 : f32
    %58 = vector.broadcast %cst_34 : f32 to vector<8x512xf32>
    %59 = arith.cmpf oge, %57, %58 : vector<8x512xf32>
    %cst_35 = arith.constant 2.000000e-01 : f32
    %60 = vector.broadcast %cst_35 : f32 to vector<8x512xf32>
    %61 = arith.mulf %60, %57 : vector<8x512xf32>
    %62 = arith.select %59, %57, %61 : vector<8x512xi1>, vector<8x512xf32>
    %c4 = arith.constant 4 : index
    %c0_36 = arith.constant 0 : index
    %c0_37 = arith.constant 0 : index
    %63 = vector.load %arg1[%c4, %c0_36, %c0_37] : memref<8x512x512xbf16, #tpu.memory_space<vmem>>, vector<1x512x512xbf16>
    %64 = vector.shape_cast %63 : vector<1x512x512xbf16> to vector<512x512xbf16>
    %c4_38 = arith.constant 4 : index
    %c0_39 = arith.constant 0 : index
    %c0_40 = arith.constant 0 : index
    %65 = vector.load %arg2[%c4_38, %c0_39, %c0_40] : memref<8x1x512xf32, #tpu.memory_space<vmem>>, vector<1x1x512xf32>
    %66 = vector.shape_cast %65 : vector<1x1x512xf32> to vector<1x512xf32>
    %67 = arith.truncf %62 : vector<8x512xf32> to vector<8x512xbf16>
    %cst_41 = arith.constant dense<0.000000e+00> : vector<8x512xf32>
    %68 = tpu.matmul %67, %64, %cst_41 {dimension_numbers = #tpu.dot_dimension_numbers<[1], [0], [0], [1], [0, 0, 1, 1], [], []>} : vector<8x512xbf16>, vector<512x512xbf16>, vector<8x512xf32> -> vector<8x512xf32>
    %69 = vector.broadcast %66 : vector<1x512xf32> to vector<8x512xf32>
    %70 = arith.addf %68, %69 : vector<8x512xf32>
    %cst_42 = arith.constant 0.000000e+00 : f32
    %71 = vector.broadcast %cst_42 : f32 to vector<8x512xf32>
    %72 = arith.cmpf oge, %70, %71 : vector<8x512xf32>
    %cst_43 = arith.constant 2.000000e-01 : f32
    %73 = vector.broadcast %cst_43 : f32 to vector<8x512xf32>
    %74 = arith.mulf %73, %70 : vector<8x512xf32>
    %75 = arith.select %72, %70, %74 : vector<8x512xi1>, vector<8x512xf32>
    %c5 = arith.constant 5 : index
    %c0_44 = arith.constant 0 : index
    %c0_45 = arith.constant 0 : index
    %76 = vector.load %arg1[%c5, %c0_44, %c0_45] : memref<8x512x512xbf16, #tpu.memory_space<vmem>>, vector<1x512x512xbf16>
    %77 = vector.shape_cast %76 : vector<1x512x512xbf16> to vector<512x512xbf16>
    %c5_46 = arith.constant 5 : index
    %c0_47 = arith.constant 0 : index
    %c0_48 = arith.constant 0 : index
    %78 = vector.load %arg2[%c5_46, %c0_47, %c0_48] : memref<8x1x512xf32, #tpu.memory_space<vmem>>, vector<1x1x512xf32>
    %79 = vector.shape_cast %78 : vector<1x1x512xf32> to vector<1x512xf32>
    %80 = arith.truncf %75 : vector<8x512xf32> to vector<8x512xbf16>
    %cst_49 = arith.constant dense<0.000000e+00> : vector<8x512xf32>
    %81 = tpu.matmul %80, %77, %cst_49 {dimension_numbers = #tpu.dot_dimension_numbers<[1], [0], [0], [1], [0, 0, 1, 1], [], []>} : vector<8x512xbf16>, vector<512x512xbf16>, vector<8x512xf32> -> vector<8x512xf32>
    %82 = vector.broadcast %79 : vector<1x512xf32> to vector<8x512xf32>
    %83 = arith.addf %81, %82 : vector<8x512xf32>
    %cst_50 = arith.constant 0.000000e+00 : f32
    %84 = vector.broadcast %cst_50 : f32 to vector<8x512xf32>
    %85 = arith.cmpf oge, %83, %84 : vector<8x512xf32>
    %cst_51 = arith.constant 2.000000e-01 : f32
    %86 = vector.broadcast %cst_51 : f32 to vector<8x512xf32>
    %87 = arith.mulf %86, %83 : vector<8x512xf32>
    %88 = arith.select %85, %83, %87 : vector<8x512xi1>, vector<8x512xf32>
    %c6 = arith.constant 6 : index
    %c0_52 = arith.constant 0 : index
    %c0_53 = arith.constant 0 : index
    %89 = vector.load %arg1[%c6, %c0_52, %c0_53] : memref<8x512x512xbf16, #tpu.memory_space<vmem>>, vector<1x512x512xbf16>
    %90 = vector.shape_cast %89 : vector<1x512x512xbf16> to vector<512x512xbf16>
    %c6_54 = arith.constant 6 : index
    %c0_55 = arith.constant 0 : index
    %c0_56 = arith.constant 0 : index
    %91 = vector.load %arg2[%c6_54, %c0_55, %c0_56] : memref<8x1x512xf32, #tpu.memory_space<vmem>>, vector<1x1x512xf32>
    %92 = vector.shape_cast %91 : vector<1x1x512xf32> to vector<1x512xf32>
    %93 = arith.truncf %88 : vector<8x512xf32> to vector<8x512xbf16>
    %cst_57 = arith.constant dense<0.000000e+00> : vector<8x512xf32>
    %94 = tpu.matmul %93, %90, %cst_57 {dimension_numbers = #tpu.dot_dimension_numbers<[1], [0], [0], [1], [0, 0, 1, 1], [], []>} : vector<8x512xbf16>, vector<512x512xbf16>, vector<8x512xf32> -> vector<8x512xf32>
    %95 = vector.broadcast %92 : vector<1x512xf32> to vector<8x512xf32>
    %96 = arith.addf %94, %95 : vector<8x512xf32>
    %cst_58 = arith.constant 0.000000e+00 : f32
    %97 = vector.broadcast %cst_58 : f32 to vector<8x512xf32>
    %98 = arith.cmpf oge, %96, %97 : vector<8x512xf32>
    %cst_59 = arith.constant 2.000000e-01 : f32
    %99 = vector.broadcast %cst_59 : f32 to vector<8x512xf32>
    %100 = arith.mulf %99, %96 : vector<8x512xf32>
    %101 = arith.select %98, %96, %100 : vector<8x512xi1>, vector<8x512xf32>
    %c7 = arith.constant 7 : index
    %c0_60 = arith.constant 0 : index
    %c0_61 = arith.constant 0 : index
    %102 = vector.load %arg1[%c7, %c0_60, %c0_61] : memref<8x512x512xbf16, #tpu.memory_space<vmem>>, vector<1x512x512xbf16>
    %103 = vector.shape_cast %102 : vector<1x512x512xbf16> to vector<512x512xbf16>
    %c7_62 = arith.constant 7 : index
    %c0_63 = arith.constant 0 : index
    %c0_64 = arith.constant 0 : index
    %104 = vector.load %arg2[%c7_62, %c0_63, %c0_64] : memref<8x1x512xf32, #tpu.memory_space<vmem>>, vector<1x1x512xf32>
    %105 = vector.shape_cast %104 : vector<1x1x512xf32> to vector<1x512xf32>
    %106 = arith.truncf %101 : vector<8x512xf32> to vector<8x512xbf16>
    %cst_65 = arith.constant dense<0.000000e+00> : vector<8x512xf32>
    %107 = tpu.matmul %106, %103, %cst_65 {dimension_numbers = #tpu.dot_dimension_numbers<[1], [0], [0], [1], [0, 0, 1, 1], [], []>} : vector<8x512xbf16>, vector<512x512xbf16>, vector<8x512xf32> -> vector<8x512xf32>
    %108 = vector.broadcast %105 : vector<1x512xf32> to vector<8x512xf32>
    %109 = arith.addf %107, %108 : vector<8x512xf32>
    %cst_66 = arith.constant 0.000000e+00 : f32
    %110 = vector.broadcast %cst_66 : f32 to vector<8x512xf32>
    %111 = arith.cmpf oge, %109, %110 : vector<8x512xf32>
    %cst_67 = arith.constant 2.000000e-01 : f32
    %112 = vector.broadcast %cst_67 : f32 to vector<8x512xf32>
    %113 = arith.mulf %112, %109 : vector<8x512xf32>
    %114 = arith.select %111, %109, %113 : vector<8x512xi1>, vector<8x512xf32>
    %115 = arith.truncf %114 : vector<8x512xf32> to vector<8x512xbf16>
    %c0_68 = arith.constant 0 : index
    %c0_69 = arith.constant 0 : index
    %116 = vector.load %arg3[%c0_68, %c0_69] : memref<512x32xbf16, #tpu.memory_space<vmem>>, vector<512x32xbf16>
    %cst_70 = arith.constant dense<0.000000e+00> : vector<8x32xf32>
    %117 = tpu.matmul %115, %116, %cst_70 {dimension_numbers = #tpu.dot_dimension_numbers<[1], [0], [0], [1], [0, 0, 1, 1], [], []>} : vector<8x512xbf16>, vector<512x32xbf16>, vector<8x32xf32> -> vector<8x32xf32>
    %c0_71 = arith.constant 0 : index
    %c0_72 = arith.constant 0 : index
    %118 = vector.load %arg4[%c0_71, %c0_72] : memref<1x32xf32, #tpu.memory_space<vmem>>, vector<1x32xf32>
    %119 = vector.broadcast %118 : vector<1x32xf32> to vector<8x32xf32>
    %120 = arith.addf %117, %119 : vector<8x32xf32>
    %cst_73 = arith.constant 0.000000e+00 : f32
    %121 = vector.broadcast %cst_73 : f32 to vector<8x32xf32>
    %122 = arith.cmpf oge, %120, %121 : vector<8x32xf32>
    %cst_74 = arith.constant 2.000000e-01 : f32
    %123 = vector.broadcast %cst_74 : f32 to vector<8x32xf32>
    %124 = arith.mulf %123, %120 : vector<8x32xf32>
    %125 = arith.select %122, %120, %124 : vector<8x32xi1>, vector<8x32xf32>
    %c0_75 = arith.constant 0 : index
    %c0_76 = arith.constant 0 : index
    %126 = vector.load %arg5[%c0_75, %c0_76] : memref<8x32xf32, #tpu.memory_space<vmem>>, vector<8x32xf32>
    tpu.vector_store %arg5[%c0_75, %c0_76], %125 {strides = array<i32>} : memref<8x32xf32, #tpu.memory_space<vmem>>, vector<8x32xf32>,
    return
  }
}

module attributes {stable_mosaic.version = 11 : i64} {
  func.func @_instnorm_kernel(%arg0: memref<256x64xf32, #tpu.memory_space<vmem>>, %arg1: memref<256x64xf32, #tpu.memory_space<vmem>>) attributes {dimension_semantics = [], scalar_prefetch = 0 : i64, scratch_operands = 0 : i64, tpu.core_type = #tpu.core_type<tc>} {
    %c0 = arith.constant 0 : index
    %c0_0 = arith.constant 0 : index
    %0 = vector.load %arg0[%c0, %c0_0] : memref<256x64xf32, #tpu.memory_space<vmem>>, vector<256x64xf32>
    %cst = arith.constant dense<0.000000e+00> : vector<256xf32>
    %1 = vector.multi_reduction <add>, %0, %cst [1] : vector<256x64xf32> to vector<256xf32>
    %2 = vector.shape_cast %1 : vector<256xf32> to vector<256x1xf32>
    %cst_1 = arith.constant 6.400000e+01 : f32
    %3 = vector.broadcast %cst_1 : f32 to vector<256x1xf32>
    %4 = arith.divf %2, %3 : vector<256x1xf32>
    %5 = vector.broadcast %4 : vector<256x1xf32> to vector<256x64xf32>
    %6 = arith.subf %0, %5 : vector<256x64xf32>
    %7 = arith.mulf %6, %6 : vector<256x64xf32>
    %cst_2 = arith.constant dense<0.000000e+00> : vector<256xf32>
    %8 = vector.multi_reduction <add>, %7, %cst_2 [1] : vector<256x64xf32> to vector<256xf32>
    %9 = vector.shape_cast %8 : vector<256xf32> to vector<256x1xf32>
    %cst_3 = arith.constant 6.400000e+01 : f32
    %10 = vector.broadcast %cst_3 : f32 to vector<256x1xf32>
    %11 = arith.divf %9, %10 : vector<256x1xf32>
    %12 = vector.broadcast %4 : vector<256x1xf32> to vector<256x64xf32>
    %13 = arith.subf %0, %12 : vector<256x64xf32>
    %cst_4 = arith.constant 9.99999974E-6 : f32
    %14 = vector.broadcast %cst_4 : f32 to vector<256x1xf32>
    %15 = arith.addf %11, %14 : vector<256x1xf32>
    %16 = math.rsqrt %15 : vector<256x1xf32>
    %17 = vector.broadcast %16 : vector<256x1xf32> to vector<256x64xf32>
    %18 = arith.mulf %13, %17 : vector<256x64xf32>
    %cst_5 = arith.constant 0.000000e+00 : f32
    %19 = vector.broadcast %cst_5 : f32 to vector<256x64xf32>
    %20 = arith.cmpf oge, %18, %19 : vector<256x64xf32>
    %cst_6 = arith.constant 0.00999999977 : f32
    %21 = vector.broadcast %cst_6 : f32 to vector<256x64xf32>
    %22 = arith.mulf %21, %18 : vector<256x64xf32>
    %23 = arith.select %20, %18, %22 : vector<256x64xi1>, vector<256x64xf32>
    %c0_7 = arith.constant 0 : index
    %c0_8 = arith.constant 0 : index
    %24 = vector.load %arg1[%c0_7, %c0_8] : memref<256x64xf32, #tpu.memory_space<vmem>>, vector<256x64xf32>
    tpu.vector_store %arg1[%c0_7, %c0_8], %23 {strides = array<i32>} : memref<256x64xf32, #tpu.memory_space<vmem>>, vector<256x64xf32>,
    return
  }
}

module attributes {stable_mosaic.version = 11 : i64} {
  func.func @_small_mm_kernel(%arg0: memref<32x1152xbf16, #tpu.memory_space<vmem>>, %arg1: memref<1152x128xbf16, #tpu.memory_space<vmem>>, %arg2: memref<32x128xf32, #tpu.memory_space<vmem>>) attributes {dimension_semantics = [], scalar_prefetch = 0 : i64, scratch_operands = 0 : i64, tpu.core_type = #tpu.core_type<tc>} {
    %c0 = arith.constant 0 : index
    %c0_0 = arith.constant 0 : index
    %0 = vector.load %arg0[%c0, %c0_0] : memref<32x1152xbf16, #tpu.memory_space<vmem>>, vector<32x1152xbf16>
    %c0_1 = arith.constant 0 : index
    %c0_2 = arith.constant 0 : index
    %1 = vector.load %arg1[%c0_1, %c0_2] : memref<1152x128xbf16, #tpu.memory_space<vmem>>, vector<1152x128xbf16>
    %cst = arith.constant dense<0.000000e+00> : vector<32x128xf32>
    %2 = tpu.matmul %0, %1, %cst {dimension_numbers = #tpu.dot_dimension_numbers<[1], [0], [0], [1], [0, 0, 1, 1], [], []>} : vector<32x1152xbf16>, vector<1152x128xbf16>, vector<32x128xf32> -> vector<32x128xf32>
    %c0_3 = arith.constant 0 : index
    %c0_4 = arith.constant 0 : index
    %3 = vector.load %arg2[%c0_3, %c0_4] : memref<32x128xf32, #tpu.memory_space<vmem>>, vector<32x128xf32>
    tpu.vector_store %arg2[%c0_3, %c0_4], %2 {strides = array<i32>} : memref<32x128xf32, #tpu.memory_space<vmem>>, vector<32x128xf32>,
    return
  }
}

module attributes {stable_mosaic.version = 11 : i64} {
  func.func @_selector_kernel(%arg0: memref<8x512xbf16, #tpu.memory_space<vmem>>, %arg1: memref<512x32xbf16, #tpu.memory_space<vmem>>, %arg2: memref<32x512xbf16, #tpu.memory_space<vmem>>, %arg3: memref<1x512xf32, #tpu.memory_space<vmem>>, %arg4: memref<32x512xbf16, #tpu.memory_space<vmem>>, %arg5: memref<1x512xf32, #tpu.memory_space<vmem>>, %arg6: memref<8x512xf32, #tpu.memory_space<vmem>>, %arg7: memref<8x512xf32, #tpu.memory_space<vmem>>) attributes {dimension_semantics = [], scalar_prefetch = 0 : i64, scratch_operands = 0 : i64, tpu.core_type = #tpu.core_type<tc>} {
    %c0 = arith.constant 0 : index
    %c0_0 = arith.constant 0 : index
    %0 = vector.load %arg0[%c0, %c0_0] : memref<8x512xbf16, #tpu.memory_space<vmem>>, vector<8x512xbf16>
    %c0_1 = arith.constant 0 : index
    %c0_2 = arith.constant 0 : index
    %1 = vector.load %arg1[%c0_1, %c0_2] : memref<512x32xbf16, #tpu.memory_space<vmem>>, vector<512x32xbf16>
    %cst = arith.constant dense<0.000000e+00> : vector<8x32xf32>
    %2 = tpu.matmul %0, %1, %cst {dimension_numbers = #tpu.dot_dimension_numbers<[1], [0], [0], [1], [0, 0, 1, 1], [], []>} : vector<8x512xbf16>, vector<512x32xbf16>, vector<8x32xf32> -> vector<8x32xf32>
    %cst_3 = arith.constant 0.000000e+00 : f32
    %3 = vector.broadcast %cst_3 : f32 to vector<8x32xf32>
    %4 = arith.maximumf %2, %3 : vector<8x32xf32>
    %5 = arith.truncf %4 : vector<8x32xf32> to vector<8x32xbf16>
    %c0_4 = arith.constant 0 : index
    %c0_5 = arith.constant 0 : index
    %6 = vector.load %arg2[%c0_4, %c0_5] : memref<32x512xbf16, #tpu.memory_space<vmem>>, vector<32x512xbf16>
    %cst_6 = arith.constant dense<0.000000e+00> : vector<8x512xf32>
    %7 = tpu.matmul %5, %6, %cst_6 {dimension_numbers = #tpu.dot_dimension_numbers<[1], [0], [0], [1], [0, 0, 1, 1], [], []>} : vector<8x32xbf16>, vector<32x512xbf16>, vector<8x512xf32> -> vector<8x512xf32>
    %c0_7 = arith.constant 0 : index
    %c0_8 = arith.constant 0 : index
    %8 = vector.load %arg3[%c0_7, %c0_8] : memref<1x512xf32, #tpu.memory_space<vmem>>, vector<1x512xf32>
    %9 = vector.broadcast %8 : vector<1x512xf32> to vector<8x512xf32>
    %10 = arith.addf %7, %9 : vector<8x512xf32>
    %c0_9 = arith.constant 0 : index
    %c0_10 = arith.constant 0 : index
    %11 = vector.load %arg4[%c0_9, %c0_10] : memref<32x512xbf16, #tpu.memory_space<vmem>>, vector<32x512xbf16>
    %cst_11 = arith.constant dense<0.000000e+00> : vector<8x512xf32>
    %12 = tpu.matmul %5, %11, %cst_11 {dimension_numbers = #tpu.dot_dimension_numbers<[1], [0], [0], [1], [0, 0, 1, 1], [], []>} : vector<8x32xbf16>, vector<32x512xbf16>, vector<8x512xf32> -> vector<8x512xf32>
    %c0_12 = arith.constant 0 : index
    %c0_13 = arith.constant 0 : index
    %13 = vector.load %arg5[%c0_12, %c0_13] : memref<1x512xf32, #tpu.memory_space<vmem>>, vector<1x512xf32>
    %14 = vector.broadcast %13 : vector<1x512xf32> to vector<8x512xf32>
    %15 = arith.addf %12, %14 : vector<8x512xf32>
    %16 = arith.maximumf %10, %15 : vector<8x512xf32>
    %17 = arith.subf %10, %16 : vector<8x512xf32>
    %18 = math.exp %17 : vector<8x512xf32>
    %19 = arith.subf %15, %16 : vector<8x512xf32>
    %20 = math.exp %19 : vector<8x512xf32>
    %21 = arith.addf %18, %20 : vector<8x512xf32>
    %22 = tpu.reciprocal %21 {approx = true} : vector<8x512xf32> -> vector<8x512xf32>
    %23 = arith.mulf %18, %22 : vector<8x512xf32>
    %c0_14 = arith.constant 0 : index
    %c0_15 = arith.constant 0 : index
    %24 = vector.load %arg6[%c0_14, %c0_15] : memref<8x512xf32, #tpu.memory_space<vmem>>, vector<8x512xf32>
    tpu.vector_store %arg6[%c0_14, %c0_15], %23 {strides = array<i32>} : memref<8x512xf32, #tpu.memory_space<vmem>>, vector<8x512xf32>,
    %25 = arith.mulf %20, %22 : vector<8x512xf32>
    %c0_16 = arith.constant 0 : index
    %c0_17 = arith.constant 0 : index
    %26 = vector.load %arg7[%c0_16, %c0_17] : memref<8x512xf32, #tpu.memory_space<vmem>>, vector<8x512xf32>
    tpu.vector_store %arg7[%c0_16, %c0_17], %25 {strides = array<i32>} : memref<8x512xf32, #tpu.memory_space<vmem>>, vector<8x512xf32>,
    return
  }
}

module attributes {stable_mosaic.version = 11 : i64} {
  func.func @_combine_kernel(%arg0: memref<4x1024xf32, #tpu.memory_space<vmem>>, %arg1: memref<4x1024xf32, #tpu.memory_space<vmem>>, %arg2: memref<4x1024xf32, #tpu.memory_space<vmem>>, %arg3: memref<4x1024xf32, #tpu.memory_space<vmem>>, %arg4: memref<4x1024xf32, #tpu.memory_space<vmem>>) attributes {dimension_semantics = [], scalar_prefetch = 0 : i64, scratch_operands = 0 : i64, tpu.core_type = #tpu.core_type<tc>} {
    %c0 = arith.constant 0 : index
    %c0_0 = arith.constant 0 : index
    %0 = vector.load %arg0[%c0, %c0_0] : memref<4x1024xf32, #tpu.memory_space<vmem>>, vector<4x1024xf32>
    %c0_1 = arith.constant 0 : index
    %c0_2 = arith.constant 0 : index
    %1 = vector.load %arg2[%c0_1, %c0_2] : memref<4x1024xf32, #tpu.memory_space<vmem>>, vector<4x1024xf32>
    %2 = arith.mulf %0, %1 : vector<4x1024xf32>
    %c0_3 = arith.constant 0 : index
    %c0_4 = arith.constant 0 : index
    %3 = vector.load %arg1[%c0_3, %c0_4] : memref<4x1024xf32, #tpu.memory_space<vmem>>, vector<4x1024xf32>
    %c0_5 = arith.constant 0 : index
    %c0_6 = arith.constant 0 : index
    %4 = vector.load %arg3[%c0_5, %c0_6] : memref<4x1024xf32, #tpu.memory_space<vmem>>, vector<4x1024xf32>
    %5 = arith.mulf %3, %4 : vector<4x1024xf32>
    %6 = arith.addf %2, %5 : vector<4x1024xf32>
    %c0_7 = arith.constant 0 : index
    %c0_8 = arith.constant 0 : index
    %7 = vector.load %arg4[%c0_7, %c0_8] : memref<4x1024xf32, #tpu.memory_space<vmem>>, vector<4x1024xf32>
    tpu.vector_store %arg4[%c0_7, %c0_8], %6 {strides = array<i32>} : memref<4x1024xf32, #tpu.memory_space<vmem>>, vector<4x1024xf32>,
    return
  }
}

module attributes {stable_mosaic.version = 11 : i64} {
  func.func @_small_mm_kernel(%arg0: memref<128x32xbf16, #tpu.memory_space<vmem>>, %arg1: memref<32x128xbf16, #tpu.memory_space<vmem>>, %arg2: memref<1x128xf32, #tpu.memory_space<vmem>>, %arg3: memref<128x128xf32, #tpu.memory_space<vmem>>) attributes {dimension_semantics = [], scalar_prefetch = 0 : i64, scratch_operands = 0 : i64, tpu.core_type = #tpu.core_type<tc>} {
    %c0 = arith.constant 0 : index
    %c0_0 = arith.constant 0 : index
    %0 = vector.load %arg0[%c0, %c0_0] : memref<128x32xbf16, #tpu.memory_space<vmem>>, vector<128x32xbf16>
    %c0_1 = arith.constant 0 : index
    %c0_2 = arith.constant 0 : index
    %1 = vector.load %arg1[%c0_1, %c0_2] : memref<32x128xbf16, #tpu.memory_space<vmem>>, vector<32x128xbf16>
    %cst = arith.constant dense<0.000000e+00> : vector<128x128xf32>
    %2 = tpu.matmul %0, %1, %cst {dimension_numbers = #tpu.dot_dimension_numbers<[1], [0], [0], [1], [0, 0, 1, 1], [], []>} : vector<128x32xbf16>, vector<32x128xbf16>, vector<128x128xf32> -> vector<128x128xf32>
    %c0_3 = arith.constant 0 : index
    %c0_4 = arith.constant 0 : index
    %3 = vector.load %arg2[%c0_3, %c0_4] : memref<1x128xf32, #tpu.memory_space<vmem>>, vector<1x128xf32>
    %4 = vector.broadcast %3 : vector<1x128xf32> to vector<128x128xf32>
    %5 = arith.addf %2, %4 : vector<128x128xf32>
    %c0_5 = arith.constant 0 : index
    %c0_6 = arith.constant 0 : index
    %6 = vector.load %arg3[%c0_5, %c0_6] : memref<128x128xf32, #tpu.memory_space<vmem>>, vector<128x128xf32>
    tpu.vector_store %arg3[%c0_5, %c0_6], %5 {strides = array<i32>} : memref<128x128xf32, #tpu.memory_space<vmem>>, vector<128x128xf32>,
    return
  }
}

module attributes {stable_mosaic.version = 11 : i64} {
  func.func @_small_mm_kernel(%arg0: memref<64x256xbf16, #tpu.memory_space<vmem>>, %arg1: memref<256x128xbf16, #tpu.memory_space<vmem>>, %arg2: memref<64x128xf32, #tpu.memory_space<vmem>>) attributes {dimension_semantics = [], scalar_prefetch = 0 : i64, scratch_operands = 0 : i64, tpu.core_type = #tpu.core_type<tc>} {
    %c0 = arith.constant 0 : index
    %c0_0 = arith.constant 0 : index
    %0 = vector.load %arg0[%c0, %c0_0] : memref<64x256xbf16, #tpu.memory_space<vmem>>, vector<64x256xbf16>
    %c0_1 = arith.constant 0 : index
    %c0_2 = arith.constant 0 : index
    %1 = vector.load %arg1[%c0_1, %c0_2] : memref<256x128xbf16, #tpu.memory_space<vmem>>, vector<256x128xbf16>
    %cst = arith.constant dense<0.000000e+00> : vector<64x128xf32>
    %2 = tpu.matmul %0, %1, %cst {dimension_numbers = #tpu.dot_dimension_numbers<[1], [0], [0], [1], [0, 0, 1, 1], [], []>} : vector<64x256xbf16>, vector<256x128xbf16>, vector<64x128xf32> -> vector<64x128xf32>
    %c0_3 = arith.constant 0 : index
    %c0_4 = arith.constant 0 : index
    %3 = vector.load %arg2[%c0_3, %c0_4] : memref<64x128xf32, #tpu.memory_space<vmem>>, vector<64x128xf32>
    tpu.vector_store %arg2[%c0_3, %c0_4], %2 {strides = array<i32>} : memref<64x128xf32, #tpu.memory_space<vmem>>, vector<64x128xf32>,
    return
  }
}

module attributes {stable_mosaic.version = 11 : i64} {
  func.func @_small_mm_kernel(%arg0: memref<32x64xbf16, #tpu.memory_space<vmem>>, %arg1: memref<64x512xbf16, #tpu.memory_space<vmem>>, %arg2: memref<32x512xf32, #tpu.memory_space<vmem>>) attributes {dimension_semantics = [], scalar_prefetch = 0 : i64, scratch_operands = 0 : i64, tpu.core_type = #tpu.core_type<tc>} {
    %c0 = arith.constant 0 : index
    %c0_0 = arith.constant 0 : index
    %0 = vector.load %arg0[%c0, %c0_0] : memref<32x64xbf16, #tpu.memory_space<vmem>>, vector<32x64xbf16>
    %c0_1 = arith.constant 0 : index
    %c0_2 = arith.constant 0 : index
    %1 = vector.load %arg1[%c0_1, %c0_2] : memref<64x512xbf16, #tpu.memory_space<vmem>>, vector<64x512xbf16>
    %cst = arith.constant dense<0.000000e+00> : vector<32x512xf32>
    %2 = tpu.matmul %0, %1, %cst {dimension_numbers = #tpu.dot_dimension_numbers<[1], [0], [0], [1], [0, 0, 1, 1], [], []>} : vector<32x64xbf16>, vector<64x512xbf16>, vector<32x512xf32> -> vector<32x512xf32>
    %c0_3 = arith.constant 0 : index
    %c0_4 = arith.constant 0 : index
    %3 = vector.load %arg2[%c0_3, %c0_4] : memref<32x512xf32, #tpu.memory_space<vmem>>, vector<32x512xf32>
    tpu.vector_store %arg2[%c0_3, %c0_4], %2 {strides = array<i32>} : memref<32x512xf32, #tpu.memory_space<vmem>>, vector<32x512xf32>,
    return
  }
}

module attributes {stable_mosaic.version = 11 : i64} {
  func.func @_instnorm_kernel(%arg0: memref<128x256xf32, #tpu.memory_space<vmem>>, %arg1: memref<128x256xf32, #tpu.memory_space<vmem>>) attributes {dimension_semantics = [], scalar_prefetch = 0 : i64, scratch_operands = 0 : i64, tpu.core_type = #tpu.core_type<tc>} {
    %c0 = arith.constant 0 : index
    %c0_0 = arith.constant 0 : index
    %0 = vector.load %arg0[%c0, %c0_0] : memref<128x256xf32, #tpu.memory_space<vmem>>, vector<128x256xf32>
    %cst = arith.constant dense<0.000000e+00> : vector<128xf32>
    %1 = vector.multi_reduction <add>, %0, %cst [1] : vector<128x256xf32> to vector<128xf32>
    %2 = vector.shape_cast %1 : vector<128xf32> to vector<128x1xf32>
    %cst_1 = arith.constant 2.560000e+02 : f32
    %3 = vector.broadcast %cst_1 : f32 to vector<128x1xf32>
    %4 = arith.divf %2, %3 : vector<128x1xf32>
    %5 = vector.broadcast %4 : vector<128x1xf32> to vector<128x256xf32>
    %6 = arith.subf %0, %5 : vector<128x256xf32>
    %7 = arith.mulf %6, %6 : vector<128x256xf32>
    %cst_2 = arith.constant dense<0.000000e+00> : vector<128xf32>
    %8 = vector.multi_reduction <add>, %7, %cst_2 [1] : vector<128x256xf32> to vector<128xf32>
    %9 = vector.shape_cast %8 : vector<128xf32> to vector<128x1xf32>
    %cst_3 = arith.constant 2.560000e+02 : f32
    %10 = vector.broadcast %cst_3 : f32 to vector<128x1xf32>
    %11 = arith.divf %9, %10 : vector<128x1xf32>
    %12 = vector.broadcast %4 : vector<128x1xf32> to vector<128x256xf32>
    %13 = arith.subf %0, %12 : vector<128x256xf32>
    %cst_4 = arith.constant 9.99999974E-6 : f32
    %14 = vector.broadcast %cst_4 : f32 to vector<128x1xf32>
    %15 = arith.addf %11, %14 : vector<128x1xf32>
    %16 = math.rsqrt %15 : vector<128x1xf32>
    %17 = vector.broadcast %16 : vector<128x1xf32> to vector<128x256xf32>
    %18 = arith.mulf %13, %17 : vector<128x256xf32>
    %cst_5 = arith.constant 0.000000e+00 : f32
    %19 = vector.broadcast %cst_5 : f32 to vector<128x256xf32>
    %20 = arith.cmpf oge, %18, %19 : vector<128x256xf32>
    %cst_6 = arith.constant 0.00999999977 : f32
    %21 = vector.broadcast %cst_6 : f32 to vector<128x256xf32>
    %22 = arith.mulf %21, %18 : vector<128x256xf32>
    %23 = arith.select %20, %18, %22 : vector<128x256xi1>, vector<128x256xf32>
    %c0_7 = arith.constant 0 : index
    %c0_8 = arith.constant 0 : index
    %24 = vector.load %arg1[%c0_7, %c0_8] : memref<128x256xf32, #tpu.memory_space<vmem>>, vector<128x256xf32>
    tpu.vector_store %arg1[%c0_7, %c0_8], %23 {strides = array<i32>} : memref<128x256xf32, #tpu.memory_space<vmem>>, vector<128x256xf32>,
    return
  }
}

module attributes {stable_mosaic.version = 11 : i64} {
  func.func @_small_mm_kernel(%arg0: memref<32x576xbf16, #tpu.memory_space<vmem>>, %arg1: memref<576x512xbf16, #tpu.memory_space<vmem>>, %arg2: memref<32x512xf32, #tpu.memory_space<vmem>>) attributes {dimension_semantics = [], scalar_prefetch = 0 : i64, scratch_operands = 0 : i64, tpu.core_type = #tpu.core_type<tc>} {
    %c0 = arith.constant 0 : index
    %c0_0 = arith.constant 0 : index
    %0 = vector.load %arg0[%c0, %c0_0] : memref<32x576xbf16, #tpu.memory_space<vmem>>, vector<32x576xbf16>
    %c0_1 = arith.constant 0 : index
    %c0_2 = arith.constant 0 : index
    %1 = vector.load %arg1[%c0_1, %c0_2] : memref<576x512xbf16, #tpu.memory_space<vmem>>, vector<576x512xbf16>
    %cst = arith.constant dense<0.000000e+00> : vector<32x512xf32>
    %2 = tpu.matmul %0, %1, %cst {dimension_numbers = #tpu.dot_dimension_numbers<[1], [0], [0], [1], [0, 0, 1, 1], [], []>} : vector<32x576xbf16>, vector<576x512xbf16>, vector<32x512xf32> -> vector<32x512xf32>
    %c0_3 = arith.constant 0 : index
    %c0_4 = arith.constant 0 : index
    %3 = vector.load %arg2[%c0_3, %c0_4] : memref<32x512xf32, #tpu.memory_space<vmem>>, vector<32x512xf32>
    tpu.vector_store %arg2[%c0_3, %c0_4], %2 {strides = array<i32>} : memref<32x512xf32, #tpu.memory_space<vmem>>, vector<32x512xf32>,
    return
  }
}

module attributes {stable_mosaic.version = 11 : i64} {
  func.func @_combine_kernel(%arg0: memref<16x1024xf32, #tpu.memory_space<vmem>>, %arg1: memref<16x1024xf32, #tpu.memory_space<vmem>>, %arg2: memref<16x1024xf32, #tpu.memory_space<vmem>>, %arg3: memref<16x1024xf32, #tpu.memory_space<vmem>>, %arg4: memref<16x1024xf32, #tpu.memory_space<vmem>>) attributes {dimension_semantics = [], scalar_prefetch = 0 : i64, scratch_operands = 0 : i64, tpu.core_type = #tpu.core_type<tc>} {
    %c0 = arith.constant 0 : index
    %c0_0 = arith.constant 0 : index
    %0 = vector.load %arg0[%c0, %c0_0] : memref<16x1024xf32, #tpu.memory_space<vmem>>, vector<16x1024xf32>
    %c0_1 = arith.constant 0 : index
    %c0_2 = arith.constant 0 : index
    %1 = vector.load %arg2[%c0_1, %c0_2] : memref<16x1024xf32, #tpu.memory_space<vmem>>, vector<16x1024xf32>
    %2 = arith.mulf %0, %1 : vector<16x1024xf32>
    %c0_3 = arith.constant 0 : index
    %c0_4 = arith.constant 0 : index
    %3 = vector.load %arg1[%c0_3, %c0_4] : memref<16x1024xf32, #tpu.memory_space<vmem>>, vector<16x1024xf32>
    %c0_5 = arith.constant 0 : index
    %c0_6 = arith.constant 0 : index
    %4 = vector.load %arg3[%c0_5, %c0_6] : memref<16x1024xf32, #tpu.memory_space<vmem>>, vector<16x1024xf32>
    %5 = arith.mulf %3, %4 : vector<16x1024xf32>
    %6 = arith.addf %2, %5 : vector<16x1024xf32>
    %c0_7 = arith.constant 0 : index
    %c0_8 = arith.constant 0 : index
    %7 = vector.load %arg4[%c0_7, %c0_8] : memref<16x1024xf32, #tpu.memory_space<vmem>>, vector<16x1024xf32>
    tpu.vector_store %arg4[%c0_7, %c0_8], %6 {strides = array<i32>} : memref<16x1024xf32, #tpu.memory_space<vmem>>, vector<16x1024xf32>,
    return
  }
}

module attributes {stable_mosaic.version = 11 : i64} {
  func.func @_small_mm_kernel(%arg0: memref<8x288xbf16, #tpu.memory_space<vmem>>, %arg1: memref<288x512xbf16, #tpu.memory_space<vmem>>, %arg2: memref<8x1xf32, #tpu.memory_space<vmem>>, %arg3: memref<8x512xf32, #tpu.memory_space<vmem>>) attributes {dimension_semantics = [], scalar_prefetch = 0 : i64, scratch_operands = 0 : i64, tpu.core_type = #tpu.core_type<tc>} {
    %c0 = arith.constant 0 : index
    %c0_0 = arith.constant 0 : index
    %0 = vector.load %arg0[%c0, %c0_0] : memref<8x288xbf16, #tpu.memory_space<vmem>>, vector<8x288xbf16>
    %c0_1 = arith.constant 0 : index
    %c0_2 = arith.constant 0 : index
    %1 = vector.load %arg1[%c0_1, %c0_2] : memref<288x512xbf16, #tpu.memory_space<vmem>>, vector<288x512xbf16>
    %cst = arith.constant dense<0.000000e+00> : vector<8x512xf32>
    %2 = tpu.matmul %0, %1, %cst {dimension_numbers = #tpu.dot_dimension_numbers<[1], [0], [0], [1], [0, 0, 1, 1], [], []>} : vector<8x288xbf16>, vector<288x512xbf16>, vector<8x512xf32> -> vector<8x512xf32>
    %c0_3 = arith.constant 0 : index
    %c0_4 = arith.constant 0 : index
    %3 = vector.load %arg2[%c0_3, %c0_4] : memref<8x1xf32, #tpu.memory_space<vmem>>, vector<8x1xf32>
    %4 = vector.broadcast %3 : vector<8x1xf32> to vector<8x512xf32>
    %5 = arith.addf %2, %4 : vector<8x512xf32>
    %c0_5 = arith.constant 0 : index
    %c0_6 = arith.constant 0 : index
    %6 = vector.load %arg3[%c0_5, %c0_6] : memref<8x512xf32, #tpu.memory_space<vmem>>, vector<8x512xf32>
    tpu.vector_store %arg3[%c0_5, %c0_6], %5 {strides = array<i32>} : memref<8x512xf32, #tpu.memory_space<vmem>>, vector<8x512xf32>,
    return
  }
}

</mosaic_0001>

<bundles_post_ra>
// kernel: n2_apply.21
= control target key start
LH: loop header
LB: loop body
LE: loop exit
PB: predicated region body
PF: predicated region fallthrough
CT: control target
= control target key end

     0   :  { %v154_v1 = vmov 0   ;;  %vm46_vm0 = vcmask 130048   ;;  %s205_s1 = inlined_call_operand.vmem [shape: bf16[16,512], index: 1, kind: input, shape index: {}]   ;;  %s206_s2 = inlined_call_operand.vmem [shape: f32[8,1], index: 2, kind: input, shape index: {}]   ;;  %s207_s0 = inlined_call_operand.vmem [shape: bf16[8,16], index: 0, kind: input, shape index: {}]   ;;  %s208_s3 = inlined_call_operand.vmem [shape: f32[8,512], index: 3, kind: output, shape index: {}]  }
   0x1   :  { %v148_v0 = vld [vmem:[%s205_s1 + $0x4] ss:$16 sps:$4 sm:$0xff]   ;;  %82 = vmatprep.mubr.bf16.mxu0 %v154_v1  ;;  %123 = vmatprep.mubr.bf16.mxu1 %v154_v1  ;;  %v150_v2 = vld [vmem:[%s205_s1 + $0xc] ss:$16 sps:$4 sm:$0xff]   ;;  %v152_v3 = vld [vmem:[%s205_s1] ss:$16 sps:$4 sm:$0xff]  }
   0x2   :  { %147 = vset.pattern.permute.xlu0 %v154_v1  ;;  %50 = vmatprep.subr.bf16.mxu0 %v148_v0  ;;  %v153_v4 = vld [vmem:[%s205_s1 + $0x8] ss:$16 sps:$4 sm:$0xff]   ;;  %v20_v5 = vld [vmem:[%s206_s2] sm:$0xff] }
   0x3   :  { %91 = vmatprep.subr.bf16.mxu1 %v150_v2  ;;  %51 = vmatpush1.bf16.msra.mxu0 %v152_v3  ;;  %v15_v6 = vld [vmem:[%s207_s0] sm:$0xf] }
   0x4   :  { %92 = vmatpush1.bf16.msra.mxu1 %v153_v4  ;;  %23 = vperm.xlu0 %147, %v20_v5  }
   0x6   :  { %144 = vmatmul.mubr.msk.bf16.vlgmr.msra.gmra.mrb[0].mxu0 %vm46_vm0, %v15_v6 }
   0x7   :  { %145 = vmatmul.mubr.msk.bf16.vlgmr.msra.gmra.mrb[0].mxu1 %vm46_vm0, %v15_v6 }
  0x83   :  { %v24_v7 = vpop.permute.xlu0 %23 }
  0xd9   :  { %v84_v8 = vpop.f32.mrb[0].mxu0 }
  0xda   :  { %v125_v9 = vpop.f32.mrb[0].mxu1  ;;  %v85_v10 = vadd.f32 %v84_v8, %v24_v7  ;;  %v86_v12 = vpop.f32.mrb[1].mxu0 }
  0xdb   :  { %v126_v11 = vadd.f32 %v125_v9, %v24_v7  ;;  %v127_v13 = vpop.f32.mrb[1].mxu1  ;;  %v87_v14 = vadd.f32 %v86_v12, %v24_v7  ;;  %v88_v16 = vpop.f32.mrb[2].mxu0 }
  0xdc   :  { %v128_v15 = vadd.f32 %v127_v13, %v24_v7  ;;  %v129_v17 = vpop.f32.mrb[2].mxu1  ;;  %132 = vst [vmem:[%s208_s3] sm:$0xff] %v85_v10  ;;  %v89_v18 = vpop.f32.mrb[3].mxu0 }
  0xdd   :  { %134 = vst [vmem:[%s208_s3 + $0x10] sm:$0xff] %v126_v11  ;;  %v130_v19 = vpop.f32.mrb[3].mxu1  ;;  %133 = vst [vmem:[%s208_s3 + $0x8] sm:$0xff] %v87_v14 }
  0xde   :  { %135 = vst [vmem:[%s208_s3 + $0x18] sm:$0xff] %v128_v15 }

// kernel: n2_apply.22
= control target key start
LH: loop header
LB: loop body
LE: loop exit
PB: predicated region body
PF: predicated region fallthrough
CT: control target
= control target key end

     0   :  { %vm346_vm0 = vcmask 654336   ;;  %s858_s1 = inlined_call_operand.vmem [shape: bf16[208,512], index: 1, kind: input, shape index: {}]   ;;  %s859_s0 = inlined_call_operand.vmem [shape: bf16[32,208], index: 0, kind: input, shape index: {}]   ;;  %s860_s2 = inlined_call_operand.vmem [shape: f32[32,512], index: 2, kind: output, shape index: {}]  }
   0x1   :  { %v539_v0 = vld [vmem:[%s858_s1 + $0x4] ss:$16 sps:$4 sm:$0xff]   ;;  %v541_v1 = vld [vmem:[%s858_s1 + $0xc] ss:$16 sps:$4 sm:$0xff]   ;;  %v543_v2 = vld [vmem:[%s858_s1] ss:$16 sps:$4 sm:$0xff]  }
   0x2   :  { %353 = vmatprep.subr.bf16.mxu0 %v539_v0  ;;  %v544_v3 = vld [vmem:[%s858_s1 + $0x8] ss:$16 sps:$4 sm:$0xff]   ;;  %406 = vmatprep.subr.bf16.mxu1 %v541_v1  ;;  %v545_v4 = vld [vmem:[%s858_s1 + $0x24] ss:$16 sps:$4 sm:$0xff]   ;;  %v547_v5 = vld [vmem:[%s858_s1 + $0x2c] ss:$16 sps:$4 sm:$0xff]  }
   0x3   :  { %354 = vmatpush1.bf16.msra.mxu0 %v543_v2  ;;  %407 = vmatpush1.bf16.msra.mxu1 %v544_v3  ;;  %v549_v6 = vld [vmem:[%s858_s1 + $0x20] ss:$16 sps:$4 sm:$0xff]   ;;  %v550_v7 = vld [vmem:[%s858_s1 + $0x28] ss:$16 sps:$4 sm:$0xff]   ;;  %v551_v8 = vld [vmem:[%s858_s1 + $0x44] ss:$16 sps:$4 sm:$0xff]  }
   0x4   :  { %355 = vmatprep.subr.bf16.mxu0 %v545_v4  ;;  %408 = vmatprep.subr.bf16.mxu1 %v547_v5  ;;  %v553_v9 = vld [vmem:[%s858_s1 + $0x4c] ss:$16 sps:$4 sm:$0xff]   ;;  %v555_v10 = vld [vmem:[%s858_s1 + $0x40] ss:$16 sps:$4 sm:$0xff]   ;;  %v556_v11 = vld [vmem:[%s858_s1 + $0x48] ss:$16 sps:$4 sm:$0xff]  }
   0x5   :  { %v557_v12 = vld [vmem:[%s858_s1 + $0x64] ss:$16 sps:$4 sm:$0xff]   ;;  %v559_v13 = vld [vmem:[%s858_s1 + $0x6c] ss:$16 sps:$4 sm:$0xff]   ;;  %v561_v14 = vld [vmem:[%s858_s1 + $0x60] ss:$16 sps:$4 sm:$0xff]  }
   0x6   :  { %v562_v15 = vld [vmem:[%s858_s1 + $0x68] ss:$16 sps:$4 sm:$0xff]   ;;  %v563_v16 = vld [vmem:[%s858_s1 + $0x84] ss:$16 sps:$4 sm:$0xff]   ;;  %v565_v17 = vld [vmem:[%s858_s1 + $0x8c] ss:$16 sps:$4 sm:$0xff]  }
   0x7   :  { %356 = vmatpush1.bf16.msra.mxu0 %v549_v6  ;;  %409 = vmatpush1.bf16.msra.mxu1 %v550_v7  ;;  %v567_v18 = vld [vmem:[%s858_s1 + $0x80] ss:$16 sps:$4 sm:$0xff]   ;;  %v568_v19 = vld [vmem:[%s858_s1 + $0x88] ss:$16 sps:$4 sm:$0xff]   ;;  %v569_v20 = vld [vmem:[%s858_s1 + $0xa4] ss:$16 sps:$4 sm:$0xff]  }
   0x8   :  { %357 = vmatprep.subr.bf16.mxu0 %v551_v8  ;;  %410 = vmatprep.subr.bf16.mxu1 %v553_v9  ;;  %v571_v21 = vld [vmem:[%s858_s1 + $0xac] ss:$16 sps:$4 sm:$0xff]   ;;  %v573_v22 = vld [vmem:[%s858_s1 + $0xa0] ss:$16 sps:$4 sm:$0xff]   ;;  %v574_v23 = vld [vmem:[%s858_s1 + $0xa8] ss:$16 sps:$4 sm:$0xff]  }
   0x9   :  { %v575_v24 = vld [vmem:[%s858_s1 + $0xc4] ss:$16 sps:$4 sm:$0xff]   ;;  %v577_v25 = vld [vmem:[%s858_s1 + $0xcc] ss:$16 sps:$4 sm:$0xff]   ;;  %v579_v26 = vld [vmem:[%s858_s1 + $0xc0] ss:$16 sps:$4 sm:$0xff]  }
   0xa   :  { %v580_v27 = vld [vmem:[%s858_s1 + $0xc8] ss:$16 sps:$4 sm:$0xff]   ;;  %v581_v28 = vld [vmem:[%s858_s1 + $0xe4] ss:$16 sps:$4 sm:$0xff]   ;;  %v583_v29 = vld [vmem:[%s858_s1 + $0xec] ss:$16 sps:$4 sm:$0xff]  }
   0xb   :  { %358 = vmatpush1.bf16.msra.mxu0 %v555_v10  ;;  %411 = vmatpush1.bf16.msra.mxu1 %v556_v11  ;;  %v585_v30 = vld [vmem:[%s858_s1 + $0xe0] ss:$16 sps:$4 sm:$0xff]   ;;  %v586_v31 = vld [vmem:[%s858_s1 + $0xe8] ss:$16 sps:$4 sm:$0xff]   ;;  %v587_v32 = vld [vmem:[%s858_s1 + $0x104] ss:$16 sps:$4 sm:$0xff]  }
   0xc   :  { %359 = vmatprep.subr.bf16.mxu0 %v557_v12  ;;  %412 = vmatprep.subr.bf16.mxu1 %v559_v13  ;;  %v589_v33 = vld [vmem:[%s858_s1 + $0x10c] ss:$16 sps:$4 sm:$0xff]   ;;  %v591_v34 = vld [vmem:[%s858_s1 + $0x100] ss:$16 sps:$4 sm:$0xff]   ;;  %v592_v35 = vld [vmem:[%s858_s1 + $0x108] ss:$16 sps:$4 sm:$0xff]  }
   0xd   :  { %v593_v36 = vld [vmem:[%s858_s1 + $0x124] ss:$16 sps:$4 sm:$0xff]   ;;  %v595_v37 = vld [vmem:[%s858_s1 + $0x12c] ss:$16 sps:$4 sm:$0xff]   ;;  %v597_v38 = vld [vmem:[%s858_s1 + $0x120] ss:$16 sps:$4 sm:$0xff]  }
   0xe   :  { %v619_v39 = vld [vmem:[%s859_s0 + $0x4] ss:$8 sps:$4 sm:$0xff]   ;;  %v598_v40 = vld [vmem:[%s858_s1 + $0x128] ss:$16 sps:$4 sm:$0xff]   ;;  %v603_v43 = vld [vmem:[%s858_s1 + $0x140] ss:$16 sps:$4 sm:$0xff]  }
   0xf   :  { %360 = vmatpush1.bf16.msra.mxu0 %v561_v14  ;;  %413 = vmatpush1.bf16.msra.mxu1 %v562_v15  ;;  %v599_v41 = vld [vmem:[%s858_s1 + $0x144] ss:$16 sps:$4 sm:$0xff]   ;;  %v601_v42 = vld [vmem:[%s858_s1 + $0x14c] ss:$16 sps:$4 sm:$0xff]   ;;  %v604_v44 = vld [vmem:[%s858_s1 + $0x148] ss:$16 sps:$4 sm:$0xff]  }
  0x10   :  { %361 = vmatprep.subr.bf16.mxu0 %v563_v16  ;;  %414 = vmatprep.subr.bf16.mxu1 %v565_v17  ;;  %v605_v45 = vld [vmem:[%s858_s1 + $0x164] ss:$16 sps:$4 sm:$0xff]   ;;  %v607_v46 = vld [vmem:[%s858_s1 + $0x16c] ss:$16 sps:$4 sm:$0xff]   ;;  %v609_v47 = vld [vmem:[%s858_s1 + $0x160] ss:$16 sps:$4 sm:$0xff]  }
  0x11   :  { %535 = vmatprep.mubr.msk.bf16.mxu0 %vm346_vm0, %v619_v39  ;;  %537 = vmatprep.mubr.msk.bf16.mxu1 %vm346_vm0, %v619_v39  ;;  %v610_v48 = vld [vmem:[%s858_s1 + $0x168] ss:$16 sps:$4 sm:$0xff]   ;;  %v611_v49 = vld [vmem:[%s858_s1 + $0x184] ss:$16 sps:$4 sm:$0xff]   ;;  %v613_v50 = vld [vmem:[%s858_s1 + $0x18c] ss:$16 sps:$4 sm:$0xff]  }
  0x12   :  { %v615_v51 = vld [vmem:[%s858_s1 + $0x180] ss:$16 sps:$4 sm:$0xff]   ;;  %v616_v52 = vld [vmem:[%s858_s1 + $0x188] ss:$16 sps:$4 sm:$0xff]   ;;  %v620_v54 = vld [vmem:[%s859_s0 + $0x14] ss:$8 sps:$4 sm:$0xff]  }
  0x13   :  { %362 = vmatpush1.bf16.msra.mxu0 %v567_v18  ;;  %415 = vmatpush1.bf16.msra.mxu1 %v568_v19  ;;  %v617_v53 = vld [vmem:[%s859_s0] ss:$8 sps:$4 sm:$0xff]   ;;  %v622_v55 = vld [vmem:[%s859_s0 + $0x10] ss:$8 sps:$4 sm:$0xff]  }
  0x14   :  { %363 = vmatprep.subr.bf16.mxu0 %v569_v20  ;;  %416 = vmatprep.subr.bf16.mxu1 %v571_v21 }
  0x17   :  { %364 = vmatpush1.bf16.msra.mxu0 %v573_v22  ;;  %417 = vmatpush1.bf16.msra.mxu1 %v574_v23 }
  0x18   :  { %365 = vmatprep.subr.bf16.mxu0 %v575_v24  ;;  %418 = vmatprep.subr.bf16.mxu1 %v577_v25 }
  0x1b   :  { %366 = vmatpush1.bf16.msra.mxu0 %v579_v26  ;;  %419 = vmatpush1.bf16.msra.mxu1 %v580_v27 }
  0x1c   :  { %367 = vmatprep.subr.bf16.mxu0 %v581_v28  ;;  %420 = vmatprep.subr.bf16.mxu1 %v583_v29 }
  0x1f   :  { %368 = vmatpush1.bf16.msra.mxu0 %v585_v30  ;;  %421 = vmatpush1.bf16.msra.mxu1 %v586_v31 }
  0x20   :  { %369 = vmatprep.subr.bf16.mxu0 %v587_v32  ;;  %422 = vmatprep.subr.bf16.mxu1 %v589_v33 }
  0x23   :  { %370 = vmatpush1.bf16.msra.mxu0 %v591_v34  ;;  %423 = vmatpush1.bf16.msra.mxu1 %v592_v35 }
  0x24   :  { %371 = vmatprep.subr.bf16.mxu0 %v593_v36  ;;  %424 = vmatprep.subr.bf16.mxu1 %v595_v37 }
  0x27   :  { %372 = vmatpush1.bf16.msra.mxu0 %v597_v38  ;;  %425 = vmatpush1.bf16.msra.mxu1 %v598_v40 }
  0x28   :  { %373 = vmatprep.subr.bf16.mxu0 %v599_v41  ;;  %426 = vmatprep.subr.bf16.mxu1 %v601_v42 }
  0x2b   :  { %374 = vmatpush1.bf16.msra.mxu0 %v603_v43  ;;  %427 = vmatpush1.bf16.msra.mxu1 %v604_v44 }
  0x2c   :  { %375 = vmatprep.subr.bf16.mxu0 %v605_v45  ;;  %428 = vmatprep.subr.bf16.mxu1 %v607_v46 }
  0x2f   :  { %376 = vmatpush1.bf16.msra.mxu0 %v609_v47  ;;  %429 = vmatpush1.bf16.msra.mxu1 %v610_v48 }
  0x30   :  { %377 = vmatprep.subr.bf16.mxu0 %v611_v49  ;;  %430 = vmatprep.subr.bf16.mxu1 %v613_v50 }
  0x33   :  { %378 = vmatpush1.bf16.msra.mxu0 %v615_v51  ;;  %431 = vmatpush1.bf16.msra.mxu1 %v616_v52 }
  0x36   :  { %386 = vmatmul.mubr.bf16.vlgmr.msra.gmra.mrb[0].mxu0 %v617_v53  ;;  %439 = vmatmul.mubr.bf16.vlgmr.msra.gmra.mrb[0].mxu1 %v617_v53 }
  0x37   :  { %536 = vmatprep.mubr.msk.bf16.mxu0 %vm346_vm0, %v620_v54  ;;  %538 = vmatprep.mubr.msk.bf16.mxu1 %vm346_vm0, %v620_v54 }
  0x3e   :  { %396 = vmatmul.mubr.bf16.gmra.mrb[4].mxu0 %v622_v55  ;;  %449 = vmatmul.mubr.bf16.gmra.mrb[4].mxu1 %v622_v55 }
 0x109   :  { %v387_v56 = vpop.f32.mrb[0].mxu0  ;;  %v440_v57 = vpop.f32.mrb[0].mxu1 }
 0x10a   :  { %459 = vst [vmem:[%s860_s2] sm:$0xff] %v387_v56  ;;  %461 = vst [vmem:[%s860_s2 + $0x10] sm:$0xff] %v440_v57  ;;  %v389_v58 = vpop.f32.mrb[1].mxu0  ;;  %v442_v59 = vpop.f32.mrb[1].mxu1 }
 0x10b   :  { %460 = vst [vmem:[%s860_s2 + $0x8] sm:$0xff] %v389_v58  ;;  %462 = vst [vmem:[%s860_s2 + $0x18] sm:$0xff] %v442_v59  ;;  %v391_v60 = vpop.f32.mrb[2].mxu0  ;;  %v444_v61 = vpop.f32.mrb[2].mxu1 }
 0x10c   :  { %463 = vst [vmem:[%s860_s2 + $0x20] sm:$0xff] %v391_v60  ;;  %465 = vst [vmem:[%s860_s2 + $0x30] sm:$0xff] %v444_v61  ;;  %v393_v62 = vpop.f32.mrb[3].mxu0  ;;  %v446_v63 = vpop.f32.mrb[3].mxu1 }
 0x10d   :  { %464 = vst [vmem:[%s860_s2 + $0x28] sm:$0xff] %v393_v62  ;;  %466 = vst [vmem:[%s860_s2 + $0x38] sm:$0xff] %v446_v63 }
 0x111   :  { %v397_v0 = vpop.f32.mrb[4].mxu0  ;;  %v450_v1 = vpop.f32.mrb[4].mxu1 }
 0x112   :  { %467 = vst [vmem:[%s860_s2 + $0x40] sm:$0xff] %v397_v0  ;;  %469 = vst [vmem:[%s860_s2 + $0x50] sm:$0xff] %v450_v1  ;;  %v399_v2 = vpop.f32.mrb[5].mxu0  ;;  %v452_v3 = vpop.f32.mrb[5].mxu1 }
 0x113   :  { %468 = vst [vmem:[%s860_s2 + $0x48] sm:$0xff] %v399_v2  ;;  %470 = vst [vmem:[%s860_s2 + $0x58] sm:$0xff] %v452_v3  ;;  %v401_v4 = vpop.f32.mrb[6].mxu0  ;;  %v454_v5 = vpop.f32.mrb[6].mxu1 }
 0x114   :  { %471 = vst [vmem:[%s860_s2 + $0x60] sm:$0xff] %v401_v4  ;;  %473 = vst [vmem:[%s860_s2 + $0x70] sm:$0xff] %v454_v5  ;;  %v403_v6 = vpop.f32.mrb[7].mxu0  ;;  %v456_v7 = vpop.f32.mrb[7].mxu1 }
 0x115   :  { %472 = vst [vmem:[%s860_s2 + $0x68] sm:$0xff] %v403_v6  ;;  %474 = vst [vmem:[%s860_s2 + $0x78] sm:$0xff] %v456_v7 }

// kernel: n2_apply.23
= control target key start
LH: loop header
LB: loop body
LE: loop exit
PB: predicated region body
PF: predicated region fallthrough
CT: control target
= control target key end

     0   :  { %v583_v1 = vmov 0   ;;  %vm283_vm0 = vcmask 261120   ;;  %s746_s1 = inlined_call_operand.vmem [shape: bf16[288,128], index: 1, kind: input, shape index: {}]   ;;  %s747_s0 = inlined_call_operand.vmem [shape: bf16[64,288], index: 0, kind: input, shape index: {}]   ;;  %s748_s2 = inlined_call_operand.vmem [shape: f32[64,1], index: 2, kind: input, shape index: {}]   ;;  %s749_s3 = inlined_call_operand.vmem [shape: f32[64,128], index: 3, kind: output, shape index: {}]  }
   0x1   :  { %v549_v0 = vld [vmem:[%s746_s1 + $0x40] sm:$0xff]   ;;  %548 = vset.pattern.permute.xlu1 %v583_v1  ;;  %547 = vset.pattern.permute.xlu0 %v583_v1  ;;  %v551_v3 = vld [vmem:[%s746_s1 + $0x48] sm:$0xff]   ;;  %v553_v5 = vld [vmem:[%s746_s1 + $0x50] sm:$0xff]  }
   0x2   :  { %v550_v2 = vld [vmem:[%s746_s1] sm:$0xff]   ;;  %472 = vmatprep.subr.bf16.mxu0 %v549_v0  ;;  %530 = vmatprep.subr.bf16.mxu1 %v549_v0  ;;  %v552_v4 = vld [vmem:[%s746_s1 + $0x8] sm:$0xff]   ;;  %v554_v6 = vld [vmem:[%s746_s1 + $0x10] sm:$0xff]  }
   0x3   :  { %473 = vmatpush3.bf16.msra.mxu0 %v550_v2  ;;  %538 = vmatpush3.bf16.msra.mxu1 %v550_v2  ;;  %v555_v7 = vld [vmem:[%s746_s1 + $0x58] sm:$0xff]   ;;  %v557_v9 = vld [vmem:[%s746_s1 + $0x60] sm:$0xff]   ;;  %v559_v11 = vld [vmem:[%s746_s1 + $0x68] sm:$0xff]  }
   0x4   :  { %474 = vmatprep.subr.bf16.mxu0 %v551_v3  ;;  %531 = vmatprep.subr.bf16.mxu1 %v551_v3  ;;  %v556_v8 = vld [vmem:[%s746_s1 + $0x18] sm:$0xff]   ;;  %v558_v10 = vld [vmem:[%s746_s1 + $0x20] sm:$0xff]   ;;  %v560_v14 = vld [vmem:[%s746_s1 + $0x28] sm:$0xff]  }
   0x5   :  { %v567_v12 = vld [vmem:[%s747_s0 + $0x4] ss:$12 sps:$4 sm:$0xff]   ;;  %v570_v13 = vld [vmem:[%s747_s0 + $0x4c] ss:$12 sps:$4 sm:$0xff]   ;;  %v568_v23 = vld [vmem:[%s747_s0 + $0x48] ss:$12 sps:$4 sm:$0xff]  }
   0x6   :  { %v561_v15 = vld [vmem:[%s746_s1 + $0x70] sm:$0xff]   ;;  %328 = vmatprep.mubr.bf16.mxu0 %v567_v12  ;;  %352 = vmatprep.mubr.bf16.mxu1 %v570_v13  ;;  %v563_v17 = vld [vmem:[%s746_s1 + $0x78] sm:$0xff]   ;;  %v67_v20 = vld [vmem:[%s748_s2] sm:$0xff] }
   0x7   :  { %475 = vmatpush3.bf16.msra.mxu0 %v552_v4  ;;  %539 = vmatpush3.bf16.msra.mxu1 %v552_v4  ;;  %v562_v16 = vld [vmem:[%s746_s1 + $0x30] sm:$0xff]   ;;  %v564_v18 = vld [vmem:[%s746_s1 + $0x38] sm:$0xff]   ;;  %v571_v21 = vld [vmem:[%s746_s1 + $0x80] sm:$0xff]  }
   0x8   :  { %476 = vmatprep.subr.bf16.mxu0 %v553_v5  ;;  %532 = vmatprep.subr.bf16.mxu1 %v553_v5  ;;  %v69_v19 = vld [vmem:[%s748_s2 + $0x10] sm:$0xff]  ;;  %v565_v22 = vld [vmem:[%s747_s0] ss:$12 sps:$4 sm:$0xff]   ;;  %v70_v24 = vld [vmem:[%s748_s2 + $0x18] sm:$0xff] }
   0x9   :  { %87 = vperm.xlu1 %548, %v69_v19   ;;  %77 = vperm.xlu0 %547, %v67_v20   ;;  %v68_v25 = vld [vmem:[%s748_s2 + $0x8] sm:$0xff]  ;;  %v71_v30 = vld [vmem:[%s748_s2 + $0x20] sm:$0xff]  ;;  %v74_v33 = vld [vmem:[%s748_s2 + $0x38] sm:$0xff] }
   0xa   :  { %v573_v26 = vld [vmem:[%s747_s0 + $0x1c] ss:$12 sps:$4 sm:$0xff]   ;;  %v576_v31 = vld [vmem:[%s747_s0 + $0x18] ss:$12 sps:$4 sm:$0xff]   ;;  %v577_v32 = vld [vmem:[%s747_s0 + $0x20] ss:$12 sps:$4 sm:$0xff]  }
   0xb   :  { %477 = vmatpush3.bf16.msra.mxu0 %v554_v6  ;;  %540 = vmatpush3.bf16.msra.mxu1 %v554_v6  ;;  %v572_v27 = vld [vmem:[%s746_s1 + $0x88] sm:$0xff]   ;;  %v73_v34 = vld [vmem:[%s748_s2 + $0x30] sm:$0xff]  ;;  %v580_v36 = vld [vmem:[%s747_s0 + $0x38] ss:$12 sps:$4 sm:$0xff]  }
   0xc   :  { %478 = vmatprep.subr.bf16.mxu0 %v555_v7  ;;  %533 = vmatprep.subr.bf16.mxu1 %v555_v7  ;;  %v575_v28 = vld [vmem:[%s747_s0 + $0x8] ss:$12 sps:$4 sm:$0xff]   ;;  %v581_v37 = vld [vmem:[%s747_s0 + $0x30] ss:$12 sps:$4 sm:$0xff]  }
   0xd   :  { %92 = vperm.xlu1 %548, %v70_v24   ;;  %82 = vperm.xlu0 %547, %v68_v25   ;;  %v72_v29 = vld [vmem:[%s748_s2 + $0x28] sm:$0xff]  ;;  %v578_v35 = vld [vmem:[%s747_s0 + $0x34] ss:$12 sps:$4 sm:$0xff]   ;;  %v582_v38 = vld [vmem:[%s747_s0 + $0x50] ss:$12 sps:$4 sm:$0xff]  }
   0xf   :  { %479 = vmatpush3.bf16.msra.mxu0 %v556_v8  ;;  %541 = vmatpush3.bf16.msra.mxu1 %v556_v8 }
  0x10   :  { %480 = vmatprep.subr.bf16.mxu0 %v557_v9  ;;  %534 = vmatprep.subr.bf16.mxu1 %v557_v9 }
  0x11   :  { %102 = vperm.xlu1 %548, %v72_v29   ;;  %97 = vperm.xlu0 %547, %v71_v30  }
  0x13   :  { %481 = vmatpush3.bf16.msra.mxu0 %v558_v10  ;;  %542 = vmatpush3.bf16.msra.mxu1 %v558_v10 }
  0x14   :  { %482 = vmatprep.subr.bf16.mxu0 %v559_v11  ;;  %535 = vmatprep.subr.bf16.mxu1 %v559_v11 }
  0x15   :  { %112 = vperm.xlu1 %548, %v74_v33   ;;  %107 = vperm.xlu0 %547, %v73_v34  }
  0x17   :  { %483 = vmatpush3.bf16.msra.mxu0 %v560_v14  ;;  %543 = vmatpush3.bf16.msra.mxu1 %v560_v14 }
  0x18   :  { %484 = vmatprep.subr.bf16.mxu0 %v561_v15  ;;  %536 = vmatprep.subr.bf16.mxu1 %v561_v15 }
  0x1b   :  { %485 = vmatpush3.bf16.msra.mxu0 %v562_v16  ;;  %544 = vmatpush3.bf16.msra.mxu1 %v562_v16 }
  0x1c   :  { %486 = vmatprep.subr.bf16.mxu0 %v563_v17  ;;  %537 = vmatprep.subr.bf16.mxu1 %v563_v17 }
  0x1f   :  { %487 = vmatpush3.bf16.msra.mxu0 %v564_v18  ;;  %545 = vmatpush3.bf16.msra.mxu1 %v564_v18 }
  0x20   :  { %518 = vmatprep.subr.bf16.mxu1 %v571_v21 }
  0x22   :  { %329 = vmatmul.mubr.bf16.vlgmr.msra.gmra.mrb[0].mxu0 %v565_v22  ;;  %353 = vmatmul.mubr.bf16.vlgmr.msra.gmra.mrb[0].mxu1 %v568_v23 }
  0x23   :  { %519 = vmatpush3.bf16.msra.mxu1 %v571_v21  ;;  %336 = vmatprep.mubr.bf16.mxu0 %v573_v26 }
  0x24   :  { %520 = vmatprep.subr.bf16.mxu1 %v572_v27  ;;  %522 = vmatprep.mubr.msk.bf16.mxu1 %vm283_vm0, %v575_v28 }
  0x27   :  { %521 = vmatpush3.bf16.msra.mxu1 %v572_v27 }
  0x2a   :  { %337 = vmatmul.mubr.bf16.gmra.mrb[4].mxu0 %v576_v31  ;;  %523 = vmatmul.mubr.msk.bf16.vlgmr.msra.gmra.mrb[4].mxu1 %vm283_vm0, %v577_v32 }
  0x2b   :  { %344 = vmatprep.mubr.bf16.mxu0 %v578_v35  ;;  %526 = vmatprep.mubr.msk.bf16.mxu1 %vm283_vm0, %v580_v36 }
  0x32   :  { %345 = vmatmul.mubr.bf16.gmra.mrb[8].mxu0 %v581_v37  ;;  %527 = vmatmul.mubr.msk.bf16.gmra.mrb[8].mxu1 %vm283_vm0, %v582_v38 }
  0x88   :  { %v88_v39 = vpop.permute.xlu1 %87  ;;  %v78_v40 = vpop.permute.xlu0 %77 }
  0x8c   :  { %v93_v41 = vpop.permute.xlu1 %92  ;;  %v83_v42 = vpop.permute.xlu0 %82 }
  0x90   :  { %v98_v55 = vpop.permute.xlu0 %97  ;;  %v103_v56 = vpop.permute.xlu1 %102 }
  0x94   :  { %v108_v5 = vpop.permute.xlu0 %107  ;;  %v113_v9 = vpop.permute.xlu1 %112 }
  0xf5   :  { %v488_v43 = vpop.f32.mrb[0].mxu0  ;;  %v506_v44 = vpop.f32.mrb[0].mxu1 }
  0xf6   :  { %v489_v45 = vpop.f32.mrb[1].mxu0  ;;  %v507_v46 = vpop.f32.mrb[1].mxu1 }
  0xf7   :  { %v490_v47 = vadd.f32 %v489_v45, %v488_v43  ;;  %v491_v48 = vpop.f32.mrb[2].mxu0  ;;  %v508_v49 = vadd.f32 %v507_v46, %v506_v44  ;;  %v509_v50 = vpop.f32.mrb[2].mxu1 }
  0xf8   :  { %v492_v51 = vpop.f32.mrb[3].mxu0  ;;  %v510_v52 = vpop.f32.mrb[3].mxu1 }
  0xf9   :  { %v493_v53 = vadd.f32 %v492_v51, %v491_v48  ;;  %v511_v54 = vadd.f32 %v510_v52, %v509_v50  ;;  %v331_v59 = vadd.f32 %v490_v47, %v78_v40  ;;  %v355_v12 = vadd.f32 %v508_v49, %v108_v5 }
  0xfb   :  { %v334_v2 = vadd.f32 %v493_v53, %v83_v42  ;;  %v358_v16 = vadd.f32 %v511_v54, %v113_v9 }
  0xfd   :  { %v494_v57 = vpop.f32.mrb[4].mxu0  ;;  %v524_v58 = vpop.f32.mrb[4].mxu1 }
  0xfe   :  { %v495_v60 = vpop.f32.mrb[5].mxu0  ;;  %v395_v61 = vpop.f32.mrb[5].mxu1 }
  0xff   :  { %v496_v62 = vadd.f32 %v495_v60, %v494_v57  ;;  %v396_v63 = vadd.f32 %v395_v61, %v331_v59  ;;  %v497_v0 = vpop.f32.mrb[6].mxu0  ;;  %v525_v1 = vpop.f32.mrb[6].mxu1 }
 0x100   :  { %v498_v3 = vpop.f32.mrb[7].mxu0  ;;  %v398_v4 = vpop.f32.mrb[7].mxu1 }
 0x101   :  { %v339_v6 = vadd.f32 %v496_v62, %v88_v39  ;;  %426 = vst [vmem:[%s749_s3] sm:$0xff] %v396_v63  ;;  %v499_v7 = vadd.f32 %v498_v3, %v497_v0  ;;  %v399_v8 = vadd.f32 %v398_v4, %v334_v2 }
 0x103   :  { %v404_v10 = vadd.f32 %v524_v58, %v339_v6  ;;  %v342_v11 = vadd.f32 %v499_v7, %v93_v41  ;;  %427 = vst [vmem:[%s749_s3 + $0x8] sm:$0xff] %v399_v8 }
 0x105   :  { %428 = vst [vmem:[%s749_s3 + $0x10] sm:$0xff] %v404_v10  ;;  %v407_v13 = vadd.f32 %v525_v1, %v342_v11  ;;  %v500_v14 = vpop.f32.mrb[8].mxu0  ;;  %v528_v15 = vpop.f32.mrb[8].mxu1 }
 0x106   :  { %v420_v17 = vadd.f32 %v528_v15, %v355_v12  ;;  %v501_v18 = vpop.f32.mrb[9].mxu0  ;;  %v411_v19 = vpop.f32.mrb[9].mxu1 }
 0x107   :  { %429 = vst [vmem:[%s749_s3 + $0x18] sm:$0xff] %v407_v13  ;;  %v502_v20 = vadd.f32 %v501_v18, %v500_v14  ;;  %v503_v21 = vpop.f32.mrb[10].mxu0  ;;  %v529_v22 = vpop.f32.mrb[10].mxu1 }
 0x108   :  { %432 = vst [vmem:[%s749_s3 + $0x30] sm:$0xff] %v420_v17  ;;  %v423_v23 = vadd.f32 %v529_v22, %v358_v16  ;;  %v504_v24 = vpop.f32.mrb[11].mxu0  ;;  %v414_v25 = vpop.f32.mrb[11].mxu1 }
 0x109   :  { %v347_v26 = vadd.f32 %v502_v20, %v98_v55  ;;  %v505_v27 = vadd.f32 %v504_v24, %v503_v21 }
 0x10a   :  { %433 = vst [vmem:[%s749_s3 + $0x38] sm:$0xff] %v423_v23 }
 0x10b   :  { %v412_v28 = vadd.f32 %v411_v19, %v347_v26  ;;  %v350_v29 = vadd.f32 %v505_v27, %v103_v56 }
 0x10d   :  { %430 = vst [vmem:[%s749_s3 + $0x20] sm:$0xff] %v412_v28  ;;  %v415_v30 = vadd.f32 %v414_v25, %v350_v29 }
 0x10f   :  { %431 = vst [vmem:[%s749_s3 + $0x28] sm:$0xff] %v415_v30 }

// kernel: n2_apply.24
= control target key start
LH: loop header
LB: loop body
LE: loop exit
PB: predicated region body
PF: predicated region fallthrough
CT: control target
= control target key end

     0   :  { %v935_v1 = vmov 0   ;;  %vm475_vm0 = vcmask 523264   ;;  %vm683_vm1 = vcmask 261120   ;;  %s1190_s1 = inlined_call_operand.vmem [shape: bf16[576,32], index: 1, kind: input, shape index: {}]   ;;  %s1191_s0 = inlined_call_operand.vmem [shape: bf16[64,576], index: 0, kind: input, shape index: {}]   ;;  %s1192_s2 = inlined_call_operand.vmem [shape: f32[64,1], index: 2, kind: input, shape index: {}]   ;;  %s1193_s3 = inlined_call_operand.vmem [shape: f32[64,32], index: 3, kind: output, shape index: {}]  }
   0x1   :  { %v871_v0 = vld [vmem:[%s1190_s1 + $0x40] sm:$0xff]   ;;  %869 = vset.pattern.permute.xlu0 %v935_v1  ;;  %870 = vset.pattern.permute.xlu1 %v935_v1  ;;  %v875_v5 = vld [vmem:[%s1190_s1 + $0x48] sm:$0xff]   ;;  %v879_v9 = vld [vmem:[%s1190_s1 + $0x50] sm:$0xff]  }
   0x2   :  { %v872_v2 = vld [vmem:[%s1190_s1 + $0xc0] sm:$0xff]   ;;  %756 = vmatprep.subr.bf16.mxu0 %v871_v0  ;;  %v876_v6 = vld [vmem:[%s1190_s1 + $0xc8] sm:$0xff]   ;;  %v880_v10 = vld [vmem:[%s1190_s1 + $0xd0] sm:$0xff]  }
   0x3   :  { %v873_v3 = vld [vmem:[%s1190_s1] sm:$0xff]   ;;  %796 = vmatprep.subr.bf16.mxu1 %v872_v2  ;;  %v877_v7 = vld [vmem:[%s1190_s1 + $0x8] sm:$0xff]   ;;  %v881_v11 = vld [vmem:[%s1190_s1 + $0x10] sm:$0xff]  }
   0x4   :  { %v874_v4 = vld [vmem:[%s1190_s1 + $0x80] sm:$0xff]   ;;  %757 = vmatpush3.bf16.msra.mxu0 %v873_v3  ;;  %v878_v8 = vld [vmem:[%s1190_s1 + $0x88] sm:$0xff]   ;;  %v882_v12 = vld [vmem:[%s1190_s1 + $0x90] sm:$0xff]  }
   0x5   :  { %797 = vmatpush3.bf16.msra.mxu1 %v874_v4  ;;  %758 = vmatprep.subr.bf16.mxu0 %v875_v5  ;;  %v883_v13 = vld [vmem:[%s1190_s1 + $0x58] sm:$0xff]   ;;  %v887_v17 = vld [vmem:[%s1190_s1 + $0x60] sm:$0xff]   ;;  %v891_v21 = vld [vmem:[%s1190_s1 + $0x68] sm:$0xff]  }
   0x6   :  { %798 = vmatprep.subr.bf16.mxu1 %v876_v6  ;;  %v884_v14 = vld [vmem:[%s1190_s1 + $0xd8] sm:$0xff]   ;;  %v888_v18 = vld [vmem:[%s1190_s1 + $0xe0] sm:$0xff]   ;;  %v892_v22 = vld [vmem:[%s1190_s1 + $0xe8] sm:$0xff]  }
   0x7   :  { %v885_v15 = vld [vmem:[%s1190_s1 + $0x18] sm:$0xff]   ;;  %v889_v19 = vld [vmem:[%s1190_s1 + $0x20] sm:$0xff]   ;;  %v893_v23 = vld [vmem:[%s1190_s1 + $0x28] sm:$0xff]  }
   0x8   :  { %759 = vmatpush3.bf16.msra.mxu0 %v877_v7  ;;  %v886_v16 = vld [vmem:[%s1190_s1 + $0x98] sm:$0xff]   ;;  %v890_v20 = vld [vmem:[%s1190_s1 + $0xa0] sm:$0xff]   ;;  %v894_v24 = vld [vmem:[%s1190_s1 + $0xa8] sm:$0xff]  }
   0x9   :  { %799 = vmatpush3.bf16.msra.mxu1 %v878_v8  ;;  %760 = vmatprep.subr.bf16.mxu0 %v879_v9  ;;  %v895_v25 = vld [vmem:[%s1190_s1 + $0x70] sm:$0xff]   ;;  %v899_v29 = vld [vmem:[%s1190_s1 + $0x78] sm:$0xff]   ;;  %v908_v36 = vld [vmem:[%s1191_s0 + $0xc] ss:$20 sps:$4 sm:$0xff]  }
   0xa   :  { %800 = vmatprep.subr.bf16.mxu1 %v880_v10  ;;  %v896_v26 = vld [vmem:[%s1190_s1 + $0xf0] sm:$0xff]   ;;  %v900_v30 = vld [vmem:[%s1190_s1 + $0xf8] sm:$0xff]   ;;  %v909_v37 = vld [vmem:[%s1190_s1 + $0x100] sm:$0xff]   ;;  %585 = vmatprep.mubr.bf16.mxu1 %v908_v36 }
   0xb   :  { %v897_v27 = vld [vmem:[%s1190_s1 + $0x30] sm:$0xff]   ;;  %v901_v31 = vld [vmem:[%s1190_s1 + $0x38] sm:$0xff]   ;;  %v910_v38 = vld [vmem:[%s1191_s0 + $0x2c] ss:$20 sps:$4 sm:$0xff]  }
   0xc   :  { %761 = vmatpush3.bf16.msra.mxu0 %v881_v11  ;;  %v898_v28 = vld [vmem:[%s1190_s1 + $0xb0] sm:$0xff]   ;;  %v902_v32 = vld [vmem:[%s1190_s1 + $0xb8] sm:$0xff]   ;;  %v916_v40 = vld [vmem:[%s1190_s1 + $0x108] sm:$0xff]  }
   0xd   :  { %801 = vmatpush3.bf16.msra.mxu1 %v882_v12  ;;  %762 = vmatprep.subr.bf16.mxu0 %v883_v13  ;;  %v903_v33 = vld [vmem:[%s1191_s0] ss:$20 sps:$4 sm:$0xff]   ;;  %v905_v34 = vld [vmem:[%s1191_s0 + $0x4] ss:$20 sps:$4 sm:$0xff]   ;;  %v906_v35 = vld [vmem:[%s1191_s0 + $0x8] ss:$20 sps:$4 sm:$0xff]  }
   0xe   :  { %802 = vmatprep.subr.bf16.mxu1 %v884_v14  ;;  %520 = vmatprep.mubr.bf16.mxu0 %v905_v34  ;;  %v912_v39 = vld [vmem:[%s1191_s0 + $0x34] ss:$20 sps:$4 sm:$0xff]   ;;  %v915_v42 = vld [vmem:[%s1191_s0 + $0x30] ss:$20 sps:$4 sm:$0xff]   ;;  %v930_v46 = vld [vmem:[%s1190_s1 + $0x118] sm:$0xff]  }
   0xf   :  { %v914_v41 = vld [vmem:[%s1191_s0 + $0x28] ss:$20 sps:$4 sm:$0xff]   ;;  %v923_v45 = vld [vmem:[%s1190_s1 + $0x110] sm:$0xff]   ;;  %v922_v48 = vld [vmem:[%s1191_s0 + $0x58] ss:$20 sps:$4 sm:$0xff]  }
  0x10   :  { %763 = vmatpush3.bf16.msra.mxu0 %v885_v15  ;;  %v917_v43 = vld [vmem:[%s1191_s0 + $0x54] ss:$20 sps:$4 sm:$0xff]   ;;  %v919_v44 = vld [vmem:[%s1191_s0 + $0x5c] ss:$20 sps:$4 sm:$0xff]   ;;  %v926_v50 = vld [vmem:[%s1191_s0 + $0x84] ss:$20 sps:$4 sm:$0xff]  }
  0x11   :  { %803 = vmatpush3.bf16.msra.mxu1 %v886_v16  ;;  %764 = vmatprep.subr.bf16.mxu0 %v887_v17  ;;  %v921_v47 = vld [vmem:[%s1191_s0 + $0x50] ss:$20 sps:$4 sm:$0xff]   ;;  %v112_v53 = vld [vmem:[%s1192_s2 + $0x8] sm:$0xff]  ;;  %v114_v54 = vld [vmem:[%s1192_s2 + $0x18] sm:$0xff] }
  0x12   :  { %804 = vmatprep.subr.bf16.mxu1 %v888_v18  ;;  %v924_v49 = vld [vmem:[%s1191_s0 + $0x7c] ss:$20 sps:$4 sm:$0xff]   ;;  %v111_v51 = vld [vmem:[%s1192_s2] sm:$0xff]  ;;  %v928_v55 = vld [vmem:[%s1191_s0 + $0x78] ss:$20 sps:$4 sm:$0xff]  }
  0x13   :  { %v113_v52 = vld [vmem:[%s1192_s2 + $0x10] sm:$0xff]  ;;  %121 = vperm.xlu0 %869, %v111_v51   ;;  %v115_v58 = vld [vmem:[%s1192_s2 + $0x20] sm:$0xff]  ;;  %v116_v60 = vld [vmem:[%s1192_s2 + $0x28] sm:$0xff] }
  0x14   :  { %765 = vmatpush3.bf16.msra.mxu0 %v889_v19  ;;  %131 = vperm.xlu1 %870, %v113_v52   ;;  %v929_v56 = vld [vmem:[%s1191_s0 + $0x80] ss:$20 sps:$4 sm:$0xff]   ;;  %v931_v57 = vld [vmem:[%s1191_s0 + $0x10] ss:$20 sps:$4 sm:$0xff]   ;;  %v118_v62 = vld [vmem:[%s1192_s2 + $0x38] sm:$0xff] }
  0x15   :  { %805 = vmatpush3.bf16.msra.mxu1 %v890_v20  ;;  %766 = vmatprep.subr.bf16.mxu0 %v891_v21  ;;  %v932_v59 = vld [vmem:[%s1191_s0 + $0x60] ss:$20 sps:$4 sm:$0xff]   ;;  %v933_v63 = vld [vmem:[%s1191_s0 + $0x38] ss:$20 sps:$4 sm:$0xff]   ;;  %v934_v0 = vld [vmem:[%s1191_s0 + $0x88] ss:$20 sps:$4 sm:$0xff]  }
  0x16   :  { %806 = vmatprep.subr.bf16.mxu1 %v892_v22  ;;  %v117_v61 = vld [vmem:[%s1192_s2 + $0x30] sm:$0xff] }
  0x17   :  { %126 = vperm.xlu0 %869, %v112_v53  }
  0x18   :  { %767 = vmatpush3.bf16.msra.mxu0 %v893_v23  ;;  %136 = vperm.xlu1 %870, %v114_v54  }
  0x19   :  { %807 = vmatpush3.bf16.msra.mxu1 %v894_v24  ;;  %768 = vmatprep.subr.bf16.mxu0 %v895_v25 }
  0x1a   :  { %808 = vmatprep.subr.bf16.mxu1 %v896_v26 }
  0x1b   :  { %141 = vperm.xlu0 %869, %v115_v58  }
  0x1c   :  { %769 = vmatpush3.bf16.msra.mxu0 %v897_v27  ;;  %146 = vperm.xlu1 %870, %v116_v60  }
  0x1d   :  { %809 = vmatpush3.bf16.msra.mxu1 %v898_v28  ;;  %770 = vmatprep.subr.bf16.mxu0 %v899_v29 }
  0x1e   :  { %810 = vmatprep.subr.bf16.mxu1 %v900_v30 }
  0x1f   :  { %151 = vperm.xlu0 %869, %v117_v61  }
  0x20   :  { %771 = vmatpush3.bf16.msra.mxu0 %v901_v31  ;;  %156 = vperm.xlu1 %870, %v118_v62  }
  0x21   :  { %811 = vmatpush3.bf16.msra.mxu1 %v902_v32  ;;  %844 = vmatprep.subr.bf16.mxu0 %v909_v37 }
  0x22   :  { %860 = vmatprep.subr.bf16.mxu1 %v909_v37 }
  0x23   :  { %521 = vmatmul.mubr.bf16.vlgmr.msra.gmra.mrb[0].mxu0 %v903_v33 }
  0x24   :  { %586 = vmatmul.mubr.bf16.vlgmr.msra.gmra.mrb[0].mxu1 %v906_v35  ;;  %845 = vmatpush3.bf16.msra.mxu0 %v909_v37 }
  0x25   :  { %864 = vmatpush3.bf16.msra.mxu1 %v909_v37  ;;  %528 = vmatprep.mubr.bf16.mxu0 %v910_v38 }
  0x26   :  { %593 = vmatprep.mubr.bf16.mxu1 %v912_v39  ;;  %846 = vmatprep.subr.bf16.mxu0 %v916_v40 }
  0x27   :  { %861 = vmatprep.subr.bf16.mxu1 %v916_v40 }
  0x28   :  { %847 = vmatpush3.bf16.msra.mxu0 %v916_v40 }
  0x29   :  { %865 = vmatpush3.bf16.msra.mxu1 %v916_v40  ;;  %848 = vmatprep.subr.bf16.mxu0 %v923_v45 }
  0x2a   :  { %862 = vmatprep.subr.bf16.mxu1 %v923_v45 }
  0x2b   :  { %529 = vmatmul.mubr.bf16.gmra.mrb[4].mxu0 %v914_v41 }
  0x2c   :  { %594 = vmatmul.mubr.bf16.gmra.mrb[4].mxu1 %v915_v42  ;;  %536 = vmatprep.mubr.bf16.mxu0 %v917_v43 }
  0x2d   :  { %601 = vmatprep.mubr.bf16.mxu1 %v919_v44  ;;  %849 = vmatpush3.bf16.msra.mxu0 %v923_v45 }
  0x2e   :  { %866 = vmatpush3.bf16.msra.mxu1 %v923_v45  ;;  %850 = vmatprep.subr.bf16.mxu0 %v930_v46 }
  0x2f   :  { %863 = vmatprep.subr.bf16.mxu1 %v930_v46 }
  0x31   :  { %851 = vmatpush3.bf16.msra.mxu0 %v930_v46 }
  0x32   :  { %867 = vmatpush3.bf16.msra.mxu1 %v930_v46 }
  0x33   :  { %537 = vmatmul.mubr.bf16.gmra.mrb[8].mxu0 %v921_v47 }
  0x34   :  { %602 = vmatmul.mubr.bf16.gmra.mrb[8].mxu1 %v922_v48  ;;  %544 = vmatprep.mubr.bf16.mxu0 %v924_v49 }
  0x35   :  { %609 = vmatprep.mubr.bf16.mxu1 %v926_v50 }
  0x3b   :  { %545 = vmatmul.mubr.bf16.gmra.mrb[12].mxu0 %v928_v55 }
  0x3c   :  { %610 = vmatmul.mubr.bf16.gmra.mrb[12].mxu1 %v929_v56  ;;  %852 = vmatprep.mubr.msk.bf16.mxu0 %vm475_vm0, %v931_v57 }
  0x3d   :  { %856 = vmatprep.mubr.msk.bf16.mxu1 %vm475_vm0, %v932_v59 }
  0x43   :  { %853 = vmatmul.mubr.msk.bf16.vlgmr.msra.gmra.mrb[16].mxu0 %vm475_vm0, %v933_v63 }
  0x44   :  { %857 = vmatmul.mubr.msk.bf16.vlgmr.msra.gmra.mrb[16].mxu1 %vm475_vm0, %v934_v0 }
  0x92   :  { %v122_v1 = vpop.permute.xlu0 %121 }
  0x93   :  { %v132_v18 = vpop.permute.xlu1 %131 }
  0x96   :  { %v127_v3 = vpop.permute.xlu0 %126 }
  0x97   :  { %v137_v33 = vpop.permute.xlu1 %136 }
  0x9a   :  { %v142_v36 = vpop.permute.xlu0 %141 }
  0x9b   :  { %v147_v50 = vpop.permute.xlu1 %146 }
  0x9e   :  { %v152_v54 = vpop.permute.xlu0 %151 }
  0xf6   :  { %v772_v2 = vpop.f32.mrb[0].mxu0 }
  0xf7   :  { %v812_v4 = vpop.f32.mrb[0].mxu1  ;;  %v773_v5 = vpop.f32.mrb[1].mxu0 }
  0xf8   :  { %v774_v6 = vadd.f32 %v773_v5, %v772_v2  ;;  %v813_v7 = vpop.f32.mrb[1].mxu1  ;;  %v775_v8 = vpop.f32.mrb[2].mxu0 }
  0xf9   :  { %v814_v9 = vadd.f32 %v813_v7, %v812_v4  ;;  %v815_v10 = vpop.f32.mrb[2].mxu1  ;;  %v776_v11 = vpop.f32.mrb[3].mxu0 }
  0xfa   :  { %v523_v12 = vadd.f32 %v774_v6, %v122_v1  ;;  %v777_v13 = vadd.f32 %v776_v11, %v775_v8  ;;  %v816_v14 = vpop.f32.mrb[3].mxu1  ;;  %v157_v4 = vpop.permute.xlu1 %156 }
  0xfb   :  { %v817_v15 = vadd.f32 %v816_v14, %v815_v10 }
  0xfc   :  { %v526_v16 = vadd.f32 %v777_v13, %v127_v3  ;;  %v1152_v17 = vadd.f32 %v814_v9, %v523_v12 }
  0xfe   :  { %v778_v19 = vpop.f32.mrb[4].mxu0  ;;  %v1154_v20 = vadd.f32 %v817_v15, %v526_v16 }
  0xff   :  { %v818_v21 = vpop.f32.mrb[4].mxu1  ;;  %v779_v22 = vpop.f32.mrb[5].mxu0 }
 0x100   :  { %v780_v23 = vadd.f32 %v779_v22, %v778_v19  ;;  %v819_v24 = vpop.f32.mrb[5].mxu1  ;;  %v781_v25 = vpop.f32.mrb[6].mxu0 }
 0x101   :  { %v820_v26 = vadd.f32 %v819_v24, %v818_v21  ;;  %v821_v27 = vpop.f32.mrb[6].mxu1  ;;  %v782_v28 = vpop.f32.mrb[7].mxu0 }
 0x102   :  { %v531_v29 = vadd.f32 %v780_v23, %v132_v18  ;;  %v783_v30 = vadd.f32 %v782_v28, %v781_v25  ;;  %v822_v31 = vpop.f32.mrb[7].mxu1 }
 0x103   :  { %v823_v32 = vadd.f32 %v822_v31, %v821_v27 }
 0x104   :  { %v534_v34 = vadd.f32 %v783_v30, %v137_v33  ;;  %v596_v35 = vadd.f32 %v820_v26, %v531_v29 }
 0x106   :  { %v784_v37 = vpop.f32.mrb[8].mxu0  ;;  %v599_v38 = vadd.f32 %v823_v32, %v534_v34 }
 0x107   :  { %v824_v39 = vpop.f32.mrb[8].mxu1  ;;  %v785_v40 = vpop.f32.mrb[9].mxu0 }
 0x108   :  { %v786_v41 = vadd.f32 %v785_v40, %v784_v37  ;;  %v825_v42 = vpop.f32.mrb[9].mxu1  ;;  %v787_v43 = vpop.f32.mrb[10].mxu0 }
 0x109   :  { %v826_v44 = vadd.f32 %v825_v42, %v824_v39  ;;  %v827_v45 = vpop.f32.mrb[10].mxu1  ;;  %v788_v46 = vpop.f32.mrb[11].mxu0 }
 0x10a   :  { %v539_v47 = vadd.f32 %v786_v41, %v142_v36  ;;  %v789_v48 = vadd.f32 %v788_v46, %v787_v43  ;;  %v828_v49 = vpop.f32.mrb[11].mxu1 }
 0x10b   :  { %v829_v51 = vadd.f32 %v828_v49, %v827_v45 }
 0x10c   :  { %v542_v52 = vadd.f32 %v789_v48, %v147_v50  ;;  %v604_v53 = vadd.f32 %v826_v44, %v539_v47 }
 0x10e   :  { %v790_v55 = vpop.f32.mrb[12].mxu0  ;;  %v607_v56 = vadd.f32 %v829_v51, %v542_v52 }
 0x10f   :  { %v830_v57 = vpop.f32.mrb[12].mxu1  ;;  %v791_v58 = vpop.f32.mrb[13].mxu0 }
 0x110   :  { %v792_v59 = vadd.f32 %v791_v58, %v790_v55  ;;  %v831_v60 = vpop.f32.mrb[13].mxu1  ;;  %v793_v61 = vpop.f32.mrb[14].mxu0 }
 0x111   :  { %v832_v62 = vadd.f32 %v831_v60, %v830_v57  ;;  %v833_v63 = vpop.f32.mrb[14].mxu1  ;;  %v794_v0 = vpop.f32.mrb[15].mxu0 }
 0x112   :  { %v547_v1 = vadd.f32 %v792_v59, %v152_v54  ;;  %v795_v2 = vadd.f32 %v794_v0, %v793_v61  ;;  %v834_v3 = vpop.f32.mrb[15].mxu1 }
 0x113   :  { %v835_v5 = vadd.f32 %v834_v3, %v833_v63 }
 0x114   :  { %v550_v6 = vadd.f32 %v795_v2, %v157_v4  ;;  %v612_v7 = vadd.f32 %v832_v62, %v547_v1 }
 0x116   :  { %v854_v8 = vpop.f32.mrb[16].mxu0  ;;  %v615_v9 = vadd.f32 %v835_v5, %v550_v6 }
 0x117   :  { %v661_v10 = vadd.f32 %v854_v8, %v596_v35  ;;  %v858_v11 = vpop.f32.mrb[16].mxu1  ;;  %v652_v12 = vpop.f32.mrb[17].mxu0 }
 0x118   :  { %v677_v13 = vadd.f32 %v858_v11, %v612_v7  ;;  %v653_v14 = vadd.f32 %v652_v12, %v1152_v17  ;;  %v668_v15 = vpop.f32.mrb[17].mxu1  ;;  %v855_v16 = vpop.f32.mrb[18].mxu0 }
 0x119   :  { %686 = vst.msk [vmem:[%s1193_s3 + $0x10] sm:$0xff] %vm683_vm1, %v661_v10  ;;  %v669_v18 = vadd.f32 %v668_v15, %v604_v53  ;;  %v664_v19 = vadd.f32 %v855_v16, %v599_v38  ;;  %v859_v21 = vpop.f32.mrb[18].mxu1  ;;  %v655_v22 = vpop.f32.mrb[19].mxu0 }
 0x11a   :  { %690 = vst.msk [vmem:[%s1193_s3 + $0x30] sm:$0xff] %vm683_vm1, %v677_v13  ;;  %684 = vst.msk [vmem:[%s1193_s3] sm:$0xff] %vm683_vm1, %v653_v14  ;;  %v680_v17 = vadd.f32 %v859_v21, %v615_v9  ;;  %v656_v23 = vadd.f32 %v655_v22, %v1154_v20  ;;  %v671_v24 = vpop.f32.mrb[19].mxu1 }
 0x11b   :  { %688 = vst.msk [vmem:[%s1193_s3 + $0x20] sm:$0xff] %vm683_vm1, %v669_v18  ;;  %687 = vst.msk [vmem:[%s1193_s3 + $0x18] sm:$0xff] %vm683_vm1, %v664_v19  ;;  %v672_v25 = vadd.f32 %v671_v24, %v607_v56 }
 0x11c   :  { %691 = vst.msk [vmem:[%s1193_s3 + $0x38] sm:$0xff] %vm683_vm1, %v680_v17  ;;  %685 = vst.msk [vmem:[%s1193_s3 + $0x8] sm:$0xff] %vm683_vm1, %v656_v23 }
 0x11d   :  { %689 = vst.msk [vmem:[%s1193_s3 + $0x28] sm:$0xff] %vm683_vm1, %v672_v25 }

// kernel: n2_apply.25
= control target key start
LH: loop header
LB: loop body
LE: loop exit
PB: predicated region body
PF: predicated region fallthrough
CT: control target
= control target key end

     0   :  { %v196_v1 = vmov 0   ;;  %vm89_vm0 = vcmask 523264   ;;  %v29_v11 = vlaneseq  ;;  %s274_s1 = inlined_call_operand.vmem [shape: bf16[64,256], index: 1, kind: input, shape index: {}]   ;;  %s275_s0 = inlined_call_operand.vmem [shape: bf16[32,64], index: 0, kind: input, shape index: {}]   ;;  %s276_s2 = inlined_call_operand.vmem [shape: f32[1,256], index: 2, kind: input, shape index: {}]   ;;  %s277_s3 = inlined_call_operand.vmem [shape: f32[32,256], index: 3, kind: output, shape index: {}]  }
   0x1   :  { %v182_v0 = vld [vmem:[%s274_s1 + $0x4] ss:$8 sps:$4 sm:$0xff]   ;;  %128 = vmatprep.mubr.bf16.mxu0 %v196_v1  ;;  %138 = vmatprep.mubr.bf16.mxu1 %v196_v1  ;;  %v184_v2 = vld [vmem:[%s274_s1] ss:$8 sps:$4 sm:$0xff]   ;;  %v185_v3 = vld [vmem:[%s274_s1 + $0x14] ss:$8 sps:$4 sm:$0xff]  }
   0x2   :  { %96 = vmatprep.subr.bf16.mxu0 %v182_v0  ;;  %173 = vmatprep.subr.bf16.mxu1 %v182_v0  ;;  %v187_v4 = vld [vmem:[%s274_s1 + $0x10] ss:$8 sps:$4 sm:$0xff]   ;;  %v188_v5 = vld [vmem:[%s274_s1 + $0x24] ss:$8 sps:$4 sm:$0xff]   ;;  %v190_v6 = vld [vmem:[%s274_s1 + $0x20] ss:$8 sps:$4 sm:$0xff]  }
   0x3   :  { %97 = vmatpush1.bf16.msra.mxu0 %v184_v2  ;;  %177 = vmatpush1.bf16.msra.mxu1 %v184_v2  ;;  %v191_v7 = vld [vmem:[%s274_s1 + $0x34] ss:$8 sps:$4 sm:$0xff]   ;;  %v193_v8 = vld [vmem:[%s274_s1 + $0x30] ss:$8 sps:$4 sm:$0xff]   ;;  %v194_v9 = vld [vmem:[%s275_s0] sm:$0xff]   ;;  %v30_v12 = vshrl.u32 %v29_v11, 7 }
   0x4   :  { %98 = vmatprep.subr.bf16.mxu0 %v185_v3  ;;  %174 = vmatprep.subr.bf16.mxu1 %v185_v3  ;;  %v195_v10 = vld [vmem:[%s275_s0 + $0x8] sm:$0xff]   ;;  %v27_v14 = vld [vmem:[%s276_s2] sm:$0x3] }
   0x5   :  { %v31_v13 = vsub.s32 0, %v30_v12  ;;  %v35_v15 = vsub.s32 1, %v30_v12 }
   0x7   :  { %99 = vmatpush1.bf16.msra.mxu0 %v187_v4  ;;  %178 = vmatpush1.bf16.msra.mxu1 %v187_v4  ;;  %v32_v16 = vrot.slane %v27_v14, %v31_v13  ;;  %v36_v17 = vrot.slane %v27_v14, %v35_v15 }
   0x8   :  { %100 = vmatprep.subr.bf16.mxu0 %v188_v5  ;;  %175 = vmatprep.subr.bf16.mxu1 %v188_v5 }
   0xb   :  { %101 = vmatpush1.bf16.msra.mxu0 %v190_v6  ;;  %179 = vmatpush1.bf16.msra.mxu1 %v190_v6 }
   0xc   :  { %102 = vmatprep.subr.bf16.mxu0 %v191_v7  ;;  %176 = vmatprep.subr.bf16.mxu1 %v191_v7 }
   0xf   :  { %103 = vmatpush1.bf16.msra.mxu0 %v193_v8  ;;  %180 = vmatpush1.bf16.msra.mxu1 %v193_v8 }
  0x12   :  { %171 = vmatmul.mubr.msk.bf16.vlgmr.msra.gmra.mrb[0].mxu0 %vm89_vm0, %v194_v9  ;;  %172 = vmatmul.mubr.msk.bf16.vlgmr.msra.gmra.mrb[0].mxu1 %vm89_vm0, %v195_v10 }
  0xe5   :  { %v130_v18 = vpop.f32.mrb[0].mxu0  ;;  %v140_v19 = vpop.f32.mrb[0].mxu1 }
  0xe6   :  { %v131_v20 = vadd.f32 %v130_v18, %v32_v16  ;;  %v141_v21 = vadd.f32 %v140_v19, %v32_v16  ;;  %v132_v22 = vpop.f32.mrb[1].mxu0  ;;  %v142_v23 = vpop.f32.mrb[1].mxu1 }
  0xe7   :  { %v133_v24 = vadd.f32 %v132_v22, %v36_v17  ;;  %v143_v25 = vadd.f32 %v142_v23, %v36_v17  ;;  %v134_v26 = vpop.f32.mrb[2].mxu0  ;;  %v144_v27 = vpop.f32.mrb[2].mxu1 }
  0xe8   :  { %149 = vst [vmem:[%s277_s3] sm:$0xff] %v131_v20  ;;  %153 = vst [vmem:[%s277_s3 + $0x20] sm:$0xff] %v141_v21  ;;  %v135_v28 = vadd.f32 %v134_v26, %v32_v16  ;;  %v145_v29 = vadd.f32 %v144_v27, %v32_v16  ;;  %v136_v30 = vpop.f32.mrb[3].mxu0  ;;  %v146_v31 = vpop.f32.mrb[3].mxu1 }
  0xe9   :  { %150 = vst [vmem:[%s277_s3 + $0x8] sm:$0xff] %v133_v24  ;;  %154 = vst [vmem:[%s277_s3 + $0x28] sm:$0xff] %v143_v25  ;;  %v137_v32 = vadd.f32 %v136_v30, %v36_v17  ;;  %v147_v33 = vadd.f32 %v146_v31, %v36_v17 }
  0xea   :  { %151 = vst [vmem:[%s277_s3 + $0x10] sm:$0xff] %v135_v28  ;;  %155 = vst [vmem:[%s277_s3 + $0x30] sm:$0xff] %v145_v29 }
  0xeb   :  { %152 = vst [vmem:[%s277_s3 + $0x18] sm:$0xff] %v137_v32  ;;  %156 = vst [vmem:[%s277_s3 + $0x38] sm:$0xff] %v147_v33 }

// kernel: n2_apply.26
= control target key start
LH: loop header
LB: loop body
LE: loop exit
PB: predicated region body
PF: predicated region fallthrough
CT: control target
= control target key end

     0   :  { %vm654_vm0 = vcmask 261120   ;;  %s1218_s1 = inlined_call_operand.vmem [shape: bf16[512,32], index: 1, kind: input, shape index: {}]   ;;  %s1219_s0 = inlined_call_operand.vmem [shape: bf16[128,512], index: 0, kind: input, shape index: {}]   ;;  %s1220_s2 = inlined_call_operand.vmem [shape: f32[128,32], index: 2, kind: output, shape index: {}]  }
   0x1   :  { %v867_v0 = vld [vmem:[%s1218_s1 + $0x40] sm:$0xff]   ;;  %v871_v4 = vld [vmem:[%s1218_s1 + $0x48] sm:$0xff]   ;;  %v875_v8 = vld [vmem:[%s1218_s1 + $0x50] sm:$0xff]  }
   0x2   :  { %v868_v1 = vld [vmem:[%s1218_s1 + $0xc0] sm:$0xff]   ;;  %739 = vmatprep.subr.bf16.mxu0 %v867_v0  ;;  %v872_v5 = vld [vmem:[%s1218_s1 + $0xc8] sm:$0xff]   ;;  %v876_v9 = vld [vmem:[%s1218_s1 + $0xd0] sm:$0xff]  }
   0x3   :  { %v869_v2 = vld [vmem:[%s1218_s1] sm:$0xff]   ;;  %803 = vmatprep.subr.bf16.mxu1 %v868_v1  ;;  %v873_v6 = vld [vmem:[%s1218_s1 + $0x8] sm:$0xff]   ;;  %v877_v10 = vld [vmem:[%s1218_s1 + $0x10] sm:$0xff]  }
   0x4   :  { %v870_v3 = vld [vmem:[%s1218_s1 + $0x80] sm:$0xff]   ;;  %740 = vmatpush3.bf16.msra.mxu0 %v869_v2  ;;  %v874_v7 = vld [vmem:[%s1218_s1 + $0x88] sm:$0xff]   ;;  %v878_v11 = vld [vmem:[%s1218_s1 + $0x90] sm:$0xff]  }
   0x5   :  { %804 = vmatpush3.bf16.msra.mxu1 %v870_v3  ;;  %741 = vmatprep.subr.bf16.mxu0 %v871_v4  ;;  %v879_v12 = vld [vmem:[%s1218_s1 + $0x58] sm:$0xff]   ;;  %v883_v16 = vld [vmem:[%s1218_s1 + $0x60] sm:$0xff]   ;;  %v887_v20 = vld [vmem:[%s1218_s1 + $0x68] sm:$0xff]  }
   0x6   :  { %805 = vmatprep.subr.bf16.mxu1 %v872_v5  ;;  %v880_v13 = vld [vmem:[%s1218_s1 + $0xd8] sm:$0xff]   ;;  %v884_v17 = vld [vmem:[%s1218_s1 + $0xe0] sm:$0xff]   ;;  %v888_v21 = vld [vmem:[%s1218_s1 + $0xe8] sm:$0xff]  }
   0x7   :  { %v881_v14 = vld [vmem:[%s1218_s1 + $0x18] sm:$0xff]   ;;  %v885_v18 = vld [vmem:[%s1218_s1 + $0x20] sm:$0xff]   ;;  %v889_v22 = vld [vmem:[%s1218_s1 + $0x28] sm:$0xff]  }
   0x8   :  { %742 = vmatpush3.bf16.msra.mxu0 %v873_v6  ;;  %v882_v15 = vld [vmem:[%s1218_s1 + $0x98] sm:$0xff]   ;;  %v886_v19 = vld [vmem:[%s1218_s1 + $0xa0] sm:$0xff]   ;;  %v890_v23 = vld [vmem:[%s1218_s1 + $0xa8] sm:$0xff]  }
   0x9   :  { %806 = vmatpush3.bf16.msra.mxu1 %v874_v7  ;;  %743 = vmatprep.subr.bf16.mxu0 %v875_v8  ;;  %v891_v24 = vld [vmem:[%s1218_s1 + $0x70] sm:$0xff]   ;;  %v895_v28 = vld [vmem:[%s1218_s1 + $0x78] sm:$0xff]  }
   0xa   :  { %807 = vmatprep.subr.bf16.mxu1 %v876_v9  ;;  %v892_v25 = vld [vmem:[%s1218_s1 + $0xf0] sm:$0xff]   ;;  %v896_v29 = vld [vmem:[%s1218_s1 + $0xf8] sm:$0xff]  }
   0xb   :  { %v893_v26 = vld [vmem:[%s1218_s1 + $0x30] sm:$0xff]   ;;  %v897_v30 = vld [vmem:[%s1218_s1 + $0x38] sm:$0xff]  }
   0xc   :  { %744 = vmatpush3.bf16.msra.mxu0 %v877_v10  ;;  %v894_v27 = vld [vmem:[%s1218_s1 + $0xb0] sm:$0xff]   ;;  %v898_v31 = vld [vmem:[%s1218_s1 + $0xb8] sm:$0xff]  }
   0xd   :  { %808 = vmatpush3.bf16.msra.mxu1 %v878_v11  ;;  %745 = vmatprep.subr.bf16.mxu0 %v879_v12  ;;  %v899_v32 = vld [vmem:[%s1219_s0] ss:$16 sps:$4 sm:$0xff]   ;;  %v901_v33 = vld [vmem:[%s1219_s0 + $0x4] ss:$16 sps:$4 sm:$0xff]   ;;  %v902_v34 = vld [vmem:[%s1219_s0 + $0x8] ss:$16 sps:$4 sm:$0xff]  }
   0xe   :  { %809 = vmatprep.subr.bf16.mxu1 %v880_v13  ;;  %v904_v35 = vld [vmem:[%s1219_s0 + $0xc] ss:$16 sps:$4 sm:$0xff]   ;;  %492 = vmatprep.mubr.bf16.mxu0 %v901_v33  ;;  %v905_v36 = vld [vmem:[%s1219_s0 + $0x24] ss:$16 sps:$4 sm:$0xff]   ;;  %v909_v38 = vld [vmem:[%s1219_s0 + $0x20] ss:$16 sps:$4 sm:$0xff]  }
   0xf   :  { %589 = vmatprep.mubr.bf16.mxu1 %v904_v35  ;;  %v907_v37 = vld [vmem:[%s1219_s0 + $0x2c] ss:$16 sps:$4 sm:$0xff]   ;;  %v910_v39 = vld [vmem:[%s1219_s0 + $0x28] ss:$16 sps:$4 sm:$0xff]   ;;  %v911_v40 = vld [vmem:[%s1219_s0 + $0x44] ss:$16 sps:$4 sm:$0xff]  }
  0x10   :  { %746 = vmatpush3.bf16.msra.mxu0 %v881_v14  ;;  %v913_v41 = vld [vmem:[%s1219_s0 + $0x4c] ss:$16 sps:$4 sm:$0xff]   ;;  %v915_v42 = vld [vmem:[%s1219_s0 + $0x40] ss:$16 sps:$4 sm:$0xff]   ;;  %v916_v43 = vld [vmem:[%s1219_s0 + $0x48] ss:$16 sps:$4 sm:$0xff]  }
  0x11   :  { %810 = vmatpush3.bf16.msra.mxu1 %v882_v15  ;;  %747 = vmatprep.subr.bf16.mxu0 %v883_v16  ;;  %v917_v44 = vld [vmem:[%s1219_s0 + $0x64] ss:$16 sps:$4 sm:$0xff]   ;;  %v919_v45 = vld [vmem:[%s1219_s0 + $0x6c] ss:$16 sps:$4 sm:$0xff]   ;;  %v921_v46 = vld [vmem:[%s1219_s0 + $0x60] ss:$16 sps:$4 sm:$0xff]  }
  0x12   :  { %811 = vmatprep.subr.bf16.mxu1 %v884_v17  ;;  %v922_v47 = vld [vmem:[%s1219_s0 + $0x68] ss:$16 sps:$4 sm:$0xff]   ;;  %v923_v48 = vld [vmem:[%s1219_s0 + $0x84] ss:$16 sps:$4 sm:$0xff]   ;;  %v925_v49 = vld [vmem:[%s1219_s0 + $0x8c] ss:$16 sps:$4 sm:$0xff]  }
  0x13   :  { %v927_v50 = vld [vmem:[%s1219_s0 + $0x80] ss:$16 sps:$4 sm:$0xff]   ;;  %v928_v51 = vld [vmem:[%s1219_s0 + $0x88] ss:$16 sps:$4 sm:$0xff]   ;;  %v929_v52 = vld [vmem:[%s1219_s0 + $0xa4] ss:$16 sps:$4 sm:$0xff]  }
  0x14   :  { %748 = vmatpush3.bf16.msra.mxu0 %v885_v18  ;;  %v931_v53 = vld [vmem:[%s1219_s0 + $0xac] ss:$16 sps:$4 sm:$0xff]   ;;  %v933_v54 = vld [vmem:[%s1219_s0 + $0xa0] ss:$16 sps:$4 sm:$0xff]   ;;  %v934_v55 = vld [vmem:[%s1219_s0 + $0xa8] ss:$16 sps:$4 sm:$0xff]  }
  0x15   :  { %812 = vmatpush3.bf16.msra.mxu1 %v886_v19  ;;  %749 = vmatprep.subr.bf16.mxu0 %v887_v20  ;;  %v935_v56 = vld [vmem:[%s1219_s0 + $0xc4] ss:$16 sps:$4 sm:$0xff]   ;;  %v937_v57 = vld [vmem:[%s1219_s0 + $0xcc] ss:$16 sps:$4 sm:$0xff]   ;;  %v939_v58 = vld [vmem:[%s1219_s0 + $0xc0] ss:$16 sps:$4 sm:$0xff]  }
  0x16   :  { %813 = vmatprep.subr.bf16.mxu1 %v888_v21  ;;  %v940_v59 = vld [vmem:[%s1219_s0 + $0xc8] ss:$16 sps:$4 sm:$0xff]   ;;  %v941_v60 = vld [vmem:[%s1219_s0 + $0xe4] ss:$16 sps:$4 sm:$0xff]   ;;  %v943_v61 = vld [vmem:[%s1219_s0 + $0xec] ss:$16 sps:$4 sm:$0xff]  }
  0x17   :  { %v945_v62 = vld [vmem:[%s1219_s0 + $0xe0] ss:$16 sps:$4 sm:$0xff]   ;;  %v946_v63 = vld [vmem:[%s1219_s0 + $0xe8] ss:$16 sps:$4 sm:$0xff]  }
  0x18   :  { %750 = vmatpush3.bf16.msra.mxu0 %v889_v22 }
  0x19   :  { %814 = vmatpush3.bf16.msra.mxu1 %v890_v23  ;;  %751 = vmatprep.subr.bf16.mxu0 %v891_v24 }
  0x1a   :  { %815 = vmatprep.subr.bf16.mxu1 %v892_v25 }
  0x1c   :  { %752 = vmatpush3.bf16.msra.mxu0 %v893_v26 }
  0x1d   :  { %816 = vmatpush3.bf16.msra.mxu1 %v894_v27  ;;  %753 = vmatprep.subr.bf16.mxu0 %v895_v28 }
  0x1e   :  { %817 = vmatprep.subr.bf16.mxu1 %v896_v29 }
  0x20   :  { %754 = vmatpush3.bf16.msra.mxu0 %v897_v30 }
  0x21   :  { %818 = vmatpush3.bf16.msra.mxu1 %v898_v31 }
  0x23   :  { %493 = vmatmul.mubr.bf16.vlgmr.msra.gmra.mrb[0].mxu0 %v899_v32 }
  0x24   :  { %590 = vmatmul.mubr.bf16.vlgmr.msra.gmra.mrb[0].mxu1 %v902_v34  ;;  %500 = vmatprep.mubr.bf16.mxu0 %v905_v36 }
  0x25   :  { %597 = vmatprep.mubr.bf16.mxu1 %v907_v37 }
  0x2b   :  { %501 = vmatmul.mubr.bf16.gmra.mrb[4].mxu0 %v909_v38 }
  0x2c   :  { %598 = vmatmul.mubr.bf16.gmra.mrb[4].mxu1 %v910_v39  ;;  %508 = vmatprep.mubr.bf16.mxu0 %v911_v40 }
  0x2d   :  { %605 = vmatprep.mubr.bf16.mxu1 %v913_v41 }
  0x33   :  { %509 = vmatmul.mubr.bf16.gmra.mrb[8].mxu0 %v915_v42 }
  0x34   :  { %606 = vmatmul.mubr.bf16.gmra.mrb[8].mxu1 %v916_v43  ;;  %516 = vmatprep.mubr.bf16.mxu0 %v917_v44 }
  0x35   :  { %613 = vmatprep.mubr.bf16.mxu1 %v919_v45 }
  0x3b   :  { %517 = vmatmul.mubr.bf16.gmra.mrb[12].mxu0 %v921_v46 }
  0x3c   :  { %614 = vmatmul.mubr.bf16.gmra.mrb[12].mxu1 %v922_v47  ;;  %524 = vmatprep.mubr.bf16.mxu0 %v923_v48 }
  0x3d   :  { %621 = vmatprep.mubr.bf16.mxu1 %v925_v49 }
  0x43   :  { %525 = vmatmul.mubr.bf16.gmra.mrb[16].mxu0 %v927_v50 }
  0x44   :  { %622 = vmatmul.mubr.bf16.gmra.mrb[16].mxu1 %v928_v51  ;;  %532 = vmatprep.mubr.bf16.mxu0 %v929_v52 }
  0x45   :  { %629 = vmatprep.mubr.bf16.mxu1 %v931_v53 }
  0x4b   :  { %533 = vmatmul.mubr.bf16.gmra.mrb[20].mxu0 %v933_v54 }
  0x4c   :  { %630 = vmatmul.mubr.bf16.gmra.mrb[20].mxu1 %v934_v55  ;;  %540 = vmatprep.mubr.bf16.mxu0 %v935_v56 }
  0x4d   :  { %637 = vmatprep.mubr.bf16.mxu1 %v937_v57 }
  0x53   :  { %541 = vmatmul.mubr.bf16.gmra.mrb[24].mxu0 %v939_v58 }
  0x54   :  { %638 = vmatmul.mubr.bf16.gmra.mrb[24].mxu1 %v940_v59  ;;  %548 = vmatprep.mubr.bf16.mxu0 %v941_v60 }
  0x55   :  { %645 = vmatprep.mubr.bf16.mxu1 %v943_v61 }
  0x5b   :  { %549 = vmatmul.mubr.bf16.gmra.mrb[28].mxu0 %v945_v62 }
  0x5c   :  { %646 = vmatmul.mubr.bf16.gmra.mrb[28].mxu1 %v946_v63 }
  0xf6   :  { %v755_v0 = vpop.f32.mrb[0].mxu0 }
  0xf7   :  { %v819_v1 = vpop.f32.mrb[0].mxu1  ;;  %v756_v2 = vpop.f32.mrb[1].mxu0 }
  0xf8   :  { %v757_v3 = vadd.f32 %v756_v2, %v755_v0  ;;  %v820_v4 = vpop.f32.mrb[1].mxu1  ;;  %v758_v5 = vpop.f32.mrb[2].mxu0 }
  0xf9   :  { %v821_v6 = vadd.f32 %v820_v4, %v819_v1  ;;  %v822_v7 = vpop.f32.mrb[2].mxu1  ;;  %v759_v8 = vpop.f32.mrb[3].mxu0 }
  0xfa   :  { %v760_v9 = vadd.f32 %v759_v8, %v758_v5  ;;  %v823_v10 = vpop.f32.mrb[3].mxu1 }
  0xfb   :  { %v592_v11 = vadd.f32 %v821_v6, %v757_v3  ;;  %v824_v12 = vadd.f32 %v823_v10, %v822_v7 }
  0xfd   :  { %655 = vst.msk [vmem:[%s1220_s2] sm:$0xff] %vm654_vm0, %v592_v11  ;;  %v595_v13 = vadd.f32 %v824_v12, %v760_v9 }
  0xfe   :  { %v761_v14 = vpop.f32.mrb[4].mxu0 }
  0xff   :  { %656 = vst.msk [vmem:[%s1220_s2 + $0x8] sm:$0xff] %vm654_vm0, %v595_v13  ;;  %v825_v15 = vpop.f32.mrb[4].mxu1  ;;  %v762_v16 = vpop.f32.mrb[5].mxu0 }
 0x100   :  { %v763_v17 = vadd.f32 %v762_v16, %v761_v14  ;;  %v826_v18 = vpop.f32.mrb[5].mxu1  ;;  %v764_v19 = vpop.f32.mrb[6].mxu0 }
 0x101   :  { %v827_v20 = vadd.f32 %v826_v18, %v825_v15  ;;  %v828_v21 = vpop.f32.mrb[6].mxu1  ;;  %v765_v22 = vpop.f32.mrb[7].mxu0 }
 0x102   :  { %v766_v23 = vadd.f32 %v765_v22, %v764_v19  ;;  %v829_v24 = vpop.f32.mrb[7].mxu1 }
 0x103   :  { %v600_v25 = vadd.f32 %v827_v20, %v763_v17  ;;  %v830_v26 = vadd.f32 %v829_v24, %v828_v21 }
 0x105   :  { %657 = vst.msk [vmem:[%s1220_s2 + $0x10] sm:$0xff] %vm654_vm0, %v600_v25  ;;  %v603_v27 = vadd.f32 %v830_v26, %v766_v23 }
 0x106   :  { %v767_v28 = vpop.f32.mrb[8].mxu0 }
 0x107   :  { %658 = vst.msk [vmem:[%s1220_s2 + $0x18] sm:$0xff] %vm654_vm0, %v603_v27  ;;  %v831_v29 = vpop.f32.mrb[8].mxu1  ;;  %v768_v30 = vpop.f32.mrb[9].mxu0 }
 0x108   :  { %v769_v31 = vadd.f32 %v768_v30, %v767_v28  ;;  %v832_v32 = vpop.f32.mrb[9].mxu1  ;;  %v770_v33 = vpop.f32.mrb[10].mxu0 }
 0x109   :  { %v833_v34 = vadd.f32 %v832_v32, %v831_v29  ;;  %v834_v35 = vpop.f32.mrb[10].mxu1  ;;  %v771_v36 = vpop.f32.mrb[11].mxu0 }
 0x10a   :  { %v772_v37 = vadd.f32 %v771_v36, %v770_v33  ;;  %v835_v38 = vpop.f32.mrb[11].mxu1 }
 0x10b   :  { %v608_v39 = vadd.f32 %v833_v34, %v769_v31  ;;  %v836_v40 = vadd.f32 %v835_v38, %v834_v35 }
 0x10d   :  { %659 = vst.msk [vmem:[%s1220_s2 + $0x20] sm:$0xff] %vm654_vm0, %v608_v39  ;;  %v611_v41 = vadd.f32 %v836_v40, %v772_v37 }
 0x10e   :  { %v773_v42 = vpop.f32.mrb[12].mxu0 }
 0x10f   :  { %660 = vst.msk [vmem:[%s1220_s2 + $0x28] sm:$0xff] %vm654_vm0, %v611_v41  ;;  %v837_v43 = vpop.f32.mrb[12].mxu1  ;;  %v774_v44 = vpop.f32.mrb[13].mxu0 }
 0x110   :  { %v775_v45 = vadd.f32 %v774_v44, %v773_v42  ;;  %v838_v46 = vpop.f32.mrb[13].mxu1  ;;  %v776_v47 = vpop.f32.mrb[14].mxu0 }
 0x111   :  { %v839_v48 = vadd.f32 %v838_v46, %v837_v43  ;;  %v840_v49 = vpop.f32.mrb[14].mxu1  ;;  %v777_v50 = vpop.f32.mrb[15].mxu0 }
 0x112   :  { %v778_v51 = vadd.f32 %v777_v50, %v776_v47  ;;  %v841_v52 = vpop.f32.mrb[15].mxu1 }
 0x113   :  { %v616_v53 = vadd.f32 %v839_v48, %v775_v45  ;;  %v842_v54 = vadd.f32 %v841_v52, %v840_v49 }
 0x115   :  { %661 = vst.msk [vmem:[%s1220_s2 + $0x30] sm:$0xff] %vm654_vm0, %v616_v53  ;;  %v619_v55 = vadd.f32 %v842_v54, %v778_v51 }
 0x116   :  { %v779_v56 = vpop.f32.mrb[16].mxu0 }
 0x117   :  { %662 = vst.msk [vmem:[%s1220_s2 + $0x38] sm:$0xff] %vm654_vm0, %v619_v55  ;;  %v843_v57 = vpop.f32.mrb[16].mxu1  ;;  %v780_v58 = vpop.f32.mrb[17].mxu0 }
 0x118   :  { %v781_v59 = vadd.f32 %v780_v58, %v779_v56  ;;  %v844_v60 = vpop.f32.mrb[17].mxu1  ;;  %v782_v61 = vpop.f32.mrb[18].mxu0 }
 0x119   :  { %v845_v62 = vadd.f32 %v844_v60, %v843_v57  ;;  %v846_v63 = vpop.f32.mrb[18].mxu1  ;;  %v783_v0 = vpop.f32.mrb[19].mxu0 }
 0x11a   :  { %v784_v1 = vadd.f32 %v783_v0, %v782_v61  ;;  %v847_v2 = vpop.f32.mrb[19].mxu1 }
 0x11b   :  { %v624_v3 = vadd.f32 %v845_v62, %v781_v59  ;;  %v848_v4 = vadd.f32 %v847_v2, %v846_v63 }
 0x11d   :  { %663 = vst.msk [vmem:[%s1220_s2 + $0x40] sm:$0xff] %vm654_vm0, %v624_v3  ;;  %v627_v5 = vadd.f32 %v848_v4, %v784_v1 }
 0x11e   :  { %v785_v6 = vpop.f32.mrb[20].mxu0 }
 0x11f   :  { %664 = vst.msk [vmem:[%s1220_s2 + $0x48] sm:$0xff] %vm654_vm0, %v627_v5  ;;  %v849_v7 = vpop.f32.mrb[20].mxu1  ;;  %v786_v8 = vpop.f32.mrb[21].mxu0 }
 0x120   :  { %v787_v9 = vadd.f32 %v786_v8, %v785_v6  ;;  %v850_v10 = vpop.f32.mrb[21].mxu1  ;;  %v788_v11 = vpop.f32.mrb[22].mxu0 }
 0x121   :  { %v851_v12 = vadd.f32 %v850_v10, %v849_v7  ;;  %v852_v13 = vpop.f32.mrb[22].mxu1  ;;  %v789_v14 = vpop.f32.mrb[23].mxu0 }
 0x122   :  { %v790_v15 = vadd.f32 %v789_v14, %v788_v11  ;;  %v853_v16 = vpop.f32.mrb[23].mxu1 }
 0x123   :  { %v632_v17 = vadd.f32 %v851_v12, %v787_v9  ;;  %v854_v18 = vadd.f32 %v853_v16, %v852_v13 }
 0x125   :  { %665 = vst.msk [vmem:[%s1220_s2 + $0x50] sm:$0xff] %vm654_vm0, %v632_v17  ;;  %v635_v19 = vadd.f32 %v854_v18, %v790_v15 }
 0x126   :  { %v791_v20 = vpop.f32.mrb[24].mxu0 }
 0x127   :  { %666 = vst.msk [vmem:[%s1220_s2 + $0x58] sm:$0xff] %vm654_vm0, %v635_v19  ;;  %v855_v21 = vpop.f32.mrb[24].mxu1  ;;  %v792_v22 = vpop.f32.mrb[25].mxu0 }
 0x128   :  { %v793_v23 = vadd.f32 %v792_v22, %v791_v20  ;;  %v856_v24 = vpop.f32.mrb[25].mxu1  ;;  %v794_v25 = vpop.f32.mrb[26].mxu0 }
 0x129   :  { %v857_v26 = vadd.f32 %v856_v24, %v855_v21  ;;  %v858_v27 = vpop.f32.mrb[26].mxu1  ;;  %v795_v28 = vpop.f32.mrb[27].mxu0 }
 0x12a   :  { %v796_v29 = vadd.f32 %v795_v28, %v794_v25  ;;  %v859_v30 = vpop.f32.mrb[27].mxu1 }
 0x12b   :  { %v640_v31 = vadd.f32 %v857_v26, %v793_v23  ;;  %v860_v32 = vadd.f32 %v859_v30, %v858_v27 }
 0x12d   :  { %667 = vst.msk [vmem:[%s1220_s2 + $0x60] sm:$0xff] %vm654_vm0, %v640_v31  ;;  %v643_v33 = vadd.f32 %v860_v32, %v796_v29 }
 0x12e   :  { %v797_v34 = vpop.f32.mrb[28].mxu0 }
 0x12f   :  { %668 = vst.msk [vmem:[%s1220_s2 + $0x68] sm:$0xff] %vm654_vm0, %v643_v33  ;;  %v861_v35 = vpop.f32.mrb[28].mxu1  ;;  %v798_v36 = vpop.f32.mrb[29].mxu0 }
 0x130   :  { %v799_v37 = vadd.f32 %v798_v36, %v797_v34  ;;  %v862_v38 = vpop.f32.mrb[29].mxu1  ;;  %v800_v39 = vpop.f32.mrb[30].mxu0 }
 0x131   :  { %v863_v40 = vadd.f32 %v862_v38, %v861_v35  ;;  %v864_v41 = vpop.f32.mrb[30].mxu1  ;;  %v801_v42 = vpop.f32.mrb[31].mxu0 }
 0x132   :  { %v802_v43 = vadd.f32 %v801_v42, %v800_v39  ;;  %v865_v44 = vpop.f32.mrb[31].mxu1 }
 0x133   :  { %v648_v45 = vadd.f32 %v863_v40, %v799_v37  ;;  %v866_v46 = vadd.f32 %v865_v44, %v864_v41 }
 0x135   :  { %669 = vst.msk [vmem:[%s1220_s2 + $0x70] sm:$0xff] %vm654_vm0, %v648_v45  ;;  %v651_v47 = vadd.f32 %v866_v46, %v802_v43 }
 0x137   :  { %670 = vst.msk [vmem:[%s1220_s2 + $0x78] sm:$0xff] %vm654_vm0, %v651_v47 }

// kernel: n2_apply.27
= control target key start
LH: loop header
LB: loop body
LE: loop exit
PB: predicated region body
PF: predicated region fallthrough
CT: control target
= control target key end

     0   :  { %s256_s1 = inlined_call_operand.vmem [shape: bf16[128,128], index: 1, kind: input, shape index: {}]   ;;  %s257_s0 = inlined_call_operand.vmem [shape: bf16[32,128], index: 0, kind: input, shape index: {}]   ;;  %s258_s2 = inlined_call_operand.vmem [shape: f32[32,128], index: 2, kind: output, shape index: {}]  }
   0x1   :  { %v189_v0 = vld [vmem:[%s256_s1] sm:$0xff]   ;;  %v190_v1 = vld [vmem:[%s256_s1 + $0x8] sm:$0xff]   ;;  %v191_v2 = vld [vmem:[%s256_s1 + $0x10] sm:$0xff]  }
   0x2   :  { %169 = vmatprep.subr.bf16.mxu0 %v189_v0  ;;  %v192_v3 = vld [vmem:[%s256_s1 + $0x18] sm:$0xff]   ;;  %v197_v4 = vld [vmem:[%s257_s0] sm:$0xff]   ;;  %v194_v6 = vld [vmem:[%s256_s1 + $0x28] sm:$0xff]  }
   0x3   :  { %170 = vmatpush3.bf16.msra.mxu0 %v189_v0  ;;  %185 = vmatprep.mubr.bf16.mxu0 %v197_v4  ;;  %v193_v5 = vld [vmem:[%s256_s1 + $0x20] sm:$0xff]   ;;  %v195_v7 = vld [vmem:[%s256_s1 + $0x30] sm:$0xff]   ;;  %v196_v8 = vld [vmem:[%s256_s1 + $0x38] sm:$0xff]  }
   0x4   :  { %171 = vmatprep.subr.bf16.mxu0 %v190_v1  ;;  %v198_v9 = vld [vmem:[%s257_s0 + $0x8] sm:$0xff]  }
   0x7   :  { %172 = vmatpush3.bf16.msra.mxu0 %v190_v1 }
   0x8   :  { %173 = vmatprep.subr.bf16.mxu0 %v191_v2 }
   0xb   :  { %174 = vmatpush3.bf16.msra.mxu0 %v191_v2 }
   0xc   :  { %175 = vmatprep.subr.bf16.mxu0 %v192_v3 }
   0xf   :  { %176 = vmatpush3.bf16.msra.mxu0 %v192_v3 }
  0x10   :  { %177 = vmatprep.subr.bf16.mxu0 %v193_v5 }
  0x13   :  { %178 = vmatpush3.bf16.msra.mxu0 %v193_v5 }
  0x14   :  { %179 = vmatprep.subr.bf16.mxu0 %v194_v6 }
  0x17   :  { %180 = vmatpush3.bf16.msra.mxu0 %v194_v6 }
  0x18   :  { %181 = vmatprep.subr.bf16.mxu0 %v195_v7 }
  0x1b   :  { %182 = vmatpush3.bf16.msra.mxu0 %v195_v7 }
  0x1c   :  { %183 = vmatprep.subr.bf16.mxu0 %v196_v8 }
  0x1f   :  { %184 = vmatpush3.bf16.msra.mxu0 %v196_v8 }
  0x22   :  { %186 = vmatmul.mubr.bf16.vlgmr.msra.gmra.mrb[0].mxu0 %v198_v9 }
  0xf5   :  { %v187_v10 = vpop.f32.mrb[0].mxu0 }
  0xf6   :  { %143 = vst [vmem:[%s258_s2 + $0x10] sm:$0xff] %v187_v10  ;;  %v126_v11 = vpop.f32.mrb[1].mxu0 }
  0xf7   :  { %141 = vst [vmem:[%s258_s2] sm:$0xff] %v126_v11  ;;  %v188_v12 = vpop.f32.mrb[2].mxu0 }
  0xf8   :  { %144 = vst [vmem:[%s258_s2 + $0x18] sm:$0xff] %v188_v12  ;;  %v129_v13 = vpop.f32.mrb[3].mxu0 }
  0xf9   :  { %142 = vst [vmem:[%s258_s2 + $0x8] sm:$0xff] %v129_v13 }

// kernel: n2_apply.29
= control target key start
LH: loop header
LB: loop body
LE: loop exit
PB: predicated region body
PF: predicated region fallthrough
CT: control target
= control target key end

     0   :  { %vm40_vm0 = vcmask 523264   ;;  %s1240_s0 = inlined_call_operand.vmem [shape: f32[256,64], index: 0, kind: input, shape index: {}]   ;;  %s1241_s1 = inlined_call_operand.vmem [shape: f32[256,64], index: 1, kind: output, shape index: {}]  }
   0x1   :  { %v667_v0 = vld [vmem:[%s1240_s0] sm:$0xff]  ;;  %v672_v1 = vld [vmem:[%s1240_s0 + $0x10] sm:$0xff]  ;;  %v677_v2 = vld [vmem:[%s1240_s0 + $0x8] sm:$0xff] }
   0x2   :  { %v41_v3 = vsel %vm40_vm0, %v667_v0, 0.0  ;;  %v47_v4 = vsel %vm40_vm0, %v672_v1, 0.0  ;;  %v686_v5 = vld [vmem:[%s1240_s0 + $0x18] sm:$0xff]  ;;  %v44_v6 = vsel %vm40_vm0, %v677_v2, 0.0  ;;  %v695_v8 = vld [vmem:[%s1240_s0 + $0x20] sm:$0xff]  ;;  %v700_v9 = vld [vmem:[%s1240_s0 + $0x28] sm:$0xff] }
   0x3   :  { %42 = vadd.xlane.f32.xlu0 %v41_v3  ;;  %48 = vadd.xlane.f32.xlu1 %v47_v4  ;;  %v50_v7 = vsel %vm40_vm0, %v686_v5, 0.0  ;;  %v53_v10 = vsel %vm40_vm0, %v695_v8, 0.0  ;;  %v56_v11 = vsel %vm40_vm0, %v700_v9, 0.0  ;;  %v709_v12 = vld [vmem:[%s1240_s0 + $0x30] sm:$0xff]  ;;  %v714_v13 = vld [vmem:[%s1240_s0 + $0x38] sm:$0xff]  ;;  %v723_v16 = vld [vmem:[%s1240_s0 + $0x40] sm:$0xff] }
   0x4   :  { %v59_v14 = vsel %vm40_vm0, %v709_v12, 0.0  ;;  %v62_v15 = vsel %vm40_vm0, %v714_v13, 0.0  ;;  %v728_v17 = vld [vmem:[%s1240_s0 + $0x48] sm:$0xff]  ;;  %v65_v18 = vsel %vm40_vm0, %v723_v16, 0.0  ;;  %v737_v20 = vld [vmem:[%s1240_s0 + $0x50] sm:$0xff]  ;;  %v742_v21 = vld [vmem:[%s1240_s0 + $0x58] sm:$0xff] }
   0x5   :  { %v68_v19 = vsel %vm40_vm0, %v728_v17, 0.0  ;;  %v71_v22 = vsel %vm40_vm0, %v737_v20, 0.0  ;;  %v74_v23 = vsel %vm40_vm0, %v742_v21, 0.0  ;;  %v751_v24 = vld [vmem:[%s1240_s0 + $0x60] sm:$0xff]  ;;  %v756_v25 = vld [vmem:[%s1240_s0 + $0x68] sm:$0xff]  ;;  %v765_v28 = vld [vmem:[%s1240_s0 + $0x70] sm:$0xff] }
   0x6   :  { %v77_v26 = vsel %vm40_vm0, %v751_v24, 0.0  ;;  %v80_v27 = vsel %vm40_vm0, %v756_v25, 0.0  ;;  %v770_v29 = vld [vmem:[%s1240_s0 + $0x78] sm:$0xff]  ;;  %v83_v30 = vsel %vm40_vm0, %v765_v28, 0.0  ;;  %v779_v32 = vld [vmem:[%s1240_s0 + $0x80] sm:$0xff]  ;;  %v784_v33 = vld [vmem:[%s1240_s0 + $0x88] sm:$0xff] }
   0x7   :  { %45 = vadd.xlane.f32.xlu0 %v44_v6  ;;  %51 = vadd.xlane.f32.xlu1 %v50_v7  ;;  %v86_v31 = vsel %vm40_vm0, %v770_v29, 0.0  ;;  %v89_v34 = vsel %vm40_vm0, %v779_v32, 0.0  ;;  %v92_v35 = vsel %vm40_vm0, %v784_v33, 0.0  ;;  %v793_v36 = vld [vmem:[%s1240_s0 + $0x90] sm:$0xff]  ;;  %v798_v37 = vld [vmem:[%s1240_s0 + $0x98] sm:$0xff]  ;;  %v807_v40 = vld [vmem:[%s1240_s0 + $0xa0] sm:$0xff] }
   0x8   :  { %v95_v38 = vsel %vm40_vm0, %v793_v36, 0.0  ;;  %v98_v39 = vsel %vm40_vm0, %v798_v37, 0.0  ;;  %v812_v41 = vld [vmem:[%s1240_s0 + $0xa8] sm:$0xff]  ;;  %v101_v42 = vsel %vm40_vm0, %v807_v40, 0.0  ;;  %v821_v44 = vld [vmem:[%s1240_s0 + $0xb0] sm:$0xff]  ;;  %v826_v45 = vld [vmem:[%s1240_s0 + $0xb8] sm:$0xff] }
   0x9   :  { %v104_v43 = vsel %vm40_vm0, %v812_v41, 0.0  ;;  %v107_v46 = vsel %vm40_vm0, %v821_v44, 0.0  ;;  %v110_v47 = vsel %vm40_vm0, %v826_v45, 0.0  ;;  %v835_v48 = vld [vmem:[%s1240_s0 + $0xc0] sm:$0xff]  ;;  %v840_v49 = vld [vmem:[%s1240_s0 + $0xc8] sm:$0xff]  ;;  %v849_v52 = vld [vmem:[%s1240_s0 + $0xd0] sm:$0xff] }
   0xa   :  { %v113_v50 = vsel %vm40_vm0, %v835_v48, 0.0  ;;  %v116_v51 = vsel %vm40_vm0, %v840_v49, 0.0  ;;  %v854_v53 = vld [vmem:[%s1240_s0 + $0xd8] sm:$0xff]  ;;  %v119_v54 = vsel %vm40_vm0, %v849_v52, 0.0  ;;  %v863_v56 = vld [vmem:[%s1240_s0 + $0xe0] sm:$0xff]  ;;  %v868_v57 = vld [vmem:[%s1240_s0 + $0xe8] sm:$0xff] }
   0xb   :  { %54 = vadd.xlane.f32.xlu0 %v53_v10  ;;  %57 = vadd.xlane.f32.xlu1 %v56_v11  ;;  %v122_v55 = vsel %vm40_vm0, %v854_v53, 0.0  ;;  %v125_v58 = vsel %vm40_vm0, %v863_v56, 0.0  ;;  %v128_v59 = vsel %vm40_vm0, %v868_v57, 0.0  ;;  %v877_v60 = vld [vmem:[%s1240_s0 + $0xf0] sm:$0xff]  ;;  %v882_v61 = vld [vmem:[%s1240_s0 + $0xf8] sm:$0xff] }
   0xc   :  { %v131_v62 = vsel %vm40_vm0, %v877_v60, 0.0  ;;  %v134_v63 = vsel %vm40_vm0, %v882_v61, 0.0 }
   0xf   :  { %60 = vadd.xlane.f32.xlu0 %v59_v14  ;;  %63 = vadd.xlane.f32.xlu1 %v62_v15 }
  0x13   :  { %66 = vadd.xlane.f32.xlu0 %v65_v18  ;;  %69 = vadd.xlane.f32.xlu1 %v68_v19 }
  0x17   :  { %72 = vadd.xlane.f32.xlu0 %v71_v22  ;;  %75 = vadd.xlane.f32.xlu1 %v74_v23 }
  0x1b   :  { %78 = vadd.xlane.f32.xlu0 %v77_v26  ;;  %81 = vadd.xlane.f32.xlu1 %v80_v27 }
  0x1f   :  { %84 = vadd.xlane.f32.xlu0 %v83_v30  ;;  %87 = vadd.xlane.f32.xlu1 %v86_v31 }
  0x23   :  { %90 = vadd.xlane.f32.xlu0 %v89_v34  ;;  %93 = vadd.xlane.f32.xlu1 %v92_v35 }
  0x27   :  { %96 = vadd.xlane.f32.xlu0 %v95_v38  ;;  %99 = vadd.xlane.f32.xlu1 %v98_v39 }
  0x2b   :  { %102 = vadd.xlane.f32.xlu0 %v101_v42  ;;  %105 = vadd.xlane.f32.xlu1 %v104_v43 }
  0x2f   :  { %108 = vadd.xlane.f32.xlu0 %v107_v46  ;;  %111 = vadd.xlane.f32.xlu1 %v110_v47 }
  0x33   :  { %114 = vadd.xlane.f32.xlu0 %v113_v50  ;;  %117 = vadd.xlane.f32.xlu1 %v116_v51 }
  0x37   :  { %120 = vadd.xlane.f32.xlu0 %v119_v54  ;;  %123 = vadd.xlane.f32.xlu1 %v122_v55 }
  0x3b   :  { %126 = vadd.xlane.f32.xlu0 %v125_v58  ;;  %129 = vadd.xlane.f32.xlu1 %v128_v59 }
  0x3f   :  { %132 = vadd.xlane.f32.xlu0 %v131_v62  ;;  %135 = vadd.xlane.f32.xlu1 %v134_v63 }
  0x90   :  { %v43_v3 = vpop.xlane.xlu0 %42  ;;  %v49_v4 = vpop.xlane.xlu1 %48 }
  0x91   :  { %v138_v6 = vmul.f32 0.015625, %v43_v3  ;;  %v140_v7 = vmul.f32 0.015625, %v49_v4 }
  0x93   :  { %v889_v10 = vsub.f32 %v667_v0, %v138_v6  ;;  %v892_v11 = vsub.f32 %v672_v1, %v140_v7 }
  0x94   :  { %v46_v14 = vpop.xlane.xlu0 %45  ;;  %v52_v15 = vpop.xlane.xlu1 %51 }
  0x95   :  { %v139_v18 = vmul.f32 0.015625, %v46_v14  ;;  %v141_v19 = vmul.f32 0.015625, %v52_v15  ;;  %v202_v22 = vmul.f32 %v889_v10, %v889_v10  ;;  %v204_v23 = vmul.f32 %v892_v11, %v892_v11 }
  0x97   :  { %v899_v26 = vsub.f32 %v677_v2, %v139_v18  ;;  %v902_v27 = vsub.f32 %v686_v5, %v141_v19  ;;  %v234_v0 = vsel %vm40_vm0, %v202_v22, 0.0  ;;  %v240_v31 = vsel %vm40_vm0, %v204_v23, 0.0 }
  0x98   :  { %235 = vadd.xlane.f32.xlu0 %v234_v0  ;;  %v55_v1 = vpop.xlane.xlu0 %54  ;;  %v58_v30 = vpop.xlane.xlu1 %57 }
  0x99   :  { %v142_v34 = vmul.f32 0.015625, %v55_v1  ;;  %v143_v35 = vmul.f32 0.015625, %v58_v30  ;;  %v203_v38 = vmul.f32 %v899_v26, %v899_v26  ;;  %v205_v39 = vmul.f32 %v902_v27, %v902_v27 }
  0x9b   :  { %v911_v2 = vsub.f32 %v695_v8, %v142_v34  ;;  %v914_v5 = vsub.f32 %v700_v9, %v143_v35  ;;  %v237_v42 = vsel %vm40_vm0, %v203_v38, 0.0  ;;  %v243_v47 = vsel %vm40_vm0, %v205_v39, 0.0 }
  0x9c   :  { %241 = vadd.xlane.f32.xlu0 %v240_v31  ;;  %238 = vadd.xlane.f32.xlu1 %v237_v42  ;;  %v61_v43 = vpop.xlane.xlu0 %60  ;;  %v64_v46 = vpop.xlane.xlu1 %63 }
  0x9d   :  { %v144_v50 = vmul.f32 0.015625, %v61_v43  ;;  %v145_v51 = vmul.f32 0.015625, %v64_v46  ;;  %v206_v54 = vmul.f32 %v911_v2, %v911_v2  ;;  %v207_v8 = vmul.f32 %v914_v5, %v914_v5 }
  0x9f   :  { %v923_v55 = vsub.f32 %v709_v12, %v144_v50  ;;  %v926_v9 = vsub.f32 %v714_v13, %v145_v51  ;;  %v246_v58 = vsel %vm40_vm0, %v206_v54, 0.0  ;;  %v249_v63 = vsel %vm40_vm0, %v207_v8, 0.0 }
  0xa0   :  { %244 = vadd.xlane.f32.xlu1 %v243_v47  ;;  %247 = vadd.xlane.f32.xlu0 %v246_v58  ;;  %v67_v59 = vpop.xlane.xlu0 %66  ;;  %v70_v62 = vpop.xlane.xlu1 %69 }
  0xa1   :  { %v146_v3 = vmul.f32 0.015625, %v67_v59  ;;  %v147_v4 = vmul.f32 0.015625, %v70_v62  ;;  %v208_v6 = vmul.f32 %v923_v55, %v923_v55  ;;  %v209_v12 = vmul.f32 %v926_v9, %v926_v9 }
  0xa3   :  { %v935_v7 = vsub.f32 %v723_v16, %v146_v3  ;;  %v938_v13 = vsub.f32 %v728_v17, %v147_v4  ;;  %v252_v14 = vsel %vm40_vm0, %v208_v6, 0.0  ;;  %v255_v19 = vsel %vm40_vm0, %v209_v12, 0.0 }
  0xa4   :  { %250 = vadd.xlane.f32.xlu1 %v249_v63  ;;  %253 = vadd.xlane.f32.xlu0 %v252_v14  ;;  %v73_v15 = vpop.xlane.xlu0 %72  ;;  %v76_v18 = vpop.xlane.xlu1 %75 }
  0xa5   :  { %v148_v22 = vmul.f32 0.015625, %v73_v15  ;;  %v149_v23 = vmul.f32 0.015625, %v76_v18  ;;  %v210_v0 = vmul.f32 %v935_v7, %v935_v7  ;;  %v211_v16 = vmul.f32 %v938_v13, %v938_v13 }
  0xa7   :  { %v947_v1 = vsub.f32 %v737_v20, %v148_v22  ;;  %v950_v17 = vsub.f32 %v742_v21, %v149_v23  ;;  %v258_v30 = vsel %vm40_vm0, %v210_v0, 0.0  ;;  %v261_v35 = vsel %vm40_vm0, %v211_v16, 0.0 }
  0xa8   :  { %256 = vadd.xlane.f32.xlu1 %v255_v19  ;;  %259 = vadd.xlane.f32.xlu0 %v258_v30  ;;  %v79_v31 = vpop.xlane.xlu0 %78  ;;  %v82_v34 = vpop.xlane.xlu1 %81 }
  0xa9   :  { %v150_v38 = vmul.f32 0.015625, %v79_v31  ;;  %v151_v39 = vmul.f32 0.015625, %v82_v34  ;;  %v212_v42 = vmul.f32 %v947_v1, %v947_v1  ;;  %v213_v20 = vmul.f32 %v950_v17, %v950_v17 }
  0xab   :  { %v959_v43 = vsub.f32 %v751_v24, %v150_v38  ;;  %v962_v21 = vsub.f32 %v756_v25, %v151_v39  ;;  %v264_v46 = vsel %vm40_vm0, %v212_v42, 0.0  ;;  %v267_v51 = vsel %vm40_vm0, %v213_v20, 0.0 }
  0xac   :  { %262 = vadd.xlane.f32.xlu1 %v261_v35  ;;  %265 = vadd.xlane.f32.xlu0 %v264_v46  ;;  %v85_v47 = vpop.xlane.xlu0 %84  ;;  %v88_v50 = vpop.xlane.xlu1 %87 }
  0xad   :  { %v152_v54 = vmul.f32 0.015625, %v85_v47  ;;  %v153_v8 = vmul.f32 0.015625, %v88_v50  ;;  %v214_v58 = vmul.f32 %v959_v43, %v959_v43  ;;  %v215_v24 = vmul.f32 %v962_v21, %v962_v21 }
  0xaf   :  { %v971_v59 = vsub.f32 %v765_v28, %v152_v54  ;;  %v974_v25 = vsub.f32 %v770_v29, %v153_v8  ;;  %v270_v62 = vsel %vm40_vm0, %v214_v58, 0.0  ;;  %v273_v4 = vsel %vm40_vm0, %v215_v24, 0.0 }
  0xb0   :  { %268 = vadd.xlane.f32.xlu1 %v267_v51  ;;  %271 = vadd.xlane.f32.xlu0 %v270_v62  ;;  %v91_v63 = vpop.xlane.xlu0 %90  ;;  %v94_v3 = vpop.xlane.xlu1 %93 }
  0xb1   :  { %v154_v6 = vmul.f32 0.015625, %v91_v63  ;;  %v155_v12 = vmul.f32 0.015625, %v94_v3  ;;  %v216_v14 = vmul.f32 %v971_v59, %v971_v59  ;;  %v217_v28 = vmul.f32 %v974_v25, %v974_v25 }
  0xb3   :  { %v983_v15 = vsub.f32 %v779_v32, %v154_v6  ;;  %v986_v29 = vsub.f32 %v784_v33, %v155_v12  ;;  %v276_v18 = vsel %vm40_vm0, %v216_v14, 0.0  ;;  %v279_v23 = vsel %vm40_vm0, %v217_v28, 0.0 }
  0xb4   :  { %274 = vadd.xlane.f32.xlu1 %v273_v4  ;;  %277 = vadd.xlane.f32.xlu0 %v276_v18  ;;  %v97_v19 = vpop.xlane.xlu0 %96  ;;  %v100_v22 = vpop.xlane.xlu1 %99 }
  0xb5   :  { %v156_v0 = vmul.f32 0.015625, %v97_v19  ;;  %v157_v16 = vmul.f32 0.015625, %v100_v22  ;;  %v218_v30 = vmul.f32 %v983_v15, %v983_v15  ;;  %v219_v32 = vmul.f32 %v986_v29, %v986_v29 }
  0xb7   :  { %v995_v31 = vsub.f32 %v793_v36, %v156_v0  ;;  %v998_v33 = vsub.f32 %v798_v37, %v157_v16  ;;  %v282_v34 = vsel %vm40_vm0, %v218_v30, 0.0  ;;  %v285_v39 = vsel %vm40_vm0, %v219_v32, 0.0 }
  0xb8   :  { %280 = vadd.xlane.f32.xlu1 %v279_v23  ;;  %283 = vadd.xlane.f32.xlu0 %v282_v34  ;;  %v103_v35 = vpop.xlane.xlu0 %102  ;;  %v106_v38 = vpop.xlane.xlu1 %105 }
  0xb9   :  { %v158_v42 = vmul.f32 0.015625, %v103_v35  ;;  %v159_v20 = vmul.f32 0.015625, %v106_v38  ;;  %v220_v46 = vmul.f32 %v995_v31, %v995_v31  ;;  %v221_v36 = vmul.f32 %v998_v33, %v998_v33 }
  0xbb   :  { %v1007_v47 = vsub.f32 %v807_v40, %v158_v42  ;;  %v1010_v37 = vsub.f32 %v812_v41, %v159_v20  ;;  %v288_v50 = vsel %vm40_vm0, %v220_v46, 0.0  ;;  %v291_v8 = vsel %vm40_vm0, %v221_v36, 0.0 }
  0xbc   :  { %286 = vadd.xlane.f32.xlu1 %v285_v39  ;;  %289 = vadd.xlane.f32.xlu0 %v288_v50  ;;  %v109_v51 = vpop.xlane.xlu0 %108  ;;  %v112_v54 = vpop.xlane.xlu1 %111 }
  0xbd   :  { %v160_v58 = vmul.f32 0.015625, %v109_v51  ;;  %v161_v24 = vmul.f32 0.015625, %v112_v54  ;;  %v222_v62 = vmul.f32 %v1007_v47, %v1007_v47  ;;  %v223_v40 = vmul.f32 %v1010_v37, %v1010_v37 }
  0xbf   :  { %v1019_v63 = vsub.f32 %v821_v44, %v160_v58  ;;  %v1022_v41 = vsub.f32 %v826_v45, %v161_v24  ;;  %v294_v3 = vsel %vm40_vm0, %v222_v62, 0.0  ;;  %v297_v12 = vsel %vm40_vm0, %v223_v40, 0.0 }
  0xc0   :  { %292 = vadd.xlane.f32.xlu1 %v291_v8  ;;  %295 = vadd.xlane.f32.xlu0 %v294_v3  ;;  %v115_v4 = vpop.xlane.xlu0 %114  ;;  %v118_v6 = vpop.xlane.xlu1 %117 }
  0xc1   :  { %v162_v14 = vmul.f32 0.015625, %v115_v4  ;;  %v163_v28 = vmul.f32 0.015625, %v118_v6  ;;  %v224_v18 = vmul.f32 %v1019_v63, %v1019_v63  ;;  %v225_v44 = vmul.f32 %v1022_v41, %v1022_v41 }
  0xc3   :  { %v1031_v19 = vsub.f32 %v835_v48, %v162_v14  ;;  %v1034_v45 = vsub.f32 %v840_v49, %v163_v28  ;;  %v300_v22 = vsel %vm40_vm0, %v224_v18, 0.0  ;;  %v303_v16 = vsel %vm40_vm0, %v225_v44, 0.0 }
  0xc4   :  { %298 = vadd.xlane.f32.xlu1 %v297_v12  ;;  %301 = vadd.xlane.f32.xlu0 %v300_v22  ;;  %v121_v23 = vpop.xlane.xlu0 %120  ;;  %v124_v0 = vpop.xlane.xlu1 %123 }
  0xc5   :  { %v164_v30 = vmul.f32 0.015625, %v121_v23  ;;  %v165_v32 = vmul.f32 0.015625, %v124_v0  ;;  %v226_v34 = vmul.f32 %v1031_v19, %v1031_v19  ;;  %v227_v48 = vmul.f32 %v1034_v45, %v1034_v45 }
  0xc7   :  { %v1043_v35 = vsub.f32 %v849_v52, %v164_v30  ;;  %v1046_v49 = vsub.f32 %v854_v53, %v165_v32  ;;  %v306_v38 = vsel %vm40_vm0, %v226_v34, 0.0  ;;  %v309_v20 = vsel %vm40_vm0, %v227_v48, 0.0 }
  0xc8   :  { %304 = vadd.xlane.f32.xlu1 %v303_v16  ;;  %307 = vadd.xlane.f32.xlu0 %v306_v38  ;;  %v127_v39 = vpop.xlane.xlu0 %126  ;;  %v130_v42 = vpop.xlane.xlu1 %129 }
  0xc9   :  { %v166_v46 = vmul.f32 0.015625, %v127_v39  ;;  %v167_v36 = vmul.f32 0.015625, %v130_v42  ;;  %v228_v50 = vmul.f32 %v1043_v35, %v1043_v35  ;;  %v229_v52 = vmul.f32 %v1046_v49, %v1046_v49 }
  0xcb   :  { %v1055_v51 = vsub.f32 %v863_v56, %v166_v46  ;;  %v1058_v53 = vsub.f32 %v868_v57, %v167_v36  ;;  %v312_v54 = vsel %vm40_vm0, %v228_v50, 0.0  ;;  %v315_v24 = vsel %vm40_vm0, %v229_v52, 0.0 }
  0xcc   :  { %310 = vadd.xlane.f32.xlu1 %v309_v20  ;;  %313 = vadd.xlane.f32.xlu0 %v312_v54  ;;  %v133_v8 = vpop.xlane.xlu0 %132  ;;  %v136_v58 = vpop.xlane.xlu1 %135 }
  0xcd   :  { %v168_v62 = vmul.f32 0.015625, %v133_v8  ;;  %v169_v40 = vmul.f32 0.015625, %v136_v58  ;;  %v230_v3 = vmul.f32 %v1055_v51, %v1055_v51  ;;  %v231_v56 = vmul.f32 %v1058_v53, %v1058_v53 }
  0xcf   :  { %v1067_v4 = vsub.f32 %v877_v60, %v168_v62  ;;  %v1070_v57 = vsub.f32 %v882_v61, %v169_v40  ;;  %v318_v6 = vsel %vm40_vm0, %v230_v3, 0.0  ;;  %v321_v12 = vsel %vm40_vm0, %v231_v56, 0.0 }
  0xd0   :  { %316 = vadd.xlane.f32.xlu1 %v315_v24  ;;  %319 = vadd.xlane.f32.xlu0 %v318_v6 }
  0xd1   :  { %v232_v14 = vmul.f32 %v1067_v4, %v1067_v4  ;;  %v233_v28 = vmul.f32 %v1070_v57, %v1070_v57 }
  0xd3   :  { %v324_v18 = vsel %vm40_vm0, %v232_v14, 0.0  ;;  %v327_v60 = vsel %vm40_vm0, %v233_v28, 0.0 }
  0xd4   :  { %322 = vadd.xlane.f32.xlu1 %v321_v12  ;;  %325 = vadd.xlane.f32.xlu0 %v324_v18 }
  0xd8   :  { %328 = vadd.xlane.f32.xlu1 %v327_v60 }
 0x125   :  { %v236_v61 = vpop.xlane.xlu0 %235 }
 0x126   :  { %v330_v44 = vmul.f32 0.015625, %v236_v61 }
 0x128   :  { %v362_v22 = vadd.f32 1e-05, %v330_v44 }
 0x129   :  { %v239_v23 = vpop.xlane.xlu1 %238  ;;  %v242_v0 = vpop.xlane.xlu0 %241 }
 0x12a   :  { %590 = vrsqrt.f32 %v362_v22  ;;  %v331_v16 = vmul.f32 0.015625, %v239_v23  ;;  %v332_v30 = vmul.f32 0.015625, %v242_v0 }
 0x12c   :  { %v363_v32 = vadd.f32 1e-05, %v331_v16  ;;  %v364_v34 = vadd.f32 1e-05, %v332_v30 }
 0x12d   :  { %v245_v48 = vpop.xlane.xlu1 %244  ;;  %v248_v38 = vpop.xlane.xlu0 %247 }
 0x12e   :  { %592 = vrsqrt.f32 %v363_v32  ;;  %v333_v39 = vmul.f32 0.015625, %v245_v48  ;;  %v334_v42 = vmul.f32 0.015625, %v248_v38 }
 0x12f   :  { %594 = vrsqrt.f32 %v364_v34 }
 0x130   :  { %v365_v20 = vadd.f32 1e-05, %v333_v39  ;;  %v366_v46 = vadd.f32 1e-05, %v334_v42 }
 0x131   :  { %v251_v36 = vpop.xlane.xlu1 %250  ;;  %v254_v50 = vpop.xlane.xlu0 %253 }
 0x132   :  { %596 = vrsqrt.f32 %v365_v20  ;;  %v335_v52 = vmul.f32 0.015625, %v251_v36  ;;  %v336_v54 = vmul.f32 0.015625, %v254_v50 }
 0x133   :  { %598 = vrsqrt.f32 %v366_v46 }
 0x134   :  { %v591_v8 = vpop.eup %590  ;;  %v367_v58 = vadd.f32 1e-05, %v335_v52  ;;  %v368_v24 = vadd.f32 1e-05, %v336_v54 }
 0x135   :  { %v426_v62 = vmul.f32 %v591_v8, %v889_v10  ;;  %v257_v40 = vpop.xlane.xlu1 %256  ;;  %v260_v3 = vpop.xlane.xlu0 %259 }
 0x136   :  { %600 = vrsqrt.f32 %v367_v58  ;;  %v337_v56 = vmul.f32 0.015625, %v257_v40  ;;  %v338_v6 = vmul.f32 0.015625, %v260_v3 }
 0x137   :  { %vm458_vm1 = vcmp.ge.f32.partialorder %v426_v62, 0.0  ;;  %v490_v12 = vmul.f32 0.01, %v426_v62  ;;  %602 = vrsqrt.f32 %v368_v24 }
 0x138   :  { %v593_v14 = vpop.eup %592  ;;  %v369_v28 = vadd.f32 1e-05, %v337_v56  ;;  %v370_v18 = vadd.f32 1e-05, %v338_v6 }
 0x139   :  { %v595_v60 = vpop.eup %594  ;;  %v522_v61 = vsel %vm458_vm1, %v426_v62, %v490_v12  ;;  %v427_v44 = vmul.f32 %v593_v14, %v899_v26  ;;  %v263_v22 = vpop.xlane.xlu1 %262 }
 0x13a   :  { %v266_v23 = vpop.xlane.xlu0 %265  ;;  %554 = vst.msk [vmem:[%s1241_s1] sm:$0xff] %vm40_vm0, %v522_v61  ;;  %v428_v10 = vmul.f32 %v595_v60, %v892_v11  ;;  %604 = vrsqrt.f32 %v369_v28  ;;  %v339_v0 = vmul.f32 0.015625, %v263_v22 }
 0x13b   :  { %v340_v16 = vmul.f32 0.015625, %v266_v23  ;;  %vm459_vm2 = vcmp.ge.f32.partialorder %v427_v44, 0.0  ;;  %v491_v30 = vmul.f32 0.01, %v427_v44  ;;  %606 = vrsqrt.f32 %v370_v18 }
 0x13c   :  { %v597_v32 = vpop.eup %596  ;;  %vm460_vm3 = vcmp.ge.f32.partialorder %v428_v10, 0.0  ;;  %v492_v34 = vmul.f32 0.01, %v428_v10  ;;  %v371_v48 = vadd.f32 1e-05, %v339_v0 }
 0x13d   :  { %v599_v26 = vpop.eup %598  ;;  %v523_v38 = vsel %vm459_vm2, %v427_v44, %v491_v30  ;;  %v429_v39 = vmul.f32 %v597_v32, %v902_v27  ;;  %v372_v42 = vadd.f32 1e-05, %v340_v16  ;;  %v269_v20 = vpop.xlane.xlu1 %268 }
 0x13e   :  { %v272_v46 = vpop.xlane.xlu0 %271  ;;  %555 = vst.msk [vmem:[%s1241_s1 + $0x8] sm:$0xff] %vm40_vm0, %v523_v38  ;;  %v524_v11 = vsel %vm460_vm3, %v428_v10, %v492_v34  ;;  %v430_v36 = vmul.f32 %v599_v26, %v911_v2  ;;  %608 = vrsqrt.f32 %v371_v48  ;;  %v341_v50 = vmul.f32 0.015625, %v269_v20 }
 0x13f   :  { %556 = vst.msk [vmem:[%s1241_s1 + $0x10] sm:$0xff] %vm40_vm0, %v524_v11  ;;  %vm461_vm4 = vcmp.ge.f32.partialorder %v429_v39, 0.0  ;;  %v493_v27 = vmul.f32 0.01, %v429_v39  ;;  %610 = vrsqrt.f32 %v372_v42  ;;  %v342_v52 = vmul.f32 0.015625, %v272_v46 }
 0x140   :  { %v601_v54 = vpop.eup %600  ;;  %vm462_vm5 = vcmp.ge.f32.partialorder %v430_v36, 0.0  ;;  %v494_v8 = vmul.f32 0.01, %v430_v36  ;;  %v373_v58 = vadd.f32 1e-05, %v341_v50 }
 0x141   :  { %v603_v24 = vpop.eup %602  ;;  %v525_v62 = vsel %vm461_vm4, %v429_v39, %v493_v27  ;;  %v431_v40 = vmul.f32 %v601_v54, %v914_v5  ;;  %v374_v2 = vadd.f32 1e-05, %v342_v52  ;;  %v275_v3 = vpop.xlane.xlu1 %274 }
 0x142   :  { %v278_v56 = vpop.xlane.xlu0 %277  ;;  %557 = vst.msk [vmem:[%s1241_s1 + $0x18] sm:$0xff] %vm40_vm0, %v525_v62  ;;  %v526_v6 = vsel %vm462_vm5, %v430_v36, %v494_v8  ;;  %v432_v12 = vmul.f32 %v603_v24, %v923_v55  ;;  %612 = vrsqrt.f32 %v373_v58  ;;  %v343_v14 = vmul.f32 0.015625, %v275_v3 }
 0x143   :  { %558 = vst.msk [vmem:[%s1241_s1 + $0x20] sm:$0xff] %vm40_vm0, %v526_v6  ;;  %vm463_vm6 = vcmp.ge.f32.partialorder %v431_v40, 0.0  ;;  %v495_v5 = vmul.f32 0.01, %v431_v40  ;;  %614 = vrsqrt.f32 %v374_v2  ;;  %v344_v28 = vmul.f32 0.015625, %v278_v56 }
 0x144   :  { %v605_v18 = vpop.eup %604  ;;  %vm464_vm7 = vcmp.ge.f32.partialorder %v432_v12, 0.0  ;;  %v496_v60 = vmul.f32 0.01, %v432_v12  ;;  %v375_v61 = vadd.f32 1e-05, %v343_v14 }
 0x145   :  { %v607_v44 = vpop.eup %606  ;;  %v527_v22 = vsel %vm463_vm6, %v431_v40, %v495_v5  ;;  %v433_v23 = vmul.f32 %v605_v18, %v926_v9  ;;  %v376_v55 = vadd.f32 1e-05, %v344_v28  ;;  %v281_v10 = vpop.xlane.xlu1 %280 }
 0x146   :  { %v284_v0 = vpop.xlane.xlu0 %283  ;;  %559 = vst.msk [vmem:[%s1241_s1 + $0x28] sm:$0xff] %vm40_vm0, %v527_v22  ;;  %v528_v16 = vsel %vm464_vm7, %v432_v12, %v496_v60  ;;  %v434_v30 = vmul.f32 %v607_v44, %v935_v7  ;;  %616 = vrsqrt.f32 %v375_v61  ;;  %v345_v32 = vmul.f32 0.015625, %v281_v10 }
 0x147   :  { %560 = vst.msk [vmem:[%s1241_s1 + $0x30] sm:$0xff] %vm40_vm0, %v528_v16  ;;  %vm465_vm8 = vcmp.ge.f32.partialorder %v433_v23, 0.0  ;;  %v497_v9 = vmul.f32 0.01, %v433_v23  ;;  %618 = vrsqrt.f32 %v376_v55  ;;  %v346_v34 = vmul.f32 0.015625, %v284_v0 }
 0x148   :  { %v609_v48 = vpop.eup %608  ;;  %vm466_vm9 = vcmp.ge.f32.partialorder %v434_v30, 0.0  ;;  %v498_v26 = vmul.f32 0.01, %v434_v30  ;;  %v377_v38 = vadd.f32 1e-05, %v345_v32 }
 0x149   :  { %v611_v39 = vpop.eup %610  ;;  %v529_v42 = vsel %vm465_vm8, %v433_v23, %v497_v9  ;;  %v435_v20 = vmul.f32 %v609_v48, %v938_v13  ;;  %v378_v7 = vadd.f32 1e-05, %v346_v34  ;;  %v287_v46 = vpop.xlane.xlu1 %286 }
 0x14a   :  { %v290_v11 = vpop.xlane.xlu0 %289  ;;  %561 = vst.msk [vmem:[%s1241_s1 + $0x38] sm:$0xff] %vm40_vm0, %v529_v42  ;;  %v530_v36 = vsel %vm466_vm9, %v434_v30, %v498_v26  ;;  %v436_v50 = vmul.f32 %v611_v39, %v947_v1  ;;  %620 = vrsqrt.f32 %v377_v38  ;;  %v347_v27 = vmul.f32 0.015625, %v287_v46 }
 0x14b   :  { %562 = vst.msk [vmem:[%s1241_s1 + $0x40] sm:$0xff] %vm40_vm0, %v530_v36  ;;  %vm467_vm10 = vcmp.ge.f32.partialorder %v435_v20, 0.0  ;;  %v499_v13 = vmul.f32 0.01, %v435_v20  ;;  %622 = vrsqrt.f32 %v378_v7  ;;  %v348_v52 = vmul.f32 0.015625, %v290_v11 }
 0x14c   :  { %v613_v54 = vpop.eup %612  ;;  %vm468_vm11 = vcmp.ge.f32.partialorder %v436_v50, 0.0  ;;  %v500_v8 = vmul.f32 0.01, %v436_v50  ;;  %v379_v58 = vadd.f32 1e-05, %v347_v27 }
 0x14d   :  { %v615_v24 = vpop.eup %614  ;;  %v531_v62 = vsel %vm467_vm10, %v435_v20, %v499_v13  ;;  %v437_v40 = vmul.f32 %v613_v54, %v950_v17  ;;  %v380_v1 = vadd.f32 1e-05, %v348_v52  ;;  %v293_v2 = vpop.xlane.xlu1 %292 }
 0x14e   :  { %v296_v3 = vpop.xlane.xlu0 %295  ;;  %563 = vst.msk [vmem:[%s1241_s1 + $0x48] sm:$0xff] %vm40_vm0, %v531_v62  ;;  %v532_v56 = vsel %vm468_vm11, %v436_v50, %v500_v8  ;;  %v438_v6 = vmul.f32 %v615_v24, %v959_v43  ;;  %624 = vrsqrt.f32 %v379_v58  ;;  %v349_v12 = vmul.f32 0.015625, %v293_v2 }
 0x14f   :  { %564 = vst.msk [vmem:[%s1241_s1 + $0x50] sm:$0xff] %vm40_vm0, %v532_v56  ;;  %vm469_vm12 = vcmp.ge.f32.partialorder %v437_v40, 0.0  ;;  %v501_v17 = vmul.f32 0.01, %v437_v40  ;;  %626 = vrsqrt.f32 %v380_v1  ;;  %v350_v14 = vmul.f32 0.015625, %v296_v3 }
 0x150   :  { %v617_v5 = vpop.eup %616  ;;  %vm470_vm13 = vcmp.ge.f32.partialorder %v438_v6, 0.0  ;;  %v502_v28 = vmul.f32 0.01, %v438_v6  ;;  %v381_v18 = vadd.f32 1e-05, %v349_v12 }
 0x151   :  { %v619_v60 = vpop.eup %618  ;;  %v533_v61 = vsel %vm469_vm12, %v437_v40, %v501_v17  ;;  %v439_v44 = vmul.f32 %v617_v5, %v962_v21  ;;  %v382_v43 = vadd.f32 1e-05, %v350_v14  ;;  %v299_v22 = vpop.xlane.xlu1 %298 }
 0x152   :  { %v302_v23 = vpop.xlane.xlu0 %301  ;;  %565 = vst.msk [vmem:[%s1241_s1 + $0x58] sm:$0xff] %vm40_vm0, %v533_v61  ;;  %v534_v55 = vsel %vm470_vm13, %v438_v6, %v502_v28  ;;  %v440_v10 = vmul.f32 %v619_v60, %v971_v59  ;;  %628 = vrsqrt.f32 %v381_v18  ;;  %v351_v0 = vmul.f32 0.015625, %v299_v22 }
 0x153   :  { %566 = vst.msk [vmem:[%s1241_s1 + $0x60] sm:$0xff] %vm40_vm0, %v534_v55  ;;  %vm471_vm14 = vcmp.ge.f32.partialorder %v439_v44, 0.0  ;;  %v503_v21 = vmul.f32 0.01, %v439_v44  ;;  %630 = vrsqrt.f32 %v382_v43  ;;  %v352_v16 = vmul.f32 0.015625, %v302_v23 }
 0x154   :  { %v621_v30 = vpop.eup %620  ;;  %vm472_vm15 = vcmp.ge.f32.partialorder %v440_v10, 0.0  ;;  %v504_v32 = vmul.f32 0.01, %v440_v10  ;;  %v383_v9 = vadd.f32 1e-05, %v351_v0 }
 0x155   :  { %v623_v34 = vpop.eup %622  ;;  %v535_v48 = vsel %vm471_vm14, %v439_v44, %v503_v21  ;;  %v441_v26 = vmul.f32 %v621_v30, %v974_v25  ;;  %v384_v59 = vadd.f32 1e-05, %v352_v16  ;;  %v305_v38 = vpop.xlane.xlu1 %304 }
 0x156   :  { %v308_v39 = vpop.xlane.xlu0 %307  ;;  %567 = vst.msk [vmem:[%s1241_s1 + $0x68] sm:$0xff] %vm40_vm0, %v535_v48  ;;  %v536_v42 = vsel %vm472_vm15, %v440_v10, %v504_v32  ;;  %v442_v20 = vmul.f32 %v623_v34, %v983_v15  ;;  %632 = vrsqrt.f32 %v383_v9  ;;  %v353_v7 = vmul.f32 0.015625, %v305_v38 }
 0x157   :  { %568 = vst.msk [vmem:[%s1241_s1 + $0x70] sm:$0xff] %vm40_vm0, %v536_v42  ;;  %vm473_vm1 = vcmp.ge.f32.partialorder %v441_v26, 0.0  ;;  %v505_v25 = vmul.f32 0.01, %v441_v26  ;;  %634 = vrsqrt.f32 %v384_v59  ;;  %v354_v46 = vmul.f32 0.015625, %v308_v39 }
 0x158   :  { %v625_v11 = vpop.eup %624  ;;  %vm474_vm2 = vcmp.ge.f32.partialorder %v442_v20, 0.0  ;;  %v506_v36 = vmul.f32 0.01, %v442_v20  ;;  %v385_v50 = vadd.f32 1e-05, %v353_v7 }
 0x159   :  { %v627_v27 = vpop.eup %626  ;;  %v537_v13 = vsel %vm473_vm1, %v441_v26, %v505_v25  ;;  %v443_v52 = vmul.f32 %v625_v11, %v986_v29  ;;  %v386_v15 = vadd.f32 1e-05, %v354_v46  ;;  %v311_v54 = vpop.xlane.xlu1 %310 }
 0x15a   :  { %v314_v8 = vpop.xlane.xlu0 %313  ;;  %569 = vst.msk [vmem:[%s1241_s1 + $0x78] sm:$0xff] %vm40_vm0, %v537_v13  ;;  %v538_v58 = vsel %vm474_vm2, %v442_v20, %v506_v36  ;;  %v444_v24 = vmul.f32 %v627_v27, %v995_v31  ;;  %636 = vrsqrt.f32 %v385_v50  ;;  %v355_v62 = vmul.f32 0.015625, %v311_v54 }
 0x15b   :  { %570 = vst.msk [vmem:[%s1241_s1 + $0x80] sm:$0xff] %vm40_vm0, %v538_v58  ;;  %vm475_vm3 = vcmp.ge.f32.partialorder %v443_v52, 0.0  ;;  %v507_v29 = vmul.f32 0.01, %v443_v52  ;;  %638 = vrsqrt.f32 %v386_v15  ;;  %v356_v40 = vmul.f32 0.015625, %v314_v8 }
 0x15c   :  { %v629_v1 = vpop.eup %628  ;;  %vm476_vm4 = vcmp.ge.f32.partialorder %v444_v24, 0.0  ;;  %v508_v2 = vmul.f32 0.01, %v444_v24  ;;  %v387_v3 = vadd.f32 1e-05, %v355_v62 }
 0x15d   :  { %v631_v56 = vpop.eup %630  ;;  %v539_v6 = vsel %vm475_vm3, %v443_v52, %v507_v29  ;;  %v445_v12 = vmul.f32 %v629_v1, %v998_v33  ;;  %v388_v31 = vadd.f32 1e-05, %v356_v40  ;;  %v317_v17 = vpop.xlane.xlu1 %316 }
 0x15e   :  { %v320_v14 = vpop.xlane.xlu0 %319  ;;  %571 = vst.msk [vmem:[%s1241_s1 + $0x88] sm:$0xff] %vm40_vm0, %v539_v6  ;;  %v540_v5 = vsel %vm476_vm4, %v444_v24, %v508_v2  ;;  %v446_v28 = vmul.f32 %v631_v56, %v1007_v47  ;;  %640 = vrsqrt.f32 %v387_v3  ;;  %v357_v18 = vmul.f32 0.015625, %v317_v17 }
 0x15f   :  { %572 = vst.msk [vmem:[%s1241_s1 + $0x90] sm:$0xff] %vm40_vm0, %v540_v5  ;;  %vm477_vm5 = vcmp.ge.f32.partialorder %v445_v12, 0.0  ;;  %v509_v33 = vmul.f32 0.01, %v445_v12  ;;  %642 = vrsqrt.f32 %v388_v31  ;;  %v358_v60 = vmul.f32 0.015625, %v320_v14 }
 0x160   :  { %v633_v61 = vpop.eup %632  ;;  %vm478_vm6 = vcmp.ge.f32.partialorder %v446_v28, 0.0  ;;  %v510_v44 = vmul.f32 0.01, %v446_v28  ;;  %v389_v43 = vadd.f32 1e-05, %v357_v18 }
 0x161   :  { %v635_v22 = vpop.eup %634  ;;  %v541_v23 = vsel %vm477_vm5, %v445_v12, %v509_v33  ;;  %v447_v55 = vmul.f32 %v633_v61, %v1010_v37  ;;  %v390_v47 = vadd.f32 1e-05, %v358_v60  ;;  %v323_v10 = vpop.xlane.xlu1 %322 }
 0x162   :  { %v326_v0 = vpop.xlane.xlu0 %325  ;;  %573 = vst.msk [vmem:[%s1241_s1 + $0x98] sm:$0xff] %vm40_vm0, %v541_v23  ;;  %v542_v21 = vsel %vm478_vm6, %v446_v28, %v510_v44  ;;  %v448_v16 = vmul.f32 %v635_v22, %v1019_v63  ;;  %644 = vrsqrt.f32 %v389_v43  ;;  %v359_v30 = vmul.f32 0.015625, %v323_v10 }
 0x163   :  { %574 = vst.msk [vmem:[%s1241_s1 + $0xa0] sm:$0xff] %vm40_vm0, %v542_v21  ;;  %vm479_vm7 = vcmp.ge.f32.partialorder %v447_v55, 0.0  ;;  %v511_v37 = vmul.f32 0.01, %v447_v55  ;;  %646 = vrsqrt.f32 %v390_v47  ;;  %v360_v32 = vmul.f32 0.015625, %v326_v0 }
 0x164   :  { %v637_v9 = vpop.eup %636  ;;  %vm480_vm8 = vcmp.ge.f32.partialorder %v448_v16, 0.0  ;;  %v512_v34 = vmul.f32 0.01, %v448_v16  ;;  %v391_v48 = vadd.f32 1e-05, %v359_v30 }
 0x165   :  { %v639_v26 = vpop.eup %638  ;;  %v543_v59 = vsel %vm479_vm7, %v447_v55, %v511_v37  ;;  %v449_v38 = vmul.f32 %v637_v9, %v1022_v41  ;;  %v392_v63 = vadd.f32 1e-05, %v360_v32  ;;  %v329_v39 = vpop.xlane.xlu1 %328 }
 0x166   :  { %575 = vst.msk [vmem:[%s1241_s1 + $0xa8] sm:$0xff] %vm40_vm0, %v543_v59  ;;  %v544_v42 = vsel %vm480_vm8, %v448_v16, %v512_v34  ;;  %v450_v20 = vmul.f32 %v639_v26, %v1031_v19  ;;  %648 = vrsqrt.f32 %v391_v48  ;;  %v361_v7 = vmul.f32 0.015625, %v329_v39 }
 0x167   :  { %576 = vst.msk [vmem:[%s1241_s1 + $0xb0] sm:$0xff] %vm40_vm0, %v544_v42  ;;  %vm481_vm9 = vcmp.ge.f32.partialorder %v449_v38, 0.0  ;;  %v513_v25 = vmul.f32 0.01, %v449_v38  ;;  %650 = vrsqrt.f32 %v392_v63 }
 0x168   :  { %v641_v41 = vpop.eup %640  ;;  %vm482_vm10 = vcmp.ge.f32.partialorder %v450_v20, 0.0  ;;  %v514_v46 = vmul.f32 0.01, %v450_v20  ;;  %v393_v11 = vadd.f32 1e-05, %v361_v7 }
 0x169   :  { %v643_v36 = vpop.eup %642  ;;  %v545_v50 = vsel %vm481_vm9, %v449_v38, %v513_v25  ;;  %v451_v27 = vmul.f32 %v641_v41, %v1034_v45 }
 0x16a   :  { %577 = vst.msk [vmem:[%s1241_s1 + $0xb8] sm:$0xff] %vm40_vm0, %v545_v50  ;;  %v546_v19 = vsel %vm482_vm10, %v450_v20, %v514_v46  ;;  %v452_v13 = vmul.f32 %v643_v36, %v1043_v35  ;;  %652 = vrsqrt.f32 %v393_v11 }
 0x16b   :  { %578 = vst.msk [vmem:[%s1241_s1 + $0xc0] sm:$0xff] %vm40_vm0, %v546_v19  ;;  %vm483_vm11 = vcmp.ge.f32.partialorder %v451_v27, 0.0  ;;  %v515_v52 = vmul.f32 0.01, %v451_v27 }
 0x16c   :  { %v645_v15 = vpop.eup %644  ;;  %vm484_vm12 = vcmp.ge.f32.partialorder %v452_v13, 0.0  ;;  %v516_v54 = vmul.f32 0.01, %v452_v13 }
 0x16d   :  { %v647_v45 = vpop.eup %646  ;;  %v547_v8 = vsel %vm483_vm11, %v451_v27, %v515_v52  ;;  %v453_v58 = vmul.f32 %v645_v15, %v1046_v49 }
 0x16e   :  { %579 = vst.msk [vmem:[%s1241_s1 + $0xc8] sm:$0xff] %vm40_vm0, %v547_v8  ;;  %v548_v35 = vsel %vm484_vm12, %v452_v13, %v516_v54  ;;  %v454_v24 = vmul.f32 %v647_v45, %v1055_v51 }
 0x16f   :  { %580 = vst.msk [vmem:[%s1241_s1 + $0xd0] sm:$0xff] %vm40_vm0, %v548_v35  ;;  %vm485_vm13 = vcmp.ge.f32.partialorder %v453_v58, 0.0  ;;  %v517_v62 = vmul.f32 0.01, %v453_v58 }
 0x170   :  { %v649_v29 = vpop.eup %648  ;;  %vm486_vm14 = vcmp.ge.f32.partialorder %v454_v24, 0.0  ;;  %v518_v40 = vmul.f32 0.01, %v454_v24 }
 0x171   :  { %v651_v1 = vpop.eup %650  ;;  %v549_v49 = vsel %vm485_vm13, %v453_v58, %v517_v62  ;;  %v455_v2 = vmul.f32 %v649_v29, %v1058_v53 }
 0x172   :  { %581 = vst.msk [vmem:[%s1241_s1 + $0xd8] sm:$0xff] %vm40_vm0, %v549_v49  ;;  %v550_v51 = vsel %vm486_vm14, %v454_v24, %v518_v40  ;;  %v456_v3 = vmul.f32 %v651_v1, %v1067_v4 }
 0x173   :  { %582 = vst.msk [vmem:[%s1241_s1 + $0xe0] sm:$0xff] %vm40_vm0, %v550_v51  ;;  %vm487_vm15 = vcmp.ge.f32.partialorder %v455_v2, 0.0  ;;  %v519_v56 = vmul.f32 0.01, %v455_v2 }
 0x174   :  { %v653_v6 = vpop.eup %652  ;;  %vm488_vm1 = vcmp.ge.f32.partialorder %v456_v3, 0.0  ;;  %v520_v12 = vmul.f32 0.01, %v456_v3 }
 0x175   :  { %v551_v31 = vsel %vm487_vm15, %v455_v2, %v519_v56  ;;  %v457_v53 = vmul.f32 %v653_v6, %v1070_v57 }
 0x176   :  { %583 = vst.msk [vmem:[%s1241_s1 + $0xe8] sm:$0xff] %vm40_vm0, %v551_v31  ;;  %v552_v17 = vsel %vm488_vm1, %v456_v3, %v520_v12 }
 0x177   :  { %584 = vst.msk [vmem:[%s1241_s1 + $0xf0] sm:$0xff] %vm40_vm0, %v552_v17  ;;  %vm489_vm2 = vcmp.ge.f32.partialorder %v457_v53, 0.0  ;;  %v521_v4 = vmul.f32 0.01, %v457_v53 }
 0x179   :  { %v553_v14 = vsel %vm489_vm2, %v457_v53, %v521_v4 }
 0x17a   :  { %585 = vst.msk [vmem:[%s1241_s1 + $0xf8] sm:$0xff] %vm40_vm0, %v553_v14 }

// kernel: n2_apply.28
= control target key start
LH: loop header
LB: loop body
LE: loop exit
PB: predicated region body
PF: predicated region fallthrough
CT: control target
= control target key end

     0   :  { %s15216_s0 = inlined_call_operand.vmem [shape: f32[8,512], index: 0, kind: input, shape index: {}]   ;;  %s15217_s1 = inlined_call_operand.vmem [shape: bf16[8,512,512], index: 1, kind: input, shape index: {}]   ;;  %s15218_s2 = inlined_call_operand.vmem [shape: f32[8,1,512], index: 2, kind: input, shape index: {}]   ;;  %s15219_s3 = inlined_call_operand.vmem [shape: bf16[512,32], index: 3, kind: input, shape index: {}]   ;;  %s15220_s4 = inlined_call_operand.vmem [shape: f32[1,32], index: 4, kind: input, shape index: {}]   ;;  %s15221_s5 = inlined_call_operand.vmem [shape: f32[8,32], index: 5, kind: output, shape index: {}]  }
   0x1   :  { %v11876_v0 = vld [vmem:[%s15216_s0] sm:$0xff]  ;;  %v11881_v1 = vld [vmem:[%s15216_s0 + $0x8] sm:$0xff]  ;;  %v23_v2 = vld [vmem:[%s15216_s0 + $0x10] sm:$0xff] }
   0x2   :  { %v11889_v3 = vld [vmem:[%s15216_s0 + $0x18] sm:$0xff]  ;;  %v25_v4 = vmul.f32 %v11876_v0, %v11876_v0  ;;  %v26_v5 = vmul.f32 %v11881_v1, %v11881_v1  ;;  %v27_v6 = vmul.f32 %v23_v2, %v23_v2  ;;  %v10272_v7 = vld [vmem:[%s15217_s1 + $0x4] ss:$16 sps:$4 sm:$0xff]   ;;  %v10276_v11 = vld [vmem:[%s15217_s1] ss:$16 sps:$4 sm:$0xff]  }
   0x3   :  { %v28_v8 = vmul.f32 %v11889_v3, %v11889_v3  ;;  %v10274_v10 = vld [vmem:[%s15217_s1 + $0xc] ss:$16 sps:$4 sm:$0xff]   ;;  %v10277_v12 = vld [vmem:[%s15217_s1 + $0x8] ss:$16 sps:$4 sm:$0xff]   ;;  %836 = vmatprep.subr.bf16.mxu0 %v10272_v7  ;;  %v10278_v13 = vld [vmem:[%s15217_s1 + $0x24] ss:$16 sps:$4 sm:$0xff]  }
   0x4   :  { %v29_v9 = vadd.f32 %v26_v5, %v25_v4  ;;  %918 = vmatprep.subr.bf16.mxu1 %v10274_v10  ;;  %837 = vmatpush1.bf16.msra.mxu0 %v10276_v11  ;;  %v10280_v15 = vld [vmem:[%s15217_s1 + $0x2c] ss:$16 sps:$4 sm:$0xff]   ;;  %v10282_v16 = vld [vmem:[%s15217_s1 + $0x20] ss:$16 sps:$4 sm:$0xff]   ;;  %v10283_v17 = vld [vmem:[%s15217_s1 + $0x28] ss:$16 sps:$4 sm:$0xff]  }
   0x5   :  { %919 = vmatpush1.bf16.msra.mxu1 %v10277_v12  ;;  %838 = vmatprep.subr.bf16.mxu0 %v10278_v13  ;;  %v10284_v19 = vld [vmem:[%s15217_s1 + $0x44] ss:$16 sps:$4 sm:$0xff]   ;;  %v10286_v20 = vld [vmem:[%s15217_s1 + $0x4c] ss:$16 sps:$4 sm:$0xff]   ;;  %v10288_v21 = vld [vmem:[%s15217_s1 + $0x40] ss:$16 sps:$4 sm:$0xff]  }
   0x6   :  { %v30_v14 = vadd.f32 %v29_v9, %v27_v6  ;;  %920 = vmatprep.subr.bf16.mxu1 %v10280_v15  ;;  %v10289_v22 = vld [vmem:[%s15217_s1 + $0x48] ss:$16 sps:$4 sm:$0xff]   ;;  %v10290_v23 = vld [vmem:[%s15217_s1 + $0x64] ss:$16 sps:$4 sm:$0xff]   ;;  %v10292_v24 = vld [vmem:[%s15217_s1 + $0x6c] ss:$16 sps:$4 sm:$0xff]  }
   0x7   :  { %v10294_v25 = vld [vmem:[%s15217_s1 + $0x60] ss:$16 sps:$4 sm:$0xff]   ;;  %v10295_v26 = vld [vmem:[%s15217_s1 + $0x68] ss:$16 sps:$4 sm:$0xff]   ;;  %v10296_v27 = vld [vmem:[%s15217_s1 + $0x84] ss:$16 sps:$4 sm:$0xff]  }
   0x8   :  { %v31_v18 = vadd.f32 %v30_v14, %v28_v8  ;;  %839 = vmatpush1.bf16.msra.mxu0 %v10282_v16  ;;  %v10298_v28 = vld [vmem:[%s15217_s1 + $0x8c] ss:$16 sps:$4 sm:$0xff]   ;;  %v10300_v29 = vld [vmem:[%s15217_s1 + $0x80] ss:$16 sps:$4 sm:$0xff]   ;;  %v10301_v30 = vld [vmem:[%s15217_s1 + $0x88] ss:$16 sps:$4 sm:$0xff]  }
   0x9   :  { %921 = vmatpush1.bf16.msra.mxu1 %v10283_v17  ;;  %840 = vmatprep.subr.bf16.mxu0 %v10284_v19  ;;  %v10302_v31 = vld [vmem:[%s15217_s1 + $0xa4] ss:$16 sps:$4 sm:$0xff]   ;;  %v10304_v32 = vld [vmem:[%s15217_s1 + $0xac] ss:$16 sps:$4 sm:$0xff]   ;;  %v10306_v33 = vld [vmem:[%s15217_s1 + $0xa0] ss:$16 sps:$4 sm:$0xff]  }
   0xa   :  { %32 = vadd.xlane.f32.xlu0 %v31_v18  ;;  %922 = vmatprep.subr.bf16.mxu1 %v10286_v20  ;;  %v10307_v34 = vld [vmem:[%s15217_s1 + $0xa8] ss:$16 sps:$4 sm:$0xff]   ;;  %v10308_v35 = vld [vmem:[%s15217_s1 + $0xc4] ss:$16 sps:$4 sm:$0xff]   ;;  %v10310_v36 = vld [vmem:[%s15217_s1 + $0xcc] ss:$16 sps:$4 sm:$0xff]  }
   0xb   :  { %v10312_v37 = vld [vmem:[%s15217_s1 + $0xc0] ss:$16 sps:$4 sm:$0xff]   ;;  %v10313_v38 = vld [vmem:[%s15217_s1 + $0xc8] ss:$16 sps:$4 sm:$0xff]   ;;  %v10314_v39 = vld [vmem:[%s15217_s1 + $0xe4] ss:$16 sps:$4 sm:$0xff]  }
   0xc   :  { %841 = vmatpush1.bf16.msra.mxu0 %v10288_v21  ;;  %v10316_v40 = vld [vmem:[%s15217_s1 + $0xec] ss:$16 sps:$4 sm:$0xff]   ;;  %v10318_v41 = vld [vmem:[%s15217_s1 + $0xe0] ss:$16 sps:$4 sm:$0xff]   ;;  %v10319_v42 = vld [vmem:[%s15217_s1 + $0xe8] ss:$16 sps:$4 sm:$0xff]  }
   0xd   :  { %923 = vmatpush1.bf16.msra.mxu1 %v10289_v22  ;;  %842 = vmatprep.subr.bf16.mxu0 %v10290_v23  ;;  %v10320_v43 = vld [vmem:[%s15217_s1 + $0x104] ss:$16 sps:$4 sm:$0xff]   ;;  %v10322_v44 = vld [vmem:[%s15217_s1 + $0x10c] ss:$16 sps:$4 sm:$0xff]   ;;  %v10324_v45 = vld [vmem:[%s15217_s1 + $0x100] ss:$16 sps:$4 sm:$0xff]  }
   0xe   :  { %924 = vmatprep.subr.bf16.mxu1 %v10292_v24  ;;  %v10325_v46 = vld [vmem:[%s15217_s1 + $0x108] ss:$16 sps:$4 sm:$0xff]   ;;  %v10326_v47 = vld [vmem:[%s15217_s1 + $0x124] ss:$16 sps:$4 sm:$0xff]   ;;  %v10328_v48 = vld [vmem:[%s15217_s1 + $0x12c] ss:$16 sps:$4 sm:$0xff]  }
   0xf   :  { %v10330_v49 = vld [vmem:[%s15217_s1 + $0x120] ss:$16 sps:$4 sm:$0xff]   ;;  %v10331_v50 = vld [vmem:[%s15217_s1 + $0x128] ss:$16 sps:$4 sm:$0xff]   ;;  %v10332_v51 = vld [vmem:[%s15217_s1 + $0x144] ss:$16 sps:$4 sm:$0xff]  }
  0x10   :  { %843 = vmatpush1.bf16.msra.mxu0 %v10294_v25  ;;  %v10334_v52 = vld [vmem:[%s15217_s1 + $0x14c] ss:$16 sps:$4 sm:$0xff]   ;;  %v10336_v53 = vld [vmem:[%s15217_s1 + $0x140] ss:$16 sps:$4 sm:$0xff]   ;;  %v10337_v54 = vld [vmem:[%s15217_s1 + $0x148] ss:$16 sps:$4 sm:$0xff]  }
  0x11   :  { %925 = vmatpush1.bf16.msra.mxu1 %v10295_v26  ;;  %844 = vmatprep.subr.bf16.mxu0 %v10296_v27  ;;  %v10338_v55 = vld [vmem:[%s15217_s1 + $0x164] ss:$16 sps:$4 sm:$0xff]   ;;  %v10340_v56 = vld [vmem:[%s15217_s1 + $0x16c] ss:$16 sps:$4 sm:$0xff]   ;;  %v10342_v57 = vld [vmem:[%s15217_s1 + $0x160] ss:$16 sps:$4 sm:$0xff]  }
  0x12   :  { %926 = vmatprep.subr.bf16.mxu1 %v10298_v28  ;;  %v10343_v58 = vld [vmem:[%s15217_s1 + $0x168] ss:$16 sps:$4 sm:$0xff]   ;;  %v10344_v59 = vld [vmem:[%s15217_s1 + $0x184] ss:$16 sps:$4 sm:$0xff]   ;;  %v10346_v60 = vld [vmem:[%s15217_s1 + $0x18c] ss:$16 sps:$4 sm:$0xff]  }
  0x13   :  { %v10348_v61 = vld [vmem:[%s15217_s1 + $0x180] ss:$16 sps:$4 sm:$0xff]   ;;  %v10349_v62 = vld [vmem:[%s15217_s1 + $0x188] ss:$16 sps:$4 sm:$0xff]   ;;  %v10350_v63 = vld [vmem:[%s15217_s1 + $0x1a4] ss:$16 sps:$4 sm:$0xff]  }
  0x14   :  { %845 = vmatpush1.bf16.msra.mxu0 %v10300_v29  ;;  %v10352_v2 = vld [vmem:[%s15217_s1 + $0x1ac] ss:$16 sps:$4 sm:$0xff]   ;;  %v10354_v4 = vld [vmem:[%s15217_s1 + $0x1a0] ss:$16 sps:$4 sm:$0xff]   ;;  %v10355_v5 = vld [vmem:[%s15217_s1 + $0x1a8] ss:$16 sps:$4 sm:$0xff]  }
  0x15   :  { %927 = vmatpush1.bf16.msra.mxu1 %v10301_v30  ;;  %846 = vmatprep.subr.bf16.mxu0 %v10302_v31  ;;  %v10356_v6 = vld [vmem:[%s15217_s1 + $0x1c4] ss:$16 sps:$4 sm:$0xff]   ;;  %v10358_v7 = vld [vmem:[%s15217_s1 + $0x1cc] ss:$16 sps:$4 sm:$0xff]   ;;  %v10360_v8 = vld [vmem:[%s15217_s1 + $0x1c0] ss:$16 sps:$4 sm:$0xff]  }
  0x16   :  { %928 = vmatprep.subr.bf16.mxu1 %v10304_v32  ;;  %v10361_v9 = vld [vmem:[%s15217_s1 + $0x1c8] ss:$16 sps:$4 sm:$0xff]   ;;  %v10362_v10 = vld [vmem:[%s15217_s1 + $0x1e4] ss:$16 sps:$4 sm:$0xff]   ;;  %v10364_v11 = vld [vmem:[%s15217_s1 + $0x1ec] ss:$16 sps:$4 sm:$0xff]  }
  0x17   :  { %v10366_v12 = vld [vmem:[%s15217_s1 + $0x1e0] ss:$16 sps:$4 sm:$0xff]   ;;  %v10367_v13 = vld [vmem:[%s15217_s1 + $0x1e8] ss:$16 sps:$4 sm:$0xff]   ;;  %v10370_v14 = vld [vmem:[%s15217_s1 + $0x204] ss:$16 sps:$4 sm:$0xff]  }
  0x18   :  { %847 = vmatpush1.bf16.msra.mxu0 %v10306_v33  ;;  %v10373_v15 = vld [vmem:[%s15217_s1 + $0x20c] ss:$16 sps:$4 sm:$0xff]   ;;  %v10368_v21 = vld [vmem:[%s15217_s1 + $0x200] ss:$16 sps:$4 sm:$0xff]   ;;  %v10371_v22 = vld [vmem:[%s15217_s1 + $0x208] ss:$16 sps:$4 sm:$0xff]  }
  0x19   :  { %929 = vmatpush1.bf16.msra.mxu1 %v10307_v34  ;;  %848 = vmatprep.subr.bf16.mxu0 %v10308_v35  ;;  %v10379_v27 = vld [vmem:[%s15217_s1 + $0x22c] ss:$16 sps:$4 sm:$0xff]   ;;  %v10374_v28 = vld [vmem:[%s15217_s1 + $0x220] ss:$16 sps:$4 sm:$0xff]   ;;  %v10382_v29 = vld [vmem:[%s15217_s1 + $0x244] ss:$16 sps:$4 sm:$0xff]  }
  0x1a   :  { %930 = vmatprep.subr.bf16.mxu1 %v10310_v36  ;;  %v10385_v30 = vld [vmem:[%s15217_s1 + $0x24c] ss:$16 sps:$4 sm:$0xff]   ;;  %v10380_v31 = vld [vmem:[%s15217_s1 + $0x240] ss:$16 sps:$4 sm:$0xff]   ;;  %v10383_v32 = vld [vmem:[%s15217_s1 + $0x248] ss:$16 sps:$4 sm:$0xff]  }
  0x1b   :  { %v10388_v33 = vld [vmem:[%s15217_s1 + $0x264] ss:$16 sps:$4 sm:$0xff]   ;;  %v10391_v34 = vld [vmem:[%s15217_s1 + $0x26c] ss:$16 sps:$4 sm:$0xff]   ;;  %v10386_v35 = vld [vmem:[%s15217_s1 + $0x260] ss:$16 sps:$4 sm:$0xff]  }
  0x1c   :  { %849 = vmatpush1.bf16.msra.mxu0 %v10312_v37  ;;  %v10389_v36 = vld [vmem:[%s15217_s1 + $0x268] ss:$16 sps:$4 sm:$0xff]   ;;  %v10394_v37 = vld [vmem:[%s15217_s1 + $0x284] ss:$16 sps:$4 sm:$0xff]  }
  0x1d   :  { %931 = vmatpush1.bf16.msra.mxu1 %v10313_v38  ;;  %850 = vmatprep.subr.bf16.mxu0 %v10314_v39  ;;  %v10397_v38 = vld [vmem:[%s15217_s1 + $0x28c] ss:$16 sps:$4 sm:$0xff]   ;;  %v10392_v39 = vld [vmem:[%s15217_s1 + $0x280] ss:$16 sps:$4 sm:$0xff]  }
  0x1e   :  { %932 = vmatprep.subr.bf16.mxu1 %v10316_v40  ;;  %v10395_v40 = vld [vmem:[%s15217_s1 + $0x288] ss:$16 sps:$4 sm:$0xff]  }
  0x20   :  { %851 = vmatpush1.bf16.msra.mxu0 %v10318_v41  ;;  %v10400_v41 = vld [vmem:[%s15217_s1 + $0x2a4] ss:$16 sps:$4 sm:$0xff]  }
  0x21   :  { %933 = vmatpush1.bf16.msra.mxu1 %v10319_v42  ;;  %852 = vmatprep.subr.bf16.mxu0 %v10320_v43  ;;  %v10403_v42 = vld [vmem:[%s15217_s1 + $0x2ac] ss:$16 sps:$4 sm:$0xff]   ;;  %v10398_v43 = vld [vmem:[%s15217_s1 + $0x2a0] ss:$16 sps:$4 sm:$0xff]  }
  0x22   :  { %934 = vmatprep.subr.bf16.mxu1 %v10322_v44  ;;  %v10401_v44 = vld [vmem:[%s15217_s1 + $0x2a8] ss:$16 sps:$4 sm:$0xff]  }
  0x24   :  { %853 = vmatpush1.bf16.msra.mxu0 %v10324_v45  ;;  %v10406_v45 = vld [vmem:[%s15217_s1 + $0x2c4] ss:$16 sps:$4 sm:$0xff]  }
  0x25   :  { %935 = vmatpush1.bf16.msra.mxu1 %v10325_v46  ;;  %854 = vmatprep.subr.bf16.mxu0 %v10326_v47  ;;  %v10409_v46 = vld [vmem:[%s15217_s1 + $0x2cc] ss:$16 sps:$4 sm:$0xff]   ;;  %v10404_v47 = vld [vmem:[%s15217_s1 + $0x2c0] ss:$16 sps:$4 sm:$0xff]  }
  0x26   :  { %936 = vmatprep.subr.bf16.mxu1 %v10328_v48  ;;  %v10407_v48 = vld [vmem:[%s15217_s1 + $0x2c8] ss:$16 sps:$4 sm:$0xff]  }
  0x28   :  { %855 = vmatpush1.bf16.msra.mxu0 %v10330_v49  ;;  %v10412_v49 = vld [vmem:[%s15217_s1 + $0x2e4] ss:$16 sps:$4 sm:$0xff]  }
  0x29   :  { %937 = vmatpush1.bf16.msra.mxu1 %v10331_v50  ;;  %856 = vmatprep.subr.bf16.mxu0 %v10332_v51  ;;  %v10415_v50 = vld [vmem:[%s15217_s1 + $0x2ec] ss:$16 sps:$4 sm:$0xff]   ;;  %v10410_v51 = vld [vmem:[%s15217_s1 + $0x2e0] ss:$16 sps:$4 sm:$0xff]  }
  0x2a   :  { %938 = vmatprep.subr.bf16.mxu1 %v10334_v52  ;;  %v10413_v52 = vld [vmem:[%s15217_s1 + $0x2e8] ss:$16 sps:$4 sm:$0xff]  }
  0x2c   :  { %857 = vmatpush1.bf16.msra.mxu0 %v10336_v53  ;;  %v10418_v53 = vld [vmem:[%s15217_s1 + $0x304] ss:$16 sps:$4 sm:$0xff]  }
  0x2d   :  { %939 = vmatpush1.bf16.msra.mxu1 %v10337_v54  ;;  %858 = vmatprep.subr.bf16.mxu0 %v10338_v55  ;;  %v10421_v54 = vld [vmem:[%s15217_s1 + $0x30c] ss:$16 sps:$4 sm:$0xff]   ;;  %v10416_v55 = vld [vmem:[%s15217_s1 + $0x300] ss:$16 sps:$4 sm:$0xff]  }
  0x2e   :  { %940 = vmatprep.subr.bf16.mxu1 %v10340_v56  ;;  %v10419_v56 = vld [vmem:[%s15217_s1 + $0x308] ss:$16 sps:$4 sm:$0xff]  }
  0x30   :  { %859 = vmatpush1.bf16.msra.mxu0 %v10342_v57  ;;  %v10424_v57 = vld [vmem:[%s15217_s1 + $0x324] ss:$16 sps:$4 sm:$0xff]  }
  0x31   :  { %941 = vmatpush1.bf16.msra.mxu1 %v10343_v58  ;;  %860 = vmatprep.subr.bf16.mxu0 %v10344_v59  ;;  %v10427_v58 = vld [vmem:[%s15217_s1 + $0x32c] ss:$16 sps:$4 sm:$0xff]   ;;  %v10422_v59 = vld [vmem:[%s15217_s1 + $0x320] ss:$16 sps:$4 sm:$0xff]  }
  0x32   :  { %942 = vmatprep.subr.bf16.mxu1 %v10346_v60  ;;  %v10425_v60 = vld [vmem:[%s15217_s1 + $0x328] ss:$16 sps:$4 sm:$0xff]  }
  0x34   :  { %861 = vmatpush1.bf16.msra.mxu0 %v10348_v61  ;;  %v10430_v61 = vld [vmem:[%s15217_s1 + $0x344] ss:$16 sps:$4 sm:$0xff]  }
  0x35   :  { %943 = vmatpush1.bf16.msra.mxu1 %v10349_v62  ;;  %862 = vmatprep.subr.bf16.mxu0 %v10350_v63  ;;  %v10433_v62 = vld [vmem:[%s15217_s1 + $0x34c] ss:$16 sps:$4 sm:$0xff]   ;;  %v10428_v63 = vld [vmem:[%s15217_s1 + $0x340] ss:$16 sps:$4 sm:$0xff]  }
  0x36   :  { %944 = vmatprep.subr.bf16.mxu1 %v10352_v2  ;;  %v10431_v2 = vld [vmem:[%s15217_s1 + $0x348] ss:$16 sps:$4 sm:$0xff]  }
  0x38   :  { %863 = vmatpush1.bf16.msra.mxu0 %v10354_v4  ;;  %v10436_v4 = vld [vmem:[%s15217_s1 + $0x364] ss:$16 sps:$4 sm:$0xff]  }
  0x39   :  { %945 = vmatpush1.bf16.msra.mxu1 %v10355_v5  ;;  %864 = vmatprep.subr.bf16.mxu0 %v10356_v6  ;;  %v10439_v5 = vld [vmem:[%s15217_s1 + $0x36c] ss:$16 sps:$4 sm:$0xff]   ;;  %v10434_v6 = vld [vmem:[%s15217_s1 + $0x360] ss:$16 sps:$4 sm:$0xff]  }
  0x3a   :  { %946 = vmatprep.subr.bf16.mxu1 %v10358_v7  ;;  %v10437_v7 = vld [vmem:[%s15217_s1 + $0x368] ss:$16 sps:$4 sm:$0xff]  }
  0x3c   :  { %865 = vmatpush1.bf16.msra.mxu0 %v10360_v8  ;;  %v10442_v8 = vld [vmem:[%s15217_s1 + $0x384] ss:$16 sps:$4 sm:$0xff]  }
  0x3d   :  { %947 = vmatpush1.bf16.msra.mxu1 %v10361_v9  ;;  %866 = vmatprep.subr.bf16.mxu0 %v10362_v10  ;;  %v10445_v9 = vld [vmem:[%s15217_s1 + $0x38c] ss:$16 sps:$4 sm:$0xff]   ;;  %v10440_v10 = vld [vmem:[%s15217_s1 + $0x380] ss:$16 sps:$4 sm:$0xff]  }
  0x3e   :  { %948 = vmatprep.subr.bf16.mxu1 %v10364_v11  ;;  %v10443_v11 = vld [vmem:[%s15217_s1 + $0x388] ss:$16 sps:$4 sm:$0xff]  }
  0x40   :  { %867 = vmatpush1.bf16.msra.mxu0 %v10366_v12  ;;  %v10448_v12 = vld [vmem:[%s15217_s1 + $0x3a4] ss:$16 sps:$4 sm:$0xff]  }
  0x41   :  { %949 = vmatpush1.bf16.msra.mxu1 %v10367_v13  ;;  %877 = vmatprep.subr.bf16.mxu0 %v10370_v14  ;;  %v10451_v13 = vld [vmem:[%s15217_s1 + $0x3ac] ss:$16 sps:$4 sm:$0xff]   ;;  %v10446_v14 = vld [vmem:[%s15217_s1 + $0x3a0] ss:$16 sps:$4 sm:$0xff]  }
  0x42   :  { %959 = vmatprep.subr.bf16.mxu1 %v10373_v15  ;;  %v10449_v15 = vld [vmem:[%s15217_s1 + $0x3a8] ss:$16 sps:$4 sm:$0xff]  }
  0x97   :  { %v33_v16 = vpop.xlane.xlu0 %32 }
  0x98   :  { %v35_v17 = vmul.f32 0.001953125, %v33_v16  ;;  %v10454_v16 = vld [vmem:[%s15217_s1 + $0x3c4] ss:$16 sps:$4 sm:$0xff]  }
  0x9a   :  { %v36_v18 = vadd.f32 1e-08, %v35_v17  ;;  %v10457_v17 = vld [vmem:[%s15217_s1 + $0x3cc] ss:$16 sps:$4 sm:$0xff]  }
  0x9c   :  { %11840 = vrsqrt.f32 %v36_v18  ;;  %v10452_v18 = vld [vmem:[%s15217_s1 + $0x3c0] ss:$16 sps:$4 sm:$0xff]  }
  0xa6   :  { %v12095_v19 = vpop.eup %11840 }
  0xa7   :  { %v39_v20 = vmul.f32 %v12095_v19, %v11881_v1  ;;  %v38_v23 = vmul.f32 %v12095_v19, %v11876_v0  ;;  %v41_v24 = vmul.f32 %v12095_v19, %v11889_v3  ;;  %v10376_v1 = vld [vmem:[%s15217_s1 + $0x224] ss:$16 sps:$4 sm:$0xff]   ;;  %v10377_v0 = vld [vmem:[%s15217_s1 + $0x228] ss:$16 sps:$4 sm:$0xff]  }
  0xa9   :  { %v172_v25 = vpack.c.bf16 %v39_v20, %v39_v20  ;;  %v171_v26 = vpack.c.bf16 %v38_v23, %v38_v23  ;;  %v174_v3 = vpack.c.bf16 %v41_v24, %v41_v24  ;;  %v10455_v20 = vld [vmem:[%s15217_s1 + $0x3c8] ss:$16 sps:$4 sm:$0xff]   ;;  %v10458_v23 = vld [vmem:[%s15217_s1 + $0x3e0] ss:$16 sps:$4 sm:$0xff]  }
  0xaa   :  { %v10461_v24 = vld [vmem:[%s15217_s1 + $0x3e8] ss:$16 sps:$4 sm:$0xff]  }
  0xab   :  { %868 = vmatprep.mubr.bf16.mxu0 %v172_v25  ;;  %950 = vmatprep.mubr.bf16.mxu1 %v172_v25  ;;  %v10466_v25 = vld [vmem:[%s15217_s1 + $0x404] ss:$16 sps:$4 sm:$0xff]  }
  0xac   :  { %869 = vmatmul.mubr.bf16.vlgmr.msra.gmra.mrb[0].mxu0 %v171_v26  ;;  %951 = vmatmul.mubr.bf16.vlgmr.msra.gmra.mrb[0].mxu1 %v171_v26  ;;  %v10469_v26 = vld [vmem:[%s15217_s1 + $0x40c] ss:$16 sps:$4 sm:$0xff]  }
  0xad   :  { %878 = vmatpush1.bf16.msra.mxu0 %v10368_v21  ;;  %960 = vmatpush1.bf16.msra.mxu1 %v10371_v22  ;;  %v10460_v21 = vld [vmem:[%s15217_s1 + $0x3e4] ss:$16 sps:$4 sm:$0xff]   ;;  %v10463_v22 = vld [vmem:[%s15217_s1 + $0x3ec] ss:$16 sps:$4 sm:$0xff]  }
  0xae   :  { %909 = vmatprep.mubr.bf16.mxu0 %v174_v3  ;;  %991 = vmatprep.mubr.bf16.mxu1 %v174_v3  ;;  %v10472_v3 = vld [vmem:[%s15217_s1 + $0x424] ss:$16 sps:$4 sm:$0xff]  }
  0xaf   :  { %879 = vmatprep.subr.bf16.mxu0 %v10376_v1  ;;  %961 = vmatprep.subr.bf16.mxu1 %v10379_v27  ;;  %v11842_v1 = vld [vmem:[%s15216_s0 + $0x10] sm:$0xff] }
  0xb0   :  { %v40_v27 = vmul.f32 %v11842_v1, %v12095_v19  ;;  %v10470_v19 = vld [vmem:[%s15217_s1 + $0x420] ss:$16 sps:$4 sm:$0xff]   ;;  %v10557_v1 = vld [vmem:[%s15217_s1 + $0x5e8] ss:$16 sps:$4 sm:$0xff]  }
  0xb1   :  { %880 = vmatpush1.bf16.msra.mxu0 %v10374_v28  ;;  %962 = vmatpush1.bf16.msra.mxu1 %v10377_v0  ;;  %v10464_v28 = vld [vmem:[%s15217_s1 + $0x400] ss:$16 sps:$4 sm:$0xff]   ;;  %v10467_v0 = vld [vmem:[%s15217_s1 + $0x408] ss:$16 sps:$4 sm:$0xff]  }
  0xb2   :  { %881 = vmatprep.subr.bf16.mxu0 %v10382_v29  ;;  %963 = vmatprep.subr.bf16.mxu1 %v10385_v30  ;;  %v10475_v29 = vld [vmem:[%s15217_s1 + $0x42c] ss:$16 sps:$4 sm:$0xff]   ;;  %v173_v30 = vpack.c.bf16 %v40_v27, %v40_v27  ;;  %v10562_v27 = vld [vmem:[%s15217_s1 + $0x604] ss:$16 sps:$4 sm:$0xff]  }
  0xb5   :  { %882 = vmatpush1.bf16.msra.mxu0 %v10380_v31  ;;  %964 = vmatpush1.bf16.msra.mxu1 %v10383_v32  ;;  %v10473_v31 = vld [vmem:[%s15217_s1 + $0x428] ss:$16 sps:$4 sm:$0xff]   ;;  %v10478_v32 = vld [vmem:[%s15217_s1 + $0x444] ss:$16 sps:$4 sm:$0xff]  }
  0xb6   :  { %883 = vmatprep.subr.bf16.mxu0 %v10388_v33  ;;  %965 = vmatprep.subr.bf16.mxu1 %v10391_v34  ;;  %v10481_v33 = vld [vmem:[%s15217_s1 + $0x44c] ss:$16 sps:$4 sm:$0xff]   ;;  %v10476_v34 = vld [vmem:[%s15217_s1 + $0x440] ss:$16 sps:$4 sm:$0xff]  }
  0xb9   :  { %884 = vmatpush1.bf16.msra.mxu0 %v10386_v35  ;;  %966 = vmatpush1.bf16.msra.mxu1 %v10389_v36  ;;  %v10479_v35 = vld [vmem:[%s15217_s1 + $0x448] ss:$16 sps:$4 sm:$0xff]   ;;  %v10484_v36 = vld [vmem:[%s15217_s1 + $0x464] ss:$16 sps:$4 sm:$0xff]  }
  0xba   :  { %885 = vmatprep.subr.bf16.mxu0 %v10394_v37  ;;  %967 = vmatprep.subr.bf16.mxu1 %v10397_v38  ;;  %v10487_v37 = vld [vmem:[%s15217_s1 + $0x46c] ss:$16 sps:$4 sm:$0xff]   ;;  %v10482_v38 = vld [vmem:[%s15217_s1 + $0x460] ss:$16 sps:$4 sm:$0xff]  }
  0xbd   :  { %886 = vmatpush1.bf16.msra.mxu0 %v10392_v39  ;;  %968 = vmatpush1.bf16.msra.mxu1 %v10395_v40  ;;  %v10485_v39 = vld [vmem:[%s15217_s1 + $0x468] ss:$16 sps:$4 sm:$0xff]   ;;  %v10490_v40 = vld [vmem:[%s15217_s1 + $0x484] ss:$16 sps:$4 sm:$0xff]  }
  0xbe   :  { %887 = vmatprep.subr.bf16.mxu0 %v10400_v41  ;;  %969 = vmatprep.subr.bf16.mxu1 %v10403_v42  ;;  %v10493_v41 = vld [vmem:[%s15217_s1 + $0x48c] ss:$16 sps:$4 sm:$0xff]   ;;  %v10488_v42 = vld [vmem:[%s15217_s1 + $0x480] ss:$16 sps:$4 sm:$0xff]  }
  0xc1   :  { %888 = vmatpush1.bf16.msra.mxu0 %v10398_v43  ;;  %970 = vmatpush1.bf16.msra.mxu1 %v10401_v44  ;;  %v10491_v43 = vld [vmem:[%s15217_s1 + $0x488] ss:$16 sps:$4 sm:$0xff]   ;;  %v10496_v44 = vld [vmem:[%s15217_s1 + $0x4a4] ss:$16 sps:$4 sm:$0xff]  }
  0xc2   :  { %889 = vmatprep.subr.bf16.mxu0 %v10406_v45  ;;  %971 = vmatprep.subr.bf16.mxu1 %v10409_v46  ;;  %v10499_v45 = vld [vmem:[%s15217_s1 + $0x4ac] ss:$16 sps:$4 sm:$0xff]   ;;  %v10494_v46 = vld [vmem:[%s15217_s1 + $0x4a0] ss:$16 sps:$4 sm:$0xff]  }
  0xc5   :  { %890 = vmatpush1.bf16.msra.mxu0 %v10404_v47  ;;  %972 = vmatpush1.bf16.msra.mxu1 %v10407_v48  ;;  %v10497_v47 = vld [vmem:[%s15217_s1 + $0x4a8] ss:$16 sps:$4 sm:$0xff]   ;;  %v10502_v48 = vld [vmem:[%s15217_s1 + $0x4c4] ss:$16 sps:$4 sm:$0xff]  }
  0xc6   :  { %891 = vmatprep.subr.bf16.mxu0 %v10412_v49  ;;  %973 = vmatprep.subr.bf16.mxu1 %v10415_v50  ;;  %v10505_v49 = vld [vmem:[%s15217_s1 + $0x4cc] ss:$16 sps:$4 sm:$0xff]   ;;  %v10500_v50 = vld [vmem:[%s15217_s1 + $0x4c0] ss:$16 sps:$4 sm:$0xff]  }
  0xc9   :  { %892 = vmatpush1.bf16.msra.mxu0 %v10410_v51  ;;  %974 = vmatpush1.bf16.msra.mxu1 %v10413_v52  ;;  %v10503_v51 = vld [vmem:[%s15217_s1 + $0x4c8] ss:$16 sps:$4 sm:$0xff]   ;;  %v10508_v52 = vld [vmem:[%s15217_s1 + $0x4e4] ss:$16 sps:$4 sm:$0xff]  }
  0xca   :  { %893 = vmatprep.subr.bf16.mxu0 %v10418_v53  ;;  %975 = vmatprep.subr.bf16.mxu1 %v10421_v54  ;;  %v10511_v53 = vld [vmem:[%s15217_s1 + $0x4ec] ss:$16 sps:$4 sm:$0xff]   ;;  %v10506_v54 = vld [vmem:[%s15217_s1 + $0x4e0] ss:$16 sps:$4 sm:$0xff]  }
  0xcd   :  { %894 = vmatpush1.bf16.msra.mxu0 %v10416_v55  ;;  %976 = vmatpush1.bf16.msra.mxu1 %v10419_v56  ;;  %v10509_v55 = vld [vmem:[%s15217_s1 + $0x4e8] ss:$16 sps:$4 sm:$0xff]   ;;  %v10514_v56 = vld [vmem:[%s15217_s1 + $0x504] ss:$16 sps:$4 sm:$0xff]  }
  0xce   :  { %895 = vmatprep.subr.bf16.mxu0 %v10424_v57  ;;  %977 = vmatprep.subr.bf16.mxu1 %v10427_v58  ;;  %v10517_v57 = vld [vmem:[%s15217_s1 + $0x50c] ss:$16 sps:$4 sm:$0xff]   ;;  %v10512_v58 = vld [vmem:[%s15217_s1 + $0x500] ss:$16 sps:$4 sm:$0xff]  }
  0xd1   :  { %896 = vmatpush1.bf16.msra.mxu0 %v10422_v59  ;;  %978 = vmatpush1.bf16.msra.mxu1 %v10425_v60  ;;  %v10515_v59 = vld [vmem:[%s15217_s1 + $0x508] ss:$16 sps:$4 sm:$0xff]   ;;  %v10520_v60 = vld [vmem:[%s15217_s1 + $0x524] ss:$16 sps:$4 sm:$0xff]  }
  0xd2   :  { %897 = vmatprep.subr.bf16.mxu0 %v10430_v61  ;;  %979 = vmatprep.subr.bf16.mxu1 %v10433_v62  ;;  %v10523_v61 = vld [vmem:[%s15217_s1 + $0x52c] ss:$16 sps:$4 sm:$0xff]   ;;  %v10518_v62 = vld [vmem:[%s15217_s1 + $0x520] ss:$16 sps:$4 sm:$0xff]  }
  0xd5   :  { %898 = vmatpush1.bf16.msra.mxu0 %v10428_v63  ;;  %980 = vmatpush1.bf16.msra.mxu1 %v10431_v2  ;;  %v10521_v63 = vld [vmem:[%s15217_s1 + $0x528] ss:$16 sps:$4 sm:$0xff]   ;;  %v10526_v2 = vld [vmem:[%s15217_s1 + $0x544] ss:$16 sps:$4 sm:$0xff]  }
  0xd6   :  { %899 = vmatprep.subr.bf16.mxu0 %v10436_v4  ;;  %981 = vmatprep.subr.bf16.mxu1 %v10439_v5  ;;  %v10529_v4 = vld [vmem:[%s15217_s1 + $0x54c] ss:$16 sps:$4 sm:$0xff]   ;;  %v10524_v5 = vld [vmem:[%s15217_s1 + $0x540] ss:$16 sps:$4 sm:$0xff]  }
  0xd9   :  { %900 = vmatpush1.bf16.msra.mxu0 %v10434_v6  ;;  %982 = vmatpush1.bf16.msra.mxu1 %v10437_v7  ;;  %v10527_v6 = vld [vmem:[%s15217_s1 + $0x548] ss:$16 sps:$4 sm:$0xff]   ;;  %v10532_v7 = vld [vmem:[%s15217_s1 + $0x564] ss:$16 sps:$4 sm:$0xff]  }
  0xda   :  { %901 = vmatprep.subr.bf16.mxu0 %v10442_v8  ;;  %983 = vmatprep.subr.bf16.mxu1 %v10445_v9  ;;  %v10535_v8 = vld [vmem:[%s15217_s1 + $0x56c] ss:$16 sps:$4 sm:$0xff]   ;;  %v10530_v9 = vld [vmem:[%s15217_s1 + $0x560] ss:$16 sps:$4 sm:$0xff]  }
  0xdd   :  { %902 = vmatpush1.bf16.msra.mxu0 %v10440_v10  ;;  %984 = vmatpush1.bf16.msra.mxu1 %v10443_v11  ;;  %v10533_v10 = vld [vmem:[%s15217_s1 + $0x568] ss:$16 sps:$4 sm:$0xff]   ;;  %v10538_v11 = vld [vmem:[%s15217_s1 + $0x584] ss:$16 sps:$4 sm:$0xff]  }
  0xde   :  { %903 = vmatprep.subr.bf16.mxu0 %v10448_v12  ;;  %985 = vmatprep.subr.bf16.mxu1 %v10451_v13  ;;  %v10541_v12 = vld [vmem:[%s15217_s1 + $0x58c] ss:$16 sps:$4 sm:$0xff]   ;;  %v10536_v13 = vld [vmem:[%s15217_s1 + $0x580] ss:$16 sps:$4 sm:$0xff]  }
  0xe1   :  { %904 = vmatpush1.bf16.msra.mxu0 %v10446_v14  ;;  %986 = vmatpush1.bf16.msra.mxu1 %v10449_v15  ;;  %v10539_v14 = vld [vmem:[%s15217_s1 + $0x588] ss:$16 sps:$4 sm:$0xff]   ;;  %v10544_v15 = vld [vmem:[%s15217_s1 + $0x5a4] ss:$16 sps:$4 sm:$0xff]  }
  0xe2   :  { %905 = vmatprep.subr.bf16.mxu0 %v10454_v16  ;;  %987 = vmatprep.subr.bf16.mxu1 %v10457_v17  ;;  %v10547_v16 = vld [vmem:[%s15217_s1 + $0x5ac] ss:$16 sps:$4 sm:$0xff]   ;;  %v10542_v17 = vld [vmem:[%s15217_s1 + $0x5a0] ss:$16 sps:$4 sm:$0xff]  }
  0xe5   :  { %906 = vmatpush1.bf16.msra.mxu0 %v10452_v18  ;;  %988 = vmatpush1.bf16.msra.mxu1 %v10455_v20  ;;  %v10545_v18 = vld [vmem:[%s15217_s1 + $0x5a8] ss:$16 sps:$4 sm:$0xff]   ;;  %v10550_v20 = vld [vmem:[%s15217_s1 + $0x5c4] ss:$16 sps:$4 sm:$0xff]  }
  0xe6   :  { %907 = vmatprep.subr.bf16.mxu0 %v10460_v21  ;;  %989 = vmatprep.subr.bf16.mxu1 %v10463_v22  ;;  %v10553_v21 = vld [vmem:[%s15217_s1 + $0x5cc] ss:$16 sps:$4 sm:$0xff]   ;;  %v10548_v22 = vld [vmem:[%s15217_s1 + $0x5c0] ss:$16 sps:$4 sm:$0xff]  }
  0xe9   :  { %908 = vmatpush1.bf16.msra.mxu0 %v10458_v23  ;;  %990 = vmatpush1.bf16.msra.mxu1 %v10461_v24  ;;  %v10551_v23 = vld [vmem:[%s15217_s1 + $0x5c8] ss:$16 sps:$4 sm:$0xff]   ;;  %v10556_v24 = vld [vmem:[%s15217_s1 + $0x5e4] ss:$16 sps:$4 sm:$0xff]  }
  0xea   :  { %1808 = vmatprep.subr.bf16.mxu0 %v10466_v25  ;;  %1890 = vmatprep.subr.bf16.mxu1 %v10469_v26  ;;  %v10559_v25 = vld [vmem:[%s15217_s1 + $0x5ec] ss:$16 sps:$4 sm:$0xff]   ;;  %v10554_v26 = vld [vmem:[%s15217_s1 + $0x5e0] ss:$16 sps:$4 sm:$0xff]  }
  0xec   :  { %910 = vmatmul.mubr.bf16.vlgmr.msra.gmra.mrb[0].mxu0 %v173_v30  ;;  %992 = vmatmul.mubr.bf16.vlgmr.msra.gmra.mrb[0].mxu1 %v173_v30 }
  0xed   :  { %1809 = vmatpush1.bf16.msra.mxu0 %v10464_v28  ;;  %1891 = vmatpush1.bf16.msra.mxu1 %v10467_v0  ;;  %v10565_v28 = vld [vmem:[%s15217_s1 + $0x60c] ss:$16 sps:$4 sm:$0xff]   ;;  %v176_v0 = vlaneseq }
  0xee   :  { %1810 = vmatprep.subr.bf16.mxu0 %v10472_v3  ;;  %1892 = vmatprep.subr.bf16.mxu1 %v10475_v29  ;;  %v12496_v29 = vld [vmem:[%s15218_s2] sm:$0xf] }
  0xef   :  { %v12491_v3 = vshrl.u32 %v176_v0, 7  ;;  %v10619_v0 = vld [vmem:[%s15217_s1 + $0x72c] ss:$16 sps:$4 sm:$0xff]  }
  0xf1   :  { %1811 = vmatpush1.bf16.msra.mxu0 %v10470_v19  ;;  %1893 = vmatpush1.bf16.msra.mxu1 %v10473_v31  ;;  %v12499_v30 = vsub.s32 0, %v12491_v3  ;;  %v12502_v19 = vsub.s32 1, %v12491_v3  ;;  %v12505_v31 = vsub.s32 3, %v12491_v3 }
  0xf2   :  { %1812 = vmatprep.subr.bf16.mxu0 %v10478_v32  ;;  %1894 = vmatprep.subr.bf16.mxu1 %v10481_v33 }
  0xf3   :  { %v179_v32 = vrot.slane %v12496_v29, %v12499_v30  ;;  %v183_v33 = vrot.slane %v12496_v29, %v12502_v19 }
  0xf5   :  { %1813 = vmatpush1.bf16.msra.mxu0 %v10476_v34  ;;  %1895 = vmatpush1.bf16.msra.mxu1 %v10479_v35  ;;  %v191_v34 = vrot.slane %v12496_v29, %v12505_v31 }
  0xf6   :  { %1814 = vmatprep.subr.bf16.mxu0 %v10484_v36  ;;  %1896 = vmatprep.subr.bf16.mxu1 %v10487_v37 }
  0xf9   :  { %1815 = vmatpush1.bf16.msra.mxu0 %v10482_v38  ;;  %1897 = vmatpush1.bf16.msra.mxu1 %v10485_v39 }
  0xfa   :  { %1816 = vmatprep.subr.bf16.mxu0 %v10490_v40  ;;  %1898 = vmatprep.subr.bf16.mxu1 %v10493_v41 }
  0xfd   :  { %1817 = vmatpush1.bf16.msra.mxu0 %v10488_v42  ;;  %1899 = vmatpush1.bf16.msra.mxu1 %v10491_v43 }
  0xfe   :  { %1818 = vmatprep.subr.bf16.mxu0 %v10496_v44  ;;  %1900 = vmatprep.subr.bf16.mxu1 %v10499_v45 }
 0x101   :  { %1819 = vmatpush1.bf16.msra.mxu0 %v10494_v46  ;;  %1901 = vmatpush1.bf16.msra.mxu1 %v10497_v47 }
 0x102   :  { %1820 = vmatprep.subr.bf16.mxu0 %v10502_v48  ;;  %1902 = vmatprep.subr.bf16.mxu1 %v10505_v49 }
 0x105   :  { %1821 = vmatpush1.bf16.msra.mxu0 %v10500_v50  ;;  %1903 = vmatpush1.bf16.msra.mxu1 %v10503_v51 }
 0x106   :  { %1822 = vmatprep.subr.bf16.mxu0 %v10508_v52  ;;  %1904 = vmatprep.subr.bf16.mxu1 %v10511_v53  ;;  %v10560_v52 = vld [vmem:[%s15217_s1 + $0x600] ss:$16 sps:$4 sm:$0xff]   ;;  %v10563_v53 = vld [vmem:[%s15217_s1 + $0x608] ss:$16 sps:$4 sm:$0xff]  }
 0x109   :  { %1823 = vmatpush1.bf16.msra.mxu0 %v10506_v54  ;;  %1905 = vmatpush1.bf16.msra.mxu1 %v10509_v55 }
 0x10a   :  { %1824 = vmatprep.subr.bf16.mxu0 %v10514_v56  ;;  %1906 = vmatprep.subr.bf16.mxu1 %v10517_v57  ;;  %v10568_v56 = vld [vmem:[%s15217_s1 + $0x624] ss:$16 sps:$4 sm:$0xff]   ;;  %v10571_v57 = vld [vmem:[%s15217_s1 + $0x62c] ss:$16 sps:$4 sm:$0xff]  }
 0x10d   :  { %1825 = vmatpush1.bf16.msra.mxu0 %v10512_v58  ;;  %1907 = vmatpush1.bf16.msra.mxu1 %v10515_v59  ;;  %v10566_v59 = vld [vmem:[%s15217_s1 + $0x620] ss:$16 sps:$4 sm:$0xff]  }
 0x10e   :  { %1826 = vmatprep.subr.bf16.mxu0 %v10520_v60  ;;  %1908 = vmatprep.subr.bf16.mxu1 %v10523_v61  ;;  %v10569_v60 = vld [vmem:[%s15217_s1 + $0x628] ss:$16 sps:$4 sm:$0xff]   ;;  %v10574_v61 = vld [vmem:[%s15217_s1 + $0x644] ss:$16 sps:$4 sm:$0xff]  }
 0x111   :  { %1827 = vmatpush1.bf16.msra.mxu0 %v10518_v62  ;;  %1909 = vmatpush1.bf16.msra.mxu1 %v10521_v63  ;;  %v10577_v62 = vld [vmem:[%s15217_s1 + $0x64c] ss:$16 sps:$4 sm:$0xff]   ;;  %v10572_v63 = vld [vmem:[%s15217_s1 + $0x640] ss:$16 sps:$4 sm:$0xff]  }
 0x112   :  { %1828 = vmatprep.subr.bf16.mxu0 %v10526_v2  ;;  %1910 = vmatprep.subr.bf16.mxu1 %v10529_v4  ;;  %v10575_v2 = vld [vmem:[%s15217_s1 + $0x648] ss:$16 sps:$4 sm:$0xff]   ;;  %v10580_v4 = vld [vmem:[%s15217_s1 + $0x664] ss:$16 sps:$4 sm:$0xff]  }
 0x115   :  { %1829 = vmatpush1.bf16.msra.mxu0 %v10524_v5  ;;  %1911 = vmatpush1.bf16.msra.mxu1 %v10527_v6  ;;  %v10583_v5 = vld [vmem:[%s15217_s1 + $0x66c] ss:$16 sps:$4 sm:$0xff]   ;;  %v10578_v6 = vld [vmem:[%s15217_s1 + $0x660] ss:$16 sps:$4 sm:$0xff]  }
 0x116   :  { %1830 = vmatprep.subr.bf16.mxu0 %v10532_v7  ;;  %1912 = vmatprep.subr.bf16.mxu1 %v10535_v8  ;;  %v10581_v7 = vld [vmem:[%s15217_s1 + $0x668] ss:$16 sps:$4 sm:$0xff]   ;;  %v10586_v8 = vld [vmem:[%s15217_s1 + $0x684] ss:$16 sps:$4 sm:$0xff]  }
 0x119   :  { %1831 = vmatpush1.bf16.msra.mxu0 %v10530_v9  ;;  %1913 = vmatpush1.bf16.msra.mxu1 %v10533_v10  ;;  %v10589_v9 = vld [vmem:[%s15217_s1 + $0x68c] ss:$16 sps:$4 sm:$0xff]   ;;  %v10584_v10 = vld [vmem:[%s15217_s1 + $0x680] ss:$16 sps:$4 sm:$0xff]  }
 0x11a   :  { %1832 = vmatprep.subr.bf16.mxu0 %v10538_v11  ;;  %1914 = vmatprep.subr.bf16.mxu1 %v10541_v12  ;;  %v10587_v11 = vld [vmem:[%s15217_s1 + $0x688] ss:$16 sps:$4 sm:$0xff]   ;;  %v10592_v12 = vld [vmem:[%s15217_s1 + $0x6a4] ss:$16 sps:$4 sm:$0xff]  }
 0x11d   :  { %1833 = vmatpush1.bf16.msra.mxu0 %v10536_v13  ;;  %1915 = vmatpush1.bf16.msra.mxu1 %v10539_v14  ;;  %v10595_v13 = vld [vmem:[%s15217_s1 + $0x6ac] ss:$16 sps:$4 sm:$0xff]   ;;  %v10590_v14 = vld [vmem:[%s15217_s1 + $0x6a0] ss:$16 sps:$4 sm:$0xff]  }
 0x11e   :  { %1834 = vmatprep.subr.bf16.mxu0 %v10544_v15  ;;  %1916 = vmatprep.subr.bf16.mxu1 %v10547_v16  ;;  %v10593_v15 = vld [vmem:[%s15217_s1 + $0x6a8] ss:$16 sps:$4 sm:$0xff]   ;;  %v10598_v16 = vld [vmem:[%s15217_s1 + $0x6c4] ss:$16 sps:$4 sm:$0xff]  }
 0x121   :  { %1835 = vmatpush1.bf16.msra.mxu0 %v10542_v17  ;;  %1917 = vmatpush1.bf16.msra.mxu1 %v10545_v18  ;;  %v10601_v17 = vld [vmem:[%s15217_s1 + $0x6cc] ss:$16 sps:$4 sm:$0xff]   ;;  %v10596_v18 = vld [vmem:[%s15217_s1 + $0x6c0] ss:$16 sps:$4 sm:$0xff]  }
 0x122   :  { %1836 = vmatprep.subr.bf16.mxu0 %v10550_v20  ;;  %1918 = vmatprep.subr.bf16.mxu1 %v10553_v21  ;;  %v10599_v20 = vld [vmem:[%s15217_s1 + $0x6c8] ss:$16 sps:$4 sm:$0xff]   ;;  %v10604_v21 = vld [vmem:[%s15217_s1 + $0x6e4] ss:$16 sps:$4 sm:$0xff]  }
 0x125   :  { %1837 = vmatpush1.bf16.msra.mxu0 %v10548_v22  ;;  %1919 = vmatpush1.bf16.msra.mxu1 %v10551_v23  ;;  %v10607_v22 = vld [vmem:[%s15217_s1 + $0x6ec] ss:$16 sps:$4 sm:$0xff]   ;;  %v10602_v23 = vld [vmem:[%s15217_s1 + $0x6e0] ss:$16 sps:$4 sm:$0xff]  }
 0x126   :  { %1838 = vmatprep.subr.bf16.mxu0 %v10556_v24  ;;  %1920 = vmatprep.subr.bf16.mxu1 %v10559_v25  ;;  %v10605_v24 = vld [vmem:[%s15217_s1 + $0x6e8] ss:$16 sps:$4 sm:$0xff]   ;;  %v10610_v25 = vld [vmem:[%s15217_s1 + $0x704] ss:$16 sps:$4 sm:$0xff]  }
 0x129   :  { %1839 = vmatpush1.bf16.msra.mxu0 %v10554_v26  ;;  %1921 = vmatpush1.bf16.msra.mxu1 %v10557_v1  ;;  %v10613_v26 = vld [vmem:[%s15217_s1 + $0x70c] ss:$16 sps:$4 sm:$0xff]   ;;  %v10608_v1 = vld [vmem:[%s15217_s1 + $0x700] ss:$16 sps:$4 sm:$0xff]  }
 0x12a   :  { %1849 = vmatprep.subr.bf16.mxu0 %v10562_v27  ;;  %1931 = vmatprep.subr.bf16.mxu1 %v10565_v28  ;;  %v10611_v27 = vld [vmem:[%s15217_s1 + $0x708] ss:$16 sps:$4 sm:$0xff]   ;;  %v10616_v28 = vld [vmem:[%s15217_s1 + $0x724] ss:$16 sps:$4 sm:$0xff]  }
 0x1bf   :  { %v911_v35 = vpop.f32.mrb[0].mxu0  ;;  %v12513_v36 = vpop.f32.mrb[0].mxu1 }
 0x1c0   :  { %v10176_v37 = vadd.f32 %v911_v35, %v179_v32  ;;  %v913_v38 = vpop.f32.mrb[1].mxu0  ;;  %v995_v39 = vpop.f32.mrb[1].mxu1  ;;  %v10614_v32 = vld [vmem:[%s15217_s1 + $0x720] ss:$16 sps:$4 sm:$0xff]   ;;  %v10625_v35 = vld [vmem:[%s15217_s1 + $0x74c] ss:$16 sps:$4 sm:$0xff]  }
 0x1c1   :  { %v10177_v40 = vadd.f32 %v913_v38, %v183_v33  ;;  %v10179_v41 = vadd.f32 %v995_v39, %v191_v34  ;;  %v915_v42 = vpop.f32.mrb[2].mxu0  ;;  %v997_v43 = vpop.f32.mrb[2].mxu1  ;;  %v10617_v33 = vld [vmem:[%s15217_s1 + $0x728] ss:$16 sps:$4 sm:$0xff]   ;;  %v10622_v34 = vld [vmem:[%s15217_s1 + $0x744] ss:$16 sps:$4 sm:$0xff]  }
 0x1c2   :  { %vm1000_vm0 = vcmp.ge.f32.partialorder %v10176_v37, 0.0  ;;  %v1004_v44 = vmul.f32 0.2, %v10176_v37  ;;  %v916_v48 = vpop.f32.mrb[3].mxu0  ;;  %v998_v49 = vpop.f32.mrb[3].mxu1 }
 0x1c3   :  { %vm1001_vm1 = vcmp.ge.f32.partialorder %v10177_v40, 0.0  ;;  %v1005_v45 = vmul.f32 0.2, %v10177_v40  ;;  %vm1003_vm2 = vcmp.ge.f32.partialorder %v10179_v41, 0.0  ;;  %v1007_v46 = vmul.f32 0.2, %v10179_v41 }
 0x1c4   :  { %v1008_v47 = vsel %vm1000_vm0, %v10176_v37, %v1004_v44  ;;  %v10620_v37 = vld [vmem:[%s15217_s1 + $0x740] ss:$16 sps:$4 sm:$0xff]   ;;  %v10623_v38 = vld [vmem:[%s15217_s1 + $0x748] ss:$16 sps:$4 sm:$0xff]   ;;  %v10628_v39 = vld [vmem:[%s15217_s1 + $0x764] ss:$16 sps:$4 sm:$0xff]  }
 0x1c5   :  { %v1009_v50 = vsel %vm1001_vm1, %v10177_v40, %v1005_v45  ;;  %v1011_v54 = vsel %vm1003_vm2, %v10179_v41, %v1007_v46  ;;  %v1143_v55 = vpack.c.bf16 %v1008_v47, %v1008_v47  ;;  %v10631_v40 = vld [vmem:[%s15217_s1 + $0x76c] ss:$16 sps:$4 sm:$0xff]   ;;  %v10626_v41 = vld [vmem:[%s15217_s1 + $0x760] ss:$16 sps:$4 sm:$0xff]   ;;  %v10629_v42 = vld [vmem:[%s15217_s1 + $0x768] ss:$16 sps:$4 sm:$0xff]  }
 0x1c6   :  { %v1144_v51 = vpack.c.bf16 %v1009_v50, %v1009_v50  ;;  %v1146_v58 = vpack.c.bf16 %v1011_v54, %v1011_v54  ;;  %v10634_v43 = vld [vmem:[%s15217_s1 + $0x784] ss:$16 sps:$4 sm:$0xff]   ;;  %v10637_v44 = vld [vmem:[%s15217_s1 + $0x78c] ss:$16 sps:$4 sm:$0xff]   ;;  %v12660_v45 = vsub.s32 2, %v12491_v3 }
 0x1c7   :  { %v10632_v46 = vld [vmem:[%s15217_s1 + $0x780] ss:$16 sps:$4 sm:$0xff]   ;;  %v10635_v47 = vld [vmem:[%s15217_s1 + $0x788] ss:$16 sps:$4 sm:$0xff]   ;;  %v10640_v48 = vld [vmem:[%s15217_s1 + $0x7a4] ss:$16 sps:$4 sm:$0xff]  }
 0x1c8   :  { %1840 = vmatprep.mubr.bf16.mxu0 %v1144_v51  ;;  %1922 = vmatprep.mubr.bf16.mxu1 %v1144_v51  ;;  %v10643_v3 = vld [vmem:[%s15217_s1 + $0x7ac] ss:$16 sps:$4 sm:$0xff]   ;;  %v187_v49 = vrot.slane %v12496_v29, %v12660_v45  ;;  %v10638_v50 = vld [vmem:[%s15217_s1 + $0x7a0] ss:$16 sps:$4 sm:$0xff]   ;;  %v10641_v51 = vld [vmem:[%s15217_s1 + $0x7a8] ss:$16 sps:$4 sm:$0xff]  }
 0x1c9   :  { %1841 = vmatmul.mubr.bf16.vlgmr.msra.gmra.mrb[4].mxu0 %v1143_v55  ;;  %1923 = vmatmul.mubr.bf16.vlgmr.msra.gmra.mrb[4].mxu1 %v1143_v55  ;;  %v10649_v29 = vld [vmem:[%s15217_s1 + $0x7cc] ss:$16 sps:$4 sm:$0xff]   ;;  %v10644_v54 = vld [vmem:[%s15217_s1 + $0x7c0] ss:$16 sps:$4 sm:$0xff]   ;;  %v10647_v55 = vld [vmem:[%s15217_s1 + $0x7c8] ss:$16 sps:$4 sm:$0xff]  }
 0x1ca   :  { %1850 = vmatpush1.bf16.msra.mxu0 %v10560_v52  ;;  %1932 = vmatpush1.bf16.msra.mxu1 %v10563_v53  ;;  %v10646_v52 = vld [vmem:[%s15217_s1 + $0x7c4] ss:$16 sps:$4 sm:$0xff]   ;;  %v10178_v53 = vadd.f32 %v12513_v36, %v187_v49  ;;  %v10655_v36 = vld [vmem:[%s15217_s1 + $0x7ec] ss:$16 sps:$4 sm:$0xff]  }
 0x1cb   :  { %1881 = vmatprep.mubr.bf16.mxu0 %v1146_v58  ;;  %1963 = vmatprep.mubr.bf16.mxu1 %v1146_v58  ;;  %v10650_v58 = vld [vmem:[%s15217_s1 + $0x7e0] ss:$16 sps:$4 sm:$0xff]   ;;  %v10727_v49 = vld [vmem:[%s15217_s1 + $0x96c] ss:$16 sps:$4 sm:$0xff]  }
 0x1cc   :  { %1851 = vmatprep.subr.bf16.mxu0 %v10568_v56  ;;  %1933 = vmatprep.subr.bf16.mxu1 %v10571_v57  ;;  %v10652_v56 = vld [vmem:[%s15217_s1 + $0x7e4] ss:$16 sps:$4 sm:$0xff]   ;;  %v1006_v57 = vmul.f32 0.2, %v10178_v53  ;;  %vm1002_vm3 = vcmp.ge.f32.partialorder %v10178_v53, 0.0 }
 0x1ce   :  { %1852 = vmatpush1.bf16.msra.mxu0 %v10566_v59  ;;  %1934 = vmatpush1.bf16.msra.mxu1 %v10569_v60  ;;  %v10653_v59 = vld [vmem:[%s15217_s1 + $0x7e8] ss:$16 sps:$4 sm:$0xff]   ;;  %v10658_v60 = vld [vmem:[%s15217_s1 + $0x804] ss:$16 sps:$4 sm:$0xff]  }
 0x1cf   :  { %1853 = vmatprep.subr.bf16.mxu0 %v10574_v61  ;;  %1935 = vmatprep.subr.bf16.mxu1 %v10577_v62  ;;  %v10661_v61 = vld [vmem:[%s15217_s1 + $0x80c] ss:$16 sps:$4 sm:$0xff]   ;;  %v1010_v62 = vsel %vm1002_vm3, %v10178_v53, %v1006_v57  ;;  %v10728_v53 = vld [vmem:[%s15217_s1 + $0x980] ss:$16 sps:$4 sm:$0xff]   ;;  %v10737_v57 = vld [vmem:[%s15217_s1 + $0x9a8] ss:$16 sps:$4 sm:$0xff]  }
 0x1d2   :  { %1854 = vmatpush1.bf16.msra.mxu0 %v10572_v63  ;;  %1936 = vmatpush1.bf16.msra.mxu1 %v10575_v2  ;;  %v10656_v63 = vld [vmem:[%s15217_s1 + $0x800] ss:$16 sps:$4 sm:$0xff]   ;;  %v10659_v2 = vld [vmem:[%s15217_s1 + $0x808] ss:$16 sps:$4 sm:$0xff]  }
 0x1d3   :  { %1855 = vmatprep.subr.bf16.mxu0 %v10580_v4  ;;  %1937 = vmatprep.subr.bf16.mxu1 %v10583_v5  ;;  %v1145_v4 = vpack.c.bf16 %v1010_v62, %v1010_v62  ;;  %v10664_v5 = vld [vmem:[%s15217_s1 + $0x824] ss:$16 sps:$4 sm:$0xff]  }
 0x1d4   :  { %v10748_v62 = vld [vmem:[%s15217_s1 + $0x9e4] ss:$16 sps:$4 sm:$0xff]  }
 0x1d6   :  { %1856 = vmatpush1.bf16.msra.mxu0 %v10578_v6  ;;  %1938 = vmatpush1.bf16.msra.mxu1 %v10581_v7  ;;  %v10667_v6 = vld [vmem:[%s15217_s1 + $0x82c] ss:$16 sps:$4 sm:$0xff]   ;;  %v10662_v7 = vld [vmem:[%s15217_s1 + $0x820] ss:$16 sps:$4 sm:$0xff]  }
 0x1d7   :  { %1857 = vmatprep.subr.bf16.mxu0 %v10586_v8  ;;  %1939 = vmatprep.subr.bf16.mxu1 %v10589_v9  ;;  %v10665_v8 = vld [vmem:[%s15217_s1 + $0x828] ss:$16 sps:$4 sm:$0xff]   ;;  %v10670_v9 = vld [vmem:[%s15217_s1 + $0x844] ss:$16 sps:$4 sm:$0xff]  }
 0x1da   :  { %1858 = vmatpush1.bf16.msra.mxu0 %v10584_v10  ;;  %1940 = vmatpush1.bf16.msra.mxu1 %v10587_v11  ;;  %v10673_v10 = vld [vmem:[%s15217_s1 + $0x84c] ss:$16 sps:$4 sm:$0xff]   ;;  %v10668_v11 = vld [vmem:[%s15217_s1 + $0x840] ss:$16 sps:$4 sm:$0xff]  }
 0x1db   :  { %1859 = vmatprep.subr.bf16.mxu0 %v10592_v12  ;;  %1941 = vmatprep.subr.bf16.mxu1 %v10595_v13  ;;  %v10671_v12 = vld [vmem:[%s15217_s1 + $0x848] ss:$16 sps:$4 sm:$0xff]   ;;  %v10676_v13 = vld [vmem:[%s15217_s1 + $0x864] ss:$16 sps:$4 sm:$0xff]  }
 0x1de   :  { %1860 = vmatpush1.bf16.msra.mxu0 %v10590_v14  ;;  %1942 = vmatpush1.bf16.msra.mxu1 %v10593_v15  ;;  %v10679_v14 = vld [vmem:[%s15217_s1 + $0x86c] ss:$16 sps:$4 sm:$0xff]   ;;  %v10674_v15 = vld [vmem:[%s15217_s1 + $0x860] ss:$16 sps:$4 sm:$0xff]  }
 0x1df   :  { %1861 = vmatprep.subr.bf16.mxu0 %v10598_v16  ;;  %1943 = vmatprep.subr.bf16.mxu1 %v10601_v17  ;;  %v10677_v16 = vld [vmem:[%s15217_s1 + $0x868] ss:$16 sps:$4 sm:$0xff]   ;;  %v10682_v17 = vld [vmem:[%s15217_s1 + $0x884] ss:$16 sps:$4 sm:$0xff]  }
 0x1e2   :  { %1862 = vmatpush1.bf16.msra.mxu0 %v10596_v18  ;;  %1944 = vmatpush1.bf16.msra.mxu1 %v10599_v20  ;;  %v10685_v18 = vld [vmem:[%s15217_s1 + $0x88c] ss:$16 sps:$4 sm:$0xff]   ;;  %v10680_v20 = vld [vmem:[%s15217_s1 + $0x880] ss:$16 sps:$4 sm:$0xff]  }
 0x1e3   :  { %1863 = vmatprep.subr.bf16.mxu0 %v10604_v21  ;;  %1945 = vmatprep.subr.bf16.mxu1 %v10607_v22  ;;  %v10683_v21 = vld [vmem:[%s15217_s1 + $0x888] ss:$16 sps:$4 sm:$0xff]   ;;  %v10688_v22 = vld [vmem:[%s15217_s1 + $0x8a4] ss:$16 sps:$4 sm:$0xff]  }
 0x1e6   :  { %1864 = vmatpush1.bf16.msra.mxu0 %v10602_v23  ;;  %1946 = vmatpush1.bf16.msra.mxu1 %v10605_v24  ;;  %v10691_v23 = vld [vmem:[%s15217_s1 + $0x8ac] ss:$16 sps:$4 sm:$0xff]   ;;  %v10686_v24 = vld [vmem:[%s15217_s1 + $0x8a0] ss:$16 sps:$4 sm:$0xff]  }
 0x1e7   :  { %1865 = vmatprep.subr.bf16.mxu0 %v10610_v25  ;;  %1947 = vmatprep.subr.bf16.mxu1 %v10613_v26  ;;  %v10689_v25 = vld [vmem:[%s15217_s1 + $0x8a8] ss:$16 sps:$4 sm:$0xff]   ;;  %v10694_v26 = vld [vmem:[%s15217_s1 + $0x8c4] ss:$16 sps:$4 sm:$0xff]  }
 0x1ea   :  { %1866 = vmatpush1.bf16.msra.mxu0 %v10608_v1  ;;  %1948 = vmatpush1.bf16.msra.mxu1 %v10611_v27  ;;  %v10697_v1 = vld [vmem:[%s15217_s1 + $0x8cc] ss:$16 sps:$4 sm:$0xff]   ;;  %v10692_v27 = vld [vmem:[%s15217_s1 + $0x8c0] ss:$16 sps:$4 sm:$0xff]  }
 0x1eb   :  { %1867 = vmatprep.subr.bf16.mxu0 %v10616_v28  ;;  %1949 = vmatprep.subr.bf16.mxu1 %v10619_v0  ;;  %v10695_v28 = vld [vmem:[%s15217_s1 + $0x8c8] ss:$16 sps:$4 sm:$0xff]   ;;  %v10700_v0 = vld [vmem:[%s15217_s1 + $0x8e4] ss:$16 sps:$4 sm:$0xff]  }
 0x1ee   :  { %1868 = vmatpush1.bf16.msra.mxu0 %v10614_v32  ;;  %1950 = vmatpush1.bf16.msra.mxu1 %v10617_v33  ;;  %v10703_v32 = vld [vmem:[%s15217_s1 + $0x8ec] ss:$16 sps:$4 sm:$0xff]   ;;  %v10698_v33 = vld [vmem:[%s15217_s1 + $0x8e0] ss:$16 sps:$4 sm:$0xff]  }
 0x1ef   :  { %1869 = vmatprep.subr.bf16.mxu0 %v10622_v34  ;;  %1951 = vmatprep.subr.bf16.mxu1 %v10625_v35  ;;  %v10701_v34 = vld [vmem:[%s15217_s1 + $0x8e8] ss:$16 sps:$4 sm:$0xff]   ;;  %v10706_v35 = vld [vmem:[%s15217_s1 + $0x904] ss:$16 sps:$4 sm:$0xff]  }
 0x1f2   :  { %1870 = vmatpush1.bf16.msra.mxu0 %v10620_v37  ;;  %1952 = vmatpush1.bf16.msra.mxu1 %v10623_v38  ;;  %v10709_v37 = vld [vmem:[%s15217_s1 + $0x90c] ss:$16 sps:$4 sm:$0xff]   ;;  %v10704_v38 = vld [vmem:[%s15217_s1 + $0x900] ss:$16 sps:$4 sm:$0xff]  }
 0x1f3   :  { %1871 = vmatprep.subr.bf16.mxu0 %v10628_v39  ;;  %1953 = vmatprep.subr.bf16.mxu1 %v10631_v40  ;;  %v10707_v39 = vld [vmem:[%s15217_s1 + $0x908] ss:$16 sps:$4 sm:$0xff]   ;;  %v10712_v40 = vld [vmem:[%s15217_s1 + $0x924] ss:$16 sps:$4 sm:$0xff]  }
 0x1f6   :  { %1872 = vmatpush1.bf16.msra.mxu0 %v10626_v41  ;;  %1954 = vmatpush1.bf16.msra.mxu1 %v10629_v42  ;;  %v10715_v41 = vld [vmem:[%s15217_s1 + $0x92c] ss:$16 sps:$4 sm:$0xff]   ;;  %v10710_v42 = vld [vmem:[%s15217_s1 + $0x920] ss:$16 sps:$4 sm:$0xff]  }
 0x1f7   :  { %1873 = vmatprep.subr.bf16.mxu0 %v10634_v43  ;;  %1955 = vmatprep.subr.bf16.mxu1 %v10637_v44  ;;  %v10713_v43 = vld [vmem:[%s15217_s1 + $0x928] ss:$16 sps:$4 sm:$0xff]   ;;  %v10718_v44 = vld [vmem:[%s15217_s1 + $0x944] ss:$16 sps:$4 sm:$0xff]  }
 0x1fa   :  { %1874 = vmatpush1.bf16.msra.mxu0 %v10632_v46  ;;  %1956 = vmatpush1.bf16.msra.mxu1 %v10635_v47  ;;  %v10721_v46 = vld [vmem:[%s15217_s1 + $0x94c] ss:$16 sps:$4 sm:$0xff]   ;;  %v10716_v47 = vld [vmem:[%s15217_s1 + $0x940] ss:$16 sps:$4 sm:$0xff]  }
 0x1fb   :  { %1875 = vmatprep.subr.bf16.mxu0 %v10640_v48  ;;  %1957 = vmatprep.subr.bf16.mxu1 %v10643_v3  ;;  %v10719_v48 = vld [vmem:[%s15217_s1 + $0x948] ss:$16 sps:$4 sm:$0xff]   ;;  %v10724_v3 = vld [vmem:[%s15217_s1 + $0x964] ss:$16 sps:$4 sm:$0xff]  }
 0x1fe   :  { %1876 = vmatpush1.bf16.msra.mxu0 %v10638_v50  ;;  %1958 = vmatpush1.bf16.msra.mxu1 %v10641_v51  ;;  %v10722_v50 = vld [vmem:[%s15217_s1 + $0x960] ss:$16 sps:$4 sm:$0xff]   ;;  %v10725_v51 = vld [vmem:[%s15217_s1 + $0x968] ss:$16 sps:$4 sm:$0xff]  }
 0x1ff   :  { %1877 = vmatprep.subr.bf16.mxu0 %v10646_v52  ;;  %1959 = vmatprep.subr.bf16.mxu1 %v10649_v29  ;;  %v10730_v52 = vld [vmem:[%s15217_s1 + $0x984] ss:$16 sps:$4 sm:$0xff]   ;;  %v10733_v29 = vld [vmem:[%s15217_s1 + $0x98c] ss:$16 sps:$4 sm:$0xff]  }
 0x202   :  { %1878 = vmatpush1.bf16.msra.mxu0 %v10644_v54  ;;  %1960 = vmatpush1.bf16.msra.mxu1 %v10647_v55  ;;  %v10731_v54 = vld [vmem:[%s15217_s1 + $0x988] ss:$16 sps:$4 sm:$0xff]   ;;  %v10736_v55 = vld [vmem:[%s15217_s1 + $0x9a4] ss:$16 sps:$4 sm:$0xff]  }
 0x203   :  { %1879 = vmatprep.subr.bf16.mxu0 %v10652_v56  ;;  %1961 = vmatprep.subr.bf16.mxu1 %v10655_v36  ;;  %v10739_v56 = vld [vmem:[%s15217_s1 + $0x9ac] ss:$16 sps:$4 sm:$0xff]   ;;  %v10734_v36 = vld [vmem:[%s15217_s1 + $0x9a0] ss:$16 sps:$4 sm:$0xff]  }
 0x206   :  { %1880 = vmatpush1.bf16.msra.mxu0 %v10650_v58  ;;  %1962 = vmatpush1.bf16.msra.mxu1 %v10653_v59  ;;  %v10742_v58 = vld [vmem:[%s15217_s1 + $0x9c4] ss:$16 sps:$4 sm:$0xff]   ;;  %v10745_v59 = vld [vmem:[%s15217_s1 + $0x9cc] ss:$16 sps:$4 sm:$0xff]  }
 0x207   :  { %2780 = vmatprep.subr.bf16.mxu0 %v10658_v60  ;;  %2862 = vmatprep.subr.bf16.mxu1 %v10661_v61  ;;  %v10740_v60 = vld [vmem:[%s15217_s1 + $0x9c0] ss:$16 sps:$4 sm:$0xff]   ;;  %v10743_v61 = vld [vmem:[%s15217_s1 + $0x9c8] ss:$16 sps:$4 sm:$0xff]  }
 0x209   :  { %1882 = vmatmul.mubr.bf16.vlgmr.msra.gmra.mrb[4].mxu0 %v1145_v4  ;;  %1964 = vmatmul.mubr.bf16.vlgmr.msra.gmra.mrb[4].mxu1 %v1145_v4  ;;  %v10749_v4 = vld [vmem:[%s15217_s1 + $0x9e8] ss:$16 sps:$4 sm:$0xff]  }
 0x20a   :  { %2781 = vmatpush1.bf16.msra.mxu0 %v10656_v63  ;;  %2863 = vmatpush1.bf16.msra.mxu1 %v10659_v2  ;;  %v10751_v63 = vld [vmem:[%s15217_s1 + $0x9ec] ss:$16 sps:$4 sm:$0xff]   ;;  %v10746_v2 = vld [vmem:[%s15217_s1 + $0x9e0] ss:$16 sps:$4 sm:$0xff]  }
 0x20b   :  { %2782 = vmatprep.subr.bf16.mxu0 %v10664_v5  ;;  %2864 = vmatprep.subr.bf16.mxu1 %v10667_v6  ;;  %v10754_v5 = vld [vmem:[%s15217_s1 + $0xa04] ss:$16 sps:$4 sm:$0xff]   ;;  %v10757_v6 = vld [vmem:[%s15217_s1 + $0xa0c] ss:$16 sps:$4 sm:$0xff]  }
 0x20e   :  { %2783 = vmatpush1.bf16.msra.mxu0 %v10662_v7  ;;  %2865 = vmatpush1.bf16.msra.mxu1 %v10665_v8  ;;  %v12908_v7 = vld [vmem:[%s15218_s2 + $0x4] sm:$0xf] }
 0x20f   :  { %2784 = vmatprep.subr.bf16.mxu0 %v10670_v9  ;;  %2866 = vmatprep.subr.bf16.mxu1 %v10673_v10  ;;  %v1151_v8 = vrot.slane %v12908_v7, %v12499_v30  ;;  %v1155_v9 = vrot.slane %v12908_v7, %v12502_v19  ;;  %v1163_v10 = vrot.slane %v12908_v7, %v12505_v31 }
 0x212   :  { %2785 = vmatpush1.bf16.msra.mxu0 %v10668_v11  ;;  %2867 = vmatpush1.bf16.msra.mxu1 %v10671_v12 }
 0x213   :  { %2786 = vmatprep.subr.bf16.mxu0 %v10676_v13  ;;  %2868 = vmatprep.subr.bf16.mxu1 %v10679_v14 }
 0x216   :  { %2787 = vmatpush1.bf16.msra.mxu0 %v10674_v15  ;;  %2869 = vmatpush1.bf16.msra.mxu1 %v10677_v16 }
 0x217   :  { %2788 = vmatprep.subr.bf16.mxu0 %v10682_v17  ;;  %2870 = vmatprep.subr.bf16.mxu1 %v10685_v18 }
 0x21a   :  { %2789 = vmatpush1.bf16.msra.mxu0 %v10680_v20  ;;  %2871 = vmatpush1.bf16.msra.mxu1 %v10683_v21 }
 0x21b   :  { %2790 = vmatprep.subr.bf16.mxu0 %v10688_v22  ;;  %2872 = vmatprep.subr.bf16.mxu1 %v10691_v23 }
 0x21e   :  { %2791 = vmatpush1.bf16.msra.mxu0 %v10686_v24  ;;  %2873 = vmatpush1.bf16.msra.mxu1 %v10689_v25 }
 0x21f   :  { %2792 = vmatprep.subr.bf16.mxu0 %v10694_v26  ;;  %2874 = vmatprep.subr.bf16.mxu1 %v10697_v1 }
 0x222   :  { %2793 = vmatpush1.bf16.msra.mxu0 %v10692_v27  ;;  %2875 = vmatpush1.bf16.msra.mxu1 %v10695_v28  ;;  %v10752_v28 = vld [vmem:[%s15217_s1 + $0xa00] ss:$16 sps:$4 sm:$0xff]  }
 0x223   :  { %2794 = vmatprep.subr.bf16.mxu0 %v10700_v0  ;;  %2876 = vmatprep.subr.bf16.mxu1 %v10703_v32  ;;  %v10755_v0 = vld [vmem:[%s15217_s1 + $0xa08] ss:$16 sps:$4 sm:$0xff]  }
 0x226   :  { %2795 = vmatpush1.bf16.msra.mxu0 %v10698_v33  ;;  %2877 = vmatpush1.bf16.msra.mxu1 %v10701_v34  ;;  %v10760_v34 = vld [vmem:[%s15217_s1 + $0xa24] ss:$16 sps:$4 sm:$0xff]  }
 0x227   :  { %2796 = vmatprep.subr.bf16.mxu0 %v10706_v35  ;;  %2878 = vmatprep.subr.bf16.mxu1 %v10709_v37  ;;  %v10763_v35 = vld [vmem:[%s15217_s1 + $0xa2c] ss:$16 sps:$4 sm:$0xff]  }
 0x22a   :  { %2797 = vmatpush1.bf16.msra.mxu0 %v10704_v38  ;;  %2879 = vmatpush1.bf16.msra.mxu1 %v10707_v39  ;;  %v10758_v38 = vld [vmem:[%s15217_s1 + $0xa20] ss:$16 sps:$4 sm:$0xff]   ;;  %v10761_v39 = vld [vmem:[%s15217_s1 + $0xa28] ss:$16 sps:$4 sm:$0xff]  }
 0x22b   :  { %2798 = vmatprep.subr.bf16.mxu0 %v10712_v40  ;;  %2880 = vmatprep.subr.bf16.mxu1 %v10715_v41  ;;  %v10766_v40 = vld [vmem:[%s15217_s1 + $0xa44] ss:$16 sps:$4 sm:$0xff]   ;;  %v10769_v41 = vld [vmem:[%s15217_s1 + $0xa4c] ss:$16 sps:$4 sm:$0xff]  }
 0x22e   :  { %2799 = vmatpush1.bf16.msra.mxu0 %v10710_v42  ;;  %2881 = vmatpush1.bf16.msra.mxu1 %v10713_v43  ;;  %v10764_v42 = vld [vmem:[%s15217_s1 + $0xa40] ss:$16 sps:$4 sm:$0xff]   ;;  %v10767_v43 = vld [vmem:[%s15217_s1 + $0xa48] ss:$16 sps:$4 sm:$0xff]  }
 0x22f   :  { %2800 = vmatprep.subr.bf16.mxu0 %v10718_v44  ;;  %2882 = vmatprep.subr.bf16.mxu1 %v10721_v46  ;;  %v10772_v44 = vld [vmem:[%s15217_s1 + $0xa64] ss:$16 sps:$4 sm:$0xff]   ;;  %v10775_v46 = vld [vmem:[%s15217_s1 + $0xa6c] ss:$16 sps:$4 sm:$0xff]  }
 0x232   :  { %2801 = vmatpush1.bf16.msra.mxu0 %v10716_v47  ;;  %2883 = vmatpush1.bf16.msra.mxu1 %v10719_v48  ;;  %v10770_v47 = vld [vmem:[%s15217_s1 + $0xa60] ss:$16 sps:$4 sm:$0xff]   ;;  %v10773_v48 = vld [vmem:[%s15217_s1 + $0xa68] ss:$16 sps:$4 sm:$0xff]  }
 0x233   :  { %2802 = vmatprep.subr.bf16.mxu0 %v10724_v3  ;;  %2884 = vmatprep.subr.bf16.mxu1 %v10727_v49  ;;  %v10778_v3 = vld [vmem:[%s15217_s1 + $0xa84] ss:$16 sps:$4 sm:$0xff]   ;;  %v10781_v49 = vld [vmem:[%s15217_s1 + $0xa8c] ss:$16 sps:$4 sm:$0xff]  }
 0x236   :  { %2803 = vmatpush1.bf16.msra.mxu0 %v10722_v50  ;;  %2885 = vmatpush1.bf16.msra.mxu1 %v10725_v51  ;;  %v10776_v50 = vld [vmem:[%s15217_s1 + $0xa80] ss:$16 sps:$4 sm:$0xff]   ;;  %v10779_v51 = vld [vmem:[%s15217_s1 + $0xa88] ss:$16 sps:$4 sm:$0xff]  }
 0x237   :  { %2804 = vmatprep.subr.bf16.mxu0 %v10730_v52  ;;  %2886 = vmatprep.subr.bf16.mxu1 %v10733_v29  ;;  %v10784_v52 = vld [vmem:[%s15217_s1 + $0xaa4] ss:$16 sps:$4 sm:$0xff]   ;;  %v10787_v29 = vld [vmem:[%s15217_s1 + $0xaac] ss:$16 sps:$4 sm:$0xff]  }
 0x23a   :  { %2805 = vmatpush1.bf16.msra.mxu0 %v10728_v53  ;;  %2887 = vmatpush1.bf16.msra.mxu1 %v10731_v54  ;;  %v10782_v53 = vld [vmem:[%s15217_s1 + $0xaa0] ss:$16 sps:$4 sm:$0xff]   ;;  %v10785_v54 = vld [vmem:[%s15217_s1 + $0xaa8] ss:$16 sps:$4 sm:$0xff]  }
 0x23b   :  { %2806 = vmatprep.subr.bf16.mxu0 %v10736_v55  ;;  %2888 = vmatprep.subr.bf16.mxu1 %v10739_v56  ;;  %v10790_v55 = vld [vmem:[%s15217_s1 + $0xac4] ss:$16 sps:$4 sm:$0xff]   ;;  %v10793_v56 = vld [vmem:[%s15217_s1 + $0xacc] ss:$16 sps:$4 sm:$0xff]  }
 0x23e   :  { %2807 = vmatpush1.bf16.msra.mxu0 %v10734_v36  ;;  %2889 = vmatpush1.bf16.msra.mxu1 %v10737_v57  ;;  %v10788_v36 = vld [vmem:[%s15217_s1 + $0xac0] ss:$16 sps:$4 sm:$0xff]   ;;  %v10791_v57 = vld [vmem:[%s15217_s1 + $0xac8] ss:$16 sps:$4 sm:$0xff]  }
 0x23f   :  { %2808 = vmatprep.subr.bf16.mxu0 %v10742_v58  ;;  %2890 = vmatprep.subr.bf16.mxu1 %v10745_v59  ;;  %v10796_v58 = vld [vmem:[%s15217_s1 + $0xae4] ss:$16 sps:$4 sm:$0xff]   ;;  %v10799_v59 = vld [vmem:[%s15217_s1 + $0xaec] ss:$16 sps:$4 sm:$0xff]  }
 0x242   :  { %2809 = vmatpush1.bf16.msra.mxu0 %v10740_v60  ;;  %2891 = vmatpush1.bf16.msra.mxu1 %v10743_v61  ;;  %v10794_v60 = vld [vmem:[%s15217_s1 + $0xae0] ss:$16 sps:$4 sm:$0xff]   ;;  %v10797_v61 = vld [vmem:[%s15217_s1 + $0xae8] ss:$16 sps:$4 sm:$0xff]  }
 0x243   :  { %2810 = vmatprep.subr.bf16.mxu0 %v10748_v62  ;;  %2892 = vmatprep.subr.bf16.mxu1 %v10751_v63  ;;  %v10802_v62 = vld [vmem:[%s15217_s1 + $0xb04] ss:$16 sps:$4 sm:$0xff]   ;;  %v10805_v63 = vld [vmem:[%s15217_s1 + $0xb0c] ss:$16 sps:$4 sm:$0xff]  }
 0x246   :  { %2811 = vmatpush1.bf16.msra.mxu0 %v10746_v2  ;;  %2893 = vmatpush1.bf16.msra.mxu1 %v10749_v4  ;;  %v10800_v2 = vld [vmem:[%s15217_s1 + $0xb00] ss:$16 sps:$4 sm:$0xff]   ;;  %v10803_v4 = vld [vmem:[%s15217_s1 + $0xb08] ss:$16 sps:$4 sm:$0xff]  }
 0x247   :  { %2821 = vmatprep.subr.bf16.mxu0 %v10754_v5  ;;  %2903 = vmatprep.subr.bf16.mxu1 %v10757_v6  ;;  %v10808_v5 = vld [vmem:[%s15217_s1 + $0xb24] ss:$16 sps:$4 sm:$0xff]   ;;  %v10811_v6 = vld [vmem:[%s15217_s1 + $0xb2c] ss:$16 sps:$4 sm:$0xff]  }
 0x2dc   :  { %v1883_v11 = vpop.f32.mrb[4].mxu0  ;;  %v12916_v12 = vpop.f32.mrb[4].mxu1 }
 0x2dd   :  { %v10180_v13 = vadd.f32 %v1883_v11, %v1151_v8  ;;  %v1885_v14 = vpop.f32.mrb[5].mxu0  ;;  %v1967_v15 = vpop.f32.mrb[5].mxu1  ;;  %v10806_v8 = vld [vmem:[%s15217_s1 + $0xb20] ss:$16 sps:$4 sm:$0xff]   ;;  %v10817_v11 = vld [vmem:[%s15217_s1 + $0xb4c] ss:$16 sps:$4 sm:$0xff]  }
 0x2de   :  { %v10181_v16 = vadd.f32 %v1885_v14, %v1155_v9  ;;  %v10183_v17 = vadd.f32 %v1967_v15, %v1163_v10  ;;  %v1887_v18 = vpop.f32.mrb[6].mxu0  ;;  %v1969_v20 = vpop.f32.mrb[6].mxu1  ;;  %v10809_v9 = vld [vmem:[%s15217_s1 + $0xb28] ss:$16 sps:$4 sm:$0xff]   ;;  %v10814_v10 = vld [vmem:[%s15217_s1 + $0xb44] ss:$16 sps:$4 sm:$0xff]  }
 0x2df   :  { %vm1972_vm4 = vcmp.ge.f32.partialorder %v10180_v13, 0.0  ;;  %v1976_v21 = vmul.f32 0.2, %v10180_v13  ;;  %v1888_v25 = vpop.f32.mrb[7].mxu0  ;;  %v1970_v26 = vpop.f32.mrb[7].mxu1 }
 0x2e0   :  { %vm1973_vm5 = vcmp.ge.f32.partialorder %v10181_v16, 0.0  ;;  %v1977_v22 = vmul.f32 0.2, %v10181_v16  ;;  %vm1975_vm6 = vcmp.ge.f32.partialorder %v10183_v17, 0.0  ;;  %v1979_v23 = vmul.f32 0.2, %v10183_v17 }
 0x2e1   :  { %v1980_v24 = vsel %vm1972_vm4, %v10180_v13, %v1976_v21  ;;  %v10812_v13 = vld [vmem:[%s15217_s1 + $0xb40] ss:$16 sps:$4 sm:$0xff]   ;;  %v10815_v14 = vld [vmem:[%s15217_s1 + $0xb48] ss:$16 sps:$4 sm:$0xff]   ;;  %v10820_v15 = vld [vmem:[%s15217_s1 + $0xb64] ss:$16 sps:$4 sm:$0xff]   ;;  %v1159_v26 = vrot.slane %v12908_v7, %v12660_v45 }
 0x2e2   :  { %v1981_v1 = vsel %vm1973_vm5, %v10181_v16, %v1977_v22  ;;  %v1983_v32 = vsel %vm1975_vm6, %v10183_v17, %v1979_v23  ;;  %v2115_v33 = vpack.c.bf16 %v1980_v24, %v1980_v24  ;;  %v10823_v16 = vld [vmem:[%s15217_s1 + $0xb6c] ss:$16 sps:$4 sm:$0xff]   ;;  %v10818_v17 = vld [vmem:[%s15217_s1 + $0xb60] ss:$16 sps:$4 sm:$0xff]   ;;  %v10821_v18 = vld [vmem:[%s15217_s1 + $0xb68] ss:$16 sps:$4 sm:$0xff]  }
 0x2e3   :  { %v2116_v27 = vpack.c.bf16 %v1981_v1, %v1981_v1  ;;  %v2118_v37 = vpack.c.bf16 %v1983_v32, %v1983_v32  ;;  %v10826_v20 = vld [vmem:[%s15217_s1 + $0xb84] ss:$16 sps:$4 sm:$0xff]   ;;  %v10829_v21 = vld [vmem:[%s15217_s1 + $0xb8c] ss:$16 sps:$4 sm:$0xff]   ;;  %v10824_v22 = vld [vmem:[%s15217_s1 + $0xb80] ss:$16 sps:$4 sm:$0xff]  }
 0x2e4   :  { %v10827_v23 = vld [vmem:[%s15217_s1 + $0xb88] ss:$16 sps:$4 sm:$0xff]   ;;  %v10832_v24 = vld [vmem:[%s15217_s1 + $0xba4] ss:$16 sps:$4 sm:$0xff]   ;;  %v10835_v25 = vld [vmem:[%s15217_s1 + $0xbac] ss:$16 sps:$4 sm:$0xff]  }
 0x2e5   :  { %2812 = vmatprep.mubr.bf16.mxu0 %v2116_v27  ;;  %2894 = vmatprep.mubr.bf16.mxu1 %v2116_v27  ;;  %v10830_v1 = vld [vmem:[%s15217_s1 + $0xba0] ss:$16 sps:$4 sm:$0xff]   ;;  %v10833_v27 = vld [vmem:[%s15217_s1 + $0xba8] ss:$16 sps:$4 sm:$0xff]   ;;  %v10841_v7 = vld [vmem:[%s15217_s1 + $0xbcc] ss:$16 sps:$4 sm:$0xff]  }
 0x2e6   :  { %2813 = vmatmul.mubr.bf16.vlgmr.msra.gmra.mrb[8].mxu0 %v2115_v33  ;;  %2895 = vmatmul.mubr.bf16.vlgmr.msra.gmra.mrb[8].mxu1 %v2115_v33  ;;  %v10836_v32 = vld [vmem:[%s15217_s1 + $0xbc0] ss:$16 sps:$4 sm:$0xff]   ;;  %v10839_v33 = vld [vmem:[%s15217_s1 + $0xbc8] ss:$16 sps:$4 sm:$0xff]  }
 0x2e7   :  { %2822 = vmatpush1.bf16.msra.mxu0 %v10752_v28  ;;  %2904 = vmatpush1.bf16.msra.mxu1 %v10755_v0  ;;  %v10838_v28 = vld [vmem:[%s15217_s1 + $0xbc4] ss:$16 sps:$4 sm:$0xff]   ;;  %v10182_v0 = vadd.f32 %v12916_v12, %v1159_v26  ;;  %v10847_v12 = vld [vmem:[%s15217_s1 + $0xbec] ss:$16 sps:$4 sm:$0xff]  }
 0x2e8   :  { %2853 = vmatprep.mubr.bf16.mxu0 %v2118_v37  ;;  %2935 = vmatprep.mubr.bf16.mxu1 %v2118_v37  ;;  %v10842_v37 = vld [vmem:[%s15217_s1 + $0xbe0] ss:$16 sps:$4 sm:$0xff]   ;;  %v10919_v26 = vld [vmem:[%s15217_s1 + $0xd6c] ss:$16 sps:$4 sm:$0xff]  }
 0x2e9   :  { %2823 = vmatprep.subr.bf16.mxu0 %v10760_v34  ;;  %2905 = vmatprep.subr.bf16.mxu1 %v10763_v35  ;;  %v10844_v34 = vld [vmem:[%s15217_s1 + $0xbe4] ss:$16 sps:$4 sm:$0xff]   ;;  %v1978_v35 = vmul.f32 0.2, %v10182_v0  ;;  %vm1974_vm7 = vcmp.ge.f32.partialorder %v10182_v0, 0.0 }
 0x2eb   :  { %2824 = vmatpush1.bf16.msra.mxu0 %v10758_v38  ;;  %2906 = vmatpush1.bf16.msra.mxu1 %v10761_v39  ;;  %v10845_v38 = vld [vmem:[%s15217_s1 + $0xbe8] ss:$16 sps:$4 sm:$0xff]   ;;  %v10850_v39 = vld [vmem:[%s15217_s1 + $0xc04] ss:$16 sps:$4 sm:$0xff]  }
 0x2ec   :  { %2825 = vmatprep.subr.bf16.mxu0 %v10766_v40  ;;  %2907 = vmatprep.subr.bf16.mxu1 %v10769_v41  ;;  %v10853_v40 = vld [vmem:[%s15217_s1 + $0xc0c] ss:$16 sps:$4 sm:$0xff]   ;;  %v1982_v41 = vsel %vm1974_vm7, %v10182_v0, %v1978_v35  ;;  %v10920_v0 = vld [vmem:[%s15217_s1 + $0xd80] ss:$16 sps:$4 sm:$0xff]   ;;  %v10929_v35 = vld [vmem:[%s15217_s1 + $0xda8] ss:$16 sps:$4 sm:$0xff]  }
 0x2ef   :  { %2826 = vmatpush1.bf16.msra.mxu0 %v10764_v42  ;;  %2908 = vmatpush1.bf16.msra.mxu1 %v10767_v43  ;;  %v10848_v42 = vld [vmem:[%s15217_s1 + $0xc00] ss:$16 sps:$4 sm:$0xff]   ;;  %v10851_v43 = vld [vmem:[%s15217_s1 + $0xc08] ss:$16 sps:$4 sm:$0xff]  }
 0x2f0   :  { %2827 = vmatprep.subr.bf16.mxu0 %v10772_v44  ;;  %2909 = vmatprep.subr.bf16.mxu1 %v10775_v46  ;;  %v2117_v44 = vpack.c.bf16 %v1982_v41, %v1982_v41  ;;  %v10856_v46 = vld [vmem:[%s15217_s1 + $0xc24] ss:$16 sps:$4 sm:$0xff]  }
 0x2f1   :  { %v10940_v41 = vld [vmem:[%s15217_s1 + $0xde4] ss:$16 sps:$4 sm:$0xff]  }
 0x2f3   :  { %2828 = vmatpush1.bf16.msra.mxu0 %v10770_v47  ;;  %2910 = vmatpush1.bf16.msra.mxu1 %v10773_v48  ;;  %v10859_v47 = vld [vmem:[%s15217_s1 + $0xc2c] ss:$16 sps:$4 sm:$0xff]   ;;  %v10854_v48 = vld [vmem:[%s15217_s1 + $0xc20] ss:$16 sps:$4 sm:$0xff]  }
 0x2f4   :  { %2829 = vmatprep.subr.bf16.mxu0 %v10778_v3  ;;  %2911 = vmatprep.subr.bf16.mxu1 %v10781_v49  ;;  %v10857_v3 = vld [vmem:[%s15217_s1 + $0xc28] ss:$16 sps:$4 sm:$0xff]   ;;  %v10862_v49 = vld [vmem:[%s15217_s1 + $0xc44] ss:$16 sps:$4 sm:$0xff]  }
 0x2f7   :  { %2830 = vmatpush1.bf16.msra.mxu0 %v10776_v50  ;;  %2912 = vmatpush1.bf16.msra.mxu1 %v10779_v51  ;;  %v10865_v50 = vld [vmem:[%s15217_s1 + $0xc4c] ss:$16 sps:$4 sm:$0xff]   ;;  %v10860_v51 = vld [vmem:[%s15217_s1 + $0xc40] ss:$16 sps:$4 sm:$0xff]  }
 0x2f8   :  { %2831 = vmatprep.subr.bf16.mxu0 %v10784_v52  ;;  %2913 = vmatprep.subr.bf16.mxu1 %v10787_v29  ;;  %v10863_v52 = vld [vmem:[%s15217_s1 + $0xc48] ss:$16 sps:$4 sm:$0xff]   ;;  %v10868_v29 = vld [vmem:[%s15217_s1 + $0xc64] ss:$16 sps:$4 sm:$0xff]  }
 0x2fb   :  { %2832 = vmatpush1.bf16.msra.mxu0 %v10782_v53  ;;  %2914 = vmatpush1.bf16.msra.mxu1 %v10785_v54  ;;  %v10871_v53 = vld [vmem:[%s15217_s1 + $0xc6c] ss:$16 sps:$4 sm:$0xff]   ;;  %v10866_v54 = vld [vmem:[%s15217_s1 + $0xc60] ss:$16 sps:$4 sm:$0xff]  }
 0x2fc   :  { %2833 = vmatprep.subr.bf16.mxu0 %v10790_v55  ;;  %2915 = vmatprep.subr.bf16.mxu1 %v10793_v56  ;;  %v10869_v55 = vld [vmem:[%s15217_s1 + $0xc68] ss:$16 sps:$4 sm:$0xff]   ;;  %v10874_v56 = vld [vmem:[%s15217_s1 + $0xc84] ss:$16 sps:$4 sm:$0xff]  }
 0x2ff   :  { %2834 = vmatpush1.bf16.msra.mxu0 %v10788_v36  ;;  %2916 = vmatpush1.bf16.msra.mxu1 %v10791_v57  ;;  %v10877_v36 = vld [vmem:[%s15217_s1 + $0xc8c] ss:$16 sps:$4 sm:$0xff]   ;;  %v10872_v57 = vld [vmem:[%s15217_s1 + $0xc80] ss:$16 sps:$4 sm:$0xff]  }
 0x300   :  { %2835 = vmatprep.subr.bf16.mxu0 %v10796_v58  ;;  %2917 = vmatprep.subr.bf16.mxu1 %v10799_v59  ;;  %v10875_v58 = vld [vmem:[%s15217_s1 + $0xc88] ss:$16 sps:$4 sm:$0xff]   ;;  %v10880_v59 = vld [vmem:[%s15217_s1 + $0xca4] ss:$16 sps:$4 sm:$0xff]  }
 0x303   :  { %2836 = vmatpush1.bf16.msra.mxu0 %v10794_v60  ;;  %2918 = vmatpush1.bf16.msra.mxu1 %v10797_v61  ;;  %v10883_v60 = vld [vmem:[%s15217_s1 + $0xcac] ss:$16 sps:$4 sm:$0xff]   ;;  %v10878_v61 = vld [vmem:[%s15217_s1 + $0xca0] ss:$16 sps:$4 sm:$0xff]  }
 0x304   :  { %2837 = vmatprep.subr.bf16.mxu0 %v10802_v62  ;;  %2919 = vmatprep.subr.bf16.mxu1 %v10805_v63  ;;  %v10881_v62 = vld [vmem:[%s15217_s1 + $0xca8] ss:$16 sps:$4 sm:$0xff]   ;;  %v10886_v63 = vld [vmem:[%s15217_s1 + $0xcc4] ss:$16 sps:$4 sm:$0xff]  }
 0x307   :  { %2838 = vmatpush1.bf16.msra.mxu0 %v10800_v2  ;;  %2920 = vmatpush1.bf16.msra.mxu1 %v10803_v4  ;;  %v10889_v2 = vld [vmem:[%s15217_s1 + $0xccc] ss:$16 sps:$4 sm:$0xff]   ;;  %v10884_v4 = vld [vmem:[%s15217_s1 + $0xcc0] ss:$16 sps:$4 sm:$0xff]  }
 0x308   :  { %2839 = vmatprep.subr.bf16.mxu0 %v10808_v5  ;;  %2921 = vmatprep.subr.bf16.mxu1 %v10811_v6  ;;  %v10887_v5 = vld [vmem:[%s15217_s1 + $0xcc8] ss:$16 sps:$4 sm:$0xff]   ;;  %v10892_v6 = vld [vmem:[%s15217_s1 + $0xce4] ss:$16 sps:$4 sm:$0xff]  }
 0x30b   :  { %2840 = vmatpush1.bf16.msra.mxu0 %v10806_v8  ;;  %2922 = vmatpush1.bf16.msra.mxu1 %v10809_v9  ;;  %v10895_v8 = vld [vmem:[%s15217_s1 + $0xcec] ss:$16 sps:$4 sm:$0xff]   ;;  %v10890_v9 = vld [vmem:[%s15217_s1 + $0xce0] ss:$16 sps:$4 sm:$0xff]  }
 0x30c   :  { %2841 = vmatprep.subr.bf16.mxu0 %v10814_v10  ;;  %2923 = vmatprep.subr.bf16.mxu1 %v10817_v11  ;;  %v10893_v10 = vld [vmem:[%s15217_s1 + $0xce8] ss:$16 sps:$4 sm:$0xff]   ;;  %v10898_v11 = vld [vmem:[%s15217_s1 + $0xd04] ss:$16 sps:$4 sm:$0xff]  }
 0x30f   :  { %2842 = vmatpush1.bf16.msra.mxu0 %v10812_v13  ;;  %2924 = vmatpush1.bf16.msra.mxu1 %v10815_v14  ;;  %v10901_v13 = vld [vmem:[%s15217_s1 + $0xd0c] ss:$16 sps:$4 sm:$0xff]   ;;  %v10896_v14 = vld [vmem:[%s15217_s1 + $0xd00] ss:$16 sps:$4 sm:$0xff]  }
 0x310   :  { %2843 = vmatprep.subr.bf16.mxu0 %v10820_v15  ;;  %2925 = vmatprep.subr.bf16.mxu1 %v10823_v16  ;;  %v10899_v15 = vld [vmem:[%s15217_s1 + $0xd08] ss:$16 sps:$4 sm:$0xff]   ;;  %v10904_v16 = vld [vmem:[%s15217_s1 + $0xd24] ss:$16 sps:$4 sm:$0xff]  }
 0x313   :  { %2844 = vmatpush1.bf16.msra.mxu0 %v10818_v17  ;;  %2926 = vmatpush1.bf16.msra.mxu1 %v10821_v18  ;;  %v10907_v17 = vld [vmem:[%s15217_s1 + $0xd2c] ss:$16 sps:$4 sm:$0xff]   ;;  %v10902_v18 = vld [vmem:[%s15217_s1 + $0xd20] ss:$16 sps:$4 sm:$0xff]  }
 0x314   :  { %2845 = vmatprep.subr.bf16.mxu0 %v10826_v20  ;;  %2927 = vmatprep.subr.bf16.mxu1 %v10829_v21  ;;  %v10905_v20 = vld [vmem:[%s15217_s1 + $0xd28] ss:$16 sps:$4 sm:$0xff]   ;;  %v10910_v21 = vld [vmem:[%s15217_s1 + $0xd44] ss:$16 sps:$4 sm:$0xff]  }
 0x317   :  { %2846 = vmatpush1.bf16.msra.mxu0 %v10824_v22  ;;  %2928 = vmatpush1.bf16.msra.mxu1 %v10827_v23  ;;  %v10913_v22 = vld [vmem:[%s15217_s1 + $0xd4c] ss:$16 sps:$4 sm:$0xff]   ;;  %v10908_v23 = vld [vmem:[%s15217_s1 + $0xd40] ss:$16 sps:$4 sm:$0xff]  }
 0x318   :  { %2847 = vmatprep.subr.bf16.mxu0 %v10832_v24  ;;  %2929 = vmatprep.subr.bf16.mxu1 %v10835_v25  ;;  %v10911_v24 = vld [vmem:[%s15217_s1 + $0xd48] ss:$16 sps:$4 sm:$0xff]   ;;  %v10916_v25 = vld [vmem:[%s15217_s1 + $0xd64] ss:$16 sps:$4 sm:$0xff]  }
 0x31b   :  { %2848 = vmatpush1.bf16.msra.mxu0 %v10830_v1  ;;  %2930 = vmatpush1.bf16.msra.mxu1 %v10833_v27  ;;  %v10914_v1 = vld [vmem:[%s15217_s1 + $0xd60] ss:$16 sps:$4 sm:$0xff]   ;;  %v10917_v27 = vld [vmem:[%s15217_s1 + $0xd68] ss:$16 sps:$4 sm:$0xff]  }
 0x31c   :  { %2849 = vmatprep.subr.bf16.mxu0 %v10838_v28  ;;  %2931 = vmatprep.subr.bf16.mxu1 %v10841_v7  ;;  %v10922_v28 = vld [vmem:[%s15217_s1 + $0xd84] ss:$16 sps:$4 sm:$0xff]   ;;  %v10925_v7 = vld [vmem:[%s15217_s1 + $0xd8c] ss:$16 sps:$4 sm:$0xff]  }
 0x31f   :  { %2850 = vmatpush1.bf16.msra.mxu0 %v10836_v32  ;;  %2932 = vmatpush1.bf16.msra.mxu1 %v10839_v33  ;;  %v10923_v32 = vld [vmem:[%s15217_s1 + $0xd88] ss:$16 sps:$4 sm:$0xff]   ;;  %v10928_v33 = vld [vmem:[%s15217_s1 + $0xda4] ss:$16 sps:$4 sm:$0xff]  }
 0x320   :  { %2851 = vmatprep.subr.bf16.mxu0 %v10844_v34  ;;  %2933 = vmatprep.subr.bf16.mxu1 %v10847_v12  ;;  %v10931_v34 = vld [vmem:[%s15217_s1 + $0xdac] ss:$16 sps:$4 sm:$0xff]   ;;  %v10926_v12 = vld [vmem:[%s15217_s1 + $0xda0] ss:$16 sps:$4 sm:$0xff]  }
 0x323   :  { %2852 = vmatpush1.bf16.msra.mxu0 %v10842_v37  ;;  %2934 = vmatpush1.bf16.msra.mxu1 %v10845_v38  ;;  %v10934_v37 = vld [vmem:[%s15217_s1 + $0xdc4] ss:$16 sps:$4 sm:$0xff]   ;;  %v10937_v38 = vld [vmem:[%s15217_s1 + $0xdcc] ss:$16 sps:$4 sm:$0xff]  }
 0x324   :  { %3752 = vmatprep.subr.bf16.mxu0 %v10850_v39  ;;  %3834 = vmatprep.subr.bf16.mxu1 %v10853_v40  ;;  %v10932_v39 = vld [vmem:[%s15217_s1 + $0xdc0] ss:$16 sps:$4 sm:$0xff]   ;;  %v10935_v40 = vld [vmem:[%s15217_s1 + $0xdc8] ss:$16 sps:$4 sm:$0xff]  }
 0x326   :  { %2854 = vmatmul.mubr.bf16.vlgmr.msra.gmra.mrb[8].mxu0 %v2117_v44  ;;  %2936 = vmatmul.mubr.bf16.vlgmr.msra.gmra.mrb[8].mxu1 %v2117_v44  ;;  %v10941_v44 = vld [vmem:[%s15217_s1 + $0xde8] ss:$16 sps:$4 sm:$0xff]  }
 0x327   :  { %3753 = vmatpush1.bf16.msra.mxu0 %v10848_v42  ;;  %3835 = vmatpush1.bf16.msra.mxu1 %v10851_v43  ;;  %v10943_v42 = vld [vmem:[%s15217_s1 + $0xdec] ss:$16 sps:$4 sm:$0xff]   ;;  %v10938_v43 = vld [vmem:[%s15217_s1 + $0xde0] ss:$16 sps:$4 sm:$0xff]  }
 0x328   :  { %3754 = vmatprep.subr.bf16.mxu0 %v10856_v46  ;;  %3836 = vmatprep.subr.bf16.mxu1 %v10859_v47  ;;  %v10946_v46 = vld [vmem:[%s15217_s1 + $0xe04] ss:$16 sps:$4 sm:$0xff]   ;;  %v10949_v47 = vld [vmem:[%s15217_s1 + $0xe0c] ss:$16 sps:$4 sm:$0xff]  }
 0x32b   :  { %3755 = vmatpush1.bf16.msra.mxu0 %v10854_v48  ;;  %3837 = vmatpush1.bf16.msra.mxu1 %v10857_v3  ;;  %v13308_v48 = vld [vmem:[%s15218_s2 + $0x8] sm:$0xf] }
 0x32c   :  { %3756 = vmatprep.subr.bf16.mxu0 %v10862_v49  ;;  %3838 = vmatprep.subr.bf16.mxu1 %v10865_v50  ;;  %v2123_v3 = vrot.slane %v13308_v48, %v12499_v30  ;;  %v2127_v49 = vrot.slane %v13308_v48, %v12502_v19  ;;  %v2135_v50 = vrot.slane %v13308_v48, %v12505_v31 }
 0x32f   :  { %3757 = vmatpush1.bf16.msra.mxu0 %v10860_v51  ;;  %3839 = vmatpush1.bf16.msra.mxu1 %v10863_v52 }
 0x330   :  { %3758 = vmatprep.subr.bf16.mxu0 %v10868_v29  ;;  %3840 = vmatprep.subr.bf16.mxu1 %v10871_v53 }
 0x333   :  { %3759 = vmatpush1.bf16.msra.mxu0 %v10866_v54  ;;  %3841 = vmatpush1.bf16.msra.mxu1 %v10869_v55 }
 0x334   :  { %3760 = vmatprep.subr.bf16.mxu0 %v10874_v56  ;;  %3842 = vmatprep.subr.bf16.mxu1 %v10877_v36 }
 0x337   :  { %3761 = vmatpush1.bf16.msra.mxu0 %v10872_v57  ;;  %3843 = vmatpush1.bf16.msra.mxu1 %v10875_v58 }
 0x338   :  { %3762 = vmatprep.subr.bf16.mxu0 %v10880_v59  ;;  %3844 = vmatprep.subr.bf16.mxu1 %v10883_v60 }
 0x33b   :  { %3763 = vmatpush1.bf16.msra.mxu0 %v10878_v61  ;;  %3845 = vmatpush1.bf16.msra.mxu1 %v10881_v62 }
 0x33c   :  { %3764 = vmatprep.subr.bf16.mxu0 %v10886_v63  ;;  %3846 = vmatprep.subr.bf16.mxu1 %v10889_v2 }
 0x33f   :  { %3765 = vmatpush1.bf16.msra.mxu0 %v10884_v4  ;;  %3847 = vmatpush1.bf16.msra.mxu1 %v10887_v5  ;;  %v10944_v5 = vld [vmem:[%s15217_s1 + $0xe00] ss:$16 sps:$4 sm:$0xff]  }
 0x340   :  { %3766 = vmatprep.subr.bf16.mxu0 %v10892_v6  ;;  %3848 = vmatprep.subr.bf16.mxu1 %v10895_v8  ;;  %v10947_v6 = vld [vmem:[%s15217_s1 + $0xe08] ss:$16 sps:$4 sm:$0xff]  }
 0x343   :  { %3767 = vmatpush1.bf16.msra.mxu0 %v10890_v9  ;;  %3849 = vmatpush1.bf16.msra.mxu1 %v10893_v10  ;;  %v10952_v10 = vld [vmem:[%s15217_s1 + $0xe24] ss:$16 sps:$4 sm:$0xff]  }
 0x344   :  { %3768 = vmatprep.subr.bf16.mxu0 %v10898_v11  ;;  %3850 = vmatprep.subr.bf16.mxu1 %v10901_v13  ;;  %v10955_v11 = vld [vmem:[%s15217_s1 + $0xe2c] ss:$16 sps:$4 sm:$0xff]  }
 0x347   :  { %3769 = vmatpush1.bf16.msra.mxu0 %v10896_v14  ;;  %3851 = vmatpush1.bf16.msra.mxu1 %v10899_v15  ;;  %v10950_v14 = vld [vmem:[%s15217_s1 + $0xe20] ss:$16 sps:$4 sm:$0xff]   ;;  %v10953_v15 = vld [vmem:[%s15217_s1 + $0xe28] ss:$16 sps:$4 sm:$0xff]  }
 0x348   :  { %3770 = vmatprep.subr.bf16.mxu0 %v10904_v16  ;;  %3852 = vmatprep.subr.bf16.mxu1 %v10907_v17  ;;  %v10958_v16 = vld [vmem:[%s15217_s1 + $0xe44] ss:$16 sps:$4 sm:$0xff]   ;;  %v10961_v17 = vld [vmem:[%s15217_s1 + $0xe4c] ss:$16 sps:$4 sm:$0xff]  }
 0x34b   :  { %3771 = vmatpush1.bf16.msra.mxu0 %v10902_v18  ;;  %3853 = vmatpush1.bf16.msra.mxu1 %v10905_v20  ;;  %v10956_v18 = vld [vmem:[%s15217_s1 + $0xe40] ss:$16 sps:$4 sm:$0xff]   ;;  %v10959_v20 = vld [vmem:[%s15217_s1 + $0xe48] ss:$16 sps:$4 sm:$0xff]  }
 0x34c   :  { %3772 = vmatprep.subr.bf16.mxu0 %v10910_v21  ;;  %3854 = vmatprep.subr.bf16.mxu1 %v10913_v22  ;;  %v10964_v21 = vld [vmem:[%s15217_s1 + $0xe64] ss:$16 sps:$4 sm:$0xff]   ;;  %v10967_v22 = vld [vmem:[%s15217_s1 + $0xe6c] ss:$16 sps:$4 sm:$0xff]  }
 0x34f   :  { %3773 = vmatpush1.bf16.msra.mxu0 %v10908_v23  ;;  %3855 = vmatpush1.bf16.msra.mxu1 %v10911_v24  ;;  %v10962_v23 = vld [vmem:[%s15217_s1 + $0xe60] ss:$16 sps:$4 sm:$0xff]   ;;  %v10965_v24 = vld [vmem:[%s15217_s1 + $0xe68] ss:$16 sps:$4 sm:$0xff]  }
 0x350   :  { %3774 = vmatprep.subr.bf16.mxu0 %v10916_v25  ;;  %3856 = vmatprep.subr.bf16.mxu1 %v10919_v26  ;;  %v10970_v25 = vld [vmem:[%s15217_s1 + $0xe84] ss:$16 sps:$4 sm:$0xff]   ;;  %v10973_v26 = vld [vmem:[%s15217_s1 + $0xe8c] ss:$16 sps:$4 sm:$0xff]  }
 0x353   :  { %3775 = vmatpush1.bf16.msra.mxu0 %v10914_v1  ;;  %3857 = vmatpush1.bf16.msra.mxu1 %v10917_v27  ;;  %v10968_v1 = vld [vmem:[%s15217_s1 + $0xe80] ss:$16 sps:$4 sm:$0xff]   ;;  %v10971_v27 = vld [vmem:[%s15217_s1 + $0xe88] ss:$16 sps:$4 sm:$0xff]  }
 0x354   :  { %3776 = vmatprep.subr.bf16.mxu0 %v10922_v28  ;;  %3858 = vmatprep.subr.bf16.mxu1 %v10925_v7  ;;  %v10976_v28 = vld [vmem:[%s15217_s1 + $0xea4] ss:$16 sps:$4 sm:$0xff]   ;;  %v10979_v7 = vld [vmem:[%s15217_s1 + $0xeac] ss:$16 sps:$4 sm:$0xff]  }
 0x357   :  { %3777 = vmatpush1.bf16.msra.mxu0 %v10920_v0  ;;  %3859 = vmatpush1.bf16.msra.mxu1 %v10923_v32  ;;  %v10974_v0 = vld [vmem:[%s15217_s1 + $0xea0] ss:$16 sps:$4 sm:$0xff]   ;;  %v10977_v32 = vld [vmem:[%s15217_s1 + $0xea8] ss:$16 sps:$4 sm:$0xff]  }
 0x358   :  { %3778 = vmatprep.subr.bf16.mxu0 %v10928_v33  ;;  %3860 = vmatprep.subr.bf16.mxu1 %v10931_v34  ;;  %v10982_v33 = vld [vmem:[%s15217_s1 + $0xec4] ss:$16 sps:$4 sm:$0xff]   ;;  %v10985_v34 = vld [vmem:[%s15217_s1 + $0xecc] ss:$16 sps:$4 sm:$0xff]  }
 0x35b   :  { %3779 = vmatpush1.bf16.msra.mxu0 %v10926_v12  ;;  %3861 = vmatpush1.bf16.msra.mxu1 %v10929_v35  ;;  %v10980_v12 = vld [vmem:[%s15217_s1 + $0xec0] ss:$16 sps:$4 sm:$0xff]   ;;  %v10983_v35 = vld [vmem:[%s15217_s1 + $0xec8] ss:$16 sps:$4 sm:$0xff]  }
 0x35c   :  { %3780 = vmatprep.subr.bf16.mxu0 %v10934_v37  ;;  %3862 = vmatprep.subr.bf16.mxu1 %v10937_v38  ;;  %v10988_v37 = vld [vmem:[%s15217_s1 + $0xee4] ss:$16 sps:$4 sm:$0xff]   ;;  %v10991_v38 = vld [vmem:[%s15217_s1 + $0xeec] ss:$16 sps:$4 sm:$0xff]  }
 0x35f   :  { %3781 = vmatpush1.bf16.msra.mxu0 %v10932_v39  ;;  %3863 = vmatpush1.bf16.msra.mxu1 %v10935_v40  ;;  %v10986_v39 = vld [vmem:[%s15217_s1 + $0xee0] ss:$16 sps:$4 sm:$0xff]   ;;  %v10989_v40 = vld [vmem:[%s15217_s1 + $0xee8] ss:$16 sps:$4 sm:$0xff]  }
 0x360   :  { %3782 = vmatprep.subr.bf16.mxu0 %v10940_v41  ;;  %3864 = vmatprep.subr.bf16.mxu1 %v10943_v42  ;;  %v10994_v41 = vld [vmem:[%s15217_s1 + $0xf04] ss:$16 sps:$4 sm:$0xff]   ;;  %v10997_v42 = vld [vmem:[%s15217_s1 + $0xf0c] ss:$16 sps:$4 sm:$0xff]  }
 0x363   :  { %3783 = vmatpush1.bf16.msra.mxu0 %v10938_v43  ;;  %3865 = vmatpush1.bf16.msra.mxu1 %v10941_v44  ;;  %v10992_v43 = vld [vmem:[%s15217_s1 + $0xf00] ss:$16 sps:$4 sm:$0xff]   ;;  %v10995_v44 = vld [vmem:[%s15217_s1 + $0xf08] ss:$16 sps:$4 sm:$0xff]  }
 0x364   :  { %3793 = vmatprep.subr.bf16.mxu0 %v10946_v46  ;;  %3875 = vmatprep.subr.bf16.mxu1 %v10949_v47  ;;  %v11000_v46 = vld [vmem:[%s15217_s1 + $0xf24] ss:$16 sps:$4 sm:$0xff]   ;;  %v11003_v47 = vld [vmem:[%s15217_s1 + $0xf2c] ss:$16 sps:$4 sm:$0xff]  }
 0x3f9   :  { %v2855_v51 = vpop.f32.mrb[8].mxu0  ;;  %v13316_v52 = vpop.f32.mrb[8].mxu1 }
 0x3fa   :  { %v10184_v29 = vadd.f32 %v2855_v51, %v2123_v3  ;;  %v2857_v53 = vpop.f32.mrb[9].mxu0  ;;  %v2939_v54 = vpop.f32.mrb[9].mxu1  ;;  %v10998_v3 = vld [vmem:[%s15217_s1 + $0xf20] ss:$16 sps:$4 sm:$0xff]   ;;  %v11009_v51 = vld [vmem:[%s15217_s1 + $0xf4c] ss:$16 sps:$4 sm:$0xff]  }
 0x3fb   :  { %v10185_v55 = vadd.f32 %v2857_v53, %v2127_v49  ;;  %v10187_v56 = vadd.f32 %v2939_v54, %v2135_v50  ;;  %v2859_v36 = vpop.f32.mrb[10].mxu0  ;;  %v2941_v57 = vpop.f32.mrb[10].mxu1  ;;  %v11001_v49 = vld [vmem:[%s15217_s1 + $0xf28] ss:$16 sps:$4 sm:$0xff]   ;;  %v11006_v50 = vld [vmem:[%s15217_s1 + $0xf44] ss:$16 sps:$4 sm:$0xff]  }
 0x3fc   :  { %vm2944_vm8 = vcmp.ge.f32.partialorder %v10184_v29, 0.0  ;;  %v2948_v58 = vmul.f32 0.2, %v10184_v29  ;;  %v2860_v62 = vpop.f32.mrb[11].mxu0  ;;  %v2942_v63 = vpop.f32.mrb[11].mxu1 }
 0x3fd   :  { %vm2945_vm9 = vcmp.ge.f32.partialorder %v10185_v55, 0.0  ;;  %v2949_v59 = vmul.f32 0.2, %v10185_v55  ;;  %vm2947_vm10 = vcmp.ge.f32.partialorder %v10187_v56, 0.0  ;;  %v2951_v60 = vmul.f32 0.2, %v10187_v56 }
 0x3fe   :  { %v2952_v61 = vsel %vm2944_vm8, %v10184_v29, %v2948_v58  ;;  %v11004_v29 = vld [vmem:[%s15217_s1 + $0xf40] ss:$16 sps:$4 sm:$0xff]   ;;  %v11007_v53 = vld [vmem:[%s15217_s1 + $0xf48] ss:$16 sps:$4 sm:$0xff]   ;;  %v11012_v54 = vld [vmem:[%s15217_s1 + $0xf64] ss:$16 sps:$4 sm:$0xff]   ;;  %v2131_v63 = vrot.slane %v13308_v48, %v12660_v45 }
 0x3ff   :  { %v2953_v2 = vsel %vm2945_vm9, %v10185_v55, %v2949_v59  ;;  %v2955_v8 = vsel %vm2947_vm10, %v10187_v56, %v2951_v60  ;;  %v3087_v9 = vpack.c.bf16 %v2952_v61, %v2952_v61  ;;  %v11015_v55 = vld [vmem:[%s15217_s1 + $0xf6c] ss:$16 sps:$4 sm:$0xff]   ;;  %v11010_v56 = vld [vmem:[%s15217_s1 + $0xf60] ss:$16 sps:$4 sm:$0xff]   ;;  %v11013_v36 = vld [vmem:[%s15217_s1 + $0xf68] ss:$16 sps:$4 sm:$0xff]  }
 0x400   :  { %v3088_v4 = vpack.c.bf16 %v2953_v2, %v2953_v2  ;;  %v3090_v13 = vpack.c.bf16 %v2955_v8, %v2955_v8  ;;  %v11018_v57 = vld [vmem:[%s15217_s1 + $0xf84] ss:$16 sps:$4 sm:$0xff]   ;;  %v11021_v58 = vld [vmem:[%s15217_s1 + $0xf8c] ss:$16 sps:$4 sm:$0xff]   ;;  %v11016_v59 = vld [vmem:[%s15217_s1 + $0xf80] ss:$16 sps:$4 sm:$0xff]  }
 0x401   :  { %v11019_v60 = vld [vmem:[%s15217_s1 + $0xf88] ss:$16 sps:$4 sm:$0xff]   ;;  %v11024_v61 = vld [vmem:[%s15217_s1 + $0xfa4] ss:$16 sps:$4 sm:$0xff]   ;;  %v11027_v62 = vld [vmem:[%s15217_s1 + $0xfac] ss:$16 sps:$4 sm:$0xff]  }
 0x402   :  { %3784 = vmatprep.mubr.bf16.mxu0 %v3088_v4  ;;  %3866 = vmatprep.mubr.bf16.mxu1 %v3088_v4  ;;  %v11022_v2 = vld [vmem:[%s15217_s1 + $0xfa0] ss:$16 sps:$4 sm:$0xff]   ;;  %v11025_v4 = vld [vmem:[%s15217_s1 + $0xfa8] ss:$16 sps:$4 sm:$0xff]   ;;  %v11033_v48 = vld [vmem:[%s15217_s1 + $0xfcc] ss:$16 sps:$4 sm:$0xff]  }
 0x403   :  { %3785 = vmatmul.mubr.bf16.vlgmr.msra.gmra.mrb[12].mxu0 %v3087_v9  ;;  %3867 = vmatmul.mubr.bf16.vlgmr.msra.gmra.mrb[12].mxu1 %v3087_v9  ;;  %v11028_v8 = vld [vmem:[%s15217_s1 + $0xfc0] ss:$16 sps:$4 sm:$0xff]   ;;  %v11031_v9 = vld [vmem:[%s15217_s1 + $0xfc8] ss:$16 sps:$4 sm:$0xff]  }
 0x404   :  { %3794 = vmatpush1.bf16.msra.mxu0 %v10944_v5  ;;  %3876 = vmatpush1.bf16.msra.mxu1 %v10947_v6  ;;  %v11030_v5 = vld [vmem:[%s15217_s1 + $0xfc4] ss:$16 sps:$4 sm:$0xff]   ;;  %v10186_v6 = vadd.f32 %v13316_v52, %v2131_v63  ;;  %v11039_v52 = vld [vmem:[%s15217_s1 + $0xfec] ss:$16 sps:$4 sm:$0xff]  }
 0x405   :  { %3825 = vmatprep.mubr.bf16.mxu0 %v3090_v13  ;;  %3907 = vmatprep.mubr.bf16.mxu1 %v3090_v13  ;;  %v11034_v13 = vld [vmem:[%s15217_s1 + $0xfe0] ss:$16 sps:$4 sm:$0xff]   ;;  %v11111_v63 = vld [vmem:[%s15217_s1 + $0x116c] ss:$16 sps:$4 sm:$0xff]  }
 0x406   :  { %3795 = vmatprep.subr.bf16.mxu0 %v10952_v10  ;;  %3877 = vmatprep.subr.bf16.mxu1 %v10955_v11  ;;  %v11036_v10 = vld [vmem:[%s15217_s1 + $0xfe4] ss:$16 sps:$4 sm:$0xff]   ;;  %v2950_v11 = vmul.f32 0.2, %v10186_v6  ;;  %vm2946_vm11 = vcmp.ge.f32.partialorder %v10186_v6, 0.0 }
 0x408   :  { %3796 = vmatpush1.bf16.msra.mxu0 %v10950_v14  ;;  %3878 = vmatpush1.bf16.msra.mxu1 %v10953_v15  ;;  %v11037_v14 = vld [vmem:[%s15217_s1 + $0xfe8] ss:$16 sps:$4 sm:$0xff]   ;;  %v11042_v15 = vld [vmem:[%s15217_s1 + $0x1004] ss:$16 sps:$4 sm:$0xff]  }
 0x409   :  { %3797 = vmatprep.subr.bf16.mxu0 %v10958_v16  ;;  %3879 = vmatprep.subr.bf16.mxu1 %v10961_v17  ;;  %v11045_v16 = vld [vmem:[%s15217_s1 + $0x100c] ss:$16 sps:$4 sm:$0xff]   ;;  %v2954_v17 = vsel %vm2946_vm11, %v10186_v6, %v2950_v11  ;;  %v11112_v6 = vld [vmem:[%s15217_s1 + $0x1180] ss:$16 sps:$4 sm:$0xff]   ;;  %v11121_v11 = vld [vmem:[%s15217_s1 + $0x11a8] ss:$16 sps:$4 sm:$0xff]  }
 0x40c   :  { %3798 = vmatpush1.bf16.msra.mxu0 %v10956_v18  ;;  %3880 = vmatpush1.bf16.msra.mxu1 %v10959_v20  ;;  %v11040_v18 = vld [vmem:[%s15217_s1 + $0x1000] ss:$16 sps:$4 sm:$0xff]   ;;  %v11043_v20 = vld [vmem:[%s15217_s1 + $0x1008] ss:$16 sps:$4 sm:$0xff]  }
 0x40d   :  { %3799 = vmatprep.subr.bf16.mxu0 %v10964_v21  ;;  %3881 = vmatprep.subr.bf16.mxu1 %v10967_v22  ;;  %v3089_v21 = vpack.c.bf16 %v2954_v17, %v2954_v17  ;;  %v11048_v22 = vld [vmem:[%s15217_s1 + $0x1024] ss:$16 sps:$4 sm:$0xff]  }
 0x40e   :  { %v11132_v17 = vld [vmem:[%s15217_s1 + $0x11e4] ss:$16 sps:$4 sm:$0xff]  }
 0x410   :  { %3800 = vmatpush1.bf16.msra.mxu0 %v10962_v23  ;;  %3882 = vmatpush1.bf16.msra.mxu1 %v10965_v24  ;;  %v11051_v23 = vld [vmem:[%s15217_s1 + $0x102c] ss:$16 sps:$4 sm:$0xff]   ;;  %v11046_v24 = vld [vmem:[%s15217_s1 + $0x1020] ss:$16 sps:$4 sm:$0xff]  }
 0x411   :  { %3801 = vmatprep.subr.bf16.mxu0 %v10970_v25  ;;  %3883 = vmatprep.subr.bf16.mxu1 %v10973_v26  ;;  %v11049_v25 = vld [vmem:[%s15217_s1 + $0x1028] ss:$16 sps:$4 sm:$0xff]   ;;  %v11054_v26 = vld [vmem:[%s15217_s1 + $0x1044] ss:$16 sps:$4 sm:$0xff]  }
 0x414   :  { %3802 = vmatpush1.bf16.msra.mxu0 %v10968_v1  ;;  %3884 = vmatpush1.bf16.msra.mxu1 %v10971_v27  ;;  %v11057_v1 = vld [vmem:[%s15217_s1 + $0x104c] ss:$16 sps:$4 sm:$0xff]   ;;  %v11052_v27 = vld [vmem:[%s15217_s1 + $0x1040] ss:$16 sps:$4 sm:$0xff]  }
 0x415   :  { %3803 = vmatprep.subr.bf16.mxu0 %v10976_v28  ;;  %3885 = vmatprep.subr.bf16.mxu1 %v10979_v7  ;;  %v11055_v28 = vld [vmem:[%s15217_s1 + $0x1048] ss:$16 sps:$4 sm:$0xff]   ;;  %v11060_v7 = vld [vmem:[%s15217_s1 + $0x1064] ss:$16 sps:$4 sm:$0xff]  }
 0x418   :  { %3804 = vmatpush1.bf16.msra.mxu0 %v10974_v0  ;;  %3886 = vmatpush1.bf16.msra.mxu1 %v10977_v32  ;;  %v11063_v0 = vld [vmem:[%s15217_s1 + $0x106c] ss:$16 sps:$4 sm:$0xff]   ;;  %v11058_v32 = vld [vmem:[%s15217_s1 + $0x1060] ss:$16 sps:$4 sm:$0xff]  }
 0x419   :  { %3805 = vmatprep.subr.bf16.mxu0 %v10982_v33  ;;  %3887 = vmatprep.subr.bf16.mxu1 %v10985_v34  ;;  %v11061_v33 = vld [vmem:[%s15217_s1 + $0x1068] ss:$16 sps:$4 sm:$0xff]   ;;  %v11066_v34 = vld [vmem:[%s15217_s1 + $0x1084] ss:$16 sps:$4 sm:$0xff]  }
 0x41c   :  { %3806 = vmatpush1.bf16.msra.mxu0 %v10980_v12  ;;  %3888 = vmatpush1.bf16.msra.mxu1 %v10983_v35  ;;  %v11069_v12 = vld [vmem:[%s15217_s1 + $0x108c] ss:$16 sps:$4 sm:$0xff]   ;;  %v11064_v35 = vld [vmem:[%s15217_s1 + $0x1080] ss:$16 sps:$4 sm:$0xff]  }
 0x41d   :  { %3807 = vmatprep.subr.bf16.mxu0 %v10988_v37  ;;  %3889 = vmatprep.subr.bf16.mxu1 %v10991_v38  ;;  %v11067_v37 = vld [vmem:[%s15217_s1 + $0x1088] ss:$16 sps:$4 sm:$0xff]   ;;  %v11072_v38 = vld [vmem:[%s15217_s1 + $0x10a4] ss:$16 sps:$4 sm:$0xff]  }
 0x420   :  { %3808 = vmatpush1.bf16.msra.mxu0 %v10986_v39  ;;  %3890 = vmatpush1.bf16.msra.mxu1 %v10989_v40  ;;  %v11075_v39 = vld [vmem:[%s15217_s1 + $0x10ac] ss:$16 sps:$4 sm:$0xff]   ;;  %v11070_v40 = vld [vmem:[%s15217_s1 + $0x10a0] ss:$16 sps:$4 sm:$0xff]  }
 0x421   :  { %3809 = vmatprep.subr.bf16.mxu0 %v10994_v41  ;;  %3891 = vmatprep.subr.bf16.mxu1 %v10997_v42  ;;  %v11073_v41 = vld [vmem:[%s15217_s1 + $0x10a8] ss:$16 sps:$4 sm:$0xff]   ;;  %v11078_v42 = vld [vmem:[%s15217_s1 + $0x10c4] ss:$16 sps:$4 sm:$0xff]  }
 0x424   :  { %3810 = vmatpush1.bf16.msra.mxu0 %v10992_v43  ;;  %3892 = vmatpush1.bf16.msra.mxu1 %v10995_v44  ;;  %v11081_v43 = vld [vmem:[%s15217_s1 + $0x10cc] ss:$16 sps:$4 sm:$0xff]   ;;  %v11076_v44 = vld [vmem:[%s15217_s1 + $0x10c0] ss:$16 sps:$4 sm:$0xff]  }
 0x425   :  { %3811 = vmatprep.subr.bf16.mxu0 %v11000_v46  ;;  %3893 = vmatprep.subr.bf16.mxu1 %v11003_v47  ;;  %v11079_v46 = vld [vmem:[%s15217_s1 + $0x10c8] ss:$16 sps:$4 sm:$0xff]   ;;  %v11084_v47 = vld [vmem:[%s15217_s1 + $0x10e4] ss:$16 sps:$4 sm:$0xff]  }
 0x428   :  { %3812 = vmatpush1.bf16.msra.mxu0 %v10998_v3  ;;  %3894 = vmatpush1.bf16.msra.mxu1 %v11001_v49  ;;  %v11087_v3 = vld [vmem:[%s15217_s1 + $0x10ec] ss:$16 sps:$4 sm:$0xff]   ;;  %v11082_v49 = vld [vmem:[%s15217_s1 + $0x10e0] ss:$16 sps:$4 sm:$0xff]  }
 0x429   :  { %3813 = vmatprep.subr.bf16.mxu0 %v11006_v50  ;;  %3895 = vmatprep.subr.bf16.mxu1 %v11009_v51  ;;  %v11085_v50 = vld [vmem:[%s15217_s1 + $0x10e8] ss:$16 sps:$4 sm:$0xff]   ;;  %v11090_v51 = vld [vmem:[%s15217_s1 + $0x1104] ss:$16 sps:$4 sm:$0xff]  }
 0x42c   :  { %3814 = vmatpush1.bf16.msra.mxu0 %v11004_v29  ;;  %3896 = vmatpush1.bf16.msra.mxu1 %v11007_v53  ;;  %v11093_v29 = vld [vmem:[%s15217_s1 + $0x110c] ss:$16 sps:$4 sm:$0xff]   ;;  %v11088_v53 = vld [vmem:[%s15217_s1 + $0x1100] ss:$16 sps:$4 sm:$0xff]  }
 0x42d   :  { %3815 = vmatprep.subr.bf16.mxu0 %v11012_v54  ;;  %3897 = vmatprep.subr.bf16.mxu1 %v11015_v55  ;;  %v11091_v54 = vld [vmem:[%s15217_s1 + $0x1108] ss:$16 sps:$4 sm:$0xff]   ;;  %v11096_v55 = vld [vmem:[%s15217_s1 + $0x1124] ss:$16 sps:$4 sm:$0xff]  }
 0x430   :  { %3816 = vmatpush1.bf16.msra.mxu0 %v11010_v56  ;;  %3898 = vmatpush1.bf16.msra.mxu1 %v11013_v36  ;;  %v11099_v56 = vld [vmem:[%s15217_s1 + $0x112c] ss:$16 sps:$4 sm:$0xff]   ;;  %v11094_v36 = vld [vmem:[%s15217_s1 + $0x1120] ss:$16 sps:$4 sm:$0xff]  }
 0x431   :  { %3817 = vmatprep.subr.bf16.mxu0 %v11018_v57  ;;  %3899 = vmatprep.subr.bf16.mxu1 %v11021_v58  ;;  %v11097_v57 = vld [vmem:[%s15217_s1 + $0x1128] ss:$16 sps:$4 sm:$0xff]   ;;  %v11102_v58 = vld [vmem:[%s15217_s1 + $0x1144] ss:$16 sps:$4 sm:$0xff]  }
 0x434   :  { %3818 = vmatpush1.bf16.msra.mxu0 %v11016_v59  ;;  %3900 = vmatpush1.bf16.msra.mxu1 %v11019_v60  ;;  %v11105_v59 = vld [vmem:[%s15217_s1 + $0x114c] ss:$16 sps:$4 sm:$0xff]   ;;  %v11100_v60 = vld [vmem:[%s15217_s1 + $0x1140] ss:$16 sps:$4 sm:$0xff]  }
 0x435   :  { %3819 = vmatprep.subr.bf16.mxu0 %v11024_v61  ;;  %3901 = vmatprep.subr.bf16.mxu1 %v11027_v62  ;;  %v11103_v61 = vld [vmem:[%s15217_s1 + $0x1148] ss:$16 sps:$4 sm:$0xff]   ;;  %v11108_v62 = vld [vmem:[%s15217_s1 + $0x1164] ss:$16 sps:$4 sm:$0xff]  }
 0x438   :  { %3820 = vmatpush1.bf16.msra.mxu0 %v11022_v2  ;;  %3902 = vmatpush1.bf16.msra.mxu1 %v11025_v4  ;;  %v11106_v2 = vld [vmem:[%s15217_s1 + $0x1160] ss:$16 sps:$4 sm:$0xff]   ;;  %v11109_v4 = vld [vmem:[%s15217_s1 + $0x1168] ss:$16 sps:$4 sm:$0xff]  }
 0x439   :  { %3821 = vmatprep.subr.bf16.mxu0 %v11030_v5  ;;  %3903 = vmatprep.subr.bf16.mxu1 %v11033_v48  ;;  %v11114_v5 = vld [vmem:[%s15217_s1 + $0x1184] ss:$16 sps:$4 sm:$0xff]   ;;  %v11117_v48 = vld [vmem:[%s15217_s1 + $0x118c] ss:$16 sps:$4 sm:$0xff]  }
 0x43c   :  { %3822 = vmatpush1.bf16.msra.mxu0 %v11028_v8  ;;  %3904 = vmatpush1.bf16.msra.mxu1 %v11031_v9  ;;  %v11115_v8 = vld [vmem:[%s15217_s1 + $0x1188] ss:$16 sps:$4 sm:$0xff]   ;;  %v11120_v9 = vld [vmem:[%s15217_s1 + $0x11a4] ss:$16 sps:$4 sm:$0xff]  }
 0x43d   :  { %3823 = vmatprep.subr.bf16.mxu0 %v11036_v10  ;;  %3905 = vmatprep.subr.bf16.mxu1 %v11039_v52  ;;  %v11123_v10 = vld [vmem:[%s15217_s1 + $0x11ac] ss:$16 sps:$4 sm:$0xff]   ;;  %v11118_v52 = vld [vmem:[%s15217_s1 + $0x11a0] ss:$16 sps:$4 sm:$0xff]  }
 0x440   :  { %3824 = vmatpush1.bf16.msra.mxu0 %v11034_v13  ;;  %3906 = vmatpush1.bf16.msra.mxu1 %v11037_v14  ;;  %v11126_v13 = vld [vmem:[%s15217_s1 + $0x11c4] ss:$16 sps:$4 sm:$0xff]   ;;  %v11129_v14 = vld [vmem:[%s15217_s1 + $0x11cc] ss:$16 sps:$4 sm:$0xff]  }
 0x441   :  { %4724 = vmatprep.subr.bf16.mxu0 %v11042_v15  ;;  %4806 = vmatprep.subr.bf16.mxu1 %v11045_v16  ;;  %v11124_v15 = vld [vmem:[%s15217_s1 + $0x11c0] ss:$16 sps:$4 sm:$0xff]   ;;  %v11127_v16 = vld [vmem:[%s15217_s1 + $0x11c8] ss:$16 sps:$4 sm:$0xff]  }
 0x443   :  { %3826 = vmatmul.mubr.bf16.vlgmr.msra.gmra.mrb[12].mxu0 %v3089_v21  ;;  %3908 = vmatmul.mubr.bf16.vlgmr.msra.gmra.mrb[12].mxu1 %v3089_v21  ;;  %v11133_v21 = vld [vmem:[%s15217_s1 + $0x11e8] ss:$16 sps:$4 sm:$0xff]  }
 0x444   :  { %4725 = vmatpush1.bf16.msra.mxu0 %v11040_v18  ;;  %4807 = vmatpush1.bf16.msra.mxu1 %v11043_v20  ;;  %v11135_v18 = vld [vmem:[%s15217_s1 + $0x11ec] ss:$16 sps:$4 sm:$0xff]   ;;  %v11130_v20 = vld [vmem:[%s15217_s1 + $0x11e0] ss:$16 sps:$4 sm:$0xff]  }
 0x445   :  { %4726 = vmatprep.subr.bf16.mxu0 %v11048_v22  ;;  %4808 = vmatprep.subr.bf16.mxu1 %v11051_v23  ;;  %v11138_v22 = vld [vmem:[%s15217_s1 + $0x1204] ss:$16 sps:$4 sm:$0xff]   ;;  %v11141_v23 = vld [vmem:[%s15217_s1 + $0x120c] ss:$16 sps:$4 sm:$0xff]  }
 0x448   :  { %4727 = vmatpush1.bf16.msra.mxu0 %v11046_v24  ;;  %4809 = vmatpush1.bf16.msra.mxu1 %v11049_v25  ;;  %v13708_v24 = vld [vmem:[%s15218_s2 + $0xc] sm:$0xf] }
 0x449   :  { %4728 = vmatprep.subr.bf16.mxu0 %v11054_v26  ;;  %4810 = vmatprep.subr.bf16.mxu1 %v11057_v1  ;;  %v3095_v25 = vrot.slane %v13708_v24, %v12499_v30  ;;  %v3099_v26 = vrot.slane %v13708_v24, %v12502_v19  ;;  %v3107_v1 = vrot.slane %v13708_v24, %v12505_v31 }
 0x44c   :  { %4729 = vmatpush1.bf16.msra.mxu0 %v11052_v27  ;;  %4811 = vmatpush1.bf16.msra.mxu1 %v11055_v28 }
 0x44d   :  { %4730 = vmatprep.subr.bf16.mxu0 %v11060_v7  ;;  %4812 = vmatprep.subr.bf16.mxu1 %v11063_v0 }
 0x450   :  { %4731 = vmatpush1.bf16.msra.mxu0 %v11058_v32  ;;  %4813 = vmatpush1.bf16.msra.mxu1 %v11061_v33 }
 0x451   :  { %4732 = vmatprep.subr.bf16.mxu0 %v11066_v34  ;;  %4814 = vmatprep.subr.bf16.mxu1 %v11069_v12 }
 0x454   :  { %4733 = vmatpush1.bf16.msra.mxu0 %v11064_v35  ;;  %4815 = vmatpush1.bf16.msra.mxu1 %v11067_v37 }
 0x455   :  { %4734 = vmatprep.subr.bf16.mxu0 %v11072_v38  ;;  %4816 = vmatprep.subr.bf16.mxu1 %v11075_v39 }
 0x458   :  { %4735 = vmatpush1.bf16.msra.mxu0 %v11070_v40  ;;  %4817 = vmatpush1.bf16.msra.mxu1 %v11073_v41 }
 0x459   :  { %4736 = vmatprep.subr.bf16.mxu0 %v11078_v42  ;;  %4818 = vmatprep.subr.bf16.mxu1 %v11081_v43 }
 0x45c   :  { %4737 = vmatpush1.bf16.msra.mxu0 %v11076_v44  ;;  %4819 = vmatpush1.bf16.msra.mxu1 %v11079_v46  ;;  %v11136_v46 = vld [vmem:[%s15217_s1 + $0x1200] ss:$16 sps:$4 sm:$0xff]  }
 0x45d   :  { %4738 = vmatprep.subr.bf16.mxu0 %v11084_v47  ;;  %4820 = vmatprep.subr.bf16.mxu1 %v11087_v3  ;;  %v11139_v47 = vld [vmem:[%s15217_s1 + $0x1208] ss:$16 sps:$4 sm:$0xff]  }
 0x460   :  { %4739 = vmatpush1.bf16.msra.mxu0 %v11082_v49  ;;  %4821 = vmatpush1.bf16.msra.mxu1 %v11085_v50  ;;  %v11144_v50 = vld [vmem:[%s15217_s1 + $0x1224] ss:$16 sps:$4 sm:$0xff]  }
 0x461   :  { %4740 = vmatprep.subr.bf16.mxu0 %v11090_v51  ;;  %4822 = vmatprep.subr.bf16.mxu1 %v11093_v29  ;;  %v11147_v51 = vld [vmem:[%s15217_s1 + $0x122c] ss:$16 sps:$4 sm:$0xff]  }
 0x464   :  { %4741 = vmatpush1.bf16.msra.mxu0 %v11088_v53  ;;  %4823 = vmatpush1.bf16.msra.mxu1 %v11091_v54  ;;  %v11142_v53 = vld [vmem:[%s15217_s1 + $0x1220] ss:$16 sps:$4 sm:$0xff]   ;;  %v11145_v54 = vld [vmem:[%s15217_s1 + $0x1228] ss:$16 sps:$4 sm:$0xff]  }
 0x465   :  { %4742 = vmatprep.subr.bf16.mxu0 %v11096_v55  ;;  %4824 = vmatprep.subr.bf16.mxu1 %v11099_v56  ;;  %v11150_v55 = vld [vmem:[%s15217_s1 + $0x1244] ss:$16 sps:$4 sm:$0xff]   ;;  %v11153_v56 = vld [vmem:[%s15217_s1 + $0x124c] ss:$16 sps:$4 sm:$0xff]  }
 0x468   :  { %4743 = vmatpush1.bf16.msra.mxu0 %v11094_v36  ;;  %4825 = vmatpush1.bf16.msra.mxu1 %v11097_v57  ;;  %v11148_v36 = vld [vmem:[%s15217_s1 + $0x1240] ss:$16 sps:$4 sm:$0xff]   ;;  %v11151_v57 = vld [vmem:[%s15217_s1 + $0x1248] ss:$16 sps:$4 sm:$0xff]  }
 0x469   :  { %4744 = vmatprep.subr.bf16.mxu0 %v11102_v58  ;;  %4826 = vmatprep.subr.bf16.mxu1 %v11105_v59  ;;  %v11156_v58 = vld [vmem:[%s15217_s1 + $0x1264] ss:$16 sps:$4 sm:$0xff]   ;;  %v11159_v59 = vld [vmem:[%s15217_s1 + $0x126c] ss:$16 sps:$4 sm:$0xff]  }
 0x46c   :  { %4745 = vmatpush1.bf16.msra.mxu0 %v11100_v60  ;;  %4827 = vmatpush1.bf16.msra.mxu1 %v11103_v61  ;;  %v11154_v60 = vld [vmem:[%s15217_s1 + $0x1260] ss:$16 sps:$4 sm:$0xff]   ;;  %v11157_v61 = vld [vmem:[%s15217_s1 + $0x1268] ss:$16 sps:$4 sm:$0xff]  }
 0x46d   :  { %4746 = vmatprep.subr.bf16.mxu0 %v11108_v62  ;;  %4828 = vmatprep.subr.bf16.mxu1 %v11111_v63  ;;  %v11162_v62 = vld [vmem:[%s15217_s1 + $0x1284] ss:$16 sps:$4 sm:$0xff]   ;;  %v11165_v63 = vld [vmem:[%s15217_s1 + $0x128c] ss:$16 sps:$4 sm:$0xff]  }
 0x470   :  { %4747 = vmatpush1.bf16.msra.mxu0 %v11106_v2  ;;  %4829 = vmatpush1.bf16.msra.mxu1 %v11109_v4  ;;  %v11160_v2 = vld [vmem:[%s15217_s1 + $0x1280] ss:$16 sps:$4 sm:$0xff]   ;;  %v11163_v4 = vld [vmem:[%s15217_s1 + $0x1288] ss:$16 sps:$4 sm:$0xff]  }
 0x471   :  { %4748 = vmatprep.subr.bf16.mxu0 %v11114_v5  ;;  %4830 = vmatprep.subr.bf16.mxu1 %v11117_v48  ;;  %v11168_v5 = vld [vmem:[%s15217_s1 + $0x12a4] ss:$16 sps:$4 sm:$0xff]   ;;  %v11171_v48 = vld [vmem:[%s15217_s1 + $0x12ac] ss:$16 sps:$4 sm:$0xff]  }
 0x474   :  { %4749 = vmatpush1.bf16.msra.mxu0 %v11112_v6  ;;  %4831 = vmatpush1.bf16.msra.mxu1 %v11115_v8  ;;  %v11166_v6 = vld [vmem:[%s15217_s1 + $0x12a0] ss:$16 sps:$4 sm:$0xff]   ;;  %v11169_v8 = vld [vmem:[%s15217_s1 + $0x12a8] ss:$16 sps:$4 sm:$0xff]  }
 0x475   :  { %4750 = vmatprep.subr.bf16.mxu0 %v11120_v9  ;;  %4832 = vmatprep.subr.bf16.mxu1 %v11123_v10  ;;  %v11174_v9 = vld [vmem:[%s15217_s1 + $0x12c4] ss:$16 sps:$4 sm:$0xff]   ;;  %v11177_v10 = vld [vmem:[%s15217_s1 + $0x12cc] ss:$16 sps:$4 sm:$0xff]  }
 0x478   :  { %4751 = vmatpush1.bf16.msra.mxu0 %v11118_v52  ;;  %4833 = vmatpush1.bf16.msra.mxu1 %v11121_v11  ;;  %v11172_v52 = vld [vmem:[%s15217_s1 + $0x12c0] ss:$16 sps:$4 sm:$0xff]   ;;  %v11175_v11 = vld [vmem:[%s15217_s1 + $0x12c8] ss:$16 sps:$4 sm:$0xff]  }
 0x479   :  { %4752 = vmatprep.subr.bf16.mxu0 %v11126_v13  ;;  %4834 = vmatprep.subr.bf16.mxu1 %v11129_v14  ;;  %v11180_v13 = vld [vmem:[%s15217_s1 + $0x12e4] ss:$16 sps:$4 sm:$0xff]   ;;  %v11183_v14 = vld [vmem:[%s15217_s1 + $0x12ec] ss:$16 sps:$4 sm:$0xff]  }
 0x47c   :  { %4753 = vmatpush1.bf16.msra.mxu0 %v11124_v15  ;;  %4835 = vmatpush1.bf16.msra.mxu1 %v11127_v16  ;;  %v11178_v15 = vld [vmem:[%s15217_s1 + $0x12e0] ss:$16 sps:$4 sm:$0xff]   ;;  %v11181_v16 = vld [vmem:[%s15217_s1 + $0x12e8] ss:$16 sps:$4 sm:$0xff]  }
 0x47d   :  { %4754 = vmatprep.subr.bf16.mxu0 %v11132_v17  ;;  %4836 = vmatprep.subr.bf16.mxu1 %v11135_v18  ;;  %v11186_v17 = vld [vmem:[%s15217_s1 + $0x1304] ss:$16 sps:$4 sm:$0xff]   ;;  %v11189_v18 = vld [vmem:[%s15217_s1 + $0x130c] ss:$16 sps:$4 sm:$0xff]  }
 0x480   :  { %4755 = vmatpush1.bf16.msra.mxu0 %v11130_v20  ;;  %4837 = vmatpush1.bf16.msra.mxu1 %v11133_v21  ;;  %v11184_v20 = vld [vmem:[%s15217_s1 + $0x1300] ss:$16 sps:$4 sm:$0xff]   ;;  %v11187_v21 = vld [vmem:[%s15217_s1 + $0x1308] ss:$16 sps:$4 sm:$0xff]  }
 0x481   :  { %4765 = vmatprep.subr.bf16.mxu0 %v11138_v22  ;;  %4847 = vmatprep.subr.bf16.mxu1 %v11141_v23  ;;  %v11192_v22 = vld [vmem:[%s15217_s1 + $0x1324] ss:$16 sps:$4 sm:$0xff]   ;;  %v11195_v23 = vld [vmem:[%s15217_s1 + $0x132c] ss:$16 sps:$4 sm:$0xff]  }
 0x516   :  { %v3827_v27 = vpop.f32.mrb[12].mxu0  ;;  %v13716_v28 = vpop.f32.mrb[12].mxu1 }
 0x517   :  { %v10188_v7 = vadd.f32 %v3827_v27, %v3095_v25  ;;  %v3829_v0 = vpop.f32.mrb[13].mxu0  ;;  %v3911_v32 = vpop.f32.mrb[13].mxu1  ;;  %v11190_v25 = vld [vmem:[%s15217_s1 + $0x1320] ss:$16 sps:$4 sm:$0xff]   ;;  %v11201_v27 = vld [vmem:[%s15217_s1 + $0x134c] ss:$16 sps:$4 sm:$0xff]  }
 0x518   :  { %v10189_v33 = vadd.f32 %v3829_v0, %v3099_v26  ;;  %v10191_v34 = vadd.f32 %v3911_v32, %v3107_v1  ;;  %v3831_v12 = vpop.f32.mrb[14].mxu0  ;;  %v3913_v35 = vpop.f32.mrb[14].mxu1  ;;  %v11193_v26 = vld [vmem:[%s15217_s1 + $0x1328] ss:$16 sps:$4 sm:$0xff]   ;;  %v11198_v1 = vld [vmem:[%s15217_s1 + $0x1344] ss:$16 sps:$4 sm:$0xff]  }
 0x519   :  { %vm3916_vm12 = vcmp.ge.f32.partialorder %v10188_v7, 0.0  ;;  %v3920_v37 = vmul.f32 0.2, %v10188_v7  ;;  %v3832_v41 = vpop.f32.mrb[15].mxu0  ;;  %v3914_v42 = vpop.f32.mrb[15].mxu1 }
 0x51a   :  { %vm3917_vm13 = vcmp.ge.f32.partialorder %v10189_v33, 0.0  ;;  %v3921_v38 = vmul.f32 0.2, %v10189_v33  ;;  %vm3919_vm14 = vcmp.ge.f32.partialorder %v10191_v34, 0.0  ;;  %v3923_v39 = vmul.f32 0.2, %v10191_v34 }
 0x51b   :  { %v3924_v40 = vsel %vm3916_vm12, %v10188_v7, %v3920_v37  ;;  %v11196_v7 = vld [vmem:[%s15217_s1 + $0x1340] ss:$16 sps:$4 sm:$0xff]   ;;  %v11199_v0 = vld [vmem:[%s15217_s1 + $0x1348] ss:$16 sps:$4 sm:$0xff]   ;;  %v11204_v32 = vld [vmem:[%s15217_s1 + $0x1364] ss:$16 sps:$4 sm:$0xff]   ;;  %v3103_v42 = vrot.slane %v13708_v24, %v12660_v45 }
 0x51c   :  { %v3925_v43 = vsel %vm3917_vm13, %v10189_v33, %v3921_v38  ;;  %v3927_v3 = vsel %vm3919_vm14, %v10191_v34, %v3923_v39  ;;  %v4059_v49 = vpack.c.bf16 %v3924_v40, %v3924_v40  ;;  %v11207_v33 = vld [vmem:[%s15217_s1 + $0x136c] ss:$16 sps:$4 sm:$0xff]   ;;  %v11202_v34 = vld [vmem:[%s15217_s1 + $0x1360] ss:$16 sps:$4 sm:$0xff]   ;;  %v11205_v12 = vld [vmem:[%s15217_s1 + $0x1368] ss:$16 sps:$4 sm:$0xff]  }
 0x51d   :  { %v4060_v44 = vpack.c.bf16 %v3925_v43, %v3925_v43  ;;  %v4062_v29 = vpack.c.bf16 %v3927_v3, %v3927_v3  ;;  %v11210_v35 = vld [vmem:[%s15217_s1 + $0x1384] ss:$16 sps:$4 sm:$0xff]   ;;  %v11213_v37 = vld [vmem:[%s15217_s1 + $0x138c] ss:$16 sps:$4 sm:$0xff]   ;;  %v11208_v38 = vld [vmem:[%s15217_s1 + $0x1380] ss:$16 sps:$4 sm:$0xff]  }
 0x51e   :  { %v11211_v39 = vld [vmem:[%s15217_s1 + $0x1388] ss:$16 sps:$4 sm:$0xff]   ;;  %v11216_v40 = vld [vmem:[%s15217_s1 + $0x13a4] ss:$16 sps:$4 sm:$0xff]   ;;  %v11219_v41 = vld [vmem:[%s15217_s1 + $0x13ac] ss:$16 sps:$4 sm:$0xff]  }
 0x51f   :  { %4756 = vmatprep.mubr.bf16.mxu0 %v4060_v44  ;;  %4838 = vmatprep.mubr.bf16.mxu1 %v4060_v44  ;;  %v11214_v43 = vld [vmem:[%s15217_s1 + $0x13a0] ss:$16 sps:$4 sm:$0xff]   ;;  %v11217_v44 = vld [vmem:[%s15217_s1 + $0x13a8] ss:$16 sps:$4 sm:$0xff]   ;;  %v11225_v24 = vld [vmem:[%s15217_s1 + $0x13cc] ss:$16 sps:$4 sm:$0xff]  }
 0x520   :  { %4757 = vmatmul.mubr.bf16.vlgmr.msra.gmra.mrb[16].mxu0 %v4059_v49  ;;  %4839 = vmatmul.mubr.bf16.vlgmr.msra.gmra.mrb[16].mxu1 %v4059_v49  ;;  %v11220_v3 = vld [vmem:[%s15217_s1 + $0x13c0] ss:$16 sps:$4 sm:$0xff]   ;;  %v11223_v49 = vld [vmem:[%s15217_s1 + $0x13c8] ss:$16 sps:$4 sm:$0xff]  }
 0x521   :  { %4766 = vmatpush1.bf16.msra.mxu0 %v11136_v46  ;;  %4848 = vmatpush1.bf16.msra.mxu1 %v11139_v47  ;;  %v11222_v46 = vld [vmem:[%s15217_s1 + $0x13c4] ss:$16 sps:$4 sm:$0xff]   ;;  %v10190_v47 = vadd.f32 %v13716_v28, %v3103_v42  ;;  %v11231_v28 = vld [vmem:[%s15217_s1 + $0x13ec] ss:$16 sps:$4 sm:$0xff]  }
 0x522   :  { %4797 = vmatprep.mubr.bf16.mxu0 %v4062_v29  ;;  %4879 = vmatprep.mubr.bf16.mxu1 %v4062_v29  ;;  %v11226_v29 = vld [vmem:[%s15217_s1 + $0x13e0] ss:$16 sps:$4 sm:$0xff]   ;;  %v11303_v42 = vld [vmem:[%s15217_s1 + $0x156c] ss:$16 sps:$4 sm:$0xff]  }
 0x523   :  { %4767 = vmatprep.subr.bf16.mxu0 %v11144_v50  ;;  %4849 = vmatprep.subr.bf16.mxu1 %v11147_v51  ;;  %v11228_v50 = vld [vmem:[%s15217_s1 + $0x13e4] ss:$16 sps:$4 sm:$0xff]   ;;  %v3922_v51 = vmul.f32 0.2, %v10190_v47  ;;  %vm3918_vm15 = vcmp.ge.f32.partialorder %v10190_v47, 0.0 }
 0x525   :  { %4768 = vmatpush1.bf16.msra.mxu0 %v11142_v53  ;;  %4850 = vmatpush1.bf16.msra.mxu1 %v11145_v54  ;;  %v11229_v53 = vld [vmem:[%s15217_s1 + $0x13e8] ss:$16 sps:$4 sm:$0xff]   ;;  %v11234_v54 = vld [vmem:[%s15217_s1 + $0x1404] ss:$16 sps:$4 sm:$0xff]  }
 0x526   :  { %4769 = vmatprep.subr.bf16.mxu0 %v11150_v55  ;;  %4851 = vmatprep.subr.bf16.mxu1 %v11153_v56  ;;  %v11237_v55 = vld [vmem:[%s15217_s1 + $0x140c] ss:$16 sps:$4 sm:$0xff]   ;;  %v3926_v56 = vsel %vm3918_vm15, %v10190_v47, %v3922_v51  ;;  %v11304_v47 = vld [vmem:[%s15217_s1 + $0x1580] ss:$16 sps:$4 sm:$0xff]   ;;  %v11313_v51 = vld [vmem:[%s15217_s1 + $0x15a8] ss:$16 sps:$4 sm:$0xff]  }
 0x529   :  { %4770 = vmatpush1.bf16.msra.mxu0 %v11148_v36  ;;  %4852 = vmatpush1.bf16.msra.mxu1 %v11151_v57  ;;  %v11232_v36 = vld [vmem:[%s15217_s1 + $0x1400] ss:$16 sps:$4 sm:$0xff]   ;;  %v11235_v57 = vld [vmem:[%s15217_s1 + $0x1408] ss:$16 sps:$4 sm:$0xff]  }
 0x52a   :  { %4771 = vmatprep.subr.bf16.mxu0 %v11156_v58  ;;  %4853 = vmatprep.subr.bf16.mxu1 %v11159_v59  ;;  %v4061_v58 = vpack.c.bf16 %v3926_v56, %v3926_v56  ;;  %v11240_v59 = vld [vmem:[%s15217_s1 + $0x1424] ss:$16 sps:$4 sm:$0xff]  }
 0x52b   :  { %v11324_v56 = vld [vmem:[%s15217_s1 + $0x15e4] ss:$16 sps:$4 sm:$0xff]  }
 0x52d   :  { %4772 = vmatpush1.bf16.msra.mxu0 %v11154_v60  ;;  %4854 = vmatpush1.bf16.msra.mxu1 %v11157_v61  ;;  %v11243_v60 = vld [vmem:[%s15217_s1 + $0x142c] ss:$16 sps:$4 sm:$0xff]   ;;  %v11238_v61 = vld [vmem:[%s15217_s1 + $0x1420] ss:$16 sps:$4 sm:$0xff]  }
 0x52e   :  { %4773 = vmatprep.subr.bf16.mxu0 %v11162_v62  ;;  %4855 = vmatprep.subr.bf16.mxu1 %v11165_v63  ;;  %v11241_v62 = vld [vmem:[%s15217_s1 + $0x1428] ss:$16 sps:$4 sm:$0xff]   ;;  %v11246_v63 = vld [vmem:[%s15217_s1 + $0x1444] ss:$16 sps:$4 sm:$0xff]  }
 0x531   :  { %4774 = vmatpush1.bf16.msra.mxu0 %v11160_v2  ;;  %4856 = vmatpush1.bf16.msra.mxu1 %v11163_v4  ;;  %v11249_v2 = vld [vmem:[%s15217_s1 + $0x144c] ss:$16 sps:$4 sm:$0xff]   ;;  %v11244_v4 = vld [vmem:[%s15217_s1 + $0x1440] ss:$16 sps:$4 sm:$0xff]  }
 0x532   :  { %4775 = vmatprep.subr.bf16.mxu0 %v11168_v5  ;;  %4857 = vmatprep.subr.bf16.mxu1 %v11171_v48  ;;  %v11247_v5 = vld [vmem:[%s15217_s1 + $0x1448] ss:$16 sps:$4 sm:$0xff]   ;;  %v11252_v48 = vld [vmem:[%s15217_s1 + $0x1464] ss:$16 sps:$4 sm:$0xff]  }
 0x535   :  { %4776 = vmatpush1.bf16.msra.mxu0 %v11166_v6  ;;  %4858 = vmatpush1.bf16.msra.mxu1 %v11169_v8  ;;  %v11255_v6 = vld [vmem:[%s15217_s1 + $0x146c] ss:$16 sps:$4 sm:$0xff]   ;;  %v11250_v8 = vld [vmem:[%s15217_s1 + $0x1460] ss:$16 sps:$4 sm:$0xff]  }
 0x536   :  { %4777 = vmatprep.subr.bf16.mxu0 %v11174_v9  ;;  %4859 = vmatprep.subr.bf16.mxu1 %v11177_v10  ;;  %v11253_v9 = vld [vmem:[%s15217_s1 + $0x1468] ss:$16 sps:$4 sm:$0xff]   ;;  %v11258_v10 = vld [vmem:[%s15217_s1 + $0x1484] ss:$16 sps:$4 sm:$0xff]  }
 0x539   :  { %4778 = vmatpush1.bf16.msra.mxu0 %v11172_v52  ;;  %4860 = vmatpush1.bf16.msra.mxu1 %v11175_v11  ;;  %v11261_v52 = vld [vmem:[%s15217_s1 + $0x148c] ss:$16 sps:$4 sm:$0xff]   ;;  %v11256_v11 = vld [vmem:[%s15217_s1 + $0x1480] ss:$16 sps:$4 sm:$0xff]  }
 0x53a   :  { %4779 = vmatprep.subr.bf16.mxu0 %v11180_v13  ;;  %4861 = vmatprep.subr.bf16.mxu1 %v11183_v14  ;;  %v11259_v13 = vld [vmem:[%s15217_s1 + $0x1488] ss:$16 sps:$4 sm:$0xff]   ;;  %v11264_v14 = vld [vmem:[%s15217_s1 + $0x14a4] ss:$16 sps:$4 sm:$0xff]  }
 0x53d   :  { %4780 = vmatpush1.bf16.msra.mxu0 %v11178_v15  ;;  %4862 = vmatpush1.bf16.msra.mxu1 %v11181_v16  ;;  %v11267_v15 = vld [vmem:[%s15217_s1 + $0x14ac] ss:$16 sps:$4 sm:$0xff]   ;;  %v11262_v16 = vld [vmem:[%s15217_s1 + $0x14a0] ss:$16 sps:$4 sm:$0xff]  }
 0x53e   :  { %4781 = vmatprep.subr.bf16.mxu0 %v11186_v17  ;;  %4863 = vmatprep.subr.bf16.mxu1 %v11189_v18  ;;  %v11265_v17 = vld [vmem:[%s15217_s1 + $0x14a8] ss:$16 sps:$4 sm:$0xff]   ;;  %v11270_v18 = vld [vmem:[%s15217_s1 + $0x14c4] ss:$16 sps:$4 sm:$0xff]  }
 0x541   :  { %4782 = vmatpush1.bf16.msra.mxu0 %v11184_v20  ;;  %4864 = vmatpush1.bf16.msra.mxu1 %v11187_v21  ;;  %v11273_v20 = vld [vmem:[%s15217_s1 + $0x14cc] ss:$16 sps:$4 sm:$0xff]   ;;  %v11268_v21 = vld [vmem:[%s15217_s1 + $0x14c0] ss:$16 sps:$4 sm:$0xff]  }
 0x542   :  { %4783 = vmatprep.subr.bf16.mxu0 %v11192_v22  ;;  %4865 = vmatprep.subr.bf16.mxu1 %v11195_v23  ;;  %v11271_v22 = vld [vmem:[%s15217_s1 + $0x14c8] ss:$16 sps:$4 sm:$0xff]   ;;  %v11276_v23 = vld [vmem:[%s15217_s1 + $0x14e4] ss:$16 sps:$4 sm:$0xff]  }
 0x545   :  { %4784 = vmatpush1.bf16.msra.mxu0 %v11190_v25  ;;  %4866 = vmatpush1.bf16.msra.mxu1 %v11193_v26  ;;  %v11279_v25 = vld [vmem:[%s15217_s1 + $0x14ec] ss:$16 sps:$4 sm:$0xff]   ;;  %v11274_v26 = vld [vmem:[%s15217_s1 + $0x14e0] ss:$16 sps:$4 sm:$0xff]  }
 0x546   :  { %4785 = vmatprep.subr.bf16.mxu0 %v11198_v1  ;;  %4867 = vmatprep.subr.bf16.mxu1 %v11201_v27  ;;  %v11277_v1 = vld [vmem:[%s15217_s1 + $0x14e8] ss:$16 sps:$4 sm:$0xff]   ;;  %v11282_v27 = vld [vmem:[%s15217_s1 + $0x1504] ss:$16 sps:$4 sm:$0xff]  }
 0x549   :  { %4786 = vmatpush1.bf16.msra.mxu0 %v11196_v7  ;;  %4868 = vmatpush1.bf16.msra.mxu1 %v11199_v0  ;;  %v11285_v7 = vld [vmem:[%s15217_s1 + $0x150c] ss:$16 sps:$4 sm:$0xff]   ;;  %v11280_v0 = vld [vmem:[%s15217_s1 + $0x1500] ss:$16 sps:$4 sm:$0xff]  }
 0x54a   :  { %4787 = vmatprep.subr.bf16.mxu0 %v11204_v32  ;;  %4869 = vmatprep.subr.bf16.mxu1 %v11207_v33  ;;  %v11283_v32 = vld [vmem:[%s15217_s1 + $0x1508] ss:$16 sps:$4 sm:$0xff]   ;;  %v11288_v33 = vld [vmem:[%s15217_s1 + $0x1524] ss:$16 sps:$4 sm:$0xff]  }
 0x54d   :  { %4788 = vmatpush1.bf16.msra.mxu0 %v11202_v34  ;;  %4870 = vmatpush1.bf16.msra.mxu1 %v11205_v12  ;;  %v11291_v34 = vld [vmem:[%s15217_s1 + $0x152c] ss:$16 sps:$4 sm:$0xff]   ;;  %v11286_v12 = vld [vmem:[%s15217_s1 + $0x1520] ss:$16 sps:$4 sm:$0xff]  }
 0x54e   :  { %4789 = vmatprep.subr.bf16.mxu0 %v11210_v35  ;;  %4871 = vmatprep.subr.bf16.mxu1 %v11213_v37  ;;  %v11289_v35 = vld [vmem:[%s15217_s1 + $0x1528] ss:$16 sps:$4 sm:$0xff]   ;;  %v11294_v37 = vld [vmem:[%s15217_s1 + $0x1544] ss:$16 sps:$4 sm:$0xff]  }
 0x551   :  { %4790 = vmatpush1.bf16.msra.mxu0 %v11208_v38  ;;  %4872 = vmatpush1.bf16.msra.mxu1 %v11211_v39  ;;  %v11297_v38 = vld [vmem:[%s15217_s1 + $0x154c] ss:$16 sps:$4 sm:$0xff]   ;;  %v11292_v39 = vld [vmem:[%s15217_s1 + $0x1540] ss:$16 sps:$4 sm:$0xff]  }
 0x552   :  { %4791 = vmatprep.subr.bf16.mxu0 %v11216_v40  ;;  %4873 = vmatprep.subr.bf16.mxu1 %v11219_v41  ;;  %v11295_v40 = vld [vmem:[%s15217_s1 + $0x1548] ss:$16 sps:$4 sm:$0xff]   ;;  %v11300_v41 = vld [vmem:[%s15217_s1 + $0x1564] ss:$16 sps:$4 sm:$0xff]  }
 0x555   :  { %4792 = vmatpush1.bf16.msra.mxu0 %v11214_v43  ;;  %4874 = vmatpush1.bf16.msra.mxu1 %v11217_v44  ;;  %v11298_v43 = vld [vmem:[%s15217_s1 + $0x1560] ss:$16 sps:$4 sm:$0xff]   ;;  %v11301_v44 = vld [vmem:[%s15217_s1 + $0x1568] ss:$16 sps:$4 sm:$0xff]  }
 0x556   :  { %4793 = vmatprep.subr.bf16.mxu0 %v11222_v46  ;;  %4875 = vmatprep.subr.bf16.mxu1 %v11225_v24  ;;  %v11306_v46 = vld [vmem:[%s15217_s1 + $0x1584] ss:$16 sps:$4 sm:$0xff]   ;;  %v11309_v24 = vld [vmem:[%s15217_s1 + $0x158c] ss:$16 sps:$4 sm:$0xff]  }
 0x559   :  { %4794 = vmatpush1.bf16.msra.mxu0 %v11220_v3  ;;  %4876 = vmatpush1.bf16.msra.mxu1 %v11223_v49  ;;  %v11307_v3 = vld [vmem:[%s15217_s1 + $0x1588] ss:$16 sps:$4 sm:$0xff]   ;;  %v11312_v49 = vld [vmem:[%s15217_s1 + $0x15a4] ss:$16 sps:$4 sm:$0xff]  }
 0x55a   :  { %4795 = vmatprep.subr.bf16.mxu0 %v11228_v50  ;;  %4877 = vmatprep.subr.bf16.mxu1 %v11231_v28  ;;  %v11315_v50 = vld [vmem:[%s15217_s1 + $0x15ac] ss:$16 sps:$4 sm:$0xff]   ;;  %v11310_v28 = vld [vmem:[%s15217_s1 + $0x15a0] ss:$16 sps:$4 sm:$0xff]  }
 0x55d   :  { %4796 = vmatpush1.bf16.msra.mxu0 %v11226_v29  ;;  %4878 = vmatpush1.bf16.msra.mxu1 %v11229_v53  ;;  %v11318_v29 = vld [vmem:[%s15217_s1 + $0x15c4] ss:$16 sps:$4 sm:$0xff]   ;;  %v11321_v53 = vld [vmem:[%s15217_s1 + $0x15cc] ss:$16 sps:$4 sm:$0xff]  }
 0x55e   :  { %5696 = vmatprep.subr.bf16.mxu0 %v11234_v54  ;;  %5778 = vmatprep.subr.bf16.mxu1 %v11237_v55  ;;  %v11316_v54 = vld [vmem:[%s15217_s1 + $0x15c0] ss:$16 sps:$4 sm:$0xff]   ;;  %v11319_v55 = vld [vmem:[%s15217_s1 + $0x15c8] ss:$16 sps:$4 sm:$0xff]  }
 0x560   :  { %4798 = vmatmul.mubr.bf16.vlgmr.msra.gmra.mrb[16].mxu0 %v4061_v58  ;;  %4880 = vmatmul.mubr.bf16.vlgmr.msra.gmra.mrb[16].mxu1 %v4061_v58  ;;  %v11325_v58 = vld [vmem:[%s15217_s1 + $0x15e8] ss:$16 sps:$4 sm:$0xff]  }
 0x561   :  { %5697 = vmatpush1.bf16.msra.mxu0 %v11232_v36  ;;  %5779 = vmatpush1.bf16.msra.mxu1 %v11235_v57  ;;  %v11327_v36 = vld [vmem:[%s15217_s1 + $0x15ec] ss:$16 sps:$4 sm:$0xff]   ;;  %v11322_v57 = vld [vmem:[%s15217_s1 + $0x15e0] ss:$16 sps:$4 sm:$0xff]  }
 0x562   :  { %5698 = vmatprep.subr.bf16.mxu0 %v11240_v59  ;;  %5780 = vmatprep.subr.bf16.mxu1 %v11243_v60  ;;  %v11330_v59 = vld [vmem:[%s15217_s1 + $0x1604] ss:$16 sps:$4 sm:$0xff]   ;;  %v11333_v60 = vld [vmem:[%s15217_s1 + $0x160c] ss:$16 sps:$4 sm:$0xff]  }
 0x565   :  { %5699 = vmatpush1.bf16.msra.mxu0 %v11238_v61  ;;  %5781 = vmatpush1.bf16.msra.mxu1 %v11241_v62  ;;  %v14108_v61 = vld [vmem:[%s15218_s2 + $0x10] sm:$0xf] }
 0x566   :  { %5700 = vmatprep.subr.bf16.mxu0 %v11246_v63  ;;  %5782 = vmatprep.subr.bf16.mxu1 %v11249_v2  ;;  %v4067_v62 = vrot.slane %v14108_v61, %v12499_v30  ;;  %v4071_v63 = vrot.slane %v14108_v61, %v12502_v19  ;;  %v4079_v2 = vrot.slane %v14108_v61, %v12505_v31 }
 0x569   :  { %5701 = vmatpush1.bf16.msra.mxu0 %v11244_v4  ;;  %5783 = vmatpush1.bf16.msra.mxu1 %v11247_v5 }
 0x56a   :  { %5702 = vmatprep.subr.bf16.mxu0 %v11252_v48  ;;  %5784 = vmatprep.subr.bf16.mxu1 %v11255_v6 }
 0x56d   :  { %5703 = vmatpush1.bf16.msra.mxu0 %v11250_v8  ;;  %5785 = vmatpush1.bf16.msra.mxu1 %v11253_v9 }
 0x56e   :  { %5704 = vmatprep.subr.bf16.mxu0 %v11258_v10  ;;  %5786 = vmatprep.subr.bf16.mxu1 %v11261_v52 }
 0x571   :  { %5705 = vmatpush1.bf16.msra.mxu0 %v11256_v11  ;;  %5787 = vmatpush1.bf16.msra.mxu1 %v11259_v13 }
 0x572   :  { %5706 = vmatprep.subr.bf16.mxu0 %v11264_v14  ;;  %5788 = vmatprep.subr.bf16.mxu1 %v11267_v15 }
 0x575   :  { %5707 = vmatpush1.bf16.msra.mxu0 %v11262_v16  ;;  %5789 = vmatpush1.bf16.msra.mxu1 %v11265_v17 }
 0x576   :  { %5708 = vmatprep.subr.bf16.mxu0 %v11270_v18  ;;  %5790 = vmatprep.subr.bf16.mxu1 %v11273_v20 }
 0x579   :  { %5709 = vmatpush1.bf16.msra.mxu0 %v11268_v21  ;;  %5791 = vmatpush1.bf16.msra.mxu1 %v11271_v22  ;;  %v11328_v22 = vld [vmem:[%s15217_s1 + $0x1600] ss:$16 sps:$4 sm:$0xff]  }
 0x57a   :  { %5710 = vmatprep.subr.bf16.mxu0 %v11276_v23  ;;  %5792 = vmatprep.subr.bf16.mxu1 %v11279_v25  ;;  %v11331_v23 = vld [vmem:[%s15217_s1 + $0x1608] ss:$16 sps:$4 sm:$0xff]  }
 0x57d   :  { %5711 = vmatpush1.bf16.msra.mxu0 %v11274_v26  ;;  %5793 = vmatpush1.bf16.msra.mxu1 %v11277_v1  ;;  %v11336_v1 = vld [vmem:[%s15217_s1 + $0x1624] ss:$16 sps:$4 sm:$0xff]  }
 0x57e   :  { %5712 = vmatprep.subr.bf16.mxu0 %v11282_v27  ;;  %5794 = vmatprep.subr.bf16.mxu1 %v11285_v7  ;;  %v11339_v27 = vld [vmem:[%s15217_s1 + $0x162c] ss:$16 sps:$4 sm:$0xff]  }
 0x581   :  { %5713 = vmatpush1.bf16.msra.mxu0 %v11280_v0  ;;  %5795 = vmatpush1.bf16.msra.mxu1 %v11283_v32  ;;  %v11334_v0 = vld [vmem:[%s15217_s1 + $0x1620] ss:$16 sps:$4 sm:$0xff]   ;;  %v11337_v32 = vld [vmem:[%s15217_s1 + $0x1628] ss:$16 sps:$4 sm:$0xff]  }
 0x582   :  { %5714 = vmatprep.subr.bf16.mxu0 %v11288_v33  ;;  %5796 = vmatprep.subr.bf16.mxu1 %v11291_v34  ;;  %v11342_v33 = vld [vmem:[%s15217_s1 + $0x1644] ss:$16 sps:$4 sm:$0xff]   ;;  %v11345_v34 = vld [vmem:[%s15217_s1 + $0x164c] ss:$16 sps:$4 sm:$0xff]  }
 0x585   :  { %5715 = vmatpush1.bf16.msra.mxu0 %v11286_v12  ;;  %5797 = vmatpush1.bf16.msra.mxu1 %v11289_v35  ;;  %v11340_v12 = vld [vmem:[%s15217_s1 + $0x1640] ss:$16 sps:$4 sm:$0xff]   ;;  %v11343_v35 = vld [vmem:[%s15217_s1 + $0x1648] ss:$16 sps:$4 sm:$0xff]  }
 0x586   :  { %5716 = vmatprep.subr.bf16.mxu0 %v11294_v37  ;;  %5798 = vmatprep.subr.bf16.mxu1 %v11297_v38  ;;  %v11348_v37 = vld [vmem:[%s15217_s1 + $0x1664] ss:$16 sps:$4 sm:$0xff]   ;;  %v11351_v38 = vld [vmem:[%s15217_s1 + $0x166c] ss:$16 sps:$4 sm:$0xff]  }
 0x589   :  { %5717 = vmatpush1.bf16.msra.mxu0 %v11292_v39  ;;  %5799 = vmatpush1.bf16.msra.mxu1 %v11295_v40  ;;  %v11346_v39 = vld [vmem:[%s15217_s1 + $0x1660] ss:$16 sps:$4 sm:$0xff]   ;;  %v11349_v40 = vld [vmem:[%s15217_s1 + $0x1668] ss:$16 sps:$4 sm:$0xff]  }
 0x58a   :  { %5718 = vmatprep.subr.bf16.mxu0 %v11300_v41  ;;  %5800 = vmatprep.subr.bf16.mxu1 %v11303_v42  ;;  %v11354_v41 = vld [vmem:[%s15217_s1 + $0x1684] ss:$16 sps:$4 sm:$0xff]   ;;  %v11357_v42 = vld [vmem:[%s15217_s1 + $0x168c] ss:$16 sps:$4 sm:$0xff]  }
 0x58d   :  { %5719 = vmatpush1.bf16.msra.mxu0 %v11298_v43  ;;  %5801 = vmatpush1.bf16.msra.mxu1 %v11301_v44  ;;  %v11352_v43 = vld [vmem:[%s15217_s1 + $0x1680] ss:$16 sps:$4 sm:$0xff]   ;;  %v11355_v44 = vld [vmem:[%s15217_s1 + $0x1688] ss:$16 sps:$4 sm:$0xff]  }
 0x58e   :  { %5720 = vmatprep.subr.bf16.mxu0 %v11306_v46  ;;  %5802 = vmatprep.subr.bf16.mxu1 %v11309_v24  ;;  %v11360_v46 = vld [vmem:[%s15217_s1 + $0x16a4] ss:$16 sps:$4 sm:$0xff]   ;;  %v11363_v24 = vld [vmem:[%s15217_s1 + $0x16ac] ss:$16 sps:$4 sm:$0xff]  }
 0x591   :  { %5721 = vmatpush1.bf16.msra.mxu0 %v11304_v47  ;;  %5803 = vmatpush1.bf16.msra.mxu1 %v11307_v3  ;;  %v11358_v47 = vld [vmem:[%s15217_s1 + $0x16a0] ss:$16 sps:$4 sm:$0xff]   ;;  %v11361_v3 = vld [vmem:[%s15217_s1 + $0x16a8] ss:$16 sps:$4 sm:$0xff]  }
 0x592   :  { %5722 = vmatprep.subr.bf16.mxu0 %v11312_v49  ;;  %5804 = vmatprep.subr.bf16.mxu1 %v11315_v50  ;;  %v11366_v49 = vld [vmem:[%s15217_s1 + $0x16c4] ss:$16 sps:$4 sm:$0xff]   ;;  %v11369_v50 = vld [vmem:[%s15217_s1 + $0x16cc] ss:$16 sps:$4 sm:$0xff]  }
 0x595   :  { %5723 = vmatpush1.bf16.msra.mxu0 %v11310_v28  ;;  %5805 = vmatpush1.bf16.msra.mxu1 %v11313_v51  ;;  %v11364_v28 = vld [vmem:[%s15217_s1 + $0x16c0] ss:$16 sps:$4 sm:$0xff]   ;;  %v11367_v51 = vld [vmem:[%s15217_s1 + $0x16c8] ss:$16 sps:$4 sm:$0xff]  }
 0x596   :  { %5724 = vmatprep.subr.bf16.mxu0 %v11318_v29  ;;  %5806 = vmatprep.subr.bf16.mxu1 %v11321_v53  ;;  %v11372_v29 = vld [vmem:[%s15217_s1 + $0x16e4] ss:$16 sps:$4 sm:$0xff]   ;;  %v11375_v53 = vld [vmem:[%s15217_s1 + $0x16ec] ss:$16 sps:$4 sm:$0xff]  }
 0x599   :  { %5725 = vmatpush1.bf16.msra.mxu0 %v11316_v54  ;;  %5807 = vmatpush1.bf16.msra.mxu1 %v11319_v55  ;;  %v11370_v54 = vld [vmem:[%s15217_s1 + $0x16e0] ss:$16 sps:$4 sm:$0xff]   ;;  %v11373_v55 = vld [vmem:[%s15217_s1 + $0x16e8] ss:$16 sps:$4 sm:$0xff]  }
 0x59a   :  { %5726 = vmatprep.subr.bf16.mxu0 %v11324_v56  ;;  %5808 = vmatprep.subr.bf16.mxu1 %v11327_v36  ;;  %v11378_v56 = vld [vmem:[%s15217_s1 + $0x1704] ss:$16 sps:$4 sm:$0xff]   ;;  %v11381_v36 = vld [vmem:[%s15217_s1 + $0x170c] ss:$16 sps:$4 sm:$0xff]  }
 0x59d   :  { %5727 = vmatpush1.bf16.msra.mxu0 %v11322_v57  ;;  %5809 = vmatpush1.bf16.msra.mxu1 %v11325_v58  ;;  %v11376_v57 = vld [vmem:[%s15217_s1 + $0x1700] ss:$16 sps:$4 sm:$0xff]   ;;  %v11379_v58 = vld [vmem:[%s15217_s1 + $0x1708] ss:$16 sps:$4 sm:$0xff]  }
 0x59e   :  { %5737 = vmatprep.subr.bf16.mxu0 %v11330_v59  ;;  %5819 = vmatprep.subr.bf16.mxu1 %v11333_v60  ;;  %v11384_v59 = vld [vmem:[%s15217_s1 + $0x1724] ss:$16 sps:$4 sm:$0xff]   ;;  %v11387_v60 = vld [vmem:[%s15217_s1 + $0x172c] ss:$16 sps:$4 sm:$0xff]  }
 0x633   :  { %v4799_v4 = vpop.f32.mrb[16].mxu0  ;;  %v14116_v5 = vpop.f32.mrb[16].mxu1 }
 0x634   :  { %v10192_v48 = vadd.f32 %v4799_v4, %v4067_v62  ;;  %v4801_v6 = vpop.f32.mrb[17].mxu0  ;;  %v4883_v8 = vpop.f32.mrb[17].mxu1  ;;  %v11382_v62 = vld [vmem:[%s15217_s1 + $0x1720] ss:$16 sps:$4 sm:$0xff]   ;;  %v11393_v4 = vld [vmem:[%s15217_s1 + $0x174c] ss:$16 sps:$4 sm:$0xff]  }
 0x635   :  { %v10193_v9 = vadd.f32 %v4801_v6, %v4071_v63  ;;  %v10195_v10 = vadd.f32 %v4883_v8, %v4079_v2  ;;  %v4803_v52 = vpop.f32.mrb[18].mxu0  ;;  %v4885_v11 = vpop.f32.mrb[18].mxu1  ;;  %v11385_v63 = vld [vmem:[%s15217_s1 + $0x1728] ss:$16 sps:$4 sm:$0xff]   ;;  %v11390_v2 = vld [vmem:[%s15217_s1 + $0x1744] ss:$16 sps:$4 sm:$0xff]  }
 0x636   :  { %vm4888_vm0 = vcmp.ge.f32.partialorder %v10192_v48, 0.0  ;;  %v4892_v13 = vmul.f32 0.2, %v10192_v48  ;;  %v4804_v17 = vpop.f32.mrb[19].mxu0  ;;  %v4886_v18 = vpop.f32.mrb[19].mxu1 }
 0x637   :  { %vm4889_vm1 = vcmp.ge.f32.partialorder %v10193_v9, 0.0  ;;  %v4893_v14 = vmul.f32 0.2, %v10193_v9  ;;  %vm4891_vm2 = vcmp.ge.f32.partialorder %v10195_v10, 0.0  ;;  %v4895_v15 = vmul.f32 0.2, %v10195_v10 }
 0x638   :  { %v4896_v16 = vsel %vm4888_vm0, %v10192_v48, %v4892_v13  ;;  %v11388_v48 = vld [vmem:[%s15217_s1 + $0x1740] ss:$16 sps:$4 sm:$0xff]   ;;  %v11391_v6 = vld [vmem:[%s15217_s1 + $0x1748] ss:$16 sps:$4 sm:$0xff]   ;;  %v11396_v8 = vld [vmem:[%s15217_s1 + $0x1764] ss:$16 sps:$4 sm:$0xff]   ;;  %v4075_v18 = vrot.slane %v14108_v61, %v12660_v45 }
 0x639   :  { %v4897_v20 = vsel %vm4889_vm1, %v10193_v9, %v4893_v14  ;;  %v4899_v25 = vsel %vm4891_vm2, %v10195_v10, %v4895_v15  ;;  %v5031_v26 = vpack.c.bf16 %v4896_v16, %v4896_v16  ;;  %v11399_v9 = vld [vmem:[%s15217_s1 + $0x176c] ss:$16 sps:$4 sm:$0xff]   ;;  %v11394_v10 = vld [vmem:[%s15217_s1 + $0x1760] ss:$16 sps:$4 sm:$0xff]   ;;  %v11397_v52 = vld [vmem:[%s15217_s1 + $0x1768] ss:$16 sps:$4 sm:$0xff]  }
 0x63a   :  { %v5032_v21 = vpack.c.bf16 %v4897_v20, %v4897_v20  ;;  %v5034_v7 = vpack.c.bf16 %v4899_v25, %v4899_v25  ;;  %v11402_v11 = vld [vmem:[%s15217_s1 + $0x1784] ss:$16 sps:$4 sm:$0xff]   ;;  %v11405_v13 = vld [vmem:[%s15217_s1 + $0x178c] ss:$16 sps:$4 sm:$0xff]   ;;  %v11400_v14 = vld [vmem:[%s15217_s1 + $0x1780] ss:$16 sps:$4 sm:$0xff]  }
 0x63b   :  { %v11403_v15 = vld [vmem:[%s15217_s1 + $0x1788] ss:$16 sps:$4 sm:$0xff]   ;;  %v11408_v16 = vld [vmem:[%s15217_s1 + $0x17a4] ss:$16 sps:$4 sm:$0xff]   ;;  %v11411_v17 = vld [vmem:[%s15217_s1 + $0x17ac] ss:$16 sps:$4 sm:$0xff]  }
 0x63c   :  { %5728 = vmatprep.mubr.bf16.mxu0 %v5032_v21  ;;  %5810 = vmatprep.mubr.bf16.mxu1 %v5032_v21  ;;  %v11406_v20 = vld [vmem:[%s15217_s1 + $0x17a0] ss:$16 sps:$4 sm:$0xff]   ;;  %v11409_v21 = vld [vmem:[%s15217_s1 + $0x17a8] ss:$16 sps:$4 sm:$0xff]   ;;  %v11417_v61 = vld [vmem:[%s15217_s1 + $0x17cc] ss:$16 sps:$4 sm:$0xff]  }
 0x63d   :  { %5729 = vmatmul.mubr.bf16.vlgmr.msra.gmra.mrb[20].mxu0 %v5031_v26  ;;  %5811 = vmatmul.mubr.bf16.vlgmr.msra.gmra.mrb[20].mxu1 %v5031_v26  ;;  %v11412_v25 = vld [vmem:[%s15217_s1 + $0x17c0] ss:$16 sps:$4 sm:$0xff]   ;;  %v11415_v26 = vld [vmem:[%s15217_s1 + $0x17c8] ss:$16 sps:$4 sm:$0xff]   ;;  %vm8166_vm1 = vcmask 261120  }
 0x63e   :  { %5738 = vmatpush1.bf16.msra.mxu0 %v11328_v22  ;;  %5820 = vmatpush1.bf16.msra.mxu1 %v11331_v23  ;;  %v11414_v22 = vld [vmem:[%s15217_s1 + $0x17c4] ss:$16 sps:$4 sm:$0xff]   ;;  %v10194_v23 = vadd.f32 %v14116_v5, %v4075_v18  ;;  %v11423_v5 = vld [vmem:[%s15217_s1 + $0x17ec] ss:$16 sps:$4 sm:$0xff]  }
 0x63f   :  { %5769 = vmatprep.mubr.bf16.mxu0 %v5034_v7  ;;  %5851 = vmatprep.mubr.bf16.mxu1 %v5034_v7  ;;  %v11418_v7 = vld [vmem:[%s15217_s1 + $0x17e0] ss:$16 sps:$4 sm:$0xff]   ;;  %v11495_v18 = vld [vmem:[%s15217_s1 + $0x196c] ss:$16 sps:$4 sm:$0xff]  }
 0x640   :  { %5739 = vmatprep.subr.bf16.mxu0 %v11336_v1  ;;  %5821 = vmatprep.subr.bf16.mxu1 %v11339_v27  ;;  %v11420_v1 = vld [vmem:[%s15217_s1 + $0x17e4] ss:$16 sps:$4 sm:$0xff]   ;;  %v4894_v27 = vmul.f32 0.2, %v10194_v23  ;;  %vm4890_vm3 = vcmp.ge.f32.partialorder %v10194_v23, 0.0 }
 0x642   :  { %5740 = vmatpush1.bf16.msra.mxu0 %v11334_v0  ;;  %5822 = vmatpush1.bf16.msra.mxu1 %v11337_v32  ;;  %v11421_v0 = vld [vmem:[%s15217_s1 + $0x17e8] ss:$16 sps:$4 sm:$0xff]   ;;  %v11426_v32 = vld [vmem:[%s15217_s1 + $0x1804] ss:$16 sps:$4 sm:$0xff]  }
 0x643   :  { %5741 = vmatprep.subr.bf16.mxu0 %v11342_v33  ;;  %5823 = vmatprep.subr.bf16.mxu1 %v11345_v34  ;;  %v11429_v33 = vld [vmem:[%s15217_s1 + $0x180c] ss:$16 sps:$4 sm:$0xff]   ;;  %v4898_v34 = vsel %vm4890_vm3, %v10194_v23, %v4894_v27  ;;  %v11496_v23 = vld [vmem:[%s15217_s1 + $0x1980] ss:$16 sps:$4 sm:$0xff]   ;;  %v11505_v27 = vld [vmem:[%s15217_s1 + $0x19a8] ss:$16 sps:$4 sm:$0xff]  }
 0x646   :  { %5742 = vmatpush1.bf16.msra.mxu0 %v11340_v12  ;;  %5824 = vmatpush1.bf16.msra.mxu1 %v11343_v35  ;;  %v11424_v12 = vld [vmem:[%s15217_s1 + $0x1800] ss:$16 sps:$4 sm:$0xff]   ;;  %v11427_v35 = vld [vmem:[%s15217_s1 + $0x1808] ss:$16 sps:$4 sm:$0xff]  }
 0x647   :  { %5743 = vmatprep.subr.bf16.mxu0 %v11348_v37  ;;  %5825 = vmatprep.subr.bf16.mxu1 %v11351_v38  ;;  %v5033_v37 = vpack.c.bf16 %v4898_v34, %v4898_v34  ;;  %v11432_v38 = vld [vmem:[%s15217_s1 + $0x1824] ss:$16 sps:$4 sm:$0xff]  }
 0x648   :  { %v11516_v34 = vld [vmem:[%s15217_s1 + $0x19e4] ss:$16 sps:$4 sm:$0xff]  }
 0x64a   :  { %5744 = vmatpush1.bf16.msra.mxu0 %v11346_v39  ;;  %5826 = vmatpush1.bf16.msra.mxu1 %v11349_v40  ;;  %v11435_v39 = vld [vmem:[%s15217_s1 + $0x182c] ss:$16 sps:$4 sm:$0xff]   ;;  %v11430_v40 = vld [vmem:[%s15217_s1 + $0x1820] ss:$16 sps:$4 sm:$0xff]  }
 0x64b   :  { %5745 = vmatprep.subr.bf16.mxu0 %v11354_v41  ;;  %5827 = vmatprep.subr.bf16.mxu1 %v11357_v42  ;;  %v11433_v41 = vld [vmem:[%s15217_s1 + $0x1828] ss:$16 sps:$4 sm:$0xff]   ;;  %v11438_v42 = vld [vmem:[%s15217_s1 + $0x1844] ss:$16 sps:$4 sm:$0xff]  }
 0x64e   :  { %5746 = vmatpush1.bf16.msra.mxu0 %v11352_v43  ;;  %5828 = vmatpush1.bf16.msra.mxu1 %v11355_v44  ;;  %v11441_v43 = vld [vmem:[%s15217_s1 + $0x184c] ss:$16 sps:$4 sm:$0xff]   ;;  %v11436_v44 = vld [vmem:[%s15217_s1 + $0x1840] ss:$16 sps:$4 sm:$0xff]  }
 0x64f   :  { %5747 = vmatprep.subr.bf16.mxu0 %v11360_v46  ;;  %5829 = vmatprep.subr.bf16.mxu1 %v11363_v24  ;;  %v11439_v46 = vld [vmem:[%s15217_s1 + $0x1848] ss:$16 sps:$4 sm:$0xff]   ;;  %v11444_v24 = vld [vmem:[%s15217_s1 + $0x1864] ss:$16 sps:$4 sm:$0xff]  }
 0x652   :  { %5748 = vmatpush1.bf16.msra.mxu0 %v11358_v47  ;;  %5830 = vmatpush1.bf16.msra.mxu1 %v11361_v3  ;;  %v11447_v47 = vld [vmem:[%s15217_s1 + $0x186c] ss:$16 sps:$4 sm:$0xff]   ;;  %v11442_v3 = vld [vmem:[%s15217_s1 + $0x1860] ss:$16 sps:$4 sm:$0xff]  }
 0x653   :  { %5749 = vmatprep.subr.bf16.mxu0 %v11366_v49  ;;  %5831 = vmatprep.subr.bf16.mxu1 %v11369_v50  ;;  %v11445_v49 = vld [vmem:[%s15217_s1 + $0x1868] ss:$16 sps:$4 sm:$0xff]   ;;  %v11450_v50 = vld [vmem:[%s15217_s1 + $0x1884] ss:$16 sps:$4 sm:$0xff]  }
 0x656   :  { %5750 = vmatpush1.bf16.msra.mxu0 %v11364_v28  ;;  %5832 = vmatpush1.bf16.msra.mxu1 %v11367_v51  ;;  %v11453_v28 = vld [vmem:[%s15217_s1 + $0x188c] ss:$16 sps:$4 sm:$0xff]   ;;  %v11448_v51 = vld [vmem:[%s15217_s1 + $0x1880] ss:$16 sps:$4 sm:$0xff]  }
 0x657   :  { %5751 = vmatprep.subr.bf16.mxu0 %v11372_v29  ;;  %5833 = vmatprep.subr.bf16.mxu1 %v11375_v53  ;;  %v11451_v29 = vld [vmem:[%s15217_s1 + $0x1888] ss:$16 sps:$4 sm:$0xff]   ;;  %v11456_v53 = vld [vmem:[%s15217_s1 + $0x18a4] ss:$16 sps:$4 sm:$0xff]  }
 0x65a   :  { %5752 = vmatpush1.bf16.msra.mxu0 %v11370_v54  ;;  %5834 = vmatpush1.bf16.msra.mxu1 %v11373_v55  ;;  %v11459_v54 = vld [vmem:[%s15217_s1 + $0x18ac] ss:$16 sps:$4 sm:$0xff]   ;;  %v11454_v55 = vld [vmem:[%s15217_s1 + $0x18a0] ss:$16 sps:$4 sm:$0xff]  }
 0x65b   :  { %5753 = vmatprep.subr.bf16.mxu0 %v11378_v56  ;;  %5835 = vmatprep.subr.bf16.mxu1 %v11381_v36  ;;  %v11457_v56 = vld [vmem:[%s15217_s1 + $0x18a8] ss:$16 sps:$4 sm:$0xff]   ;;  %v11462_v36 = vld [vmem:[%s15217_s1 + $0x18c4] ss:$16 sps:$4 sm:$0xff]  }
 0x65e   :  { %5754 = vmatpush1.bf16.msra.mxu0 %v11376_v57  ;;  %5836 = vmatpush1.bf16.msra.mxu1 %v11379_v58  ;;  %v11465_v57 = vld [vmem:[%s15217_s1 + $0x18cc] ss:$16 sps:$4 sm:$0xff]   ;;  %v11460_v58 = vld [vmem:[%s15217_s1 + $0x18c0] ss:$16 sps:$4 sm:$0xff]  }
 0x65f   :  { %5755 = vmatprep.subr.bf16.mxu0 %v11384_v59  ;;  %5837 = vmatprep.subr.bf16.mxu1 %v11387_v60  ;;  %v11463_v59 = vld [vmem:[%s15217_s1 + $0x18c8] ss:$16 sps:$4 sm:$0xff]   ;;  %v11468_v60 = vld [vmem:[%s15217_s1 + $0x18e4] ss:$16 sps:$4 sm:$0xff]  }
 0x662   :  { %5756 = vmatpush1.bf16.msra.mxu0 %v11382_v62  ;;  %5838 = vmatpush1.bf16.msra.mxu1 %v11385_v63  ;;  %v11471_v62 = vld [vmem:[%s15217_s1 + $0x18ec] ss:$16 sps:$4 sm:$0xff]   ;;  %v11466_v63 = vld [vmem:[%s15217_s1 + $0x18e0] ss:$16 sps:$4 sm:$0xff]  }
 0x663   :  { %5757 = vmatprep.subr.bf16.mxu0 %v11390_v2  ;;  %5839 = vmatprep.subr.bf16.mxu1 %v11393_v4  ;;  %v11469_v2 = vld [vmem:[%s15217_s1 + $0x18e8] ss:$16 sps:$4 sm:$0xff]   ;;  %v11474_v4 = vld [vmem:[%s15217_s1 + $0x1904] ss:$16 sps:$4 sm:$0xff]  }
 0x666   :  { %5758 = vmatpush1.bf16.msra.mxu0 %v11388_v48  ;;  %5840 = vmatpush1.bf16.msra.mxu1 %v11391_v6  ;;  %v11477_v48 = vld [vmem:[%s15217_s1 + $0x190c] ss:$16 sps:$4 sm:$0xff]   ;;  %v11472_v6 = vld [vmem:[%s15217_s1 + $0x1900] ss:$16 sps:$4 sm:$0xff]  }
 0x667   :  { %5759 = vmatprep.subr.bf16.mxu0 %v11396_v8  ;;  %5841 = vmatprep.subr.bf16.mxu1 %v11399_v9  ;;  %v11475_v8 = vld [vmem:[%s15217_s1 + $0x1908] ss:$16 sps:$4 sm:$0xff]   ;;  %v11480_v9 = vld [vmem:[%s15217_s1 + $0x1924] ss:$16 sps:$4 sm:$0xff]  }
 0x66a   :  { %5760 = vmatpush1.bf16.msra.mxu0 %v11394_v10  ;;  %5842 = vmatpush1.bf16.msra.mxu1 %v11397_v52  ;;  %v11483_v10 = vld [vmem:[%s15217_s1 + $0x192c] ss:$16 sps:$4 sm:$0xff]   ;;  %v11478_v52 = vld [vmem:[%s15217_s1 + $0x1920] ss:$16 sps:$4 sm:$0xff]  }
 0x66b   :  { %5761 = vmatprep.subr.bf16.mxu0 %v11402_v11  ;;  %5843 = vmatprep.subr.bf16.mxu1 %v11405_v13  ;;  %v11481_v11 = vld [vmem:[%s15217_s1 + $0x1928] ss:$16 sps:$4 sm:$0xff]   ;;  %v11486_v13 = vld [vmem:[%s15217_s1 + $0x1944] ss:$16 sps:$4 sm:$0xff]  }
 0x66e   :  { %5762 = vmatpush1.bf16.msra.mxu0 %v11400_v14  ;;  %5844 = vmatpush1.bf16.msra.mxu1 %v11403_v15  ;;  %v11489_v14 = vld [vmem:[%s15217_s1 + $0x194c] ss:$16 sps:$4 sm:$0xff]   ;;  %v11484_v15 = vld [vmem:[%s15217_s1 + $0x1940] ss:$16 sps:$4 sm:$0xff]  }
 0x66f   :  { %5763 = vmatprep.subr.bf16.mxu0 %v11408_v16  ;;  %5845 = vmatprep.subr.bf16.mxu1 %v11411_v17  ;;  %v11487_v16 = vld [vmem:[%s15217_s1 + $0x1948] ss:$16 sps:$4 sm:$0xff]   ;;  %v11492_v17 = vld [vmem:[%s15217_s1 + $0x1964] ss:$16 sps:$4 sm:$0xff]  }
 0x672   :  { %5764 = vmatpush1.bf16.msra.mxu0 %v11406_v20  ;;  %5846 = vmatpush1.bf16.msra.mxu1 %v11409_v21  ;;  %v11490_v20 = vld [vmem:[%s15217_s1 + $0x1960] ss:$16 sps:$4 sm:$0xff]   ;;  %v11493_v21 = vld [vmem:[%s15217_s1 + $0x1968] ss:$16 sps:$4 sm:$0xff]  }
 0x673   :  { %5765 = vmatprep.subr.bf16.mxu0 %v11414_v22  ;;  %5847 = vmatprep.subr.bf16.mxu1 %v11417_v61  ;;  %v11498_v22 = vld [vmem:[%s15217_s1 + $0x1984] ss:$16 sps:$4 sm:$0xff]   ;;  %v11501_v61 = vld [vmem:[%s15217_s1 + $0x198c] ss:$16 sps:$4 sm:$0xff]  }
 0x676   :  { %5766 = vmatpush1.bf16.msra.mxu0 %v11412_v25  ;;  %5848 = vmatpush1.bf16.msra.mxu1 %v11415_v26  ;;  %v11499_v25 = vld [vmem:[%s15217_s1 + $0x1988] ss:$16 sps:$4 sm:$0xff]   ;;  %v11504_v26 = vld [vmem:[%s15217_s1 + $0x19a4] ss:$16 sps:$4 sm:$0xff]  }
 0x677   :  { %5767 = vmatprep.subr.bf16.mxu0 %v11420_v1  ;;  %5849 = vmatprep.subr.bf16.mxu1 %v11423_v5  ;;  %v11507_v1 = vld [vmem:[%s15217_s1 + $0x19ac] ss:$16 sps:$4 sm:$0xff]   ;;  %v11502_v5 = vld [vmem:[%s15217_s1 + $0x19a0] ss:$16 sps:$4 sm:$0xff]  }
 0x67a   :  { %5768 = vmatpush1.bf16.msra.mxu0 %v11418_v7  ;;  %5850 = vmatpush1.bf16.msra.mxu1 %v11421_v0  ;;  %v11510_v7 = vld [vmem:[%s15217_s1 + $0x19c4] ss:$16 sps:$4 sm:$0xff]   ;;  %v11513_v0 = vld [vmem:[%s15217_s1 + $0x19cc] ss:$16 sps:$4 sm:$0xff]  }
 0x67b   :  { %6668 = vmatprep.subr.bf16.mxu0 %v11426_v32  ;;  %6750 = vmatprep.subr.bf16.mxu1 %v11429_v33  ;;  %v11508_v32 = vld [vmem:[%s15217_s1 + $0x19c0] ss:$16 sps:$4 sm:$0xff]   ;;  %v11511_v33 = vld [vmem:[%s15217_s1 + $0x19c8] ss:$16 sps:$4 sm:$0xff]  }
 0x67d   :  { %5770 = vmatmul.mubr.bf16.vlgmr.msra.gmra.mrb[20].mxu0 %v5033_v37  ;;  %5852 = vmatmul.mubr.bf16.vlgmr.msra.gmra.mrb[20].mxu1 %v5033_v37  ;;  %v11517_v37 = vld [vmem:[%s15217_s1 + $0x19e8] ss:$16 sps:$4 sm:$0xff]  }
 0x67e   :  { %6669 = vmatpush1.bf16.msra.mxu0 %v11424_v12  ;;  %6751 = vmatpush1.bf16.msra.mxu1 %v11427_v35  ;;  %v11519_v12 = vld [vmem:[%s15217_s1 + $0x19ec] ss:$16 sps:$4 sm:$0xff]   ;;  %v11514_v35 = vld [vmem:[%s15217_s1 + $0x19e0] ss:$16 sps:$4 sm:$0xff]  }
 0x67f   :  { %6670 = vmatprep.subr.bf16.mxu0 %v11432_v38  ;;  %6752 = vmatprep.subr.bf16.mxu1 %v11435_v39  ;;  %v11522_v38 = vld [vmem:[%s15217_s1 + $0x1a04] ss:$16 sps:$4 sm:$0xff]   ;;  %v11525_v39 = vld [vmem:[%s15217_s1 + $0x1a0c] ss:$16 sps:$4 sm:$0xff]  }
 0x682   :  { %6671 = vmatpush1.bf16.msra.mxu0 %v11430_v40  ;;  %6753 = vmatpush1.bf16.msra.mxu1 %v11433_v41  ;;  %v14508_v40 = vld [vmem:[%s15218_s2 + $0x14] sm:$0xf] }
 0x683   :  { %6672 = vmatprep.subr.bf16.mxu0 %v11438_v42  ;;  %6754 = vmatprep.subr.bf16.mxu1 %v11441_v43  ;;  %v5039_v41 = vrot.slane %v14508_v40, %v12499_v30  ;;  %v5043_v42 = vrot.slane %v14508_v40, %v12502_v19  ;;  %v5051_v43 = vrot.slane %v14508_v40, %v12505_v31 }
 0x686   :  { %6673 = vmatpush1.bf16.msra.mxu0 %v11436_v44  ;;  %6755 = vmatpush1.bf16.msra.mxu1 %v11439_v46 }
 0x687   :  { %6674 = vmatprep.subr.bf16.mxu0 %v11444_v24  ;;  %6756 = vmatprep.subr.bf16.mxu1 %v11447_v47 }
 0x68a   :  { %6675 = vmatpush1.bf16.msra.mxu0 %v11442_v3  ;;  %6757 = vmatpush1.bf16.msra.mxu1 %v11445_v49 }
 0x68b   :  { %6676 = vmatprep.subr.bf16.mxu0 %v11450_v50  ;;  %6758 = vmatprep.subr.bf16.mxu1 %v11453_v28 }
 0x68e   :  { %6677 = vmatpush1.bf16.msra.mxu0 %v11448_v51  ;;  %6759 = vmatpush1.bf16.msra.mxu1 %v11451_v29 }
 0x68f   :  { %6678 = vmatprep.subr.bf16.mxu0 %v11456_v53  ;;  %6760 = vmatprep.subr.bf16.mxu1 %v11459_v54 }
 0x692   :  { %6679 = vmatpush1.bf16.msra.mxu0 %v11454_v55  ;;  %6761 = vmatpush1.bf16.msra.mxu1 %v11457_v56 }
 0x693   :  { %6680 = vmatprep.subr.bf16.mxu0 %v11462_v36  ;;  %6762 = vmatprep.subr.bf16.mxu1 %v11465_v57 }
 0x696   :  { %6681 = vmatpush1.bf16.msra.mxu0 %v11460_v58  ;;  %6763 = vmatpush1.bf16.msra.mxu1 %v11463_v59  ;;  %v11520_v59 = vld [vmem:[%s15217_s1 + $0x1a00] ss:$16 sps:$4 sm:$0xff]  }
 0x697   :  { %6682 = vmatprep.subr.bf16.mxu0 %v11468_v60  ;;  %6764 = vmatprep.subr.bf16.mxu1 %v11471_v62  ;;  %v11523_v60 = vld [vmem:[%s15217_s1 + $0x1a08] ss:$16 sps:$4 sm:$0xff]  }
 0x69a   :  { %6683 = vmatpush1.bf16.msra.mxu0 %v11466_v63  ;;  %6765 = vmatpush1.bf16.msra.mxu1 %v11469_v2  ;;  %v11528_v2 = vld [vmem:[%s15217_s1 + $0x1a24] ss:$16 sps:$4 sm:$0xff]  }
 0x69b   :  { %6684 = vmatprep.subr.bf16.mxu0 %v11474_v4  ;;  %6766 = vmatprep.subr.bf16.mxu1 %v11477_v48  ;;  %v11531_v4 = vld [vmem:[%s15217_s1 + $0x1a2c] ss:$16 sps:$4 sm:$0xff]  }
 0x69e   :  { %6685 = vmatpush1.bf16.msra.mxu0 %v11472_v6  ;;  %6767 = vmatpush1.bf16.msra.mxu1 %v11475_v8  ;;  %v11526_v6 = vld [vmem:[%s15217_s1 + $0x1a20] ss:$16 sps:$4 sm:$0xff]   ;;  %v11529_v8 = vld [vmem:[%s15217_s1 + $0x1a28] ss:$16 sps:$4 sm:$0xff]  }
 0x69f   :  { %6686 = vmatprep.subr.bf16.mxu0 %v11480_v9  ;;  %6768 = vmatprep.subr.bf16.mxu1 %v11483_v10  ;;  %v11534_v9 = vld [vmem:[%s15217_s1 + $0x1a44] ss:$16 sps:$4 sm:$0xff]   ;;  %v11537_v10 = vld [vmem:[%s15217_s1 + $0x1a4c] ss:$16 sps:$4 sm:$0xff]  }
 0x6a2   :  { %6687 = vmatpush1.bf16.msra.mxu0 %v11478_v52  ;;  %6769 = vmatpush1.bf16.msra.mxu1 %v11481_v11  ;;  %v11532_v52 = vld [vmem:[%s15217_s1 + $0x1a40] ss:$16 sps:$4 sm:$0xff]   ;;  %v11535_v11 = vld [vmem:[%s15217_s1 + $0x1a48] ss:$16 sps:$4 sm:$0xff]  }
 0x6a3   :  { %6688 = vmatprep.subr.bf16.mxu0 %v11486_v13  ;;  %6770 = vmatprep.subr.bf16.mxu1 %v11489_v14  ;;  %v11540_v13 = vld [vmem:[%s15217_s1 + $0x1a64] ss:$16 sps:$4 sm:$0xff]   ;;  %v11543_v14 = vld [vmem:[%s15217_s1 + $0x1a6c] ss:$16 sps:$4 sm:$0xff]  }
 0x6a6   :  { %6689 = vmatpush1.bf16.msra.mxu0 %v11484_v15  ;;  %6771 = vmatpush1.bf16.msra.mxu1 %v11487_v16  ;;  %v11538_v15 = vld [vmem:[%s15217_s1 + $0x1a60] ss:$16 sps:$4 sm:$0xff]   ;;  %v11541_v16 = vld [vmem:[%s15217_s1 + $0x1a68] ss:$16 sps:$4 sm:$0xff]  }
 0x6a7   :  { %6690 = vmatprep.subr.bf16.mxu0 %v11492_v17  ;;  %6772 = vmatprep.subr.bf16.mxu1 %v11495_v18  ;;  %v11546_v17 = vld [vmem:[%s15217_s1 + $0x1a84] ss:$16 sps:$4 sm:$0xff]   ;;  %v11549_v18 = vld [vmem:[%s15217_s1 + $0x1a8c] ss:$16 sps:$4 sm:$0xff]  }
 0x6aa   :  { %6691 = vmatpush1.bf16.msra.mxu0 %v11490_v20  ;;  %6773 = vmatpush1.bf16.msra.mxu1 %v11493_v21  ;;  %v11544_v20 = vld [vmem:[%s15217_s1 + $0x1a80] ss:$16 sps:$4 sm:$0xff]   ;;  %v11547_v21 = vld [vmem:[%s15217_s1 + $0x1a88] ss:$16 sps:$4 sm:$0xff]  }
 0x6ab   :  { %6692 = vmatprep.subr.bf16.mxu0 %v11498_v22  ;;  %6774 = vmatprep.subr.bf16.mxu1 %v11501_v61  ;;  %v11552_v22 = vld [vmem:[%s15217_s1 + $0x1aa4] ss:$16 sps:$4 sm:$0xff]   ;;  %v11555_v61 = vld [vmem:[%s15217_s1 + $0x1aac] ss:$16 sps:$4 sm:$0xff]  }
 0x6ae   :  { %6693 = vmatpush1.bf16.msra.mxu0 %v11496_v23  ;;  %6775 = vmatpush1.bf16.msra.mxu1 %v11499_v25  ;;  %v11550_v23 = vld [vmem:[%s15217_s1 + $0x1aa0] ss:$16 sps:$4 sm:$0xff]   ;;  %v11553_v25 = vld [vmem:[%s15217_s1 + $0x1aa8] ss:$16 sps:$4 sm:$0xff]  }
 0x6af   :  { %6694 = vmatprep.subr.bf16.mxu0 %v11504_v26  ;;  %6776 = vmatprep.subr.bf16.mxu1 %v11507_v1  ;;  %v11558_v26 = vld [vmem:[%s15217_s1 + $0x1ac4] ss:$16 sps:$4 sm:$0xff]   ;;  %v11561_v1 = vld [vmem:[%s15217_s1 + $0x1acc] ss:$16 sps:$4 sm:$0xff]  }
 0x6b2   :  { %6695 = vmatpush1.bf16.msra.mxu0 %v11502_v5  ;;  %6777 = vmatpush1.bf16.msra.mxu1 %v11505_v27  ;;  %v11556_v5 = vld [vmem:[%s15217_s1 + $0x1ac0] ss:$16 sps:$4 sm:$0xff]   ;;  %v11559_v27 = vld [vmem:[%s15217_s1 + $0x1ac8] ss:$16 sps:$4 sm:$0xff]  }
 0x6b3   :  { %6696 = vmatprep.subr.bf16.mxu0 %v11510_v7  ;;  %6778 = vmatprep.subr.bf16.mxu1 %v11513_v0  ;;  %v11564_v7 = vld [vmem:[%s15217_s1 + $0x1ae4] ss:$16 sps:$4 sm:$0xff]   ;;  %v11567_v0 = vld [vmem:[%s15217_s1 + $0x1aec] ss:$16 sps:$4 sm:$0xff]  }
 0x6b6   :  { %6697 = vmatpush1.bf16.msra.mxu0 %v11508_v32  ;;  %6779 = vmatpush1.bf16.msra.mxu1 %v11511_v33  ;;  %v11562_v32 = vld [vmem:[%s15217_s1 + $0x1ae0] ss:$16 sps:$4 sm:$0xff]   ;;  %v11565_v33 = vld [vmem:[%s15217_s1 + $0x1ae8] ss:$16 sps:$4 sm:$0xff]  }
 0x6b7   :  { %6698 = vmatprep.subr.bf16.mxu0 %v11516_v34  ;;  %6780 = vmatprep.subr.bf16.mxu1 %v11519_v12  ;;  %v11570_v34 = vld [vmem:[%s15217_s1 + $0x1b04] ss:$16 sps:$4 sm:$0xff]   ;;  %v11573_v12 = vld [vmem:[%s15217_s1 + $0x1b0c] ss:$16 sps:$4 sm:$0xff]  }
 0x6ba   :  { %6699 = vmatpush1.bf16.msra.mxu0 %v11514_v35  ;;  %6781 = vmatpush1.bf16.msra.mxu1 %v11517_v37  ;;  %v11568_v35 = vld [vmem:[%s15217_s1 + $0x1b00] ss:$16 sps:$4 sm:$0xff]   ;;  %v11571_v37 = vld [vmem:[%s15217_s1 + $0x1b08] ss:$16 sps:$4 sm:$0xff]  }
 0x6bb   :  { %6709 = vmatprep.subr.bf16.mxu0 %v11522_v38  ;;  %6791 = vmatprep.subr.bf16.mxu1 %v11525_v39  ;;  %v11576_v38 = vld [vmem:[%s15217_s1 + $0x1b24] ss:$16 sps:$4 sm:$0xff]   ;;  %v11579_v39 = vld [vmem:[%s15217_s1 + $0x1b2c] ss:$16 sps:$4 sm:$0xff]  }
 0x750   :  { %v5771_v44 = vpop.f32.mrb[20].mxu0  ;;  %v14516_v46 = vpop.f32.mrb[20].mxu1 }
 0x751   :  { %v10196_v24 = vadd.f32 %v5771_v44, %v5039_v41  ;;  %v5773_v47 = vpop.f32.mrb[21].mxu0  ;;  %v5855_v3 = vpop.f32.mrb[21].mxu1  ;;  %v11574_v41 = vld [vmem:[%s15217_s1 + $0x1b20] ss:$16 sps:$4 sm:$0xff]   ;;  %v11585_v44 = vld [vmem:[%s15217_s1 + $0x1b4c] ss:$16 sps:$4 sm:$0xff]  }
 0x752   :  { %v10197_v49 = vadd.f32 %v5773_v47, %v5043_v42  ;;  %v10199_v50 = vadd.f32 %v5855_v3, %v5051_v43  ;;  %v5775_v28 = vpop.f32.mrb[22].mxu0  ;;  %v5857_v51 = vpop.f32.mrb[22].mxu1  ;;  %v11577_v42 = vld [vmem:[%s15217_s1 + $0x1b28] ss:$16 sps:$4 sm:$0xff]   ;;  %v11582_v43 = vld [vmem:[%s15217_s1 + $0x1b44] ss:$16 sps:$4 sm:$0xff]  }
 0x753   :  { %vm5860_vm4 = vcmp.ge.f32.partialorder %v10196_v24, 0.0  ;;  %v5864_v29 = vmul.f32 0.2, %v10196_v24  ;;  %v5776_v56 = vpop.f32.mrb[23].mxu0  ;;  %v5858_v36 = vpop.f32.mrb[23].mxu1 }
 0x754   :  { %vm5861_vm5 = vcmp.ge.f32.partialorder %v10197_v49, 0.0  ;;  %v5865_v53 = vmul.f32 0.2, %v10197_v49  ;;  %vm5863_vm6 = vcmp.ge.f32.partialorder %v10199_v50, 0.0  ;;  %v5867_v54 = vmul.f32 0.2, %v10199_v50 }
 0x755   :  { %v5868_v55 = vsel %vm5860_vm4, %v10196_v24, %v5864_v29  ;;  %v11580_v24 = vld [vmem:[%s15217_s1 + $0x1b40] ss:$16 sps:$4 sm:$0xff]   ;;  %v11583_v47 = vld [vmem:[%s15217_s1 + $0x1b48] ss:$16 sps:$4 sm:$0xff]   ;;  %v11588_v3 = vld [vmem:[%s15217_s1 + $0x1b64] ss:$16 sps:$4 sm:$0xff]   ;;  %v5047_v36 = vrot.slane %v14508_v40, %v12660_v45 }
 0x756   :  { %v5869_v57 = vsel %vm5861_vm5, %v10197_v49, %v5865_v53  ;;  %v5871_v62 = vsel %vm5863_vm6, %v10199_v50, %v5867_v54  ;;  %v6003_v63 = vpack.c.bf16 %v5868_v55, %v5868_v55  ;;  %v11591_v49 = vld [vmem:[%s15217_s1 + $0x1b6c] ss:$16 sps:$4 sm:$0xff]   ;;  %v11586_v50 = vld [vmem:[%s15217_s1 + $0x1b60] ss:$16 sps:$4 sm:$0xff]   ;;  %v11589_v28 = vld [vmem:[%s15217_s1 + $0x1b68] ss:$16 sps:$4 sm:$0xff]  }
 0x757   :  { %v6004_v58 = vpack.c.bf16 %v5869_v57, %v5869_v57  ;;  %v6006_v48 = vpack.c.bf16 %v5871_v62, %v5871_v62  ;;  %v11594_v51 = vld [vmem:[%s15217_s1 + $0x1b84] ss:$16 sps:$4 sm:$0xff]   ;;  %v11597_v29 = vld [vmem:[%s15217_s1 + $0x1b8c] ss:$16 sps:$4 sm:$0xff]   ;;  %v11592_v53 = vld [vmem:[%s15217_s1 + $0x1b80] ss:$16 sps:$4 sm:$0xff]  }
 0x758   :  { %v11595_v54 = vld [vmem:[%s15217_s1 + $0x1b88] ss:$16 sps:$4 sm:$0xff]   ;;  %v11600_v55 = vld [vmem:[%s15217_s1 + $0x1ba4] ss:$16 sps:$4 sm:$0xff]   ;;  %v11603_v56 = vld [vmem:[%s15217_s1 + $0x1bac] ss:$16 sps:$4 sm:$0xff]  }
 0x759   :  { %6700 = vmatprep.mubr.bf16.mxu0 %v6004_v58  ;;  %6782 = vmatprep.mubr.bf16.mxu1 %v6004_v58  ;;  %v11598_v57 = vld [vmem:[%s15217_s1 + $0x1ba0] ss:$16 sps:$4 sm:$0xff]   ;;  %v11601_v58 = vld [vmem:[%s15217_s1 + $0x1ba8] ss:$16 sps:$4 sm:$0xff]   ;;  %v11609_v40 = vld [vmem:[%s15217_s1 + $0x1bcc] ss:$16 sps:$4 sm:$0xff]  }
 0x75a   :  { %6701 = vmatmul.mubr.bf16.vlgmr.msra.gmra.mrb[24].mxu0 %v6003_v63  ;;  %6783 = vmatmul.mubr.bf16.vlgmr.msra.gmra.mrb[24].mxu1 %v6003_v63  ;;  %v11604_v62 = vld [vmem:[%s15217_s1 + $0x1bc0] ss:$16 sps:$4 sm:$0xff]   ;;  %v11607_v63 = vld [vmem:[%s15217_s1 + $0x1bc8] ss:$16 sps:$4 sm:$0xff]  }
 0x75b   :  { %6710 = vmatpush1.bf16.msra.mxu0 %v11520_v59  ;;  %6792 = vmatpush1.bf16.msra.mxu1 %v11523_v60  ;;  %v11606_v59 = vld [vmem:[%s15217_s1 + $0x1bc4] ss:$16 sps:$4 sm:$0xff]   ;;  %v10198_v60 = vadd.f32 %v14516_v46, %v5047_v36  ;;  %v11615_v46 = vld [vmem:[%s15217_s1 + $0x1bec] ss:$16 sps:$4 sm:$0xff]  }
 0x75c   :  { %6741 = vmatprep.mubr.bf16.mxu0 %v6006_v48  ;;  %6823 = vmatprep.mubr.bf16.mxu1 %v6006_v48  ;;  %v11610_v48 = vld [vmem:[%s15217_s1 + $0x1be0] ss:$16 sps:$4 sm:$0xff]   ;;  %v11687_v36 = vld [vmem:[%s15217_s1 + $0x1d6c] ss:$16 sps:$4 sm:$0xff]  }
 0x75d   :  { %6711 = vmatprep.subr.bf16.mxu0 %v11528_v2  ;;  %6793 = vmatprep.subr.bf16.mxu1 %v11531_v4  ;;  %v11612_v2 = vld [vmem:[%s15217_s1 + $0x1be4] ss:$16 sps:$4 sm:$0xff]   ;;  %v5866_v4 = vmul.f32 0.2, %v10198_v60  ;;  %vm5862_vm7 = vcmp.ge.f32.partialorder %v10198_v60, 0.0 }
 0x75f   :  { %6712 = vmatpush1.bf16.msra.mxu0 %v11526_v6  ;;  %6794 = vmatpush1.bf16.msra.mxu1 %v11529_v8  ;;  %v11613_v6 = vld [vmem:[%s15217_s1 + $0x1be8] ss:$16 sps:$4 sm:$0xff]   ;;  %v11618_v8 = vld [vmem:[%s15217_s1 + $0x1c04] ss:$16 sps:$4 sm:$0xff]  }
 0x760   :  { %6713 = vmatprep.subr.bf16.mxu0 %v11534_v9  ;;  %6795 = vmatprep.subr.bf16.mxu1 %v11537_v10  ;;  %v11621_v9 = vld [vmem:[%s15217_s1 + $0x1c0c] ss:$16 sps:$4 sm:$0xff]   ;;  %v5870_v10 = vsel %vm5862_vm7, %v10198_v60, %v5866_v4  ;;  %v11688_v60 = vld [vmem:[%s15217_s1 + $0x1d80] ss:$16 sps:$4 sm:$0xff]   ;;  %v11697_v4 = vld [vmem:[%s15217_s1 + $0x1da8] ss:$16 sps:$4 sm:$0xff]  }
 0x763   :  { %6714 = vmatpush1.bf16.msra.mxu0 %v11532_v52  ;;  %6796 = vmatpush1.bf16.msra.mxu1 %v11535_v11  ;;  %v11616_v52 = vld [vmem:[%s15217_s1 + $0x1c00] ss:$16 sps:$4 sm:$0xff]   ;;  %v11619_v11 = vld [vmem:[%s15217_s1 + $0x1c08] ss:$16 sps:$4 sm:$0xff]  }
 0x764   :  { %6715 = vmatprep.subr.bf16.mxu0 %v11540_v13  ;;  %6797 = vmatprep.subr.bf16.mxu1 %v11543_v14  ;;  %v6005_v13 = vpack.c.bf16 %v5870_v10, %v5870_v10  ;;  %v11624_v14 = vld [vmem:[%s15217_s1 + $0x1c24] ss:$16 sps:$4 sm:$0xff]  }
 0x765   :  { %v11708_v10 = vld [vmem:[%s15217_s1 + $0x1de4] ss:$16 sps:$4 sm:$0xff]  }
 0x767   :  { %6716 = vmatpush1.bf16.msra.mxu0 %v11538_v15  ;;  %6798 = vmatpush1.bf16.msra.mxu1 %v11541_v16  ;;  %v11627_v15 = vld [vmem:[%s15217_s1 + $0x1c2c] ss:$16 sps:$4 sm:$0xff]   ;;  %v11622_v16 = vld [vmem:[%s15217_s1 + $0x1c20] ss:$16 sps:$4 sm:$0xff]  }
 0x768   :  { %6717 = vmatprep.subr.bf16.mxu0 %v11546_v17  ;;  %6799 = vmatprep.subr.bf16.mxu1 %v11549_v18  ;;  %v11625_v17 = vld [vmem:[%s15217_s1 + $0x1c28] ss:$16 sps:$4 sm:$0xff]   ;;  %v11630_v18 = vld [vmem:[%s15217_s1 + $0x1c44] ss:$16 sps:$4 sm:$0xff]  }
 0x76b   :  { %6718 = vmatpush1.bf16.msra.mxu0 %v11544_v20  ;;  %6800 = vmatpush1.bf16.msra.mxu1 %v11547_v21  ;;  %v11633_v20 = vld [vmem:[%s15217_s1 + $0x1c4c] ss:$16 sps:$4 sm:$0xff]   ;;  %v11628_v21 = vld [vmem:[%s15217_s1 + $0x1c40] ss:$16 sps:$4 sm:$0xff]  }
 0x76c   :  { %6719 = vmatprep.subr.bf16.mxu0 %v11552_v22  ;;  %6801 = vmatprep.subr.bf16.mxu1 %v11555_v61  ;;  %v11631_v22 = vld [vmem:[%s15217_s1 + $0x1c48] ss:$16 sps:$4 sm:$0xff]   ;;  %v11636_v61 = vld [vmem:[%s15217_s1 + $0x1c64] ss:$16 sps:$4 sm:$0xff]  }
 0x76f   :  { %6720 = vmatpush1.bf16.msra.mxu0 %v11550_v23  ;;  %6802 = vmatpush1.bf16.msra.mxu1 %v11553_v25  ;;  %v11639_v23 = vld [vmem:[%s15217_s1 + $0x1c6c] ss:$16 sps:$4 sm:$0xff]   ;;  %v11634_v25 = vld [vmem:[%s15217_s1 + $0x1c60] ss:$16 sps:$4 sm:$0xff]  }
 0x770   :  { %6721 = vmatprep.subr.bf16.mxu0 %v11558_v26  ;;  %6803 = vmatprep.subr.bf16.mxu1 %v11561_v1  ;;  %v11637_v26 = vld [vmem:[%s15217_s1 + $0x1c68] ss:$16 sps:$4 sm:$0xff]   ;;  %v11642_v1 = vld [vmem:[%s15217_s1 + $0x1c84] ss:$16 sps:$4 sm:$0xff]  }
 0x773   :  { %6722 = vmatpush1.bf16.msra.mxu0 %v11556_v5  ;;  %6804 = vmatpush1.bf16.msra.mxu1 %v11559_v27  ;;  %v11645_v5 = vld [vmem:[%s15217_s1 + $0x1c8c] ss:$16 sps:$4 sm:$0xff]   ;;  %v11640_v27 = vld [vmem:[%s15217_s1 + $0x1c80] ss:$16 sps:$4 sm:$0xff]  }
 0x774   :  { %6723 = vmatprep.subr.bf16.mxu0 %v11564_v7  ;;  %6805 = vmatprep.subr.bf16.mxu1 %v11567_v0  ;;  %v11643_v7 = vld [vmem:[%s15217_s1 + $0x1c88] ss:$16 sps:$4 sm:$0xff]   ;;  %v11648_v0 = vld [vmem:[%s15217_s1 + $0x1ca4] ss:$16 sps:$4 sm:$0xff]  }
 0x777   :  { %6724 = vmatpush1.bf16.msra.mxu0 %v11562_v32  ;;  %6806 = vmatpush1.bf16.msra.mxu1 %v11565_v33  ;;  %v11651_v32 = vld [vmem:[%s15217_s1 + $0x1cac] ss:$16 sps:$4 sm:$0xff]   ;;  %v11646_v33 = vld [vmem:[%s15217_s1 + $0x1ca0] ss:$16 sps:$4 sm:$0xff]  }
 0x778   :  { %6725 = vmatprep.subr.bf16.mxu0 %v11570_v34  ;;  %6807 = vmatprep.subr.bf16.mxu1 %v11573_v12  ;;  %v11649_v34 = vld [vmem:[%s15217_s1 + $0x1ca8] ss:$16 sps:$4 sm:$0xff]   ;;  %v11654_v12 = vld [vmem:[%s15217_s1 + $0x1cc4] ss:$16 sps:$4 sm:$0xff]  }
 0x77b   :  { %6726 = vmatpush1.bf16.msra.mxu0 %v11568_v35  ;;  %6808 = vmatpush1.bf16.msra.mxu1 %v11571_v37  ;;  %v11657_v35 = vld [vmem:[%s15217_s1 + $0x1ccc] ss:$16 sps:$4 sm:$0xff]   ;;  %v11652_v37 = vld [vmem:[%s15217_s1 + $0x1cc0] ss:$16 sps:$4 sm:$0xff]  }
 0x77c   :  { %6727 = vmatprep.subr.bf16.mxu0 %v11576_v38  ;;  %6809 = vmatprep.subr.bf16.mxu1 %v11579_v39  ;;  %v11655_v38 = vld [vmem:[%s15217_s1 + $0x1cc8] ss:$16 sps:$4 sm:$0xff]   ;;  %v11660_v39 = vld [vmem:[%s15217_s1 + $0x1ce4] ss:$16 sps:$4 sm:$0xff]  }
 0x77f   :  { %6728 = vmatpush1.bf16.msra.mxu0 %v11574_v41  ;;  %6810 = vmatpush1.bf16.msra.mxu1 %v11577_v42  ;;  %v11663_v41 = vld [vmem:[%s15217_s1 + $0x1cec] ss:$16 sps:$4 sm:$0xff]   ;;  %v11658_v42 = vld [vmem:[%s15217_s1 + $0x1ce0] ss:$16 sps:$4 sm:$0xff]  }
 0x780   :  { %6729 = vmatprep.subr.bf16.mxu0 %v11582_v43  ;;  %6811 = vmatprep.subr.bf16.mxu1 %v11585_v44  ;;  %v11661_v43 = vld [vmem:[%s15217_s1 + $0x1ce8] ss:$16 sps:$4 sm:$0xff]   ;;  %v11666_v44 = vld [vmem:[%s15217_s1 + $0x1d04] ss:$16 sps:$4 sm:$0xff]  }
 0x783   :  { %6730 = vmatpush1.bf16.msra.mxu0 %v11580_v24  ;;  %6812 = vmatpush1.bf16.msra.mxu1 %v11583_v47  ;;  %v11669_v24 = vld [vmem:[%s15217_s1 + $0x1d0c] ss:$16 sps:$4 sm:$0xff]   ;;  %v11664_v47 = vld [vmem:[%s15217_s1 + $0x1d00] ss:$16 sps:$4 sm:$0xff]  }
 0x784   :  { %6731 = vmatprep.subr.bf16.mxu0 %v11588_v3  ;;  %6813 = vmatprep.subr.bf16.mxu1 %v11591_v49  ;;  %v11667_v3 = vld [vmem:[%s15217_s1 + $0x1d08] ss:$16 sps:$4 sm:$0xff]   ;;  %v11672_v49 = vld [vmem:[%s15217_s1 + $0x1d24] ss:$16 sps:$4 sm:$0xff]  }
 0x787   :  { %6732 = vmatpush1.bf16.msra.mxu0 %v11586_v50  ;;  %6814 = vmatpush1.bf16.msra.mxu1 %v11589_v28  ;;  %v11675_v50 = vld [vmem:[%s15217_s1 + $0x1d2c] ss:$16 sps:$4 sm:$0xff]   ;;  %v11670_v28 = vld [vmem:[%s15217_s1 + $0x1d20] ss:$16 sps:$4 sm:$0xff]  }
 0x788   :  { %6733 = vmatprep.subr.bf16.mxu0 %v11594_v51  ;;  %6815 = vmatprep.subr.bf16.mxu1 %v11597_v29  ;;  %v11673_v51 = vld [vmem:[%s15217_s1 + $0x1d28] ss:$16 sps:$4 sm:$0xff]   ;;  %v11678_v29 = vld [vmem:[%s15217_s1 + $0x1d44] ss:$16 sps:$4 sm:$0xff]  }
 0x78b   :  { %6734 = vmatpush1.bf16.msra.mxu0 %v11592_v53  ;;  %6816 = vmatpush1.bf16.msra.mxu1 %v11595_v54  ;;  %v11681_v53 = vld [vmem:[%s15217_s1 + $0x1d4c] ss:$16 sps:$4 sm:$0xff]   ;;  %v11676_v54 = vld [vmem:[%s15217_s1 + $0x1d40] ss:$16 sps:$4 sm:$0xff]  }
 0x78c   :  { %6735 = vmatprep.subr.bf16.mxu0 %v11600_v55  ;;  %6817 = vmatprep.subr.bf16.mxu1 %v11603_v56  ;;  %v11679_v55 = vld [vmem:[%s15217_s1 + $0x1d48] ss:$16 sps:$4 sm:$0xff]   ;;  %v11684_v56 = vld [vmem:[%s15217_s1 + $0x1d64] ss:$16 sps:$4 sm:$0xff]  }
 0x78f   :  { %6736 = vmatpush1.bf16.msra.mxu0 %v11598_v57  ;;  %6818 = vmatpush1.bf16.msra.mxu1 %v11601_v58  ;;  %v11682_v57 = vld [vmem:[%s15217_s1 + $0x1d60] ss:$16 sps:$4 sm:$0xff]   ;;  %v11685_v58 = vld [vmem:[%s15217_s1 + $0x1d68] ss:$16 sps:$4 sm:$0xff]  }
 0x790   :  { %6737 = vmatprep.subr.bf16.mxu0 %v11606_v59  ;;  %6819 = vmatprep.subr.bf16.mxu1 %v11609_v40  ;;  %v11690_v59 = vld [vmem:[%s15217_s1 + $0x1d84] ss:$16 sps:$4 sm:$0xff]   ;;  %v11693_v40 = vld [vmem:[%s15217_s1 + $0x1d8c] ss:$16 sps:$4 sm:$0xff]  }
 0x793   :  { %6738 = vmatpush1.bf16.msra.mxu0 %v11604_v62  ;;  %6820 = vmatpush1.bf16.msra.mxu1 %v11607_v63  ;;  %v11691_v62 = vld [vmem:[%s15217_s1 + $0x1d88] ss:$16 sps:$4 sm:$0xff]   ;;  %v11696_v63 = vld [vmem:[%s15217_s1 + $0x1da4] ss:$16 sps:$4 sm:$0xff]  }
 0x794   :  { %6739 = vmatprep.subr.bf16.mxu0 %v11612_v2  ;;  %6821 = vmatprep.subr.bf16.mxu1 %v11615_v46  ;;  %v11699_v2 = vld [vmem:[%s15217_s1 + $0x1dac] ss:$16 sps:$4 sm:$0xff]   ;;  %v11694_v46 = vld [vmem:[%s15217_s1 + $0x1da0] ss:$16 sps:$4 sm:$0xff]  }
 0x797   :  { %6740 = vmatpush1.bf16.msra.mxu0 %v11610_v48  ;;  %6822 = vmatpush1.bf16.msra.mxu1 %v11613_v6  ;;  %v11702_v48 = vld [vmem:[%s15217_s1 + $0x1dc4] ss:$16 sps:$4 sm:$0xff]   ;;  %v11705_v6 = vld [vmem:[%s15217_s1 + $0x1dcc] ss:$16 sps:$4 sm:$0xff]  }
 0x798   :  { %7640 = vmatprep.subr.bf16.mxu0 %v11618_v8  ;;  %7722 = vmatprep.subr.bf16.mxu1 %v11621_v9  ;;  %v11700_v8 = vld [vmem:[%s15217_s1 + $0x1dc0] ss:$16 sps:$4 sm:$0xff]   ;;  %v11703_v9 = vld [vmem:[%s15217_s1 + $0x1dc8] ss:$16 sps:$4 sm:$0xff]  }
 0x79a   :  { %6742 = vmatmul.mubr.bf16.vlgmr.msra.gmra.mrb[24].mxu0 %v6005_v13  ;;  %6824 = vmatmul.mubr.bf16.vlgmr.msra.gmra.mrb[24].mxu1 %v6005_v13  ;;  %v11709_v13 = vld [vmem:[%s15217_s1 + $0x1de8] ss:$16 sps:$4 sm:$0xff]  }
 0x79b   :  { %7641 = vmatpush1.bf16.msra.mxu0 %v11616_v52  ;;  %7723 = vmatpush1.bf16.msra.mxu1 %v11619_v11  ;;  %v11711_v52 = vld [vmem:[%s15217_s1 + $0x1dec] ss:$16 sps:$4 sm:$0xff]   ;;  %v11706_v11 = vld [vmem:[%s15217_s1 + $0x1de0] ss:$16 sps:$4 sm:$0xff]  }
 0x79c   :  { %7642 = vmatprep.subr.bf16.mxu0 %v11624_v14  ;;  %7724 = vmatprep.subr.bf16.mxu1 %v11627_v15  ;;  %v11714_v14 = vld [vmem:[%s15217_s1 + $0x1e04] ss:$16 sps:$4 sm:$0xff]   ;;  %v11717_v15 = vld [vmem:[%s15217_s1 + $0x1e0c] ss:$16 sps:$4 sm:$0xff]  }
 0x79f   :  { %7643 = vmatpush1.bf16.msra.mxu0 %v11622_v16  ;;  %7725 = vmatpush1.bf16.msra.mxu1 %v11625_v17  ;;  %v14908_v16 = vld [vmem:[%s15218_s2 + $0x18] sm:$0xf] }
 0x7a0   :  { %7644 = vmatprep.subr.bf16.mxu0 %v11630_v18  ;;  %7726 = vmatprep.subr.bf16.mxu1 %v11633_v20  ;;  %v6011_v17 = vrot.slane %v14908_v16, %v12499_v30  ;;  %v6015_v18 = vrot.slane %v14908_v16, %v12502_v19  ;;  %v6023_v20 = vrot.slane %v14908_v16, %v12505_v31 }
 0x7a3   :  { %7645 = vmatpush1.bf16.msra.mxu0 %v11628_v21  ;;  %7727 = vmatpush1.bf16.msra.mxu1 %v11631_v22 }
 0x7a4   :  { %7646 = vmatprep.subr.bf16.mxu0 %v11636_v61  ;;  %7728 = vmatprep.subr.bf16.mxu1 %v11639_v23 }
 0x7a7   :  { %7647 = vmatpush1.bf16.msra.mxu0 %v11634_v25  ;;  %7729 = vmatpush1.bf16.msra.mxu1 %v11637_v26 }
 0x7a8   :  { %7648 = vmatprep.subr.bf16.mxu0 %v11642_v1  ;;  %7730 = vmatprep.subr.bf16.mxu1 %v11645_v5 }
 0x7ab   :  { %7649 = vmatpush1.bf16.msra.mxu0 %v11640_v27  ;;  %7731 = vmatpush1.bf16.msra.mxu1 %v11643_v7 }
 0x7ac   :  { %7650 = vmatprep.subr.bf16.mxu0 %v11648_v0  ;;  %7732 = vmatprep.subr.bf16.mxu1 %v11651_v32 }
 0x7af   :  { %7651 = vmatpush1.bf16.msra.mxu0 %v11646_v33  ;;  %7733 = vmatpush1.bf16.msra.mxu1 %v11649_v34 }
 0x7b0   :  { %7652 = vmatprep.subr.bf16.mxu0 %v11654_v12  ;;  %7734 = vmatprep.subr.bf16.mxu1 %v11657_v35 }
 0x7b3   :  { %7653 = vmatpush1.bf16.msra.mxu0 %v11652_v37  ;;  %7735 = vmatpush1.bf16.msra.mxu1 %v11655_v38  ;;  %v11712_v38 = vld [vmem:[%s15217_s1 + $0x1e00] ss:$16 sps:$4 sm:$0xff]  }
 0x7b4   :  { %7654 = vmatprep.subr.bf16.mxu0 %v11660_v39  ;;  %7736 = vmatprep.subr.bf16.mxu1 %v11663_v41  ;;  %v11715_v39 = vld [vmem:[%s15217_s1 + $0x1e08] ss:$16 sps:$4 sm:$0xff]  }
 0x7b7   :  { %7655 = vmatpush1.bf16.msra.mxu0 %v11658_v42  ;;  %7737 = vmatpush1.bf16.msra.mxu1 %v11661_v43  ;;  %v11720_v43 = vld [vmem:[%s15217_s1 + $0x1e24] ss:$16 sps:$4 sm:$0xff]  }
 0x7b8   :  { %7656 = vmatprep.subr.bf16.mxu0 %v11666_v44  ;;  %7738 = vmatprep.subr.bf16.mxu1 %v11669_v24  ;;  %v11723_v44 = vld [vmem:[%s15217_s1 + $0x1e2c] ss:$16 sps:$4 sm:$0xff]  }
 0x7bb   :  { %7657 = vmatpush1.bf16.msra.mxu0 %v11664_v47  ;;  %7739 = vmatpush1.bf16.msra.mxu1 %v11667_v3  ;;  %v11718_v47 = vld [vmem:[%s15217_s1 + $0x1e20] ss:$16 sps:$4 sm:$0xff]   ;;  %v11721_v3 = vld [vmem:[%s15217_s1 + $0x1e28] ss:$16 sps:$4 sm:$0xff]  }
 0x7bc   :  { %7658 = vmatprep.subr.bf16.mxu0 %v11672_v49  ;;  %7740 = vmatprep.subr.bf16.mxu1 %v11675_v50  ;;  %v11726_v49 = vld [vmem:[%s15217_s1 + $0x1e44] ss:$16 sps:$4 sm:$0xff]   ;;  %v11729_v50 = vld [vmem:[%s15217_s1 + $0x1e4c] ss:$16 sps:$4 sm:$0xff]  }
 0x7bf   :  { %7659 = vmatpush1.bf16.msra.mxu0 %v11670_v28  ;;  %7741 = vmatpush1.bf16.msra.mxu1 %v11673_v51  ;;  %v11724_v28 = vld [vmem:[%s15217_s1 + $0x1e40] ss:$16 sps:$4 sm:$0xff]   ;;  %v11727_v51 = vld [vmem:[%s15217_s1 + $0x1e48] ss:$16 sps:$4 sm:$0xff]  }
 0x7c0   :  { %7660 = vmatprep.subr.bf16.mxu0 %v11678_v29  ;;  %7742 = vmatprep.subr.bf16.mxu1 %v11681_v53  ;;  %v11732_v29 = vld [vmem:[%s15217_s1 + $0x1e64] ss:$16 sps:$4 sm:$0xff]   ;;  %v11735_v53 = vld [vmem:[%s15217_s1 + $0x1e6c] ss:$16 sps:$4 sm:$0xff]  }
 0x7c3   :  { %7661 = vmatpush1.bf16.msra.mxu0 %v11676_v54  ;;  %7743 = vmatpush1.bf16.msra.mxu1 %v11679_v55  ;;  %v11730_v54 = vld [vmem:[%s15217_s1 + $0x1e60] ss:$16 sps:$4 sm:$0xff]   ;;  %v11733_v55 = vld [vmem:[%s15217_s1 + $0x1e68] ss:$16 sps:$4 sm:$0xff]  }
 0x7c4   :  { %7662 = vmatprep.subr.bf16.mxu0 %v11684_v56  ;;  %7744 = vmatprep.subr.bf16.mxu1 %v11687_v36  ;;  %v11738_v56 = vld [vmem:[%s15217_s1 + $0x1e84] ss:$16 sps:$4 sm:$0xff]   ;;  %v11741_v36 = vld [vmem:[%s15217_s1 + $0x1e8c] ss:$16 sps:$4 sm:$0xff]  }
 0x7c7   :  { %7663 = vmatpush1.bf16.msra.mxu0 %v11682_v57  ;;  %7745 = vmatpush1.bf16.msra.mxu1 %v11685_v58  ;;  %v11736_v57 = vld [vmem:[%s15217_s1 + $0x1e80] ss:$16 sps:$4 sm:$0xff]   ;;  %v11739_v58 = vld [vmem:[%s15217_s1 + $0x1e88] ss:$16 sps:$4 sm:$0xff]  }
 0x7c8   :  { %7664 = vmatprep.subr.bf16.mxu0 %v11690_v59  ;;  %7746 = vmatprep.subr.bf16.mxu1 %v11693_v40  ;;  %v11744_v59 = vld [vmem:[%s15217_s1 + $0x1ea4] ss:$16 sps:$4 sm:$0xff]   ;;  %v11747_v40 = vld [vmem:[%s15217_s1 + $0x1eac] ss:$16 sps:$4 sm:$0xff]  }
 0x7cb   :  { %7665 = vmatpush1.bf16.msra.mxu0 %v11688_v60  ;;  %7747 = vmatpush1.bf16.msra.mxu1 %v11691_v62  ;;  %v11742_v60 = vld [vmem:[%s15217_s1 + $0x1ea0] ss:$16 sps:$4 sm:$0xff]   ;;  %v11745_v62 = vld [vmem:[%s15217_s1 + $0x1ea8] ss:$16 sps:$4 sm:$0xff]  }
 0x7cc   :  { %7666 = vmatprep.subr.bf16.mxu0 %v11696_v63  ;;  %7748 = vmatprep.subr.bf16.mxu1 %v11699_v2  ;;  %v11750_v63 = vld [vmem:[%s15217_s1 + $0x1ec4] ss:$16 sps:$4 sm:$0xff]   ;;  %v11753_v2 = vld [vmem:[%s15217_s1 + $0x1ecc] ss:$16 sps:$4 sm:$0xff]  }
 0x7cf   :  { %7667 = vmatpush1.bf16.msra.mxu0 %v11694_v46  ;;  %7749 = vmatpush1.bf16.msra.mxu1 %v11697_v4  ;;  %v11748_v46 = vld [vmem:[%s15217_s1 + $0x1ec0] ss:$16 sps:$4 sm:$0xff]   ;;  %v11751_v4 = vld [vmem:[%s15217_s1 + $0x1ec8] ss:$16 sps:$4 sm:$0xff]  }
 0x7d0   :  { %7668 = vmatprep.subr.bf16.mxu0 %v11702_v48  ;;  %7750 = vmatprep.subr.bf16.mxu1 %v11705_v6  ;;  %v11756_v48 = vld [vmem:[%s15217_s1 + $0x1ee4] ss:$16 sps:$4 sm:$0xff]   ;;  %v11759_v6 = vld [vmem:[%s15217_s1 + $0x1eec] ss:$16 sps:$4 sm:$0xff]  }
 0x7d3   :  { %7669 = vmatpush1.bf16.msra.mxu0 %v11700_v8  ;;  %7751 = vmatpush1.bf16.msra.mxu1 %v11703_v9  ;;  %v11754_v8 = vld [vmem:[%s15217_s1 + $0x1ee0] ss:$16 sps:$4 sm:$0xff]   ;;  %v11757_v9 = vld [vmem:[%s15217_s1 + $0x1ee8] ss:$16 sps:$4 sm:$0xff]  }
 0x7d4   :  { %7670 = vmatprep.subr.bf16.mxu0 %v11708_v10  ;;  %7752 = vmatprep.subr.bf16.mxu1 %v11711_v52  ;;  %v11762_v10 = vld [vmem:[%s15217_s1 + $0x1f04] ss:$16 sps:$4 sm:$0xff]   ;;  %v11765_v52 = vld [vmem:[%s15217_s1 + $0x1f0c] ss:$16 sps:$4 sm:$0xff]  }
 0x7d7   :  { %7671 = vmatpush1.bf16.msra.mxu0 %v11706_v11  ;;  %7753 = vmatpush1.bf16.msra.mxu1 %v11709_v13  ;;  %v11760_v11 = vld [vmem:[%s15217_s1 + $0x1f00] ss:$16 sps:$4 sm:$0xff]   ;;  %v11763_v13 = vld [vmem:[%s15217_s1 + $0x1f08] ss:$16 sps:$4 sm:$0xff]  }
 0x7d8   :  { %7681 = vmatprep.subr.bf16.mxu0 %v11714_v14  ;;  %7763 = vmatprep.subr.bf16.mxu1 %v11717_v15  ;;  %v11768_v14 = vld [vmem:[%s15217_s1 + $0x1f24] ss:$16 sps:$4 sm:$0xff]   ;;  %v11771_v15 = vld [vmem:[%s15217_s1 + $0x1f2c] ss:$16 sps:$4 sm:$0xff]  }
 0x86d   :  { %v6743_v21 = vpop.f32.mrb[24].mxu0  ;;  %v14916_v22 = vpop.f32.mrb[24].mxu1 }
 0x86e   :  { %v10200_v61 = vadd.f32 %v6743_v21, %v6011_v17  ;;  %v6745_v23 = vpop.f32.mrb[25].mxu0  ;;  %v6827_v25 = vpop.f32.mrb[25].mxu1  ;;  %v11766_v17 = vld [vmem:[%s15217_s1 + $0x1f20] ss:$16 sps:$4 sm:$0xff]   ;;  %v11777_v21 = vld [vmem:[%s15217_s1 + $0x1f4c] ss:$16 sps:$4 sm:$0xff]  }
 0x86f   :  { %v10201_v26 = vadd.f32 %v6745_v23, %v6015_v18  ;;  %v10203_v1 = vadd.f32 %v6827_v25, %v6023_v20  ;;  %v6747_v5 = vpop.f32.mrb[26].mxu0  ;;  %v6829_v27 = vpop.f32.mrb[26].mxu1  ;;  %v11769_v18 = vld [vmem:[%s15217_s1 + $0x1f28] ss:$16 sps:$4 sm:$0xff]   ;;  %v11774_v20 = vld [vmem:[%s15217_s1 + $0x1f44] ss:$16 sps:$4 sm:$0xff]  }
 0x870   :  { %vm6832_vm8 = vcmp.ge.f32.partialorder %v10200_v61, 0.0  ;;  %v6836_v7 = vmul.f32 0.2, %v10200_v61  ;;  %v6748_v34 = vpop.f32.mrb[27].mxu0  ;;  %v6830_v12 = vpop.f32.mrb[27].mxu1 }
 0x871   :  { %vm6833_vm9 = vcmp.ge.f32.partialorder %v10201_v26, 0.0  ;;  %v6837_v0 = vmul.f32 0.2, %v10201_v26  ;;  %vm6835_vm10 = vcmp.ge.f32.partialorder %v10203_v1, 0.0  ;;  %v6839_v32 = vmul.f32 0.2, %v10203_v1 }
 0x872   :  { %v6840_v33 = vsel %vm6832_vm8, %v10200_v61, %v6836_v7  ;;  %v11772_v61 = vld [vmem:[%s15217_s1 + $0x1f40] ss:$16 sps:$4 sm:$0xff]   ;;  %v11775_v23 = vld [vmem:[%s15217_s1 + $0x1f48] ss:$16 sps:$4 sm:$0xff]   ;;  %v11780_v25 = vld [vmem:[%s15217_s1 + $0x1f64] ss:$16 sps:$4 sm:$0xff]   ;;  %v6019_v12 = vrot.slane %v14908_v16, %v12660_v45 }
 0x873   :  { %v6841_v35 = vsel %vm6833_vm9, %v10201_v26, %v6837_v0  ;;  %v6843_v41 = vsel %vm6835_vm10, %v10203_v1, %v6839_v32  ;;  %v6975_v42 = vpack.c.bf16 %v6840_v33, %v6840_v33  ;;  %v11783_v26 = vld [vmem:[%s15217_s1 + $0x1f6c] ss:$16 sps:$4 sm:$0xff]   ;;  %v11778_v1 = vld [vmem:[%s15217_s1 + $0x1f60] ss:$16 sps:$4 sm:$0xff]   ;;  %v11781_v5 = vld [vmem:[%s15217_s1 + $0x1f68] ss:$16 sps:$4 sm:$0xff]  }
 0x874   :  { %v6976_v37 = vpack.c.bf16 %v6841_v35, %v6841_v35  ;;  %v6978_v24 = vpack.c.bf16 %v6843_v41, %v6843_v41  ;;  %v11786_v27 = vld [vmem:[%s15217_s1 + $0x1f84] ss:$16 sps:$4 sm:$0xff]   ;;  %v11789_v7 = vld [vmem:[%s15217_s1 + $0x1f8c] ss:$16 sps:$4 sm:$0xff]   ;;  %v11784_v0 = vld [vmem:[%s15217_s1 + $0x1f80] ss:$16 sps:$4 sm:$0xff]  }
 0x875   :  { %v11787_v32 = vld [vmem:[%s15217_s1 + $0x1f88] ss:$16 sps:$4 sm:$0xff]   ;;  %v11792_v33 = vld [vmem:[%s15217_s1 + $0x1fa4] ss:$16 sps:$4 sm:$0xff]   ;;  %v11795_v34 = vld [vmem:[%s15217_s1 + $0x1fac] ss:$16 sps:$4 sm:$0xff]  }
 0x876   :  { %7672 = vmatprep.mubr.bf16.mxu0 %v6976_v37  ;;  %7754 = vmatprep.mubr.bf16.mxu1 %v6976_v37  ;;  %v11790_v35 = vld [vmem:[%s15217_s1 + $0x1fa0] ss:$16 sps:$4 sm:$0xff]   ;;  %v11793_v37 = vld [vmem:[%s15217_s1 + $0x1fa8] ss:$16 sps:$4 sm:$0xff]   ;;  %v11801_v16 = vld [vmem:[%s15217_s1 + $0x1fcc] ss:$16 sps:$4 sm:$0xff]  }
 0x877   :  { %7673 = vmatmul.mubr.bf16.vlgmr.msra.gmra.mrb[28].mxu0 %v6975_v42  ;;  %7755 = vmatmul.mubr.bf16.vlgmr.msra.gmra.mrb[28].mxu1 %v6975_v42  ;;  %v11796_v41 = vld [vmem:[%s15217_s1 + $0x1fc0] ss:$16 sps:$4 sm:$0xff]   ;;  %v11799_v42 = vld [vmem:[%s15217_s1 + $0x1fc8] ss:$16 sps:$4 sm:$0xff]  }
 0x878   :  { %7682 = vmatpush1.bf16.msra.mxu0 %v11712_v38  ;;  %7764 = vmatpush1.bf16.msra.mxu1 %v11715_v39  ;;  %v11798_v38 = vld [vmem:[%s15217_s1 + $0x1fc4] ss:$16 sps:$4 sm:$0xff]   ;;  %v10202_v39 = vadd.f32 %v14916_v22, %v6019_v12  ;;  %v11807_v22 = vld [vmem:[%s15217_s1 + $0x1fec] ss:$16 sps:$4 sm:$0xff]  }
 0x879   :  { %7713 = vmatprep.mubr.bf16.mxu0 %v6978_v24  ;;  %7795 = vmatprep.mubr.bf16.mxu1 %v6978_v24  ;;  %v11802_v24 = vld [vmem:[%s15217_s1 + $0x1fe0] ss:$16 sps:$4 sm:$0xff]  }
 0x87a   :  { %7683 = vmatprep.subr.bf16.mxu0 %v11720_v43  ;;  %7765 = vmatprep.subr.bf16.mxu1 %v11723_v44  ;;  %v11804_v43 = vld [vmem:[%s15217_s1 + $0x1fe4] ss:$16 sps:$4 sm:$0xff]   ;;  %v6838_v44 = vmul.f32 0.2, %v10202_v39  ;;  %vm6834_vm11 = vcmp.ge.f32.partialorder %v10202_v39, 0.0 }
 0x87c   :  { %7684 = vmatpush1.bf16.msra.mxu0 %v11718_v47  ;;  %7766 = vmatpush1.bf16.msra.mxu1 %v11721_v3  ;;  %v11805_v47 = vld [vmem:[%s15217_s1 + $0x1fe8] ss:$16 sps:$4 sm:$0xff]   ;;  %v11808_v3 = vld [vmem:[%s15219_s3 + $0x40] sm:$0xff]  }
 0x87d   :  { %7685 = vmatprep.subr.bf16.mxu0 %v11726_v49  ;;  %7767 = vmatprep.subr.bf16.mxu1 %v11729_v50  ;;  %v11809_v49 = vld [vmem:[%s15219_s3 + $0xc0] sm:$0xff]   ;;  %v6842_v50 = vsel %vm6834_vm11, %v10202_v39, %v6838_v44 }
 0x880   :  { %7686 = vmatpush1.bf16.msra.mxu0 %v11724_v28  ;;  %7768 = vmatpush1.bf16.msra.mxu1 %v11727_v51  ;;  %v11810_v28 = vld [vmem:[%s15219_s3] sm:$0xff]  }
 0x881   :  { %7687 = vmatprep.subr.bf16.mxu0 %v11732_v29  ;;  %7769 = vmatprep.subr.bf16.mxu1 %v11735_v53  ;;  %v11811_v51 = vld [vmem:[%s15219_s3 + $0x80] sm:$0xff]   ;;  %v6977_v29 = vpack.c.bf16 %v6842_v50, %v6842_v50  ;;  %v11812_v53 = vld [vmem:[%s15219_s3 + $0x48] sm:$0xff]  }
 0x884   :  { %7688 = vmatpush1.bf16.msra.mxu0 %v11730_v54  ;;  %7770 = vmatpush1.bf16.msra.mxu1 %v11733_v55  ;;  %v11813_v54 = vld [vmem:[%s15219_s3 + $0xc8] sm:$0xff]  }
 0x885   :  { %7689 = vmatprep.subr.bf16.mxu0 %v11738_v56  ;;  %7771 = vmatprep.subr.bf16.mxu1 %v11741_v36  ;;  %v11814_v55 = vld [vmem:[%s15219_s3 + $0x8] sm:$0xff]   ;;  %v11816_v36 = vld [vmem:[%s15219_s3 + $0x50] sm:$0xff]  }
 0x886   :  { %v11815_v56 = vld [vmem:[%s15219_s3 + $0x88] sm:$0xff]  }
 0x888   :  { %7690 = vmatpush1.bf16.msra.mxu0 %v11736_v57  ;;  %7772 = vmatpush1.bf16.msra.mxu1 %v11739_v58  ;;  %v11817_v57 = vld [vmem:[%s15219_s3 + $0xd0] sm:$0xff]  }
 0x889   :  { %7691 = vmatprep.subr.bf16.mxu0 %v11744_v59  ;;  %7773 = vmatprep.subr.bf16.mxu1 %v11747_v40  ;;  %v11818_v58 = vld [vmem:[%s15219_s3 + $0x10] sm:$0xff]   ;;  %v11820_v40 = vld [vmem:[%s15219_s3 + $0x58] sm:$0xff]  }
 0x88a   :  { %v11819_v59 = vld [vmem:[%s15219_s3 + $0x90] sm:$0xff]  }
 0x88c   :  { %7692 = vmatpush1.bf16.msra.mxu0 %v11742_v60  ;;  %7774 = vmatpush1.bf16.msra.mxu1 %v11745_v62  ;;  %v11821_v60 = vld [vmem:[%s15219_s3 + $0xd8] sm:$0xff]  }
 0x88d   :  { %7693 = vmatprep.subr.bf16.mxu0 %v11750_v63  ;;  %7775 = vmatprep.subr.bf16.mxu1 %v11753_v2  ;;  %v11822_v62 = vld [vmem:[%s15219_s3 + $0x18] sm:$0xff]   ;;  %v11824_v2 = vld [vmem:[%s15219_s3 + $0x60] sm:$0xff]  }
 0x88e   :  { %v11823_v63 = vld [vmem:[%s15219_s3 + $0x98] sm:$0xff]  }
 0x890   :  { %7694 = vmatpush1.bf16.msra.mxu0 %v11748_v46  ;;  %7776 = vmatpush1.bf16.msra.mxu1 %v11751_v4  ;;  %v11825_v46 = vld [vmem:[%s15219_s3 + $0xe0] sm:$0xff]  }
 0x891   :  { %7695 = vmatprep.subr.bf16.mxu0 %v11756_v48  ;;  %7777 = vmatprep.subr.bf16.mxu1 %v11759_v6  ;;  %v11826_v4 = vld [vmem:[%s15219_s3 + $0x20] sm:$0xff]   ;;  %v11828_v6 = vld [vmem:[%s15219_s3 + $0x68] sm:$0xff]  }
 0x892   :  { %v11827_v48 = vld [vmem:[%s15219_s3 + $0xa0] sm:$0xff]  }
 0x894   :  { %7696 = vmatpush1.bf16.msra.mxu0 %v11754_v8  ;;  %7778 = vmatpush1.bf16.msra.mxu1 %v11757_v9  ;;  %v11829_v8 = vld [vmem:[%s15219_s3 + $0xe8] sm:$0xff]  }
 0x895   :  { %7697 = vmatprep.subr.bf16.mxu0 %v11762_v10  ;;  %7779 = vmatprep.subr.bf16.mxu1 %v11765_v52  ;;  %v11830_v9 = vld [vmem:[%s15219_s3 + $0x28] sm:$0xff]   ;;  %v11832_v52 = vld [vmem:[%s15219_s3 + $0x70] sm:$0xff]  }
 0x896   :  { %v11831_v10 = vld [vmem:[%s15219_s3 + $0xa8] sm:$0xff]  }
 0x898   :  { %7698 = vmatpush1.bf16.msra.mxu0 %v11760_v11  ;;  %7780 = vmatpush1.bf16.msra.mxu1 %v11763_v13  ;;  %v11833_v11 = vld [vmem:[%s15219_s3 + $0xf0] sm:$0xff]  }
 0x899   :  { %7699 = vmatprep.subr.bf16.mxu0 %v11768_v14  ;;  %7781 = vmatprep.subr.bf16.mxu1 %v11771_v15  ;;  %v11834_v13 = vld [vmem:[%s15219_s3 + $0x30] sm:$0xff]   ;;  %v11836_v15 = vld [vmem:[%s15219_s3 + $0x78] sm:$0xff]  }
 0x89a   :  { %v11835_v14 = vld [vmem:[%s15219_s3 + $0xb0] sm:$0xff]  }
 0x89c   :  { %7700 = vmatpush1.bf16.msra.mxu0 %v11766_v17  ;;  %7782 = vmatpush1.bf16.msra.mxu1 %v11769_v18  ;;  %v11837_v17 = vld [vmem:[%s15219_s3 + $0xf8] sm:$0xff]  }
 0x89d   :  { %7701 = vmatprep.subr.bf16.mxu0 %v11774_v20  ;;  %7783 = vmatprep.subr.bf16.mxu1 %v11777_v21  ;;  %v11838_v18 = vld [vmem:[%s15219_s3 + $0x38] sm:$0xff]  }
 0x89e   :  { %v11839_v20 = vld [vmem:[%s15219_s3 + $0xb8] sm:$0xff]  }
 0x89f   :  { %v9970_v21 = vld [vmem:[%s15218_s2 + $0x1c] sm:$0xf] }
 0x8a0   :  { %7702 = vmatpush1.bf16.msra.mxu0 %v11772_v61  ;;  %7784 = vmatpush1.bf16.msra.mxu1 %v11775_v23  ;;  %v6983_v61 = vrot.slane %v9970_v21, %v12499_v30  ;;  %v6991_v23 = vrot.slane %v9970_v21, %v12660_v45 }
 0x8a1   :  { %7703 = vmatprep.subr.bf16.mxu0 %v11780_v25  ;;  %7785 = vmatprep.subr.bf16.mxu1 %v11783_v26  ;;  %v6987_v25 = vrot.slane %v9970_v21, %v12502_v19  ;;  %v6995_v26 = vrot.slane %v9970_v21, %v12505_v31 }
 0x8a4   :  { %7704 = vmatpush1.bf16.msra.mxu0 %v11778_v1  ;;  %7786 = vmatpush1.bf16.msra.mxu1 %v11781_v5 }
 0x8a5   :  { %7705 = vmatprep.subr.bf16.mxu0 %v11786_v27  ;;  %7787 = vmatprep.subr.bf16.mxu1 %v11789_v7 }
 0x8a8   :  { %7706 = vmatpush1.bf16.msra.mxu0 %v11784_v0  ;;  %7788 = vmatpush1.bf16.msra.mxu1 %v11787_v32 }
 0x8a9   :  { %7707 = vmatprep.subr.bf16.mxu0 %v11792_v33  ;;  %7789 = vmatprep.subr.bf16.mxu1 %v11795_v34 }
 0x8ac   :  { %7708 = vmatpush1.bf16.msra.mxu0 %v11790_v35  ;;  %7790 = vmatpush1.bf16.msra.mxu1 %v11793_v37 }
 0x8ad   :  { %7709 = vmatprep.subr.bf16.mxu0 %v11798_v38  ;;  %7791 = vmatprep.subr.bf16.mxu1 %v11801_v16 }
 0x8b0   :  { %7710 = vmatpush1.bf16.msra.mxu0 %v11796_v41  ;;  %7792 = vmatpush1.bf16.msra.mxu1 %v11799_v42 }
 0x8b1   :  { %7711 = vmatprep.subr.bf16.mxu0 %v11804_v43  ;;  %7793 = vmatprep.subr.bf16.mxu1 %v11807_v22 }
 0x8b4   :  { %7712 = vmatpush1.bf16.msra.mxu0 %v11802_v24  ;;  %7794 = vmatpush1.bf16.msra.mxu1 %v11805_v47 }
 0x8b5   :  { %10132 = vmatprep.subr.bf16.mxu0 %v11808_v3  ;;  %10154 = vmatprep.subr.bf16.mxu1 %v11809_v49  ;;  %v10099_v49 = vld [vmem:[%s15220_s4] ss:$0 sm:$0xff] }
 0x8b7   :  { %7714 = vmatmul.mubr.bf16.vlgmr.msra.gmra.mrb[28].mxu0 %v6977_v29  ;;  %7796 = vmatmul.mubr.bf16.vlgmr.msra.gmra.mrb[28].mxu1 %v6977_v29 }
 0x8b8   :  { %10133 = vmatpush3.bf16.msra.mxu0 %v11810_v28  ;;  %10155 = vmatpush3.bf16.msra.mxu1 %v11811_v51 }
 0x8b9   :  { %10134 = vmatprep.subr.bf16.mxu0 %v11812_v53  ;;  %10156 = vmatprep.subr.bf16.mxu1 %v11813_v54 }
 0x8bc   :  { %10135 = vmatpush3.bf16.msra.mxu0 %v11814_v55  ;;  %10157 = vmatpush3.bf16.msra.mxu1 %v11815_v56 }
 0x8bd   :  { %10136 = vmatprep.subr.bf16.mxu0 %v11816_v36  ;;  %10158 = vmatprep.subr.bf16.mxu1 %v11817_v57 }
 0x8c0   :  { %10137 = vmatpush3.bf16.msra.mxu0 %v11818_v58  ;;  %10159 = vmatpush3.bf16.msra.mxu1 %v11819_v59 }
 0x8c1   :  { %10138 = vmatprep.subr.bf16.mxu0 %v11820_v40  ;;  %10160 = vmatprep.subr.bf16.mxu1 %v11821_v60 }
 0x8c4   :  { %10139 = vmatpush3.bf16.msra.mxu0 %v11822_v62  ;;  %10161 = vmatpush3.bf16.msra.mxu1 %v11823_v63 }
 0x8c5   :  { %10140 = vmatprep.subr.bf16.mxu0 %v11824_v2  ;;  %10162 = vmatprep.subr.bf16.mxu1 %v11825_v46 }
 0x8c8   :  { %10141 = vmatpush3.bf16.msra.mxu0 %v11826_v4  ;;  %10163 = vmatpush3.bf16.msra.mxu1 %v11827_v48 }
 0x8c9   :  { %10142 = vmatprep.subr.bf16.mxu0 %v11828_v6  ;;  %10164 = vmatprep.subr.bf16.mxu1 %v11829_v8 }
 0x8cc   :  { %10143 = vmatpush3.bf16.msra.mxu0 %v11830_v9  ;;  %10165 = vmatpush3.bf16.msra.mxu1 %v11831_v10 }
 0x8cd   :  { %10144 = vmatprep.subr.bf16.mxu0 %v11832_v52  ;;  %10166 = vmatprep.subr.bf16.mxu1 %v11833_v11 }
 0x8d0   :  { %10145 = vmatpush3.bf16.msra.mxu0 %v11834_v13  ;;  %10167 = vmatpush3.bf16.msra.mxu1 %v11835_v14 }
 0x8d1   :  { %10146 = vmatprep.subr.bf16.mxu0 %v11836_v15  ;;  %10168 = vmatprep.subr.bf16.mxu1 %v11837_v17 }
 0x8d4   :  { %10147 = vmatpush3.bf16.msra.mxu0 %v11838_v18  ;;  %10169 = vmatpush3.bf16.msra.mxu1 %v11839_v20 }
 0x98a   :  { %v7715_v1 = vpop.f32.mrb[28].mxu0  ;;  %v7797_v5 = vpop.f32.mrb[28].mxu1 }
 0x98b   :  { %v10204_v27 = vadd.f32 %v7715_v1, %v6983_v61  ;;  %v10206_v7 = vadd.f32 %v7797_v5, %v6991_v23  ;;  %v7717_v0 = vpop.f32.mrb[29].mxu0  ;;  %v7799_v32 = vpop.f32.mrb[29].mxu1 }
 0x98c   :  { %v10205_v33 = vadd.f32 %v7717_v0, %v6987_v25  ;;  %v10207_v34 = vadd.f32 %v7799_v32, %v6995_v26  ;;  %v7719_v12 = vpop.f32.mrb[30].mxu0  ;;  %v7801_v35 = vpop.f32.mrb[30].mxu1 }
 0x98d   :  { %vm7804_vm12 = vcmp.ge.f32.partialorder %v10204_v27, 0.0  ;;  %v7808_v37 = vmul.f32 0.2, %v10204_v27  ;;  %vm7806_vm13 = vcmp.ge.f32.partialorder %v10206_v7, 0.0  ;;  %v7810_v30 = vmul.f32 0.2, %v10206_v7 }
 0x98e   :  { %vm7805_vm14 = vcmp.ge.f32.partialorder %v10205_v33, 0.0  ;;  %v7809_v45 = vmul.f32 0.2, %v10205_v33  ;;  %vm7807_vm15 = vcmp.ge.f32.partialorder %v10207_v34, 0.0  ;;  %v7811_v19 = vmul.f32 0.2, %v10207_v34 }
 0x98f   :  { %v7812_v38 = vsel %vm7804_vm12, %v10204_v27, %v7808_v37  ;;  %v7814_v31 = vsel %vm7806_vm13, %v10206_v7, %v7810_v30  ;;  %v7720_v16 = vpop.f32.mrb[31].mxu0  ;;  %v7802_v39 = vpop.f32.mrb[31].mxu1 }
 0x990   :  { %v7813_v41 = vsel %vm7805_vm14, %v10205_v33, %v7809_v45  ;;  %v7815_v42 = vsel %vm7807_vm15, %v10207_v34, %v7811_v19  ;;  %v7816_v44 = vpack.c.bf16 %v7812_v38, %v7812_v38  ;;  %v7818_v24 = vpack.c.bf16 %v7814_v31, %v7814_v31 }
 0x991   :  { %v7817_v43 = vpack.c.bf16 %v7813_v41, %v7813_v41  ;;  %v7819_v22 = vpack.c.bf16 %v7815_v42, %v7815_v42 }
 0x993   :  { %8115 = vmatprep.mubr.bf16.mxu0 %v7817_v43  ;;  %8155 = vmatprep.mubr.bf16.mxu1 %v7819_v22 }
 0x994   :  { %8116 = vmatmul.mubr.bf16.vlgmr.msra.gmra.mrb[32].mxu0 %v7816_v44  ;;  %8156 = vmatmul.mubr.bf16.vlgmr.msra.gmra.mrb[32].mxu1 %v7818_v24 }
 0xa67   :  { %v10148_v47 = vpop.f32.mrb[32].mxu0  ;;  %v10170_v3 = vpop.f32.mrb[32].mxu1 }
 0xa68   :  { %v10149_v50 = vpop.f32.mrb[33].mxu0  ;;  %v10171_v28 = vpop.f32.mrb[33].mxu1 }
 0xa69   :  { %v10150_v51 = vadd.f32 %v10149_v50, %v10148_v47  ;;  %v10172_v29 = vadd.f32 %v10171_v28, %v10170_v3  ;;  %v10151_v53 = vpop.f32.mrb[34].mxu0  ;;  %v10173_v54 = vpop.f32.mrb[34].mxu1 }
 0xa6a   :  { %v10152_v55 = vpop.f32.mrb[35].mxu0  ;;  %v10174_v56 = vpop.f32.mrb[35].mxu1 }
 0xa6b   :  { %v8118_v36 = vadd.f32 %v10150_v51, %v10099_v49 }
 0xa6d   :  { %v8158_v57 = vadd.f32 %v10172_v29, %v8118_v36 }
 0xa6f   :  { %vm8163_vm0 = vcmp.ge.f32.partialorder %v8158_v57, 0.0  ;;  %v8164_v58 = vmul.f32 0.2, %v8158_v57 }
 0xa71   :  { %v8165_v59 = vsel %vm8163_vm0, %v8158_v57, %v8164_v58 }
 0xa72   :  { %8167 = vst.msk [vmem:[%s15221_s5] sm:$0xff] %vm8166_vm1, %v8165_v59 }

// kernel: n2_apply.30
= control target key start
LH: loop header
LB: loop body
LE: loop exit
PB: predicated region body
PF: predicated region fallthrough
CT: control target
= control target key end

     0   :  { %s1580_s1 = inlined_call_operand.vmem [shape: bf16[1152,128], index: 1, kind: input, shape index: {}]   ;;  %s1581_s0 = inlined_call_operand.vmem [shape: bf16[32,1152], index: 0, kind: input, shape index: {}]   ;;  %s1582_s2 = inlined_call_operand.vmem [shape: f32[32,128], index: 2, kind: output, shape index: {}]  }
   0x1   :  { %v1185_v0 = vld [vmem:[%s1580_s1 + $0x40] sm:$0xff]   ;;  %v1189_v4 = vld [vmem:[%s1580_s1 + $0x48] sm:$0xff]   ;;  %v1193_v8 = vld [vmem:[%s1580_s1 + $0x50] sm:$0xff]  }
   0x2   :  { %v1186_v1 = vld [vmem:[%s1580_s1 + $0xc0] sm:$0xff]   ;;  %1043 = vmatprep.subr.bf16.mxu0 %v1185_v0  ;;  %v1190_v5 = vld [vmem:[%s1580_s1 + $0xc8] sm:$0xff]   ;;  %v1194_v9 = vld [vmem:[%s1580_s1 + $0xd0] sm:$0xff]  }
   0x3   :  { %v1187_v2 = vld [vmem:[%s1580_s1] sm:$0xff]   ;;  %1071 = vmatprep.subr.bf16.mxu1 %v1186_v1  ;;  %v1191_v6 = vld [vmem:[%s1580_s1 + $0x8] sm:$0xff]   ;;  %v1195_v10 = vld [vmem:[%s1580_s1 + $0x10] sm:$0xff]  }
   0x4   :  { %v1188_v3 = vld [vmem:[%s1580_s1 + $0x80] sm:$0xff]   ;;  %1044 = vmatpush3.bf16.msra.mxu0 %v1187_v2  ;;  %v1192_v7 = vld [vmem:[%s1580_s1 + $0x88] sm:$0xff]   ;;  %v1196_v11 = vld [vmem:[%s1580_s1 + $0x90] sm:$0xff]  }
   0x5   :  { %1072 = vmatpush3.bf16.msra.mxu1 %v1188_v3  ;;  %1045 = vmatprep.subr.bf16.mxu0 %v1189_v4  ;;  %v1197_v12 = vld [vmem:[%s1580_s1 + $0x58] sm:$0xff]   ;;  %v1201_v16 = vld [vmem:[%s1580_s1 + $0x60] sm:$0xff]   ;;  %v1205_v20 = vld [vmem:[%s1580_s1 + $0x68] sm:$0xff]  }
   0x6   :  { %1073 = vmatprep.subr.bf16.mxu1 %v1190_v5  ;;  %v1198_v13 = vld [vmem:[%s1580_s1 + $0xd8] sm:$0xff]   ;;  %v1202_v17 = vld [vmem:[%s1580_s1 + $0xe0] sm:$0xff]   ;;  %v1206_v21 = vld [vmem:[%s1580_s1 + $0xe8] sm:$0xff]  }
   0x7   :  { %v1199_v14 = vld [vmem:[%s1580_s1 + $0x18] sm:$0xff]   ;;  %v1203_v18 = vld [vmem:[%s1580_s1 + $0x20] sm:$0xff]   ;;  %v1207_v22 = vld [vmem:[%s1580_s1 + $0x28] sm:$0xff]  }
   0x8   :  { %1046 = vmatpush3.bf16.msra.mxu0 %v1191_v6  ;;  %v1200_v15 = vld [vmem:[%s1580_s1 + $0x98] sm:$0xff]   ;;  %v1204_v19 = vld [vmem:[%s1580_s1 + $0xa0] sm:$0xff]   ;;  %v1208_v23 = vld [vmem:[%s1580_s1 + $0xa8] sm:$0xff]  }
   0x9   :  { %1074 = vmatpush3.bf16.msra.mxu1 %v1192_v7  ;;  %1047 = vmatprep.subr.bf16.mxu0 %v1193_v8  ;;  %v1209_v24 = vld [vmem:[%s1580_s1 + $0x70] sm:$0xff]   ;;  %v1213_v28 = vld [vmem:[%s1580_s1 + $0x78] sm:$0xff]   ;;  %v1217_v32 = vld [vmem:[%s1581_s0] ss:$36 sps:$4 sm:$0xff]  }
   0xa   :  { %1075 = vmatprep.subr.bf16.mxu1 %v1194_v9  ;;  %v1210_v25 = vld [vmem:[%s1580_s1 + $0xf0] sm:$0xff]   ;;  %v1214_v29 = vld [vmem:[%s1580_s1 + $0xf8] sm:$0xff]   ;;  %v1219_v33 = vld [vmem:[%s1581_s0 + $0x4] ss:$36 sps:$4 sm:$0xff]  }
   0xb   :  { %v1211_v26 = vld [vmem:[%s1580_s1 + $0x30] sm:$0xff]   ;;  %v1215_v30 = vld [vmem:[%s1580_s1 + $0x38] sm:$0xff]   ;;  %v1220_v34 = vld [vmem:[%s1581_s0 + $0x8] ss:$36 sps:$4 sm:$0xff]   ;;  %732 = vmatprep.mubr.bf16.mxu0 %v1219_v33 }
   0xc   :  { %1048 = vmatpush3.bf16.msra.mxu0 %v1195_v10  ;;  %v1212_v27 = vld [vmem:[%s1580_s1 + $0xb0] sm:$0xff]   ;;  %v1216_v31 = vld [vmem:[%s1580_s1 + $0xb8] sm:$0xff]   ;;  %v1223_v36 = vld [vmem:[%s1580_s1 + $0x140] sm:$0xff]  }
   0xd   :  { %1076 = vmatpush3.bf16.msra.mxu1 %v1196_v11  ;;  %1049 = vmatprep.subr.bf16.mxu0 %v1197_v12  ;;  %v1222_v35 = vld [vmem:[%s1581_s0 + $0xc] ss:$36 sps:$4 sm:$0xff]   ;;  %v1224_v37 = vld [vmem:[%s1580_s1 + $0x100] sm:$0xff]   ;;  %v1235_v48 = vld [vmem:[%s1580_s1 + $0x158] sm:$0xff]  }
   0xe   :  { %1077 = vmatprep.subr.bf16.mxu1 %v1198_v13  ;;  %781 = vmatprep.mubr.bf16.mxu1 %v1222_v35  ;;  %v1225_v38 = vld [vmem:[%s1580_s1 + $0x1c0] sm:$0xff]   ;;  %v1227_v40 = vld [vmem:[%s1580_s1 + $0x148] sm:$0xff]   ;;  %v1231_v44 = vld [vmem:[%s1580_s1 + $0x150] sm:$0xff]  }
   0xf   :  { %v1226_v39 = vld [vmem:[%s1580_s1 + $0x180] sm:$0xff]   ;;  %v1228_v41 = vld [vmem:[%s1580_s1 + $0x108] sm:$0xff]   ;;  %v1232_v45 = vld [vmem:[%s1580_s1 + $0x110] sm:$0xff]  }
  0x10   :  { %1050 = vmatpush3.bf16.msra.mxu0 %v1199_v14  ;;  %v1229_v42 = vld [vmem:[%s1580_s1 + $0x1c8] sm:$0xff]   ;;  %v1233_v46 = vld [vmem:[%s1580_s1 + $0x1d0] sm:$0xff]   ;;  %v1236_v49 = vld [vmem:[%s1580_s1 + $0x118] sm:$0xff]  }
  0x11   :  { %1078 = vmatpush3.bf16.msra.mxu1 %v1200_v15  ;;  %1051 = vmatprep.subr.bf16.mxu0 %v1201_v16  ;;  %v1230_v43 = vld [vmem:[%s1580_s1 + $0x188] sm:$0xff]   ;;  %v1234_v47 = vld [vmem:[%s1580_s1 + $0x190] sm:$0xff]   ;;  %v1237_v50 = vld [vmem:[%s1580_s1 + $0x1d8] sm:$0xff]  }
  0x12   :  { %1079 = vmatprep.subr.bf16.mxu1 %v1202_v17  ;;  %v1238_v51 = vld [vmem:[%s1580_s1 + $0x198] sm:$0xff]   ;;  %v1239_v52 = vld [vmem:[%s1580_s1 + $0x160] sm:$0xff]   ;;  %v1243_v56 = vld [vmem:[%s1580_s1 + $0x168] sm:$0xff]  }
  0x13   :  { %v1240_v53 = vld [vmem:[%s1580_s1 + $0x120] sm:$0xff]   ;;  %v1244_v57 = vld [vmem:[%s1581_s0 + $0x4c] ss:$36 sps:$4 sm:$0xff]   ;;  %v1246_v58 = vld [vmem:[%s1581_s0 + $0x54] ss:$36 sps:$4 sm:$0xff]  }
  0x14   :  { %1052 = vmatpush3.bf16.msra.mxu0 %v1203_v18  ;;  %v1241_v54 = vld [vmem:[%s1580_s1 + $0x1e0] sm:$0xff]   ;;  %v1248_v59 = vld [vmem:[%s1580_s1 + $0x128] sm:$0xff]   ;;  %v1250_v61 = vld [vmem:[%s1581_s0 + $0x50] ss:$36 sps:$4 sm:$0xff]  }
  0x15   :  { %1080 = vmatpush3.bf16.msra.mxu1 %v1204_v19  ;;  %1053 = vmatprep.subr.bf16.mxu0 %v1205_v20  ;;  %v1242_v55 = vld [vmem:[%s1580_s1 + $0x1a0] sm:$0xff]   ;;  %v1249_v60 = vld [vmem:[%s1581_s0 + $0x48] ss:$36 sps:$4 sm:$0xff]   ;;  %v1253_v0 = vld [vmem:[%s1580_s1 + $0x170] sm:$0xff]  }
  0x16   :  { %1081 = vmatprep.subr.bf16.mxu1 %v1206_v21  ;;  %v1251_v62 = vld [vmem:[%s1580_s1 + $0x1e8] sm:$0xff]   ;;  %v1254_v1 = vld [vmem:[%s1580_s1 + $0x130] sm:$0xff]   ;;  %v1257_v4 = vld [vmem:[%s1580_s1 + $0x178] sm:$0xff]  }
  0x17   :  { %v1252_v63 = vld [vmem:[%s1580_s1 + $0x1a8] sm:$0xff]   ;;  %v1255_v2 = vld [vmem:[%s1580_s1 + $0x1f0] sm:$0xff]   ;;  %v1258_v5 = vld [vmem:[%s1580_s1 + $0x138] sm:$0xff]  }
  0x18   :  { %1054 = vmatpush3.bf16.msra.mxu0 %v1207_v22  ;;  %v1256_v3 = vld [vmem:[%s1580_s1 + $0x1b0] sm:$0xff]   ;;  %v1259_v6 = vld [vmem:[%s1580_s1 + $0x1f8] sm:$0xff]   ;;  %v1264_v10 = vld [vmem:[%s1580_s1 + $0x200] sm:$0xff]  }
  0x19   :  { %1082 = vmatpush3.bf16.msra.mxu1 %v1208_v23  ;;  %1055 = vmatprep.subr.bf16.mxu0 %v1209_v24  ;;  %v1260_v7 = vld [vmem:[%s1581_s0 + $0x10] ss:$36 sps:$4 sm:$0xff]   ;;  %v1263_v9 = vld [vmem:[%s1580_s1 + $0x1b8] sm:$0xff]   ;;  %v1268_v13 = vld [vmem:[%s1580_s1 + $0x208] sm:$0xff]  }
  0x1a   :  { %1083 = vmatprep.subr.bf16.mxu1 %v1210_v25  ;;  %v1262_v8 = vld [vmem:[%s1581_s0 + $0x14] ss:$36 sps:$4 sm:$0xff]   ;;  %v1267_v12 = vld [vmem:[%s1581_s0 + $0x1c] ss:$36 sps:$4 sm:$0xff]   ;;  %v1273_v17 = vld [vmem:[%s1581_s0 + $0x64] ss:$36 sps:$4 sm:$0xff]  }
  0x1b   :  { %v1265_v11 = vld [vmem:[%s1581_s0 + $0x18] ss:$36 sps:$4 sm:$0xff]   ;;  %v1272_v16 = vld [vmem:[%s1580_s1 + $0x210] sm:$0xff]   ;;  %v1275_v18 = vld [vmem:[%s1581_s0 + $0x60] ss:$36 sps:$4 sm:$0xff]  }
  0x1c   :  { %1056 = vmatpush3.bf16.msra.mxu0 %v1211_v26  ;;  %v1269_v14 = vld [vmem:[%s1581_s0 + $0x5c] ss:$36 sps:$4 sm:$0xff]   ;;  %v1278_v22 = vld [vmem:[%s1580_s1 + $0x228] sm:$0xff]   ;;  %v1279_v23 = vld [vmem:[%s1580_s1 + $0x230] sm:$0xff]  }
  0x1d   :  { %1084 = vmatpush3.bf16.msra.mxu1 %v1212_v27  ;;  %1057 = vmatprep.subr.bf16.mxu0 %v1213_v28  ;;  %v1271_v15 = vld [vmem:[%s1581_s0 + $0x58] ss:$36 sps:$4 sm:$0xff]   ;;  %v1277_v20 = vld [vmem:[%s1580_s1 + $0x220] sm:$0xff]   ;;  %v1282_v25 = vld [vmem:[%s1581_s0 + $0x68] ss:$36 sps:$4 sm:$0xff]  }
  0x1e   :  { %1085 = vmatprep.subr.bf16.mxu1 %v1214_v29  ;;  %v1276_v19 = vld [vmem:[%s1580_s1 + $0x218] sm:$0xff]   ;;  %v1281_v21 = vld [vmem:[%s1581_s0 + $0x20] ss:$36 sps:$4 sm:$0xff]  }
  0x1f   :  { %v1280_v24 = vld [vmem:[%s1580_s1 + $0x238] sm:$0xff]  }
  0x20   :  { %1058 = vmatpush3.bf16.msra.mxu0 %v1215_v30 }
  0x21   :  { %1086 = vmatpush3.bf16.msra.mxu1 %v1216_v31  ;;  %1099 = vmatprep.subr.bf16.mxu0 %v1223_v36 }
  0x22   :  { %1127 = vmatprep.subr.bf16.mxu1 %v1225_v38 }
  0x23   :  { %733 = vmatmul.mubr.bf16.vlgmr.msra.gmra.mrb[0].mxu0 %v1217_v32 }
  0x24   :  { %782 = vmatmul.mubr.bf16.vlgmr.msra.gmra.mrb[0].mxu1 %v1220_v34  ;;  %1100 = vmatpush3.bf16.msra.mxu0 %v1224_v37 }
  0x25   :  { %1128 = vmatpush3.bf16.msra.mxu1 %v1226_v39  ;;  %1101 = vmatprep.subr.bf16.mxu0 %v1227_v40 }
  0x26   :  { %1129 = vmatprep.subr.bf16.mxu1 %v1229_v42  ;;  %740 = vmatprep.mubr.bf16.mxu0 %v1244_v57 }
  0x27   :  { %789 = vmatprep.mubr.bf16.mxu1 %v1246_v58 }
  0x28   :  { %1102 = vmatpush3.bf16.msra.mxu0 %v1228_v41 }
  0x29   :  { %1130 = vmatpush3.bf16.msra.mxu1 %v1230_v43  ;;  %1103 = vmatprep.subr.bf16.mxu0 %v1231_v44 }
  0x2a   :  { %1131 = vmatprep.subr.bf16.mxu1 %v1233_v46 }
  0x2b   :  { %741 = vmatmul.mubr.bf16.gmra.mrb[4].mxu0 %v1249_v60 }
  0x2c   :  { %1104 = vmatpush3.bf16.msra.mxu0 %v1232_v45  ;;  %790 = vmatmul.mubr.bf16.gmra.mrb[4].mxu1 %v1250_v61 }
  0x2d   :  { %1132 = vmatpush3.bf16.msra.mxu1 %v1234_v47  ;;  %1105 = vmatprep.subr.bf16.mxu0 %v1235_v48 }
  0x2e   :  { %1133 = vmatprep.subr.bf16.mxu1 %v1237_v50  ;;  %830 = vmatprep.mubr.bf16.mxu0 %v1262_v8 }
  0x2f   :  { %879 = vmatprep.mubr.bf16.mxu1 %v1267_v12 }
  0x30   :  { %1106 = vmatpush3.bf16.msra.mxu0 %v1236_v49 }
  0x31   :  { %1134 = vmatpush3.bf16.msra.mxu1 %v1238_v51  ;;  %1107 = vmatprep.subr.bf16.mxu0 %v1239_v52 }
  0x32   :  { %1135 = vmatprep.subr.bf16.mxu1 %v1241_v54 }
  0x34   :  { %1108 = vmatpush3.bf16.msra.mxu0 %v1240_v53 }
  0x35   :  { %1136 = vmatpush3.bf16.msra.mxu1 %v1242_v55  ;;  %1109 = vmatprep.subr.bf16.mxu0 %v1243_v56 }
  0x36   :  { %1137 = vmatprep.subr.bf16.mxu1 %v1251_v62 }
  0x38   :  { %1110 = vmatpush3.bf16.msra.mxu0 %v1248_v59 }
  0x39   :  { %1138 = vmatpush3.bf16.msra.mxu1 %v1252_v63  ;;  %1111 = vmatprep.subr.bf16.mxu0 %v1253_v0 }
  0x3a   :  { %1139 = vmatprep.subr.bf16.mxu1 %v1255_v2 }
  0x3c   :  { %1112 = vmatpush3.bf16.msra.mxu0 %v1254_v1 }
  0x3d   :  { %1140 = vmatpush3.bf16.msra.mxu1 %v1256_v3  ;;  %1113 = vmatprep.subr.bf16.mxu0 %v1257_v4 }
  0x3e   :  { %1141 = vmatprep.subr.bf16.mxu1 %v1259_v6 }
  0x40   :  { %1114 = vmatpush3.bf16.msra.mxu0 %v1258_v5 }
  0x41   :  { %1142 = vmatpush3.bf16.msra.mxu1 %v1263_v9  ;;  %1165 = vmatprep.subr.bf16.mxu0 %v1264_v10 }
  0x43   :  { %831 = vmatmul.mubr.bf16.vlgmr.msra.gmra.mrb[8].mxu0 %v1260_v7 }
  0x44   :  { %1166 = vmatpush3.bf16.msra.mxu0 %v1264_v10  ;;  %880 = vmatmul.mubr.bf16.vlgmr.msra.gmra.mrb[8].mxu1 %v1265_v11 }
  0x45   :  { %1167 = vmatprep.subr.bf16.mxu0 %v1268_v13  ;;  %838 = vmatprep.mubr.bf16.mxu0 %v1269_v14 }
  0x46   :  { %887 = vmatprep.mubr.bf16.mxu1 %v1273_v17 }
  0x48   :  { %1168 = vmatpush3.bf16.msra.mxu0 %v1268_v13 }
  0x49   :  { %1169 = vmatprep.subr.bf16.mxu0 %v1272_v16 }
  0x4b   :  { %839 = vmatmul.mubr.bf16.gmra.mrb[12].mxu0 %v1271_v15 }
  0x4c   :  { %1170 = vmatpush3.bf16.msra.mxu0 %v1272_v16  ;;  %888 = vmatmul.mubr.bf16.gmra.mrb[12].mxu1 %v1275_v18 }
  0x4d   :  { %1171 = vmatprep.subr.bf16.mxu0 %v1276_v19  ;;  %1181 = vmatprep.mubr.bf16.mxu0 %v1281_v21 }
  0x50   :  { %1172 = vmatpush3.bf16.msra.mxu0 %v1276_v19 }
  0x51   :  { %1173 = vmatprep.subr.bf16.mxu0 %v1277_v20 }
  0x54   :  { %1174 = vmatpush3.bf16.msra.mxu0 %v1277_v20 }
  0x55   :  { %1175 = vmatprep.subr.bf16.mxu0 %v1278_v22 }
  0x58   :  { %1176 = vmatpush3.bf16.msra.mxu0 %v1278_v22 }
  0x59   :  { %1177 = vmatprep.subr.bf16.mxu0 %v1279_v23 }
  0x5c   :  { %1178 = vmatpush3.bf16.msra.mxu0 %v1279_v23 }
  0x5d   :  { %1179 = vmatprep.subr.bf16.mxu0 %v1280_v24 }
  0x60   :  { %1180 = vmatpush3.bf16.msra.mxu0 %v1280_v24 }
  0x63   :  { %1182 = vmatmul.mubr.bf16.vlgmr.msra.gmra.mrb[16].mxu0 %v1282_v25 }
  0xf6   :  { %v1059_v26 = vpop.f32.mrb[0].mxu0 }
  0xf7   :  { %v1087_v27 = vpop.f32.mrb[0].mxu1  ;;  %v1060_v28 = vpop.f32.mrb[1].mxu0 }
  0xf8   :  { %v1061_v29 = vadd.f32 %v1060_v28, %v1059_v26  ;;  %v1088_v30 = vpop.f32.mrb[1].mxu1  ;;  %v1062_v31 = vpop.f32.mrb[2].mxu0 }
  0xf9   :  { %v1089_v32 = vadd.f32 %v1088_v30, %v1087_v27  ;;  %v1090_v33 = vpop.f32.mrb[2].mxu1  ;;  %v1063_v34 = vpop.f32.mrb[3].mxu0 }
  0xfa   :  { %v1064_v35 = vadd.f32 %v1063_v34, %v1062_v31  ;;  %v1091_v36 = vpop.f32.mrb[3].mxu1 }
  0xfb   :  { %v784_v37 = vadd.f32 %v1089_v32, %v1061_v29  ;;  %v1092_v38 = vadd.f32 %v1091_v36, %v1090_v33 }
  0xfd   :  { %v787_v39 = vadd.f32 %v1092_v38, %v1064_v35 }
  0xfe   :  { %v1065_v40 = vpop.f32.mrb[4].mxu0 }
  0xff   :  { %v1093_v41 = vpop.f32.mrb[4].mxu1  ;;  %v1066_v42 = vpop.f32.mrb[5].mxu0 }
 0x100   :  { %v1094_v43 = vpop.f32.mrb[5].mxu1  ;;  %v1067_v44 = vadd.f32 %v1066_v42, %v1065_v40  ;;  %v1068_v46 = vpop.f32.mrb[6].mxu0 }
 0x101   :  { %v1095_v45 = vadd.f32 %v1094_v43, %v1093_v41  ;;  %v1096_v47 = vpop.f32.mrb[6].mxu1  ;;  %v1069_v48 = vpop.f32.mrb[7].mxu0 }
 0x102   :  { %v1097_v49 = vpop.f32.mrb[7].mxu1  ;;  %v1070_v51 = vadd.f32 %v1069_v48, %v1068_v46 }
 0x103   :  { %v792_v50 = vadd.f32 %v1095_v45, %v1067_v44  ;;  %v1098_v52 = vadd.f32 %v1097_v49, %v1096_v47 }
 0x105   :  { %v795_v53 = vadd.f32 %v1098_v52, %v1070_v51 }
 0x116   :  { %v1115_v54 = vpop.f32.mrb[8].mxu0 }
 0x117   :  { %v1116_v55 = vpop.f32.mrb[9].mxu0  ;;  %v1143_v58 = vpop.f32.mrb[8].mxu1 }
 0x118   :  { %v1117_v56 = vadd.f32 %v1116_v55, %v1115_v54  ;;  %v1118_v57 = vpop.f32.mrb[10].mxu0  ;;  %v1144_v62 = vpop.f32.mrb[9].mxu1 }
 0x119   :  { %v1119_v59 = vpop.f32.mrb[11].mxu0  ;;  %v1145_v63 = vadd.f32 %v1144_v62, %v1143_v58  ;;  %v1146_v0 = vpop.f32.mrb[10].mxu1 }
 0x11a   :  { %v833_v60 = vadd.f32 %v1117_v56, %v784_v37  ;;  %v1120_v61 = vadd.f32 %v1119_v59, %v1118_v57  ;;  %v1147_v2 = vpop.f32.mrb[11].mxu1 }
 0x11b   :  { %v1148_v3 = vadd.f32 %v1147_v2, %v1146_v0 }
 0x11c   :  { %v836_v1 = vadd.f32 %v1120_v61, %v787_v39  ;;  %v882_v4 = vadd.f32 %v1145_v63, %v833_v60 }
 0x11e   :  { %v1121_v5 = vpop.f32.mrb[12].mxu0  ;;  %v885_v7 = vadd.f32 %v1148_v3, %v836_v1 }
 0x11f   :  { %v1122_v6 = vpop.f32.mrb[13].mxu0  ;;  %v1149_v10 = vpop.f32.mrb[12].mxu1 }
 0x120   :  { %v1123_v8 = vadd.f32 %v1122_v6, %v1121_v5  ;;  %v1124_v9 = vpop.f32.mrb[14].mxu0  ;;  %v1150_v14 = vpop.f32.mrb[13].mxu1 }
 0x121   :  { %v1125_v11 = vpop.f32.mrb[15].mxu0  ;;  %v1151_v15 = vadd.f32 %v1150_v14, %v1149_v10  ;;  %v1152_v16 = vpop.f32.mrb[14].mxu1 }
 0x122   :  { %v841_v12 = vadd.f32 %v1123_v8, %v792_v50  ;;  %v1126_v13 = vadd.f32 %v1125_v11, %v1124_v9  ;;  %v1153_v18 = vpop.f32.mrb[15].mxu1 }
 0x123   :  { %v1154_v19 = vadd.f32 %v1153_v18, %v1152_v16 }
 0x124   :  { %v844_v17 = vadd.f32 %v1126_v13, %v795_v53  ;;  %v890_v20 = vadd.f32 %v1151_v15, %v841_v12 }
 0x126   :  { %v893_v21 = vadd.f32 %v1154_v19, %v844_v17 }
 0x136   :  { %v1183_v22 = vpop.f32.mrb[16].mxu0 }
 0x137   :  { %v939_v23 = vadd.f32 %v1183_v22, %v890_v20  ;;  %v930_v24 = vpop.f32.mrb[17].mxu0 }
 0x138   :  { %v931_v25 = vadd.f32 %v930_v24, %v882_v4  ;;  %v1184_v26 = vpop.f32.mrb[18].mxu0 }
 0x139   :  { %947 = vst [vmem:[%s1582_s2 + $0x10] sm:$0xff] %v939_v23  ;;  %v942_v27 = vadd.f32 %v1184_v26, %v893_v21  ;;  %v933_v28 = vpop.f32.mrb[19].mxu0 }
 0x13a   :  { %945 = vst [vmem:[%s1582_s2] sm:$0xff] %v931_v25  ;;  %v934_v29 = vadd.f32 %v933_v28, %v885_v7 }
 0x13b   :  { %948 = vst [vmem:[%s1582_s2 + $0x18] sm:$0xff] %v942_v27 }
 0x13c   :  { %946 = vst [vmem:[%s1582_s2 + $0x8] sm:$0xff] %v934_v29 }

// kernel: n2_apply.31
= control target key start
LH: loop header
LB: loop body
LE: loop exit
PB: predicated region body
PF: predicated region fallthrough
CT: control target
= control target key end

     0   :  { %v933_v46 = vmov 0   ;;  %vm450_vm0 = vcmask 261120   ;;  %s1158_s1 = inlined_call_operand.vmem [shape: bf16[512,32], index: 1, kind: input, shape index: {}]   ;;  %s1159_s0 = inlined_call_operand.vmem [shape: bf16[8,512], index: 0, kind: input, shape index: {}]   ;;  %s1160_s2 = inlined_call_operand.vmem [shape: bf16[32,512], index: 2, kind: input, shape index: {}]   ;;  %s1161_s4 = inlined_call_operand.vmem [shape: bf16[32,512], index: 4, kind: input, shape index: {}]   ;;  %s1162_s3 = inlined_call_operand.vmem [shape: f32[1,512], index: 3, kind: input, shape index: {}]   ;;  %s1163_s5 = inlined_call_operand.vmem [shape: f32[1,512], index: 5, kind: input, shape index: {}]   ;;  %s1164_s6 = inlined_call_operand.vmem [shape: f32[8,512], index: 6, kind: output, shape index: {0}]   ;;  %s1165_s7 = inlined_call_operand.vmem [shape: f32[8,512], index: 7, kind: output, shape index: {1}]  }
   0x1   :  { %v849_v0 = vld [vmem:[%s1158_s1 + $0x40] sm:$0xff]   ;;  %v853_v4 = vld [vmem:[%s1158_s1 + $0x48] sm:$0xff]   ;;  %v857_v8 = vld [vmem:[%s1158_s1 + $0x50] sm:$0xff]  }
   0x2   :  { %v850_v1 = vld [vmem:[%s1158_s1 + $0xc0] sm:$0xff]   ;;  %804 = vmatprep.subr.bf16.mxu0 %v849_v0  ;;  %v854_v5 = vld [vmem:[%s1158_s1 + $0xc8] sm:$0xff]   ;;  %v858_v9 = vld [vmem:[%s1158_s1 + $0xd0] sm:$0xff]  }
   0x3   :  { %v851_v2 = vld [vmem:[%s1158_s1] sm:$0xff]   ;;  %826 = vmatprep.subr.bf16.mxu1 %v850_v1  ;;  %v855_v6 = vld [vmem:[%s1158_s1 + $0x8] sm:$0xff]   ;;  %v859_v10 = vld [vmem:[%s1158_s1 + $0x10] sm:$0xff]  }
   0x4   :  { %v852_v3 = vld [vmem:[%s1158_s1 + $0x80] sm:$0xff]   ;;  %805 = vmatpush3.bf16.msra.mxu0 %v851_v2  ;;  %v856_v7 = vld [vmem:[%s1158_s1 + $0x88] sm:$0xff]   ;;  %v860_v11 = vld [vmem:[%s1158_s1 + $0x90] sm:$0xff]  }
   0x5   :  { %827 = vmatpush3.bf16.msra.mxu1 %v852_v3  ;;  %806 = vmatprep.subr.bf16.mxu0 %v853_v4  ;;  %v861_v12 = vld [vmem:[%s1158_s1 + $0x58] sm:$0xff]   ;;  %v865_v16 = vld [vmem:[%s1158_s1 + $0x60] sm:$0xff]   ;;  %v869_v20 = vld [vmem:[%s1158_s1 + $0x68] sm:$0xff]   ;;  %v390_v4 = vlaneseq }
   0x6   :  { %828 = vmatprep.subr.bf16.mxu1 %v854_v5  ;;  %v862_v13 = vld [vmem:[%s1158_s1 + $0xd8] sm:$0xff]   ;;  %v866_v17 = vld [vmem:[%s1158_s1 + $0xe0] sm:$0xff]   ;;  %v870_v21 = vld [vmem:[%s1158_s1 + $0xe8] sm:$0xff]  }
   0x7   :  { %v863_v14 = vld [vmem:[%s1158_s1 + $0x18] sm:$0xff]   ;;  %v867_v18 = vld [vmem:[%s1158_s1 + $0x20] sm:$0xff]   ;;  %v871_v22 = vld [vmem:[%s1158_s1 + $0x28] sm:$0xff]   ;;  %v391_v5 = vshrl.u32 %v390_v4, 7 }
   0x8   :  { %807 = vmatpush3.bf16.msra.mxu0 %v855_v6  ;;  %v864_v15 = vld [vmem:[%s1158_s1 + $0x98] sm:$0xff]   ;;  %v868_v19 = vld [vmem:[%s1158_s1 + $0xa0] sm:$0xff]   ;;  %v872_v23 = vld [vmem:[%s1158_s1 + $0xa8] sm:$0xff]  }
   0x9   :  { %829 = vmatpush3.bf16.msra.mxu1 %v856_v7  ;;  %808 = vmatprep.subr.bf16.mxu0 %v857_v8  ;;  %v873_v24 = vld [vmem:[%s1158_s1 + $0x70] sm:$0xff]   ;;  %v877_v28 = vld [vmem:[%s1158_s1 + $0x78] sm:$0xff]   ;;  %v26_v32 = vld [vmem:[%s1159_s0] sm:$0xff] }
   0xa   :  { %830 = vmatprep.subr.bf16.mxu1 %v858_v9  ;;  %v874_v25 = vld [vmem:[%s1158_s1 + $0xf0] sm:$0xff]   ;;  %v878_v29 = vld [vmem:[%s1158_s1 + $0xf8] sm:$0xff]   ;;  %v27_v33 = vld [vmem:[%s1159_s0 + $0x8] sm:$0xff]  ;;  %v748_v34 = vcombine.low %v26_v32, %v26_v32  ;;  %v749_v35 = vcombine.high %v26_v32, %v26_v32  ;;  %v392_v9 = vsub.s32 0, %v391_v5 }
   0xb   :  { %v875_v26 = vld [vmem:[%s1158_s1 + $0x30] sm:$0xff]   ;;  %v879_v30 = vld [vmem:[%s1158_s1 + $0x38] sm:$0xff]   ;;  %v750_v36 = vcombine.low %v27_v33, %v27_v33  ;;  %v751_v37 = vcombine.high %v27_v33, %v27_v33  ;;  %v388_v8 = vld [vmem:[%s1162_s3] sm:$0xf] }
   0xc   :  { %809 = vmatpush3.bf16.msra.mxu0 %v859_v10  ;;  %v876_v27 = vld [vmem:[%s1158_s1 + $0xb0] sm:$0xff]   ;;  %v880_v31 = vld [vmem:[%s1158_s1 + $0xb8] sm:$0xff]   ;;  %330 = vmatprep.mubr.bf16.mxu0 %v749_v35  ;;  %v400_v10 = vsub.s32 2, %v391_v5 }
   0xd   :  { %831 = vmatpush3.bf16.msra.mxu1 %v860_v11  ;;  %810 = vmatprep.subr.bf16.mxu0 %v861_v12  ;;  %v887_v38 = vld [vmem:[%s1160_s2 + $0x4] ss:$16 sps:$4 sm:$0xff]   ;;  %v885_v39 = vld [vmem:[%s1160_s2] ss:$16 sps:$4 sm:$0xff]   ;;  %v888_v40 = vld [vmem:[%s1160_s2 + $0x8] ss:$16 sps:$4 sm:$0xff]  }
   0xe   :  { %832 = vmatprep.subr.bf16.mxu1 %v862_v13  ;;  %370 = vmatprep.mubr.bf16.mxu1 %v751_v37  ;;  %v890_v41 = vld [vmem:[%s1160_s2 + $0xc] ss:$16 sps:$4 sm:$0xff]   ;;  %v893_v42 = vld [vmem:[%s1160_s2 + $0x24] ss:$16 sps:$4 sm:$0xff]   ;;  %v891_v44 = vld [vmem:[%s1160_s2 + $0x20] ss:$16 sps:$4 sm:$0xff]  }
   0xf   :  { %v896_v43 = vld [vmem:[%s1160_s2 + $0x2c] ss:$16 sps:$4 sm:$0xff]   ;;  %v894_v45 = vld [vmem:[%s1160_s2 + $0x28] ss:$16 sps:$4 sm:$0xff]   ;;  %v899_v47 = vld [vmem:[%s1161_s4 + $0x4] ss:$16 sps:$4 sm:$0xff]  }
  0x10   :  { %811 = vmatpush3.bf16.msra.mxu0 %v863_v14  ;;  %v902_v48 = vld [vmem:[%s1161_s4 + $0xc] ss:$16 sps:$4 sm:$0xff]   ;;  %v897_v61 = vld [vmem:[%s1161_s4] ss:$16 sps:$4 sm:$0xff]   ;;  %v900_v62 = vld [vmem:[%s1161_s4 + $0x8] ss:$16 sps:$4 sm:$0xff]  }
  0x11   :  { %833 = vmatpush3.bf16.msra.mxu1 %v864_v15  ;;  %812 = vmatprep.subr.bf16.mxu0 %v865_v16  ;;  %v905_v0 = vld [vmem:[%s1161_s4 + $0x24] ss:$16 sps:$4 sm:$0xff]   ;;  %v908_v1 = vld [vmem:[%s1161_s4 + $0x2c] ss:$16 sps:$4 sm:$0xff]   ;;  %v903_v2 = vld [vmem:[%s1161_s4 + $0x20] ss:$16 sps:$4 sm:$0xff]  }
  0x12   :  { %834 = vmatprep.subr.bf16.mxu1 %v866_v17  ;;  %v906_v3 = vld [vmem:[%s1161_s4 + $0x28] ss:$16 sps:$4 sm:$0xff]   ;;  %v396_v13 = vsub.s32 1, %v391_v5  ;;  %v404_v14 = vsub.s32 3, %v391_v5  ;;  %v544_v17 = vld [vmem:[%s1163_s5] sm:$0xf] }
  0x14   :  { %813 = vmatpush3.bf16.msra.mxu0 %v867_v18 }
  0x15   :  { %835 = vmatpush3.bf16.msra.mxu1 %v868_v19  ;;  %814 = vmatprep.subr.bf16.mxu0 %v869_v20  ;;  %v393_v20 = vrot.slane %v388_v8, %v392_v9 }
  0x16   :  { %836 = vmatprep.subr.bf16.mxu1 %v870_v21  ;;  %v401_v21 = vrot.slane %v388_v8, %v400_v10 }
  0x18   :  { %815 = vmatpush3.bf16.msra.mxu0 %v871_v22  ;;  %v549_v22 = vrot.slane %v544_v17, %v392_v9 }
  0x19   :  { %837 = vmatpush3.bf16.msra.mxu1 %v872_v23  ;;  %816 = vmatprep.subr.bf16.mxu0 %v873_v24  ;;  %v557_v23 = vrot.slane %v544_v17, %v400_v10  ;;  %v397_v24 = vrot.slane %v388_v8, %v396_v13 }
  0x1a   :  { %838 = vmatprep.subr.bf16.mxu1 %v874_v25  ;;  %v405_v25 = vrot.slane %v388_v8, %v404_v14 }
  0x1c   :  { %817 = vmatpush3.bf16.msra.mxu0 %v875_v26  ;;  %v553_v26 = vrot.slane %v544_v17, %v396_v13 }
  0x1d   :  { %839 = vmatpush3.bf16.msra.mxu1 %v876_v27  ;;  %818 = vmatprep.subr.bf16.mxu0 %v877_v28  ;;  %v561_v27 = vrot.slane %v544_v17, %v404_v14 }
  0x1e   :  { %840 = vmatprep.subr.bf16.mxu1 %v878_v29 }
  0x20   :  { %819 = vmatpush3.bf16.msra.mxu0 %v879_v30 }
  0x21   :  { %841 = vmatpush3.bf16.msra.mxu1 %v880_v31  ;;  %454 = vmatprep.subr.bf16.mxu0 %v887_v38 }
  0x22   :  { %495 = vmatprep.subr.bf16.mxu1 %v890_v41 }
  0x23   :  { %331 = vmatmul.mubr.bf16.vlgmr.msra.gmra.mrb[0].mxu0 %v748_v34 }
  0x24   :  { %371 = vmatmul.mubr.bf16.vlgmr.msra.gmra.mrb[0].mxu1 %v750_v36  ;;  %455 = vmatpush1.bf16.msra.mxu0 %v885_v39 }
  0x25   :  { %496 = vmatpush1.bf16.msra.mxu1 %v888_v40  ;;  %456 = vmatprep.subr.bf16.mxu0 %v893_v42 }
  0x26   :  { %497 = vmatprep.subr.bf16.mxu1 %v896_v43  ;;  %486 = vmatprep.mubr.bf16.mxu0 %v933_v46 }
  0x27   :  { %527 = vmatprep.mubr.bf16.mxu1 %v933_v46 }
  0x28   :  { %457 = vmatpush1.bf16.msra.mxu0 %v891_v44 }
  0x29   :  { %498 = vmatpush1.bf16.msra.mxu1 %v894_v45  ;;  %606 = vmatprep.subr.bf16.mxu0 %v899_v47 }
  0x2a   :  { %647 = vmatprep.subr.bf16.mxu1 %v902_v48 }
  0xf6   :  { %v820_v49 = vpop.f32.mrb[0].mxu0 }
  0xf7   :  { %v842_v50 = vpop.f32.mrb[0].mxu1  ;;  %v821_v51 = vpop.f32.mrb[1].mxu0 }
  0xf8   :  { %v843_v52 = vpop.f32.mrb[1].mxu1  ;;  %v822_v53 = vadd.f32 %v821_v51, %v820_v49  ;;  %v823_v55 = vpop.f32.mrb[2].mxu0 }
  0xf9   :  { %v844_v54 = vadd.f32 %v843_v52, %v842_v50  ;;  %v845_v56 = vpop.f32.mrb[2].mxu1  ;;  %v824_v57 = vpop.f32.mrb[3].mxu0 }
  0xfa   :  { %v846_v58 = vpop.f32.mrb[3].mxu1 }
  0xfb   :  { %v373_v59 = vadd.f32 %v844_v54, %v822_v53 }
  0xfd   :  { %v378_v60 = vmax.f32 %v373_v59, 0.0 }
  0xff   :  { %v379_v63 = vpack.c.bf16 %v378_v60, %v378_v60 }
 0x101   :  { %792 = vmatmul.mubr.msk.bf16.vlgmr.msra.gmra.mrb[4].mxu0 %vm450_vm0, %v379_v63  ;;  %793 = vmatmul.mubr.msk.bf16.vlgmr.msra.gmra.mrb[4].mxu1 %vm450_vm0, %v379_v63 }
 0x102   :  { %607 = vmatpush1.bf16.msra.mxu0 %v897_v61  ;;  %648 = vmatpush1.bf16.msra.mxu1 %v900_v62 }
 0x103   :  { %608 = vmatprep.subr.bf16.mxu0 %v905_v0  ;;  %649 = vmatprep.subr.bf16.mxu1 %v908_v1 }
 0x104   :  { %638 = vmatprep.mubr.bf16.mxu0 %v933_v46  ;;  %679 = vmatprep.mubr.bf16.mxu1 %v933_v46 }
 0x106   :  { %609 = vmatpush1.bf16.msra.mxu0 %v903_v2  ;;  %650 = vmatpush1.bf16.msra.mxu1 %v906_v3 }
 0x109   :  { %802 = vmatmul.mubr.msk.bf16.vlgmr.msra.gmra.mrb[8].mxu0 %vm450_vm0, %v379_v63  ;;  %803 = vmatmul.mubr.msk.bf16.vlgmr.msra.gmra.mrb[8].mxu1 %vm450_vm0, %v379_v63 }
 0x1d4   :  { %v488_v6 = vpop.f32.mrb[4].mxu0  ;;  %v529_v7 = vpop.f32.mrb[4].mxu1 }
 0x1d5   :  { %v490_v11 = vpop.f32.mrb[5].mxu0  ;;  %v531_v12 = vpop.f32.mrb[5].mxu1  ;;  %v489_v30 = vadd.f32 %v488_v6, %v393_v20  ;;  %v530_v31 = vadd.f32 %v529_v7, %v401_v21 }
 0x1d6   :  { %v492_v15 = vpop.f32.mrb[6].mxu0  ;;  %v533_v16 = vpop.f32.mrb[6].mxu1  ;;  %v491_v36 = vadd.f32 %v490_v11, %v397_v24  ;;  %v532_v37 = vadd.f32 %v531_v12, %v405_v25 }
 0x1d7   :  { %v493_v18 = vpop.f32.mrb[7].mxu0  ;;  %v534_v19 = vpop.f32.mrb[7].mxu1 }
 0x1dc   :  { %v640_v28 = vpop.f32.mrb[8].mxu0  ;;  %v681_v29 = vpop.f32.mrb[8].mxu1 }
 0x1dd   :  { %v641_v32 = vadd.f32 %v640_v28, %v549_v22  ;;  %v682_v33 = vadd.f32 %v681_v29, %v557_v23  ;;  %v642_v34 = vpop.f32.mrb[9].mxu0  ;;  %v683_v35 = vpop.f32.mrb[9].mxu1 }
 0x1de   :  { %v643_v38 = vadd.f32 %v642_v34, %v553_v26  ;;  %v684_v39 = vadd.f32 %v683_v35, %v561_v27  ;;  %v644_v40 = vpop.f32.mrb[10].mxu0  ;;  %v685_v41 = vpop.f32.mrb[10].mxu1 }
 0x1df   :  { %v688_v42 = vmax.f32 %v489_v30, %v641_v32  ;;  %v690_v43 = vmax.f32 %v530_v31, %v682_v33  ;;  %v645_v44 = vpop.f32.mrb[11].mxu0  ;;  %v686_v45 = vpop.f32.mrb[11].mxu1 }
 0x1e0   :  { %v689_v46 = vmax.f32 %v491_v36, %v643_v38  ;;  %v691_v47 = vmax.f32 %v532_v37, %v684_v39 }
 0x1e1   :  { %v692_v48 = vsub.f32 %v489_v30, %v688_v42  ;;  %v704_v49 = vsub.f32 %v641_v32, %v688_v42  ;;  %v694_v50 = vsub.f32 %v530_v31, %v690_v43  ;;  %v706_v51 = vsub.f32 %v682_v33, %v690_v43 }
 0x1e2   :  { %v693_v52 = vsub.f32 %v491_v36, %v689_v46  ;;  %v705_v53 = vsub.f32 %v643_v38, %v689_v46  ;;  %v695_v54 = vsub.f32 %v532_v37, %v691_v47  ;;  %v707_v55 = vsub.f32 %v684_v39, %v691_v47 }
 0x1e3   :  { %v696_v56 = vmul.f32 1.442695, %v692_v48  ;;  %v708_v57 = vmul.f32 1.442695, %v704_v49  ;;  %v700_v58 = vmul.f32 1.442695, %v694_v50 }
 0x1e4   :  { %v712_v59 = vmul.f32 1.442695, %v706_v51  ;;  %v698_v60 = vmul.f32 1.442695, %v693_v52  ;;  %v710_v61 = vmul.f32 1.442695, %v705_v53 }
 0x1e5   :  { %909 = vpow2.f32 %v696_v56  ;;  %v702_v62 = vmul.f32 1.442695, %v695_v54  ;;  %v714_v63 = vmul.f32 1.442695, %v707_v55 }
 0x1e6   :  { %911 = vpow2.f32 %v708_v57 }
 0x1e7   :  { %913 = vpow2.f32 %v700_v58 }
 0x1e8   :  { %915 = vpow2.f32 %v712_v59 }
 0x1e9   :  { %917 = vpow2.f32 %v698_v60 }
 0x1ea   :  { %919 = vpow2.f32 %v710_v61 }
 0x1eb   :  { %921 = vpow2.f32 %v702_v62 }
 0x1ec   :  { %923 = vpow2.f32 %v714_v63 }
 0x1ef   :  { %v910_v0 = vpop.eup %909 }
 0x1f0   :  { %v912_v1 = vpop.eup %911 }
 0x1f1   :  { %v914_v2 = vpop.eup %913  ;;  %v716_v3 = vadd.f32 %v912_v1, %v910_v0 }
 0x1f2   :  { %v916_v4 = vpop.eup %915 }
 0x1f3   :  { %v918_v5 = vpop.eup %917  ;;  %925 = vrcp.f32 %v716_v3  ;;  %v718_v6 = vadd.f32 %v916_v4, %v914_v2 }
 0x1f4   :  { %v920_v7 = vpop.eup %919 }
 0x1f5   :  { %v922_v8 = vpop.eup %921  ;;  %927 = vrcp.f32 %v718_v6  ;;  %v717_v9 = vadd.f32 %v920_v7, %v918_v5 }
 0x1f6   :  { %v924_v10 = vpop.eup %923 }
 0x1f7   :  { %929 = vrcp.f32 %v717_v9  ;;  %v719_v11 = vadd.f32 %v924_v10, %v922_v8 }
 0x1f9   :  { %931 = vrcp.f32 %v719_v11 }
 0x1fd   :  { %v926_v12 = vpop.eup %925 }
 0x1fe   :  { %v724_v13 = vmul.f32 %v926_v12, %v910_v0  ;;  %v732_v14 = vmul.f32 %v926_v12, %v912_v1 }
 0x1ff   :  { %v928_v15 = vpop.eup %927 }
 0x200   :  { %728 = vst [vmem:[%s1164_s6] sm:$0xff] %v724_v13  ;;  %736 = vst [vmem:[%s1165_s7] sm:$0xff] %v732_v14  ;;  %v726_v16 = vmul.f32 %v928_v15, %v914_v2  ;;  %v734_v17 = vmul.f32 %v928_v15, %v916_v4 }
 0x201   :  { %v930_v18 = vpop.eup %929 }
 0x202   :  { %730 = vst [vmem:[%s1164_s6 + $0x10] sm:$0xff] %v726_v16  ;;  %738 = vst [vmem:[%s1165_s7 + $0x10] sm:$0xff] %v734_v17  ;;  %v725_v19 = vmul.f32 %v930_v18, %v918_v5  ;;  %v733_v20 = vmul.f32 %v930_v18, %v920_v7 }
 0x203   :  { %v932_v21 = vpop.eup %931 }
 0x204   :  { %729 = vst [vmem:[%s1164_s6 + $0x8] sm:$0xff] %v725_v19  ;;  %737 = vst [vmem:[%s1165_s7 + $0x8] sm:$0xff] %v733_v20  ;;  %v727_v22 = vmul.f32 %v932_v21, %v922_v8  ;;  %v735_v23 = vmul.f32 %v932_v21, %v924_v10 }
 0x206   :  { %731 = vst [vmem:[%s1164_s6 + $0x18] sm:$0xff] %v727_v22  ;;  %739 = vst [vmem:[%s1165_s7 + $0x18] sm:$0xff] %v735_v23 }

// kernel: n2_apply.32
= control target key start
LH: loop header
LB: loop body
LE: loop exit
PB: predicated region body
PF: predicated region fallthrough
CT: control target
= control target key end

     0   :  { %s138_s0 = inlined_call_operand.vmem [shape: f32[4,1024], index: 0, kind: input, shape index: {}]   ;;  %s139_s1 = inlined_call_operand.vmem [shape: f32[4,1024], index: 1, kind: input, shape index: {}]   ;;  %s140_s2 = inlined_call_operand.vmem [shape: f32[4,1024], index: 2, kind: input, shape index: {}]   ;;  %s141_s3 = inlined_call_operand.vmem [shape: f32[4,1024], index: 3, kind: input, shape index: {}]   ;;  %s142_s4 = inlined_call_operand.vmem [shape: f32[4,1024], index: 4, kind: output, shape index: {}]  }
   0x1   :  { %v17_v0 = vld [vmem:[%s138_s0] sm:$0xff]  ;;  %v18_v5 = vld [vmem:[%s138_s0 + $0x8] sm:$0xff]  ;;  %v19_v11 = vld [vmem:[%s138_s0 + $0x10] sm:$0xff] }
   0x2   :  { %v21_v1 = vld [vmem:[%s140_s2] sm:$0xff]  ;;  %v22_v6 = vld [vmem:[%s140_s2 + $0x8] sm:$0xff]  ;;  %v23_v13 = vld [vmem:[%s140_s2 + $0x10] sm:$0xff] }
   0x3   :  { %v29_v2 = vld [vmem:[%s139_s1] sm:$0xff]  ;;  %v25_v3 = vmul.f32 %v21_v1, %v17_v0  ;;  %v26_v8 = vmul.f32 %v22_v6, %v18_v5  ;;  %v30_v9 = vld [vmem:[%s139_s1 + $0x8] sm:$0xff]  ;;  %v31_v14 = vld [vmem:[%s139_s1 + $0x10] sm:$0xff]  ;;  %v27_v17 = vmul.f32 %v23_v13, %v19_v11 }
   0x4   :  { %v33_v4 = vld [vmem:[%s141_s3] sm:$0xff]  ;;  %v34_v10 = vld [vmem:[%s141_s3 + $0x8] sm:$0xff]  ;;  %v35_v15 = vld [vmem:[%s141_s3 + $0x10] sm:$0xff] }
   0x5   :  { %v37_v7 = vmul.f32 %v33_v4, %v29_v2  ;;  %v38_v12 = vmul.f32 %v34_v10, %v30_v9  ;;  %v39_v18 = vmul.f32 %v35_v15, %v31_v14  ;;  %v20_v19 = vld [vmem:[%s138_s0 + $0x18] sm:$0xff] }
   0x6   :  { %v24_v20 = vld [vmem:[%s140_s2 + $0x18] sm:$0xff] }
   0x7   :  { %v41_v16 = vadd.f32 %v37_v7, %v25_v3  ;;  %v32_v21 = vld [vmem:[%s139_s1 + $0x18] sm:$0xff]  ;;  %v42_v22 = vadd.f32 %v38_v12, %v26_v8  ;;  %v28_v23 = vmul.f32 %v24_v20, %v20_v19  ;;  %v43_v25 = vadd.f32 %v39_v18, %v27_v17 }
   0x8   :  { %v36_v24 = vld [vmem:[%s141_s3 + $0x18] sm:$0xff] }
   0x9   :  { %45 = vst [vmem:[%s142_s4] sm:$0xff] %v41_v16  ;;  %v40_v26 = vmul.f32 %v36_v24, %v32_v21  ;;  %46 = vst [vmem:[%s142_s4 + $0x8] sm:$0xff] %v42_v22 }
   0xa   :  { %47 = vst [vmem:[%s142_s4 + $0x10] sm:$0xff] %v43_v25 }
   0xb   :  { %v44_v27 = vadd.f32 %v40_v26, %v28_v23 }
   0xd   :  { %48 = vst [vmem:[%s142_s4 + $0x18] sm:$0xff] %v44_v27 }

// kernel: n2_apply.33
= control target key start
LH: loop header
LB: loop body
LE: loop exit
PB: predicated region body
PF: predicated region fallthrough
CT: control target
= control target key end

     0   :  { %vm94_vm0 = vcmask 261120   ;;  %s408_s1 = inlined_call_operand.vmem [shape: bf16[32,128], index: 1, kind: input, shape index: {}]   ;;  %s409_s0 = inlined_call_operand.vmem [shape: bf16[128,32], index: 0, kind: input, shape index: {}]   ;;  %s410_s2 = inlined_call_operand.vmem [shape: f32[1,128], index: 2, kind: input, shape index: {}]   ;;  %s411_s3 = inlined_call_operand.vmem [shape: f32[128,128], index: 3, kind: output, shape index: {}]  }
   0x1   :  { %v289_v0 = vld [vmem:[%s408_s1] sm:$0xff]   ;;  %v290_v1 = vld [vmem:[%s408_s1 + $0x8] sm:$0xff]   ;;  %v295_v6 = vld [vmem:[%s409_s0 + $0x10] sm:$0xff]  }
   0x2   :  { %265 = vmatprep.subr.bf16.mxu0 %v289_v0  ;;  %285 = vmatprep.subr.bf16.mxu1 %v289_v0  ;;  %v291_v2 = vld [vmem:[%s409_s0] sm:$0xff]   ;;  %v293_v4 = vld [vmem:[%s409_s0 + $0x8] sm:$0xff]   ;;  %v296_v7 = vld [vmem:[%s409_s0 + $0x30] sm:$0xff]  }
   0x3   :  { %266 = vmatpush3.bf16.msra.mxu0 %v289_v0  ;;  %287 = vmatpush3.bf16.msra.mxu1 %v289_v0  ;;  %v292_v3 = vld [vmem:[%s409_s0 + $0x20] sm:$0xff]   ;;  %v294_v5 = vld [vmem:[%s409_s0 + $0x28] sm:$0xff]   ;;  %v297_v8 = vld [vmem:[%s409_s0 + $0x18] sm:$0xff]  }
   0x4   :  { %267 = vmatprep.subr.bf16.mxu0 %v290_v1  ;;  %286 = vmatprep.subr.bf16.mxu1 %v290_v1  ;;  %v298_v9 = vld [vmem:[%s409_s0 + $0x38] sm:$0xff]   ;;  %v236_v10 = vld [vmem:[%s410_s2] ss:$0 sm:$0xff] }
   0x5   :  { %269 = vmatprep.mubr.msk.bf16.mxu0 %vm94_vm0, %v291_v2  ;;  %277 = vmatprep.mubr.msk.bf16.mxu1 %vm94_vm0, %v292_v3 }
   0x7   :  { %268 = vmatpush3.bf16.msra.mxu0 %v290_v1  ;;  %288 = vmatpush3.bf16.msra.mxu1 %v290_v1 }
   0xa   :  { %270 = vmatmul.mubr.msk.bf16.vlgmr.msra.gmra.mrb[0].mxu0 %vm94_vm0, %v293_v4  ;;  %278 = vmatmul.mubr.msk.bf16.vlgmr.msra.gmra.mrb[0].mxu1 %vm94_vm0, %v294_v5 }
   0xb   :  { %273 = vmatprep.mubr.msk.bf16.mxu0 %vm94_vm0, %v295_v6  ;;  %281 = vmatprep.mubr.msk.bf16.mxu1 %vm94_vm0, %v296_v7 }
  0x12   :  { %274 = vmatmul.mubr.msk.bf16.gmra.mrb[4].mxu0 %vm94_vm0, %v297_v8  ;;  %282 = vmatmul.mubr.msk.bf16.gmra.mrb[4].mxu1 %vm94_vm0, %v298_v9 }
  0xdd   :  { %v271_v11 = vpop.f32.mrb[0].mxu0  ;;  %v279_v12 = vpop.f32.mrb[0].mxu1 }
  0xde   :  { %v162_v13 = vadd.f32 %v271_v11, %v236_v10  ;;  %v194_v14 = vadd.f32 %v279_v12, %v236_v10  ;;  %v153_v15 = vpop.f32.mrb[1].mxu0  ;;  %v185_v16 = vpop.f32.mrb[1].mxu1 }
  0xdf   :  { %v154_v17 = vadd.f32 %v236_v10, %v153_v15  ;;  %v186_v18 = vadd.f32 %v236_v10, %v185_v16  ;;  %v272_v19 = vpop.f32.mrb[2].mxu0  ;;  %v280_v20 = vpop.f32.mrb[2].mxu1 }
  0xe0   :  { %218 = vst [vmem:[%s411_s3 + $0x10] sm:$0xff] %v162_v13  ;;  %226 = vst [vmem:[%s411_s3 + $0x50] sm:$0xff] %v194_v14  ;;  %v165_v21 = vadd.f32 %v272_v19, %v236_v10  ;;  %v197_v22 = vadd.f32 %v280_v20, %v236_v10  ;;  %v156_v23 = vpop.f32.mrb[3].mxu0  ;;  %v188_v24 = vpop.f32.mrb[3].mxu1 }
  0xe1   :  { %216 = vst [vmem:[%s411_s3] sm:$0xff] %v154_v17  ;;  %224 = vst [vmem:[%s411_s3 + $0x40] sm:$0xff] %v186_v18  ;;  %v157_v25 = vadd.f32 %v236_v10, %v156_v23  ;;  %v189_v26 = vadd.f32 %v236_v10, %v188_v24 }
  0xe2   :  { %219 = vst [vmem:[%s411_s3 + $0x18] sm:$0xff] %v165_v21  ;;  %227 = vst [vmem:[%s411_s3 + $0x58] sm:$0xff] %v197_v22 }
  0xe3   :  { %217 = vst [vmem:[%s411_s3 + $0x8] sm:$0xff] %v157_v25  ;;  %225 = vst [vmem:[%s411_s3 + $0x48] sm:$0xff] %v189_v26 }
  0xe5   :  { %v275_v27 = vpop.f32.mrb[4].mxu0  ;;  %v283_v28 = vpop.f32.mrb[4].mxu1 }
  0xe6   :  { %v178_v29 = vadd.f32 %v275_v27, %v236_v10  ;;  %v210_v30 = vadd.f32 %v283_v28, %v236_v10  ;;  %v169_v31 = vpop.f32.mrb[5].mxu0  ;;  %v201_v32 = vpop.f32.mrb[5].mxu1 }
  0xe7   :  { %v170_v33 = vadd.f32 %v236_v10, %v169_v31  ;;  %v202_v34 = vadd.f32 %v236_v10, %v201_v32  ;;  %v276_v35 = vpop.f32.mrb[6].mxu0  ;;  %v284_v36 = vpop.f32.mrb[6].mxu1 }
  0xe8   :  { %222 = vst [vmem:[%s411_s3 + $0x30] sm:$0xff] %v178_v29  ;;  %230 = vst [vmem:[%s411_s3 + $0x70] sm:$0xff] %v210_v30  ;;  %v181_v37 = vadd.f32 %v276_v35, %v236_v10  ;;  %v213_v38 = vadd.f32 %v284_v36, %v236_v10  ;;  %v172_v39 = vpop.f32.mrb[7].mxu0  ;;  %v204_v40 = vpop.f32.mrb[7].mxu1 }
  0xe9   :  { %220 = vst [vmem:[%s411_s3 + $0x20] sm:$0xff] %v170_v33  ;;  %228 = vst [vmem:[%s411_s3 + $0x60] sm:$0xff] %v202_v34  ;;  %v173_v41 = vadd.f32 %v236_v10, %v172_v39  ;;  %v205_v42 = vadd.f32 %v236_v10, %v204_v40 }
  0xea   :  { %223 = vst [vmem:[%s411_s3 + $0x38] sm:$0xff] %v181_v37  ;;  %231 = vst [vmem:[%s411_s3 + $0x78] sm:$0xff] %v213_v38 }
  0xeb   :  { %221 = vst [vmem:[%s411_s3 + $0x28] sm:$0xff] %v173_v41  ;;  %229 = vst [vmem:[%s411_s3 + $0x68] sm:$0xff] %v205_v42 }

// kernel: n2_apply.34
= control target key start
LH: loop header
LB: loop body
LE: loop exit
PB: predicated region body
PF: predicated region fallthrough
CT: control target
= control target key end

     0   :  { %s484_s1 = inlined_call_operand.vmem [shape: bf16[256,128], index: 1, kind: input, shape index: {}]   ;;  %s485_s0 = inlined_call_operand.vmem [shape: bf16[64,256], index: 0, kind: input, shape index: {}]   ;;  %s486_s2 = inlined_call_operand.vmem [shape: f32[64,128], index: 2, kind: output, shape index: {}]  }
   0x1   :  { %v345_v0 = vld [vmem:[%s484_s1 + $0x40] sm:$0xff]   ;;  %v347_v2 = vld [vmem:[%s484_s1 + $0x48] sm:$0xff]   ;;  %v349_v4 = vld [vmem:[%s484_s1 + $0x50] sm:$0xff]  }
   0x2   :  { %v346_v1 = vld [vmem:[%s484_s1] sm:$0xff]   ;;  %289 = vmatprep.subr.bf16.mxu0 %v345_v0  ;;  %329 = vmatprep.subr.bf16.mxu1 %v345_v0  ;;  %v348_v3 = vld [vmem:[%s484_s1 + $0x8] sm:$0xff]   ;;  %v350_v5 = vld [vmem:[%s484_s1 + $0x10] sm:$0xff]  }
   0x3   :  { %290 = vmatpush3.bf16.msra.mxu0 %v346_v1  ;;  %337 = vmatpush3.bf16.msra.mxu1 %v346_v1  ;;  %v351_v6 = vld [vmem:[%s484_s1 + $0x58] sm:$0xff]   ;;  %v353_v8 = vld [vmem:[%s484_s1 + $0x60] sm:$0xff]   ;;  %v355_v10 = vld [vmem:[%s484_s1 + $0x68] sm:$0xff]  }
   0x4   :  { %291 = vmatprep.subr.bf16.mxu0 %v347_v2  ;;  %330 = vmatprep.subr.bf16.mxu1 %v347_v2  ;;  %v352_v7 = vld [vmem:[%s484_s1 + $0x18] sm:$0xff]   ;;  %v354_v9 = vld [vmem:[%s484_s1 + $0x20] sm:$0xff]   ;;  %v356_v13 = vld [vmem:[%s484_s1 + $0x28] sm:$0xff]  }
   0x5   :  { %v363_v11 = vld [vmem:[%s485_s0 + $0x4] ss:$8 sps:$4 sm:$0xff]   ;;  %v357_v14 = vld [vmem:[%s484_s1 + $0x70] sm:$0xff]   ;;  %v359_v16 = vld [vmem:[%s484_s1 + $0x78] sm:$0xff]  }
   0x6   :  { %v366_v12 = vld [vmem:[%s485_s0 + $0x24] ss:$8 sps:$4 sm:$0xff]   ;;  %220 = vmatprep.mubr.bf16.mxu0 %v363_v11  ;;  %v358_v15 = vld [vmem:[%s484_s1 + $0x30] sm:$0xff]   ;;  %v360_v17 = vld [vmem:[%s484_s1 + $0x38] sm:$0xff]  }
   0x7   :  { %292 = vmatpush3.bf16.msra.mxu0 %v348_v3  ;;  %338 = vmatpush3.bf16.msra.mxu1 %v348_v3  ;;  %v361_v18 = vld [vmem:[%s485_s0] ss:$8 sps:$4 sm:$0xff]   ;;  %v367_v20 = vld [vmem:[%s485_s0 + $0x14] ss:$8 sps:$4 sm:$0xff]   ;;  %v371_v22 = vld [vmem:[%s485_s0 + $0x10] ss:$8 sps:$4 sm:$0xff]  }
   0x8   :  { %293 = vmatprep.subr.bf16.mxu0 %v349_v4  ;;  %331 = vmatprep.subr.bf16.mxu1 %v349_v4  ;;  %v364_v19 = vld [vmem:[%s485_s0 + $0x20] ss:$8 sps:$4 sm:$0xff]   ;;  %v369_v21 = vld [vmem:[%s485_s0 + $0x34] ss:$8 sps:$4 sm:$0xff]   ;;  %v372_v23 = vld [vmem:[%s485_s0 + $0x30] ss:$8 sps:$4 sm:$0xff]  }
   0x9   :  { %236 = vmatprep.mubr.bf16.mxu1 %v366_v12 }
   0xb   :  { %294 = vmatpush3.bf16.msra.mxu0 %v350_v5  ;;  %339 = vmatpush3.bf16.msra.mxu1 %v350_v5 }
   0xc   :  { %295 = vmatprep.subr.bf16.mxu0 %v351_v6  ;;  %332 = vmatprep.subr.bf16.mxu1 %v351_v6 }
   0xf   :  { %296 = vmatpush3.bf16.msra.mxu0 %v352_v7  ;;  %340 = vmatpush3.bf16.msra.mxu1 %v352_v7 }
  0x10   :  { %297 = vmatprep.subr.bf16.mxu0 %v353_v8  ;;  %333 = vmatprep.subr.bf16.mxu1 %v353_v8 }
  0x13   :  { %298 = vmatpush3.bf16.msra.mxu0 %v354_v9  ;;  %341 = vmatpush3.bf16.msra.mxu1 %v354_v9 }
  0x14   :  { %299 = vmatprep.subr.bf16.mxu0 %v355_v10  ;;  %334 = vmatprep.subr.bf16.mxu1 %v355_v10 }
  0x17   :  { %300 = vmatpush3.bf16.msra.mxu0 %v356_v13  ;;  %342 = vmatpush3.bf16.msra.mxu1 %v356_v13 }
  0x18   :  { %301 = vmatprep.subr.bf16.mxu0 %v357_v14  ;;  %335 = vmatprep.subr.bf16.mxu1 %v357_v14 }
  0x1b   :  { %302 = vmatpush3.bf16.msra.mxu0 %v358_v15  ;;  %343 = vmatpush3.bf16.msra.mxu1 %v358_v15 }
  0x1c   :  { %303 = vmatprep.subr.bf16.mxu0 %v359_v16  ;;  %336 = vmatprep.subr.bf16.mxu1 %v359_v16 }
  0x1f   :  { %304 = vmatpush3.bf16.msra.mxu0 %v360_v17  ;;  %344 = vmatpush3.bf16.msra.mxu1 %v360_v17 }
  0x22   :  { %221 = vmatmul.mubr.bf16.vlgmr.msra.gmra.mrb[0].mxu0 %v361_v18  ;;  %237 = vmatmul.mubr.bf16.vlgmr.msra.gmra.mrb[0].mxu1 %v364_v19 }
  0x23   :  { %228 = vmatprep.mubr.bf16.mxu0 %v367_v20  ;;  %244 = vmatprep.mubr.bf16.mxu1 %v369_v21 }
  0x2a   :  { %229 = vmatmul.mubr.bf16.gmra.mrb[4].mxu0 %v371_v22  ;;  %245 = vmatmul.mubr.bf16.gmra.mrb[4].mxu1 %v372_v23 }
  0xf5   :  { %v305_v24 = vpop.f32.mrb[0].mxu0  ;;  %v317_v25 = vpop.f32.mrb[0].mxu1 }
  0xf6   :  { %v306_v26 = vpop.f32.mrb[1].mxu0  ;;  %v318_v27 = vpop.f32.mrb[1].mxu1 }
  0xf7   :  { %v307_v28 = vadd.f32 %v306_v26, %v305_v24  ;;  %v319_v29 = vadd.f32 %v318_v27, %v317_v25  ;;  %v308_v30 = vpop.f32.mrb[2].mxu0  ;;  %v320_v31 = vpop.f32.mrb[2].mxu1 }
  0xf8   :  { %v309_v32 = vpop.f32.mrb[3].mxu0  ;;  %v321_v33 = vpop.f32.mrb[3].mxu1 }
  0xf9   :  { %253 = vst [vmem:[%s486_s2] sm:$0xff] %v307_v28  ;;  %257 = vst [vmem:[%s486_s2 + $0x20] sm:$0xff] %v319_v29  ;;  %v310_v34 = vadd.f32 %v309_v32, %v308_v30  ;;  %v322_v35 = vadd.f32 %v321_v33, %v320_v31 }
  0xfb   :  { %254 = vst [vmem:[%s486_s2 + $0x8] sm:$0xff] %v310_v34  ;;  %258 = vst [vmem:[%s486_s2 + $0x28] sm:$0xff] %v322_v35 }
  0xfd   :  { %v311_v36 = vpop.f32.mrb[4].mxu0  ;;  %v323_v37 = vpop.f32.mrb[4].mxu1 }
  0xfe   :  { %v312_v38 = vpop.f32.mrb[5].mxu0  ;;  %v324_v39 = vpop.f32.mrb[5].mxu1 }
  0xff   :  { %v313_v40 = vadd.f32 %v312_v38, %v311_v36  ;;  %v325_v41 = vadd.f32 %v324_v39, %v323_v37  ;;  %v314_v42 = vpop.f32.mrb[6].mxu0  ;;  %v326_v43 = vpop.f32.mrb[6].mxu1 }
 0x100   :  { %v315_v44 = vpop.f32.mrb[7].mxu0  ;;  %v327_v45 = vpop.f32.mrb[7].mxu1 }
 0x101   :  { %255 = vst [vmem:[%s486_s2 + $0x10] sm:$0xff] %v313_v40  ;;  %259 = vst [vmem:[%s486_s2 + $0x30] sm:$0xff] %v325_v41  ;;  %v316_v46 = vadd.f32 %v315_v44, %v314_v42  ;;  %v328_v47 = vadd.f32 %v327_v45, %v326_v43 }
 0x103   :  { %256 = vst [vmem:[%s486_s2 + $0x18] sm:$0xff] %v316_v46  ;;  %260 = vst [vmem:[%s486_s2 + $0x38] sm:$0xff] %v328_v47 }

// kernel: n2_apply.35
= control target key start
LH: loop header
LB: loop body
LE: loop exit
PB: predicated region body
PF: predicated region fallthrough
CT: control target
= control target key end

     0   :  { %v304_v1 = vmov 0   ;;  %vm122_vm0 = vcmask 523264   ;;  %s422_s1 = inlined_call_operand.vmem [shape: bf16[64,512], index: 1, kind: input, shape index: {}]   ;;  %s423_s0 = inlined_call_operand.vmem [shape: bf16[32,64], index: 0, kind: input, shape index: {}]   ;;  %s424_s2 = inlined_call_operand.vmem [shape: f32[32,512], index: 2, kind: output, shape index: {}]  }
   0x1   :  { %v278_v0 = vld [vmem:[%s422_s1 + $0x4] ss:$16 sps:$4 sm:$0xff]   ;;  %161 = vmatprep.mubr.bf16.mxu0 %v304_v1  ;;  %214 = vmatprep.mubr.bf16.mxu1 %v304_v1  ;;  %v280_v2 = vld [vmem:[%s422_s1 + $0xc] ss:$16 sps:$4 sm:$0xff]   ;;  %v282_v3 = vld [vmem:[%s422_s1] ss:$16 sps:$4 sm:$0xff]  }
   0x2   :  { %129 = vmatprep.subr.bf16.mxu0 %v278_v0  ;;  %v283_v4 = vld [vmem:[%s422_s1 + $0x8] ss:$16 sps:$4 sm:$0xff]   ;;  %182 = vmatprep.subr.bf16.mxu1 %v280_v2  ;;  %v284_v5 = vld [vmem:[%s422_s1 + $0x24] ss:$16 sps:$4 sm:$0xff]   ;;  %v286_v6 = vld [vmem:[%s422_s1 + $0x2c] ss:$16 sps:$4 sm:$0xff]  }
   0x3   :  { %130 = vmatpush1.bf16.msra.mxu0 %v282_v3  ;;  %183 = vmatpush1.bf16.msra.mxu1 %v283_v4  ;;  %v288_v7 = vld [vmem:[%s422_s1 + $0x20] ss:$16 sps:$4 sm:$0xff]   ;;  %v289_v8 = vld [vmem:[%s422_s1 + $0x28] ss:$16 sps:$4 sm:$0xff]   ;;  %v290_v9 = vld [vmem:[%s422_s1 + $0x44] ss:$16 sps:$4 sm:$0xff]  }
   0x4   :  { %131 = vmatprep.subr.bf16.mxu0 %v284_v5  ;;  %184 = vmatprep.subr.bf16.mxu1 %v286_v6  ;;  %v292_v10 = vld [vmem:[%s422_s1 + $0x4c] ss:$16 sps:$4 sm:$0xff]   ;;  %v294_v11 = vld [vmem:[%s422_s1 + $0x40] ss:$16 sps:$4 sm:$0xff]   ;;  %v295_v12 = vld [vmem:[%s422_s1 + $0x48] ss:$16 sps:$4 sm:$0xff]  }
   0x5   :  { %v296_v13 = vld [vmem:[%s422_s1 + $0x64] ss:$16 sps:$4 sm:$0xff]   ;;  %v298_v14 = vld [vmem:[%s422_s1 + $0x6c] ss:$16 sps:$4 sm:$0xff]   ;;  %v300_v15 = vld [vmem:[%s422_s1 + $0x60] ss:$16 sps:$4 sm:$0xff]  }
   0x6   :  { %v301_v16 = vld [vmem:[%s422_s1 + $0x68] ss:$16 sps:$4 sm:$0xff]   ;;  %v302_v17 = vld [vmem:[%s423_s0] sm:$0xff]  }
   0x7   :  { %132 = vmatpush1.bf16.msra.mxu0 %v288_v7  ;;  %185 = vmatpush1.bf16.msra.mxu1 %v289_v8  ;;  %v303_v18 = vld [vmem:[%s423_s0 + $0x8] sm:$0xff]  }
   0x8   :  { %133 = vmatprep.subr.bf16.mxu0 %v290_v9  ;;  %186 = vmatprep.subr.bf16.mxu1 %v292_v10 }
   0xb   :  { %134 = vmatpush1.bf16.msra.mxu0 %v294_v11  ;;  %187 = vmatpush1.bf16.msra.mxu1 %v295_v12 }
   0xc   :  { %135 = vmatprep.subr.bf16.mxu0 %v296_v13  ;;  %188 = vmatprep.subr.bf16.mxu1 %v298_v14 }
   0xf   :  { %136 = vmatpush1.bf16.msra.mxu0 %v300_v15  ;;  %189 = vmatpush1.bf16.msra.mxu1 %v301_v16 }
  0x12   :  { %273 = vmatmul.mubr.msk.bf16.vlgmr.msra.gmra.mrb[0].mxu0 %vm122_vm0, %v302_v17  ;;  %275 = vmatmul.mubr.msk.bf16.vlgmr.msra.gmra.mrb[0].mxu1 %vm122_vm0, %v302_v17 }
  0x13   :  { %171 = vmatprep.mubr.bf16.mxu0 %v304_v1  ;;  %224 = vmatprep.mubr.bf16.mxu1 %v304_v1 }
  0x1a   :  { %274 = vmatmul.mubr.msk.bf16.gmra.mrb[4].mxu0 %vm122_vm0, %v303_v18  ;;  %276 = vmatmul.mubr.msk.bf16.gmra.mrb[4].mxu1 %vm122_vm0, %v303_v18 }
  0xe5   :  { %v163_v19 = vpop.f32.mrb[0].mxu0  ;;  %v216_v20 = vpop.f32.mrb[0].mxu1 }
  0xe6   :  { %235 = vst [vmem:[%s424_s2] sm:$0xff] %v163_v19  ;;  %237 = vst [vmem:[%s424_s2 + $0x10] sm:$0xff] %v216_v20  ;;  %v165_v21 = vpop.f32.mrb[1].mxu0  ;;  %v218_v22 = vpop.f32.mrb[1].mxu1 }
  0xe7   :  { %236 = vst [vmem:[%s424_s2 + $0x8] sm:$0xff] %v165_v21  ;;  %238 = vst [vmem:[%s424_s2 + $0x18] sm:$0xff] %v218_v22  ;;  %v167_v23 = vpop.f32.mrb[2].mxu0  ;;  %v220_v24 = vpop.f32.mrb[2].mxu1 }
  0xe8   :  { %239 = vst [vmem:[%s424_s2 + $0x20] sm:$0xff] %v167_v23  ;;  %241 = vst [vmem:[%s424_s2 + $0x30] sm:$0xff] %v220_v24  ;;  %v169_v25 = vpop.f32.mrb[3].mxu0  ;;  %v222_v26 = vpop.f32.mrb[3].mxu1 }
  0xe9   :  { %240 = vst [vmem:[%s424_s2 + $0x28] sm:$0xff] %v169_v25  ;;  %242 = vst [vmem:[%s424_s2 + $0x38] sm:$0xff] %v222_v26 }
  0xed   :  { %v173_v27 = vpop.f32.mrb[4].mxu0  ;;  %v226_v28 = vpop.f32.mrb[4].mxu1 }
  0xee   :  { %243 = vst [vmem:[%s424_s2 + $0x40] sm:$0xff] %v173_v27  ;;  %245 = vst [vmem:[%s424_s2 + $0x50] sm:$0xff] %v226_v28  ;;  %v175_v29 = vpop.f32.mrb[5].mxu0  ;;  %v228_v30 = vpop.f32.mrb[5].mxu1 }
  0xef   :  { %244 = vst [vmem:[%s424_s2 + $0x48] sm:$0xff] %v175_v29  ;;  %246 = vst [vmem:[%s424_s2 + $0x58] sm:$0xff] %v228_v30  ;;  %v177_v31 = vpop.f32.mrb[6].mxu0  ;;  %v230_v32 = vpop.f32.mrb[6].mxu1 }
  0xf0   :  { %247 = vst [vmem:[%s424_s2 + $0x60] sm:$0xff] %v177_v31  ;;  %249 = vst [vmem:[%s424_s2 + $0x70] sm:$0xff] %v230_v32  ;;  %v179_v33 = vpop.f32.mrb[7].mxu0  ;;  %v232_v34 = vpop.f32.mrb[7].mxu1 }
  0xf1   :  { %248 = vst [vmem:[%s424_s2 + $0x68] sm:$0xff] %v179_v33  ;;  %250 = vst [vmem:[%s424_s2 + $0x78] sm:$0xff] %v232_v34 }

// kernel: n2_apply.37
= control target key start
LH: loop header
LB: loop body
LE: loop exit
PB: predicated region body
PF: predicated region fallthrough
CT: control target
= control target key end

     0   :  { %s951_s0 = inlined_call_operand.vmem [shape: f32[128,256], index: 0, kind: input, shape index: {}]   ;;  %s952_s1 = inlined_call_operand.vmem [shape: f32[128,256], index: 1, kind: output, shape index: {}]  }
   0x1   :  { %v474_v0 = vld [vmem:[%s951_s0] sm:$0xff]  ;;  %v479_v1 = vld [vmem:[%s951_s0 + $0x8] sm:$0xff]  ;;  %v496_v5 = vld [vmem:[%s951_s0 + $0x10] sm:$0xff] }
   0x2   :  { %v484_v2 = vld [vmem:[%s951_s0 + $0x20] sm:$0xff]  ;;  %v40_v3 = vadd.f32 %v479_v1, %v474_v0  ;;  %v491_v4 = vld [vmem:[%s951_s0 + $0x28] sm:$0xff]  ;;  %v501_v6 = vld [vmem:[%s951_s0 + $0x18] sm:$0xff] }
   0x3   :  { %v46_v7 = vadd.f32 %v491_v4, %v484_v2  ;;  %v508_v8 = vld [vmem:[%s951_s0 + $0x30] sm:$0xff]  ;;  %v513_v9 = vld [vmem:[%s951_s0 + $0x38] sm:$0xff]  ;;  %v43_v10 = vadd.f32 %v501_v6, %v496_v5  ;;  %v522_v12 = vld [vmem:[%s951_s0 + $0x40] sm:$0xff] }
   0x4   :  { %41 = vadd.xlane.f32.xlu0 %v40_v3  ;;  %v49_v11 = vadd.f32 %v513_v9, %v508_v8  ;;  %v527_v13 = vld [vmem:[%s951_s0 + $0x48] sm:$0xff]  ;;  %v532_v14 = vld [vmem:[%s951_s0 + $0x50] sm:$0xff]  ;;  %v537_v15 = vld [vmem:[%s951_s0 + $0x58] sm:$0xff] }
   0x5   :  { %47 = vadd.xlane.f32.xlu1 %v46_v7  ;;  %v52_v16 = vadd.f32 %v527_v13, %v522_v12  ;;  %v55_v17 = vadd.f32 %v537_v15, %v532_v14  ;;  %v546_v18 = vld [vmem:[%s951_s0 + $0x60] sm:$0xff]  ;;  %v551_v19 = vld [vmem:[%s951_s0 + $0x68] sm:$0xff]  ;;  %v556_v20 = vld [vmem:[%s951_s0 + $0x70] sm:$0xff] }
   0x6   :  { %v561_v21 = vld [vmem:[%s951_s0 + $0x78] sm:$0xff]  ;;  %v58_v22 = vadd.f32 %v551_v19, %v546_v18  ;;  %v570_v24 = vld [vmem:[%s951_s0 + $0x80] sm:$0xff]  ;;  %v575_v25 = vld [vmem:[%s951_s0 + $0x88] sm:$0xff] }
   0x7   :  { %v61_v23 = vadd.f32 %v561_v21, %v556_v20  ;;  %v580_v26 = vld [vmem:[%s951_s0 + $0x90] sm:$0xff]  ;;  %v585_v27 = vld [vmem:[%s951_s0 + $0x98] sm:$0xff]  ;;  %v64_v28 = vadd.f32 %v575_v25, %v570_v24  ;;  %v594_v30 = vld [vmem:[%s951_s0 + $0xa0] sm:$0xff] }
   0x8   :  { %44 = vadd.xlane.f32.xlu0 %v43_v10  ;;  %v67_v29 = vadd.f32 %v585_v27, %v580_v26  ;;  %v599_v31 = vld [vmem:[%s951_s0 + $0xa8] sm:$0xff]  ;;  %v604_v32 = vld [vmem:[%s951_s0 + $0xb0] sm:$0xff]  ;;  %v609_v33 = vld [vmem:[%s951_s0 + $0xb8] sm:$0xff] }
   0x9   :  { %50 = vadd.xlane.f32.xlu1 %v49_v11  ;;  %v70_v34 = vadd.f32 %v599_v31, %v594_v30  ;;  %v73_v35 = vadd.f32 %v609_v33, %v604_v32  ;;  %v618_v36 = vld [vmem:[%s951_s0 + $0xc0] sm:$0xff]  ;;  %v623_v37 = vld [vmem:[%s951_s0 + $0xc8] sm:$0xff]  ;;  %v628_v38 = vld [vmem:[%s951_s0 + $0xd0] sm:$0xff] }
   0xa   :  { %v633_v39 = vld [vmem:[%s951_s0 + $0xd8] sm:$0xff]  ;;  %v76_v40 = vadd.f32 %v623_v37, %v618_v36  ;;  %v642_v42 = vld [vmem:[%s951_s0 + $0xe0] sm:$0xff]  ;;  %v647_v43 = vld [vmem:[%s951_s0 + $0xe8] sm:$0xff] }
   0xb   :  { %v79_v41 = vadd.f32 %v633_v39, %v628_v38  ;;  %v652_v44 = vld [vmem:[%s951_s0 + $0xf0] sm:$0xff]  ;;  %v657_v45 = vld [vmem:[%s951_s0 + $0xf8] sm:$0xff]  ;;  %v82_v46 = vadd.f32 %v647_v43, %v642_v42 }
   0xc   :  { %53 = vadd.xlane.f32.xlu0 %v52_v16  ;;  %v85_v47 = vadd.f32 %v657_v45, %v652_v44 }
   0xd   :  { %56 = vadd.xlane.f32.xlu1 %v55_v17 }
  0x10   :  { %59 = vadd.xlane.f32.xlu0 %v58_v22 }
  0x11   :  { %62 = vadd.xlane.f32.xlu1 %v61_v23 }
  0x14   :  { %65 = vadd.xlane.f32.xlu0 %v64_v28 }
  0x15   :  { %68 = vadd.xlane.f32.xlu1 %v67_v29 }
  0x18   :  { %71 = vadd.xlane.f32.xlu0 %v70_v34 }
  0x19   :  { %74 = vadd.xlane.f32.xlu1 %v73_v35 }
  0x1c   :  { %77 = vadd.xlane.f32.xlu0 %v76_v40 }
  0x1d   :  { %80 = vadd.xlane.f32.xlu1 %v79_v41 }
  0x20   :  { %83 = vadd.xlane.f32.xlu0 %v82_v46 }
  0x21   :  { %86 = vadd.xlane.f32.xlu1 %v85_v47 }
  0x91   :  { %v42_v48 = vpop.xlane.xlu0 %41 }
  0x92   :  { %v89_v49 = vmul.f32 0.00390625, %v42_v48  ;;  %v48_v50 = vpop.xlane.xlu1 %47 }
  0x93   :  { %v91_v51 = vmul.f32 0.00390625, %v48_v50 }
  0x94   :  { %v664_v52 = vsub.f32 %v474_v0, %v89_v49  ;;  %v667_v53 = vsub.f32 %v479_v1, %v89_v49 }
  0x95   :  { %v670_v54 = vsub.f32 %v484_v2, %v91_v51  ;;  %v673_v55 = vsub.f32 %v491_v4, %v91_v51  ;;  %v45_v56 = vpop.xlane.xlu0 %44 }
  0x96   :  { %v90_v57 = vmul.f32 0.00390625, %v45_v56  ;;  %v51_v58 = vpop.xlane.xlu1 %50  ;;  %v137_v59 = vmul.f32 %v664_v52, %v664_v52  ;;  %v138_v60 = vmul.f32 %v667_v53, %v667_v53 }
  0x97   :  { %v92_v61 = vmul.f32 0.00390625, %v51_v58  ;;  %v141_v62 = vmul.f32 %v670_v54, %v670_v54  ;;  %v142_v63 = vmul.f32 %v673_v55, %v673_v55 }
  0x98   :  { %v684_v0 = vsub.f32 %v496_v5, %v90_v57  ;;  %v687_v1 = vsub.f32 %v501_v6, %v90_v57  ;;  %v169_v2 = vadd.f32 %v138_v60, %v137_v59 }
  0x99   :  { %v690_v3 = vsub.f32 %v508_v8, %v92_v61  ;;  %v693_v4 = vsub.f32 %v513_v9, %v92_v61  ;;  %v54_v7 = vpop.xlane.xlu0 %53  ;;  %v175_v16 = vadd.f32 %v142_v63, %v141_v62 }
  0x9a   :  { %v93_v10 = vmul.f32 0.00390625, %v54_v7  ;;  %170 = vadd.xlane.f32.xlu0 %v169_v2  ;;  %v57_v11 = vpop.xlane.xlu1 %56  ;;  %v139_v17 = vmul.f32 %v684_v0, %v684_v0  ;;  %v140_v5 = vmul.f32 %v687_v1, %v687_v1 }
  0x9b   :  { %v94_v6 = vmul.f32 0.00390625, %v57_v11  ;;  %v143_v22 = vmul.f32 %v690_v3, %v690_v3  ;;  %v144_v8 = vmul.f32 %v693_v4, %v693_v4 }
  0x9c   :  { %v704_v9 = vsub.f32 %v522_v12, %v93_v10  ;;  %v707_v23 = vsub.f32 %v527_v13, %v93_v10  ;;  %v172_v28 = vadd.f32 %v140_v5, %v139_v17 }
  0x9d   :  { %v710_v29 = vsub.f32 %v532_v14, %v94_v6  ;;  %v713_v34 = vsub.f32 %v537_v15, %v94_v6  ;;  %v60_v35 = vpop.xlane.xlu0 %59  ;;  %v178_v46 = vadd.f32 %v144_v8, %v143_v22 }
  0x9e   :  { %v95_v40 = vmul.f32 0.00390625, %v60_v35  ;;  %176 = vadd.xlane.f32.xlu0 %v175_v16  ;;  %173 = vadd.xlane.f32.xlu1 %v172_v28  ;;  %v63_v41 = vpop.xlane.xlu1 %62  ;;  %v145_v12 = vmul.f32 %v704_v9, %v704_v9  ;;  %v146_v13 = vmul.f32 %v707_v23, %v707_v23 }
  0x9f   :  { %v96_v47 = vmul.f32 0.00390625, %v63_v41  ;;  %v147_v14 = vmul.f32 %v710_v29, %v710_v29  ;;  %v148_v15 = vmul.f32 %v713_v34, %v713_v34 }
  0xa0   :  { %v724_v48 = vsub.f32 %v546_v18, %v95_v40  ;;  %v727_v49 = vsub.f32 %v551_v19, %v95_v40  ;;  %v181_v50 = vadd.f32 %v146_v13, %v145_v12 }
  0xa1   :  { %v730_v51 = vsub.f32 %v556_v20, %v96_v47  ;;  %v733_v56 = vsub.f32 %v561_v21, %v96_v47  ;;  %v66_v57 = vpop.xlane.xlu0 %65  ;;  %v184_v60 = vadd.f32 %v148_v15, %v147_v14 }
  0xa2   :  { %v97_v58 = vmul.f32 0.00390625, %v66_v57  ;;  %179 = vadd.xlane.f32.xlu1 %v178_v46  ;;  %182 = vadd.xlane.f32.xlu0 %v181_v50  ;;  %v69_v59 = vpop.xlane.xlu1 %68  ;;  %v149_v18 = vmul.f32 %v724_v48, %v724_v48  ;;  %v150_v19 = vmul.f32 %v727_v49, %v727_v49 }
  0xa3   :  { %v98_v61 = vmul.f32 0.00390625, %v69_v59  ;;  %v151_v20 = vmul.f32 %v730_v51, %v730_v51  ;;  %v152_v21 = vmul.f32 %v733_v56, %v733_v56 }
  0xa4   :  { %v744_v62 = vsub.f32 %v570_v24, %v97_v58  ;;  %v747_v63 = vsub.f32 %v575_v25, %v97_v58  ;;  %v187_v2 = vadd.f32 %v150_v19, %v149_v18 }
  0xa5   :  { %v750_v7 = vsub.f32 %v580_v26, %v98_v61  ;;  %v753_v10 = vsub.f32 %v585_v27, %v98_v61  ;;  %v72_v11 = vpop.xlane.xlu0 %71  ;;  %v190_v5 = vadd.f32 %v152_v21, %v151_v20 }
  0xa6   :  { %v99_v16 = vmul.f32 0.00390625, %v72_v11  ;;  %185 = vadd.xlane.f32.xlu1 %v184_v60  ;;  %188 = vadd.xlane.f32.xlu0 %v187_v2  ;;  %v75_v17 = vpop.xlane.xlu1 %74  ;;  %v153_v24 = vmul.f32 %v744_v62, %v744_v62  ;;  %v154_v25 = vmul.f32 %v747_v63, %v747_v63 }
  0xa7   :  { %v100_v6 = vmul.f32 0.00390625, %v75_v17  ;;  %v155_v26 = vmul.f32 %v750_v7, %v750_v7  ;;  %v156_v27 = vmul.f32 %v753_v10, %v753_v10 }
  0xa8   :  { %v764_v22 = vsub.f32 %v594_v30, %v99_v16  ;;  %v767_v8 = vsub.f32 %v599_v31, %v99_v16  ;;  %v193_v28 = vadd.f32 %v154_v25, %v153_v24 }
  0xa9   :  { %v770_v35 = vsub.f32 %v604_v32, %v100_v6  ;;  %v773_v40 = vsub.f32 %v609_v33, %v100_v6  ;;  %v78_v41 = vpop.xlane.xlu0 %77  ;;  %v196_v13 = vadd.f32 %v156_v27, %v155_v26 }
  0xaa   :  { %v101_v46 = vmul.f32 0.00390625, %v78_v41  ;;  %191 = vadd.xlane.f32.xlu1 %v190_v5  ;;  %194 = vadd.xlane.f32.xlu0 %v193_v28  ;;  %v81_v12 = vpop.xlane.xlu1 %80  ;;  %v157_v30 = vmul.f32 %v764_v22, %v764_v22  ;;  %v158_v31 = vmul.f32 %v767_v8, %v767_v8 }
  0xab   :  { %v102_v47 = vmul.f32 0.00390625, %v81_v12  ;;  %v159_v32 = vmul.f32 %v770_v35, %v770_v35  ;;  %v160_v33 = vmul.f32 %v773_v40, %v773_v40 }
  0xac   :  { %v784_v14 = vsub.f32 %v618_v36, %v101_v46  ;;  %v787_v15 = vsub.f32 %v623_v37, %v101_v46  ;;  %v199_v50 = vadd.f32 %v158_v31, %v157_v30 }
  0xad   :  { %v790_v57 = vsub.f32 %v628_v38, %v102_v47  ;;  %v793_v58 = vsub.f32 %v633_v39, %v102_v47  ;;  %v84_v59 = vpop.xlane.xlu0 %83  ;;  %v202_v19 = vadd.f32 %v160_v33, %v159_v32 }
  0xae   :  { %v103_v60 = vmul.f32 0.00390625, %v84_v59  ;;  %197 = vadd.xlane.f32.xlu1 %v196_v13  ;;  %200 = vadd.xlane.f32.xlu0 %v199_v50  ;;  %v87_v18 = vpop.xlane.xlu1 %86  ;;  %v161_v36 = vmul.f32 %v784_v14, %v784_v14  ;;  %v162_v37 = vmul.f32 %v787_v15, %v787_v15 }
  0xaf   :  { %v104_v61 = vmul.f32 0.00390625, %v87_v18  ;;  %v163_v38 = vmul.f32 %v790_v57, %v790_v57  ;;  %v164_v39 = vmul.f32 %v793_v58, %v793_v58 }
  0xb0   :  { %v804_v20 = vsub.f32 %v642_v42, %v103_v60  ;;  %v807_v21 = vsub.f32 %v647_v43, %v103_v60  ;;  %v205_v2 = vadd.f32 %v162_v37, %v161_v36 }
  0xb1   :  { %v810_v11 = vsub.f32 %v652_v44, %v104_v61  ;;  %v813_v16 = vsub.f32 %v657_v45, %v104_v61  ;;  %v208_v17 = vadd.f32 %v164_v39, %v163_v38 }
  0xb2   :  { %203 = vadd.xlane.f32.xlu1 %v202_v19  ;;  %206 = vadd.xlane.f32.xlu0 %v205_v2  ;;  %v165_v5 = vmul.f32 %v804_v20, %v804_v20  ;;  %v166_v42 = vmul.f32 %v807_v21, %v807_v21 }
  0xb3   :  { %v167_v43 = vmul.f32 %v810_v11, %v810_v11  ;;  %v168_v24 = vmul.f32 %v813_v16, %v813_v16 }
  0xb4   :  { %v211_v44 = vadd.f32 %v166_v42, %v165_v5 }
  0xb5   :  { %v214_v45 = vadd.f32 %v168_v24, %v167_v43 }
  0xb6   :  { %209 = vadd.xlane.f32.xlu1 %v208_v17  ;;  %212 = vadd.xlane.f32.xlu0 %v211_v44 }
  0xba   :  { %215 = vadd.xlane.f32.xlu1 %v214_v45 }
 0x127   :  { %v171_v25 = vpop.xlane.xlu0 %170 }
 0x128   :  { %v217_v6 = vmul.f32 0.00390625, %v171_v25 }
 0x12a   :  { %v233_v26 = vadd.f32 1e-05, %v217_v6 }
 0x12b   :  { %v174_v27 = vpop.xlane.xlu1 %173  ;;  %v177_v28 = vpop.xlane.xlu0 %176 }
 0x12c   :  { %429 = vrsqrt.f32 %v233_v26  ;;  %v218_v41 = vmul.f32 0.00390625, %v174_v27  ;;  %v219_v46 = vmul.f32 0.00390625, %v177_v28 }
 0x12e   :  { %v234_v12 = vadd.f32 1e-05, %v218_v41  ;;  %v235_v13 = vadd.f32 1e-05, %v219_v46 }
 0x12f   :  { %v180_v30 = vpop.xlane.xlu1 %179  ;;  %v183_v31 = vpop.xlane.xlu0 %182 }
 0x130   :  { %431 = vrsqrt.f32 %v234_v12  ;;  %v220_v47 = vmul.f32 0.00390625, %v180_v30  ;;  %v221_v32 = vmul.f32 0.00390625, %v183_v31 }
 0x131   :  { %433 = vrsqrt.f32 %v235_v13 }
 0x132   :  { %v236_v33 = vadd.f32 1e-05, %v220_v47  ;;  %v237_v50 = vadd.f32 1e-05, %v221_v32 }
 0x133   :  { %v186_v59 = vpop.xlane.xlu1 %185  ;;  %v189_v60 = vpop.xlane.xlu0 %188 }
 0x134   :  { %435 = vrsqrt.f32 %v236_v33  ;;  %v222_v18 = vmul.f32 0.00390625, %v186_v59  ;;  %v223_v19 = vmul.f32 0.00390625, %v189_v60 }
 0x135   :  { %437 = vrsqrt.f32 %v237_v50 }
 0x136   :  { %v430_v36 = vpop.eup %429  ;;  %v238_v37 = vadd.f32 1e-05, %v222_v18  ;;  %v239_v61 = vadd.f32 1e-05, %v223_v19 }
 0x137   :  { %v265_v38 = vmul.f32 %v430_v36, %v664_v52  ;;  %v266_v39 = vmul.f32 %v430_v36, %v667_v53  ;;  %v192_v2 = vpop.xlane.xlu1 %191  ;;  %v195_v17 = vpop.xlane.xlu0 %194 }
 0x138   :  { %439 = vrsqrt.f32 %v238_v37  ;;  %v224_v5 = vmul.f32 0.00390625, %v192_v2  ;;  %v225_v42 = vmul.f32 0.00390625, %v195_v17 }
 0x139   :  { %vm297_vm0 = vcmp.ge.f32.partialorder %v265_v38, 0.0  ;;  %vm298_vm1 = vcmp.ge.f32.partialorder %v266_v39, 0.0  ;;  %v329_v43 = vmul.f32 0.01, %v265_v38  ;;  %v330_v24 = vmul.f32 0.01, %v266_v39 }
 0x13a   :  { %v432_v44 = vpop.eup %431  ;;  %441 = vrsqrt.f32 %v239_v61  ;;  %v240_v45 = vadd.f32 1e-05, %v224_v5  ;;  %v241_v25 = vadd.f32 1e-05, %v225_v42 }
 0x13b   :  { %v434_v6 = vpop.eup %433  ;;  %v361_v26 = vsel %vm297_vm0, %v265_v38, %v329_v43  ;;  %v362_v27 = vsel %vm298_vm1, %v266_v39, %v330_v24  ;;  %v267_v52 = vmul.f32 %v432_v44, %v684_v0  ;;  %v268_v53 = vmul.f32 %v432_v44, %v687_v1  ;;  %v198_v28 = vpop.xlane.xlu1 %197 }
 0x13c   :  { %393 = vst [vmem:[%s952_s1] sm:$0xff] %v361_v26  ;;  %394 = vst [vmem:[%s952_s1 + $0x8] sm:$0xff] %v362_v27  ;;  %v269_v41 = vmul.f32 %v434_v6, %v670_v54  ;;  %v270_v46 = vmul.f32 %v434_v6, %v673_v55  ;;  %443 = vrsqrt.f32 %v240_v45  ;;  %v226_v12 = vmul.f32 0.00390625, %v198_v28  ;;  %v201_v1 = vpop.xlane.xlu0 %200 }
 0x13d   :  { %vm299_vm2 = vcmp.ge.f32.partialorder %v267_v52, 0.0  ;;  %vm300_vm3 = vcmp.ge.f32.partialorder %v268_v53, 0.0  ;;  %v331_v0 = vmul.f32 0.01, %v267_v52  ;;  %v332_v13 = vmul.f32 0.01, %v268_v53 }
 0x13e   :  { %v436_v30 = vpop.eup %435  ;;  %vm301_vm4 = vcmp.ge.f32.partialorder %v269_v41, 0.0  ;;  %vm302_vm5 = vcmp.ge.f32.partialorder %v270_v46, 0.0  ;;  %v333_v31 = vmul.f32 0.01, %v269_v41  ;;  %v334_v47 = vmul.f32 0.01, %v270_v46 }
 0x13f   :  { %v438_v32 = vpop.eup %437  ;;  %v363_v33 = vsel %vm299_vm2, %v267_v52, %v331_v0  ;;  %v364_v50 = vsel %vm300_vm3, %v268_v53, %v332_v13  ;;  %v271_v59 = vmul.f32 %v436_v30, %v690_v3  ;;  %v272_v54 = vmul.f32 %v436_v30, %v693_v4  ;;  %v204_v55 = vpop.xlane.xlu1 %203 }
 0x140   :  { %395 = vst [vmem:[%s952_s1 + $0x10] sm:$0xff] %v363_v33  ;;  %396 = vst [vmem:[%s952_s1 + $0x18] sm:$0xff] %v364_v50  ;;  %v365_v60 = vsel %vm301_vm4, %v269_v41, %v333_v31  ;;  %v366_v18 = vsel %vm302_vm5, %v270_v46, %v334_v47  ;;  %v273_v19 = vmul.f32 %v438_v32, %v704_v9  ;;  %v207_v17 = vpop.xlane.xlu0 %206  ;;  %445 = vrsqrt.f32 %v241_v25 }
 0x141   :  { %v274_v36 = vmul.f32 %v438_v32, %v707_v23  ;;  %397 = vst [vmem:[%s952_s1 + $0x20] sm:$0xff] %v365_v60  ;;  %398 = vst [vmem:[%s952_s1 + $0x28] sm:$0xff] %v366_v18  ;;  %vm303_vm6 = vcmp.ge.f32.partialorder %v271_v59, 0.0  ;;  %vm304_vm7 = vcmp.ge.f32.partialorder %v272_v54, 0.0  ;;  %v335_v3 = vmul.f32 0.01, %v271_v59 }
 0x142   :  { %v336_v4 = vmul.f32 0.01, %v272_v54  ;;  %v440_v37 = vpop.eup %439  ;;  %vm305_vm8 = vcmp.ge.f32.partialorder %v273_v19, 0.0  ;;  %v337_v61 = vmul.f32 0.01, %v273_v19  ;;  %v227_v25 = vmul.f32 0.00390625, %v201_v1 }
 0x143   :  { %vm306_vm9 = vcmp.ge.f32.partialorder %v274_v36, 0.0  ;;  %v338_v38 = vmul.f32 0.01, %v274_v36  ;;  %v367_v9 = vsel %vm303_vm6, %v271_v59, %v335_v3  ;;  %v275_v23 = vmul.f32 %v440_v37, %v710_v29  ;;  %v210_v5 = vpop.xlane.xlu1 %209 }
 0x144   :  { %v368_v39 = vsel %vm304_vm7, %v272_v54, %v336_v4  ;;  %v276_v2 = vmul.f32 %v440_v37, %v713_v34  ;;  %v442_v42 = vpop.eup %441  ;;  %399 = vst [vmem:[%s952_s1 + $0x30] sm:$0xff] %v367_v9  ;;  %v369_v43 = vsel %vm305_vm8, %v273_v19, %v337_v61  ;;  %v242_v44 = vadd.f32 1e-05, %v226_v12  ;;  %v213_v12 = vpop.xlane.xlu0 %212 }
 0x145   :  { %400 = vst [vmem:[%s952_s1 + $0x38] sm:$0xff] %v368_v39  ;;  %v370_v24 = vsel %vm306_vm9, %v274_v36, %v338_v38  ;;  %401 = vst [vmem:[%s952_s1 + $0x40] sm:$0xff] %v369_v43  ;;  %vm307_vm10 = vcmp.ge.f32.partialorder %v275_v23, 0.0  ;;  %v339_v29 = vmul.f32 0.01, %v275_v23  ;;  %v277_v6 = vmul.f32 %v442_v42, %v724_v48 }
 0x146   :  { %402 = vst [vmem:[%s952_s1 + $0x48] sm:$0xff] %v370_v24  ;;  %vm308_vm11 = vcmp.ge.f32.partialorder %v276_v2, 0.0  ;;  %v340_v34 = vmul.f32 0.01, %v276_v2  ;;  %v444_v45 = vpop.eup %443  ;;  %v278_v26 = vmul.f32 %v442_v42, %v727_v49  ;;  %447 = vrsqrt.f32 %v242_v44 }
 0x147   :  { %v371_v27 = vsel %vm307_vm10, %v275_v23, %v339_v29  ;;  %v279_v53 = vmul.f32 %v444_v45, %v730_v51  ;;  %v280_v28 = vmul.f32 %v444_v45, %v733_v56  ;;  %vm309_vm12 = vcmp.ge.f32.partialorder %v277_v6, 0.0  ;;  %v216_v51 = vpop.xlane.xlu1 %215 }
 0x148   :  { %v372_v52 = vsel %vm308_vm11, %v276_v2, %v340_v34  ;;  %403 = vst [vmem:[%s952_s1 + $0x50] sm:$0xff] %v371_v27  ;;  %vm310_vm13 = vcmp.ge.f32.partialorder %v278_v26, 0.0  ;;  %v341_v48 = vmul.f32 0.01, %v277_v6  ;;  %v342_v49 = vmul.f32 0.01, %v278_v26 }
 0x149   :  { %404 = vst [vmem:[%s952_s1 + $0x58] sm:$0xff] %v372_v52  ;;  %vm311_vm14 = vcmp.ge.f32.partialorder %v279_v53, 0.0  ;;  %vm312_vm15 = vcmp.ge.f32.partialorder %v280_v28, 0.0  ;;  %v343_v41 = vmul.f32 0.01, %v279_v53  ;;  %v228_v1 = vmul.f32 0.00390625, %v204_v55 }
 0x14a   :  { %v344_v46 = vmul.f32 0.01, %v280_v28  ;;  %v373_v0 = vsel %vm309_vm12, %v277_v6, %v341_v48  ;;  %v374_v56 = vsel %vm310_vm13, %v278_v26, %v342_v49  ;;  %v243_v13 = vadd.f32 1e-05, %v227_v25  ;;  %v446_v60 = vpop.eup %445 }
 0x14b   :  { %405 = vst [vmem:[%s952_s1 + $0x60] sm:$0xff] %v373_v0  ;;  %406 = vst [vmem:[%s952_s1 + $0x68] sm:$0xff] %v374_v56  ;;  %v375_v30 = vsel %vm311_vm14, %v279_v53, %v343_v41  ;;  %v229_v47 = vmul.f32 0.00390625, %v207_v17  ;;  %v230_v32 = vmul.f32 0.00390625, %v210_v5  ;;  %v244_v33 = vadd.f32 1e-05, %v228_v1 }
 0x14c   :  { %v376_v31 = vsel %vm312_vm15, %v280_v28, %v344_v46  ;;  %407 = vst [vmem:[%s952_s1 + $0x70] sm:$0xff] %v375_v30  ;;  %449 = vrsqrt.f32 %v243_v13  ;;  %v231_v50 = vmul.f32 0.00390625, %v213_v12  ;;  %v232_v59 = vmul.f32 0.00390625, %v216_v51 }
 0x14d   :  { %408 = vst [vmem:[%s952_s1 + $0x78] sm:$0xff] %v376_v31  ;;  %v245_v54 = vadd.f32 1e-05, %v229_v47  ;;  %v246_v55 = vadd.f32 1e-05, %v230_v32  ;;  %451 = vrsqrt.f32 %v244_v33  ;;  %v281_v19 = vmul.f32 %v446_v60, %v744_v62 }
 0x14e   :  { %v247_v18 = vadd.f32 1e-05, %v231_v50  ;;  %v282_v36 = vmul.f32 %v446_v60, %v747_v63  ;;  %v248_v3 = vadd.f32 1e-05, %v232_v59 }
 0x14f   :  { %453 = vrsqrt.f32 %v245_v54  ;;  %vm313_vm0 = vcmp.ge.f32.partialorder %v281_v19, 0.0  ;;  %v345_v37 = vmul.f32 0.01, %v281_v19 }
 0x150   :  { %v448_v4 = vpop.eup %447  ;;  %455 = vrsqrt.f32 %v246_v55  ;;  %vm314_vm1 = vcmp.ge.f32.partialorder %v282_v36, 0.0  ;;  %v346_v61 = vmul.f32 0.01, %v282_v36 }
 0x151   :  { %v283_v38 = vmul.f32 %v448_v4, %v750_v7  ;;  %v284_v9 = vmul.f32 %v448_v4, %v753_v10  ;;  %457 = vrsqrt.f32 %v247_v18  ;;  %v377_v39 = vsel %vm313_vm0, %v281_v19, %v345_v37 }
 0x152   :  { %v378_v23 = vsel %vm314_vm1, %v282_v36, %v346_v61  ;;  %459 = vrsqrt.f32 %v248_v3  ;;  %409 = vst [vmem:[%s952_s1 + $0x80] sm:$0xff] %v377_v39 }
 0x153   :  { %410 = vst [vmem:[%s952_s1 + $0x88] sm:$0xff] %v378_v23  ;;  %vm315_vm2 = vcmp.ge.f32.partialorder %v283_v38, 0.0  ;;  %vm316_vm3 = vcmp.ge.f32.partialorder %v284_v9, 0.0  ;;  %v347_v62 = vmul.f32 0.01, %v283_v38 }
 0x154   :  { %v348_v63 = vmul.f32 0.01, %v284_v9 }
 0x155   :  { %v379_v7 = vsel %vm315_vm2, %v283_v38, %v347_v62 }
 0x156   :  { %v450_v2 = vpop.eup %449  ;;  %v380_v17 = vsel %vm316_vm3, %v284_v9, %v348_v63  ;;  %411 = vst [vmem:[%s952_s1 + $0x90] sm:$0xff] %v379_v7 }
 0x157   :  { %412 = vst [vmem:[%s952_s1 + $0x98] sm:$0xff] %v380_v17  ;;  %v285_v10 = vmul.f32 %v450_v2, %v764_v22  ;;  %v286_v5 = vmul.f32 %v450_v2, %v767_v8  ;;  %v452_v42 = vpop.eup %451 }
 0x158   :  { %v287_v34 = vmul.f32 %v452_v42, %v770_v35  ;;  %v288_v45 = vmul.f32 %v452_v42, %v773_v40 }
 0x159   :  { %v454_v43 = vpop.eup %453  ;;  %vm317_vm4 = vcmp.ge.f32.partialorder %v285_v10, 0.0  ;;  %vm318_vm5 = vcmp.ge.f32.partialorder %v286_v5, 0.0  ;;  %v349_v24 = vmul.f32 0.01, %v285_v10  ;;  %v350_v44 = vmul.f32 0.01, %v286_v5 }
 0x15a   :  { %v456_v29 = vpop.eup %455  ;;  %v289_v6 = vmul.f32 %v454_v43, %v784_v14  ;;  %v290_v26 = vmul.f32 %v454_v43, %v787_v15  ;;  %vm319_vm6 = vcmp.ge.f32.partialorder %v287_v34, 0.0  ;;  %vm320_vm7 = vcmp.ge.f32.partialorder %v288_v45, 0.0 }
 0x15b   :  { %v381_v25 = vsel %vm317_vm4, %v285_v10, %v349_v24  ;;  %v382_v27 = vsel %vm318_vm5, %v286_v5, %v350_v44  ;;  %v291_v22 = vmul.f32 %v456_v29, %v790_v57  ;;  %v292_v8 = vmul.f32 %v456_v29, %v793_v58  ;;  %v458_v52 = vpop.eup %457 }
 0x15c   :  { %413 = vst [vmem:[%s952_s1 + $0xa0] sm:$0xff] %v381_v25  ;;  %414 = vst [vmem:[%s952_s1 + $0xa8] sm:$0xff] %v382_v27  ;;  %v351_v35 = vmul.f32 0.01, %v287_v34  ;;  %v352_v40 = vmul.f32 0.01, %v288_v45  ;;  %v460_v14 = vpop.eup %459  ;;  %v293_v46 = vmul.f32 %v458_v52, %v804_v20  ;;  %v294_v12 = vmul.f32 %v458_v52, %v807_v21 }
 0x15d   :  { %vm321_vm8 = vcmp.ge.f32.partialorder %v289_v6, 0.0  ;;  %vm322_vm9 = vcmp.ge.f32.partialorder %v290_v26, 0.0  ;;  %v353_v15 = vmul.f32 0.01, %v289_v6  ;;  %v354_v57 = vmul.f32 0.01, %v290_v26 }
 0x15e   :  { %v383_v53 = vsel %vm319_vm6, %v287_v34, %v351_v35  ;;  %v384_v58 = vsel %vm320_vm7, %v288_v45, %v352_v40  ;;  %vm323_vm10 = vcmp.ge.f32.partialorder %v291_v22, 0.0  ;;  %vm324_vm11 = vcmp.ge.f32.partialorder %v292_v8, 0.0 }
 0x15f   :  { %415 = vst [vmem:[%s952_s1 + $0xb0] sm:$0xff] %v383_v53  ;;  %416 = vst [vmem:[%s952_s1 + $0xb8] sm:$0xff] %v384_v58  ;;  %v385_v28 = vsel %vm321_vm8, %v289_v6, %v353_v15  ;;  %v386_v48 = vsel %vm322_vm9, %v290_v26, %v354_v57  ;;  %v355_v49 = vmul.f32 0.01, %v291_v22  ;;  %v356_v41 = vmul.f32 0.01, %v292_v8 }
 0x160   :  { %417 = vst [vmem:[%s952_s1 + $0xc0] sm:$0xff] %v385_v28  ;;  %418 = vst [vmem:[%s952_s1 + $0xc8] sm:$0xff] %v386_v48  ;;  %v295_v51 = vmul.f32 %v460_v14, %v810_v11  ;;  %v296_v0 = vmul.f32 %v460_v14, %v813_v16  ;;  %vm325_vm12 = vcmp.ge.f32.partialorder %v293_v46, 0.0  ;;  %vm326_vm13 = vcmp.ge.f32.partialorder %v294_v12, 0.0 }
 0x161   :  { %v387_v56 = vsel %vm323_vm10, %v291_v22, %v355_v49  ;;  %v388_v13 = vsel %vm324_vm11, %v292_v8, %v356_v41  ;;  %v357_v1 = vmul.f32 0.01, %v293_v46  ;;  %v358_v20 = vmul.f32 0.01, %v294_v12 }
 0x162   :  { %419 = vst [vmem:[%s952_s1 + $0xd0] sm:$0xff] %v387_v56  ;;  %420 = vst [vmem:[%s952_s1 + $0xd8] sm:$0xff] %v388_v13  ;;  %vm327_vm14 = vcmp.ge.f32.partialorder %v295_v51, 0.0  ;;  %vm328_vm15 = vcmp.ge.f32.partialorder %v296_v0, 0.0  ;;  %v359_v21 = vmul.f32 0.01, %v295_v51 }
 0x163   :  { %v360_v11 = vmul.f32 0.01, %v296_v0  ;;  %v389_v30 = vsel %vm325_vm12, %v293_v46, %v357_v1  ;;  %v390_v16 = vsel %vm326_vm13, %v294_v12, %v358_v20 }
 0x164   :  { %421 = vst [vmem:[%s952_s1 + $0xe0] sm:$0xff] %v389_v30  ;;  %422 = vst [vmem:[%s952_s1 + $0xe8] sm:$0xff] %v390_v16  ;;  %v391_v31 = vsel %vm327_vm14, %v295_v51, %v359_v21 }
 0x165   :  { %v392_v47 = vsel %vm328_vm15, %v296_v0, %v360_v11  ;;  %423 = vst [vmem:[%s952_s1 + $0xf0] sm:$0xff] %v391_v31 }
 0x166   :  { %424 = vst [vmem:[%s952_s1 + $0xf8] sm:$0xff] %v392_v47 }

// kernel: n2_apply.38
= control target key start
LH: loop header
LB: loop body
LE: loop exit
PB: predicated region body
PF: predicated region fallthrough
CT: control target
= control target key end

     0   :  { %vm938_vm0 = vcmask 523264   ;;  %s2230_s1 = inlined_call_operand.vmem [shape: bf16[576,512], index: 1, kind: input, shape index: {}]   ;;  %s2231_s0 = inlined_call_operand.vmem [shape: bf16[32,576], index: 0, kind: input, shape index: {}]   ;;  %s2232_s2 = inlined_call_operand.vmem [shape: f32[32,512], index: 2, kind: output, shape index: {}]  }
   0x1   :  { %v1474_v0 = vld [vmem:[%s2230_s1 + $0x4] ss:$16 sps:$4 sm:$0xff]   ;;  %v1476_v1 = vld [vmem:[%s2230_s1 + $0xc] ss:$16 sps:$4 sm:$0xff]   ;;  %v1478_v2 = vld [vmem:[%s2230_s1] ss:$16 sps:$4 sm:$0xff]  }
   0x2   :  { %945 = vmatprep.subr.bf16.mxu0 %v1474_v0  ;;  %v1479_v3 = vld [vmem:[%s2230_s1 + $0x8] ss:$16 sps:$4 sm:$0xff]   ;;  %1104 = vmatprep.subr.bf16.mxu1 %v1476_v1  ;;  %v1480_v4 = vld [vmem:[%s2230_s1 + $0x24] ss:$16 sps:$4 sm:$0xff]   ;;  %v1482_v5 = vld [vmem:[%s2230_s1 + $0x2c] ss:$16 sps:$4 sm:$0xff]  }
   0x3   :  { %946 = vmatpush1.bf16.msra.mxu0 %v1478_v2  ;;  %1105 = vmatpush1.bf16.msra.mxu1 %v1479_v3  ;;  %v1484_v6 = vld [vmem:[%s2230_s1 + $0x20] ss:$16 sps:$4 sm:$0xff]   ;;  %v1485_v7 = vld [vmem:[%s2230_s1 + $0x28] ss:$16 sps:$4 sm:$0xff]   ;;  %v1486_v8 = vld [vmem:[%s2230_s1 + $0x44] ss:$16 sps:$4 sm:$0xff]  }
   0x4   :  { %947 = vmatprep.subr.bf16.mxu0 %v1480_v4  ;;  %1106 = vmatprep.subr.bf16.mxu1 %v1482_v5  ;;  %v1488_v9 = vld [vmem:[%s2230_s1 + $0x4c] ss:$16 sps:$4 sm:$0xff]   ;;  %v1490_v10 = vld [vmem:[%s2230_s1 + $0x40] ss:$16 sps:$4 sm:$0xff]   ;;  %v1491_v11 = vld [vmem:[%s2230_s1 + $0x48] ss:$16 sps:$4 sm:$0xff]  }
   0x5   :  { %v1492_v12 = vld [vmem:[%s2230_s1 + $0x64] ss:$16 sps:$4 sm:$0xff]   ;;  %v1494_v13 = vld [vmem:[%s2230_s1 + $0x6c] ss:$16 sps:$4 sm:$0xff]   ;;  %v1496_v14 = vld [vmem:[%s2230_s1 + $0x60] ss:$16 sps:$4 sm:$0xff]  }
   0x6   :  { %v1497_v15 = vld [vmem:[%s2230_s1 + $0x68] ss:$16 sps:$4 sm:$0xff]   ;;  %v1498_v16 = vld [vmem:[%s2230_s1 + $0x84] ss:$16 sps:$4 sm:$0xff]   ;;  %v1500_v17 = vld [vmem:[%s2230_s1 + $0x8c] ss:$16 sps:$4 sm:$0xff]  }
   0x7   :  { %948 = vmatpush1.bf16.msra.mxu0 %v1484_v6  ;;  %1107 = vmatpush1.bf16.msra.mxu1 %v1485_v7  ;;  %v1502_v18 = vld [vmem:[%s2230_s1 + $0x80] ss:$16 sps:$4 sm:$0xff]   ;;  %v1503_v19 = vld [vmem:[%s2230_s1 + $0x88] ss:$16 sps:$4 sm:$0xff]   ;;  %v1504_v20 = vld [vmem:[%s2230_s1 + $0xa4] ss:$16 sps:$4 sm:$0xff]  }
   0x8   :  { %949 = vmatprep.subr.bf16.mxu0 %v1486_v8  ;;  %1108 = vmatprep.subr.bf16.mxu1 %v1488_v9  ;;  %v1506_v21 = vld [vmem:[%s2230_s1 + $0xac] ss:$16 sps:$4 sm:$0xff]   ;;  %v1508_v22 = vld [vmem:[%s2230_s1 + $0xa0] ss:$16 sps:$4 sm:$0xff]   ;;  %v1509_v23 = vld [vmem:[%s2230_s1 + $0xa8] ss:$16 sps:$4 sm:$0xff]  }
   0x9   :  { %v1510_v24 = vld [vmem:[%s2230_s1 + $0xc4] ss:$16 sps:$4 sm:$0xff]   ;;  %v1512_v25 = vld [vmem:[%s2230_s1 + $0xcc] ss:$16 sps:$4 sm:$0xff]   ;;  %v1514_v26 = vld [vmem:[%s2230_s1 + $0xc0] ss:$16 sps:$4 sm:$0xff]  }
   0xa   :  { %v1515_v27 = vld [vmem:[%s2230_s1 + $0xc8] ss:$16 sps:$4 sm:$0xff]   ;;  %v1516_v28 = vld [vmem:[%s2230_s1 + $0xe4] ss:$16 sps:$4 sm:$0xff]   ;;  %v1518_v29 = vld [vmem:[%s2230_s1 + $0xec] ss:$16 sps:$4 sm:$0xff]  }
   0xb   :  { %950 = vmatpush1.bf16.msra.mxu0 %v1490_v10  ;;  %1109 = vmatpush1.bf16.msra.mxu1 %v1491_v11  ;;  %v1520_v30 = vld [vmem:[%s2230_s1 + $0xe0] ss:$16 sps:$4 sm:$0xff]   ;;  %v1521_v31 = vld [vmem:[%s2230_s1 + $0xe8] ss:$16 sps:$4 sm:$0xff]   ;;  %v1522_v32 = vld [vmem:[%s2230_s1 + $0x104] ss:$16 sps:$4 sm:$0xff]  }
   0xc   :  { %951 = vmatprep.subr.bf16.mxu0 %v1492_v12  ;;  %1110 = vmatprep.subr.bf16.mxu1 %v1494_v13  ;;  %v1524_v33 = vld [vmem:[%s2230_s1 + $0x10c] ss:$16 sps:$4 sm:$0xff]   ;;  %v1526_v34 = vld [vmem:[%s2230_s1 + $0x100] ss:$16 sps:$4 sm:$0xff]   ;;  %v1527_v35 = vld [vmem:[%s2230_s1 + $0x108] ss:$16 sps:$4 sm:$0xff]  }
   0xd   :  { %v1528_v36 = vld [vmem:[%s2230_s1 + $0x124] ss:$16 sps:$4 sm:$0xff]   ;;  %v1530_v37 = vld [vmem:[%s2230_s1 + $0x12c] ss:$16 sps:$4 sm:$0xff]   ;;  %v1532_v38 = vld [vmem:[%s2230_s1 + $0x120] ss:$16 sps:$4 sm:$0xff]  }
   0xe   :  { %v1533_v39 = vld [vmem:[%s2230_s1 + $0x128] ss:$16 sps:$4 sm:$0xff]   ;;  %v1534_v40 = vld [vmem:[%s2230_s1 + $0x144] ss:$16 sps:$4 sm:$0xff]   ;;  %v1536_v41 = vld [vmem:[%s2230_s1 + $0x14c] ss:$16 sps:$4 sm:$0xff]  }
   0xf   :  { %952 = vmatpush1.bf16.msra.mxu0 %v1496_v14  ;;  %1111 = vmatpush1.bf16.msra.mxu1 %v1497_v15  ;;  %v1538_v42 = vld [vmem:[%s2230_s1 + $0x140] ss:$16 sps:$4 sm:$0xff]   ;;  %v1539_v43 = vld [vmem:[%s2230_s1 + $0x148] ss:$16 sps:$4 sm:$0xff]   ;;  %v1540_v44 = vld [vmem:[%s2230_s1 + $0x164] ss:$16 sps:$4 sm:$0xff]  }
  0x10   :  { %953 = vmatprep.subr.bf16.mxu0 %v1498_v16  ;;  %1112 = vmatprep.subr.bf16.mxu1 %v1500_v17  ;;  %v1542_v45 = vld [vmem:[%s2230_s1 + $0x16c] ss:$16 sps:$4 sm:$0xff]   ;;  %v1544_v46 = vld [vmem:[%s2230_s1 + $0x160] ss:$16 sps:$4 sm:$0xff]   ;;  %v1545_v47 = vld [vmem:[%s2230_s1 + $0x168] ss:$16 sps:$4 sm:$0xff]  }
  0x11   :  { %v1572_v48 = vld [vmem:[%s2231_s0 + $0x4] ss:$20 sps:$4 sm:$0xff]   ;;  %v1548_v50 = vld [vmem:[%s2230_s1 + $0x18c] ss:$16 sps:$4 sm:$0xff]   ;;  %v1550_v51 = vld [vmem:[%s2230_s1 + $0x180] ss:$16 sps:$4 sm:$0xff]  }
  0x12   :  { %v1546_v49 = vld [vmem:[%s2230_s1 + $0x184] ss:$16 sps:$4 sm:$0xff]   ;;  %977 = vmatprep.mubr.bf16.mxu0 %v1572_v48  ;;  %1136 = vmatprep.mubr.bf16.mxu1 %v1572_v48  ;;  %v1551_v52 = vld [vmem:[%s2230_s1 + $0x188] ss:$16 sps:$4 sm:$0xff]   ;;  %v1554_v54 = vld [vmem:[%s2230_s1 + $0x1ac] ss:$16 sps:$4 sm:$0xff]  }
  0x13   :  { %954 = vmatpush1.bf16.msra.mxu0 %v1502_v18  ;;  %1113 = vmatpush1.bf16.msra.mxu1 %v1503_v19  ;;  %v1552_v53 = vld [vmem:[%s2230_s1 + $0x1a4] ss:$16 sps:$4 sm:$0xff]   ;;  %v1556_v55 = vld [vmem:[%s2230_s1 + $0x1a0] ss:$16 sps:$4 sm:$0xff]   ;;  %v1557_v56 = vld [vmem:[%s2230_s1 + $0x1a8] ss:$16 sps:$4 sm:$0xff]  }
  0x14   :  { %955 = vmatprep.subr.bf16.mxu0 %v1504_v20  ;;  %1114 = vmatprep.subr.bf16.mxu1 %v1506_v21  ;;  %v1558_v57 = vld [vmem:[%s2230_s1 + $0x1c4] ss:$16 sps:$4 sm:$0xff]   ;;  %v1560_v58 = vld [vmem:[%s2230_s1 + $0x1cc] ss:$16 sps:$4 sm:$0xff]   ;;  %v1562_v59 = vld [vmem:[%s2230_s1 + $0x1c0] ss:$16 sps:$4 sm:$0xff]  }
  0x15   :  { %v1563_v60 = vld [vmem:[%s2230_s1 + $0x1c8] ss:$16 sps:$4 sm:$0xff]   ;;  %v1564_v61 = vld [vmem:[%s2230_s1 + $0x1e4] ss:$16 sps:$4 sm:$0xff]   ;;  %v1566_v62 = vld [vmem:[%s2230_s1 + $0x1ec] ss:$16 sps:$4 sm:$0xff]  }
  0x16   :  { %v1568_v63 = vld [vmem:[%s2230_s1 + $0x1e0] ss:$16 sps:$4 sm:$0xff]   ;;  %v1569_v0 = vld [vmem:[%s2230_s1 + $0x1e8] ss:$16 sps:$4 sm:$0xff]   ;;  %v1575_v1 = vld [vmem:[%s2230_s1 + $0x204] ss:$16 sps:$4 sm:$0xff]  }
  0x17   :  { %956 = vmatpush1.bf16.msra.mxu0 %v1508_v22  ;;  %1115 = vmatpush1.bf16.msra.mxu1 %v1509_v23  ;;  %v1578_v2 = vld [vmem:[%s2230_s1 + $0x20c] ss:$16 sps:$4 sm:$0xff]   ;;  %v1570_v3 = vld [vmem:[%s2231_s0] ss:$20 sps:$4 sm:$0xff]   ;;  %v1576_v5 = vld [vmem:[%s2230_s1 + $0x208] ss:$16 sps:$4 sm:$0xff]  }
  0x18   :  { %957 = vmatprep.subr.bf16.mxu0 %v1510_v24  ;;  %1116 = vmatprep.subr.bf16.mxu1 %v1512_v25  ;;  %v1573_v4 = vld [vmem:[%s2230_s1 + $0x200] ss:$16 sps:$4 sm:$0xff]   ;;  %v1581_v6 = vld [vmem:[%s2230_s1 + $0x224] ss:$16 sps:$4 sm:$0xff]   ;;  %v1584_v7 = vld [vmem:[%s2230_s1 + $0x22c] ss:$16 sps:$4 sm:$0xff]  }
  0x19   :  { %v1579_v8 = vld [vmem:[%s2230_s1 + $0x220] ss:$16 sps:$4 sm:$0xff]   ;;  %v1582_v9 = vld [vmem:[%s2230_s1 + $0x228] ss:$16 sps:$4 sm:$0xff]   ;;  %v1587_v10 = vld [vmem:[%s2230_s1 + $0x244] ss:$16 sps:$4 sm:$0xff]  }
  0x1a   :  { %v1590_v11 = vld [vmem:[%s2230_s1 + $0x24c] ss:$16 sps:$4 sm:$0xff]   ;;  %v1585_v12 = vld [vmem:[%s2230_s1 + $0x240] ss:$16 sps:$4 sm:$0xff]   ;;  %v1588_v13 = vld [vmem:[%s2230_s1 + $0x248] ss:$16 sps:$4 sm:$0xff]  }
  0x1b   :  { %958 = vmatpush1.bf16.msra.mxu0 %v1514_v26  ;;  %1117 = vmatpush1.bf16.msra.mxu1 %v1515_v27  ;;  %v1593_v14 = vld [vmem:[%s2230_s1 + $0x264] ss:$16 sps:$4 sm:$0xff]   ;;  %v1596_v15 = vld [vmem:[%s2230_s1 + $0x26c] ss:$16 sps:$4 sm:$0xff]   ;;  %v1591_v16 = vld [vmem:[%s2230_s1 + $0x260] ss:$16 sps:$4 sm:$0xff]  }
  0x1c   :  { %959 = vmatprep.subr.bf16.mxu0 %v1516_v28  ;;  %1118 = vmatprep.subr.bf16.mxu1 %v1518_v29  ;;  %v1594_v17 = vld [vmem:[%s2230_s1 + $0x268] ss:$16 sps:$4 sm:$0xff]   ;;  %v1599_v18 = vld [vmem:[%s2230_s1 + $0x284] ss:$16 sps:$4 sm:$0xff]   ;;  %v1602_v19 = vld [vmem:[%s2230_s1 + $0x28c] ss:$16 sps:$4 sm:$0xff]  }
  0x1d   :  { %v1597_v20 = vld [vmem:[%s2230_s1 + $0x280] ss:$16 sps:$4 sm:$0xff]   ;;  %v1600_v21 = vld [vmem:[%s2230_s1 + $0x288] ss:$16 sps:$4 sm:$0xff]   ;;  %v1605_v22 = vld [vmem:[%s2230_s1 + $0x2a4] ss:$16 sps:$4 sm:$0xff]  }
  0x1e   :  { %v1608_v23 = vld [vmem:[%s2230_s1 + $0x2ac] ss:$16 sps:$4 sm:$0xff]   ;;  %v1603_v24 = vld [vmem:[%s2230_s1 + $0x2a0] ss:$16 sps:$4 sm:$0xff]   ;;  %v1606_v26 = vld [vmem:[%s2230_s1 + $0x2a8] ss:$16 sps:$4 sm:$0xff]  }
  0x1f   :  { %960 = vmatpush1.bf16.msra.mxu0 %v1520_v30  ;;  %1119 = vmatpush1.bf16.msra.mxu1 %v1521_v31  ;;  %v1657_v25 = vld [vmem:[%s2231_s0 + $0x2c] ss:$20 sps:$4 sm:$0xff]   ;;  %v1659_v27 = vld [vmem:[%s2231_s0 + $0x28] ss:$20 sps:$4 sm:$0xff]   ;;  %v1611_v28 = vld [vmem:[%s2230_s1 + $0x2c4] ss:$16 sps:$4 sm:$0xff]  }
  0x20   :  { %961 = vmatprep.subr.bf16.mxu0 %v1522_v32  ;;  %1120 = vmatprep.subr.bf16.mxu1 %v1524_v33  ;;  %v1614_v29 = vld [vmem:[%s2230_s1 + $0x2cc] ss:$16 sps:$4 sm:$0xff]   ;;  %v1609_v30 = vld [vmem:[%s2230_s1 + $0x2c0] ss:$16 sps:$4 sm:$0xff]   ;;  %v1612_v31 = vld [vmem:[%s2230_s1 + $0x2c8] ss:$16 sps:$4 sm:$0xff]  }
  0x21   :  { %v1617_v32 = vld [vmem:[%s2230_s1 + $0x2e4] ss:$16 sps:$4 sm:$0xff]   ;;  %v1620_v33 = vld [vmem:[%s2230_s1 + $0x2ec] ss:$16 sps:$4 sm:$0xff]   ;;  %v1636_v48 = vld [vmem:[%s2230_s1 + $0x348] ss:$16 sps:$4 sm:$0xff]  }
  0x23   :  { %962 = vmatpush1.bf16.msra.mxu0 %v1526_v34  ;;  %1121 = vmatpush1.bf16.msra.mxu1 %v1527_v35  ;;  %v1674_v34 = vld [vmem:[%s2231_s0 + $0xc] ss:$20 sps:$4 sm:$0xff]  }
  0x24   :  { %963 = vmatprep.subr.bf16.mxu0 %v1528_v36  ;;  %1122 = vmatprep.subr.bf16.mxu1 %v1530_v37  ;;  %v1615_v35 = vld [vmem:[%s2230_s1 + $0x2e0] ss:$16 sps:$4 sm:$0xff]   ;;  %v1618_v36 = vld [vmem:[%s2230_s1 + $0x2e8] ss:$16 sps:$4 sm:$0xff]   ;;  %v1623_v37 = vld [vmem:[%s2230_s1 + $0x304] ss:$16 sps:$4 sm:$0xff]  }
  0x27   :  { %964 = vmatpush1.bf16.msra.mxu0 %v1532_v38  ;;  %1123 = vmatpush1.bf16.msra.mxu1 %v1533_v39  ;;  %v1626_v38 = vld [vmem:[%s2230_s1 + $0x30c] ss:$16 sps:$4 sm:$0xff]   ;;  %v1621_v39 = vld [vmem:[%s2230_s1 + $0x300] ss:$16 sps:$4 sm:$0xff]  }
  0x28   :  { %965 = vmatprep.subr.bf16.mxu0 %v1534_v40  ;;  %1124 = vmatprep.subr.bf16.mxu1 %v1536_v41  ;;  %v1624_v40 = vld [vmem:[%s2230_s1 + $0x308] ss:$16 sps:$4 sm:$0xff]   ;;  %v1629_v41 = vld [vmem:[%s2230_s1 + $0x324] ss:$16 sps:$4 sm:$0xff]  }
  0x2b   :  { %966 = vmatpush1.bf16.msra.mxu0 %v1538_v42  ;;  %1125 = vmatpush1.bf16.msra.mxu1 %v1539_v43  ;;  %v1632_v42 = vld [vmem:[%s2230_s1 + $0x32c] ss:$16 sps:$4 sm:$0xff]   ;;  %v1627_v43 = vld [vmem:[%s2230_s1 + $0x320] ss:$16 sps:$4 sm:$0xff]  }
  0x2c   :  { %967 = vmatprep.subr.bf16.mxu0 %v1540_v44  ;;  %1126 = vmatprep.subr.bf16.mxu1 %v1542_v45  ;;  %v1630_v44 = vld [vmem:[%s2230_s1 + $0x328] ss:$16 sps:$4 sm:$0xff]   ;;  %v1635_v45 = vld [vmem:[%s2230_s1 + $0x344] ss:$16 sps:$4 sm:$0xff]  }
  0x2f   :  { %968 = vmatpush1.bf16.msra.mxu0 %v1544_v46  ;;  %1127 = vmatpush1.bf16.msra.mxu1 %v1545_v47  ;;  %v1638_v46 = vld [vmem:[%s2230_s1 + $0x34c] ss:$16 sps:$4 sm:$0xff]   ;;  %v1633_v47 = vld [vmem:[%s2230_s1 + $0x340] ss:$16 sps:$4 sm:$0xff]  }
  0x30   :  { %969 = vmatprep.subr.bf16.mxu0 %v1546_v49  ;;  %1128 = vmatprep.subr.bf16.mxu1 %v1548_v50  ;;  %v1641_v49 = vld [vmem:[%s2230_s1 + $0x364] ss:$16 sps:$4 sm:$0xff]   ;;  %v1644_v50 = vld [vmem:[%s2230_s1 + $0x36c] ss:$16 sps:$4 sm:$0xff]  }
  0x33   :  { %970 = vmatpush1.bf16.msra.mxu0 %v1550_v51  ;;  %1129 = vmatpush1.bf16.msra.mxu1 %v1551_v52  ;;  %v1639_v51 = vld [vmem:[%s2230_s1 + $0x360] ss:$16 sps:$4 sm:$0xff]   ;;  %v1642_v52 = vld [vmem:[%s2230_s1 + $0x368] ss:$16 sps:$4 sm:$0xff]  }
  0x34   :  { %971 = vmatprep.subr.bf16.mxu0 %v1552_v53  ;;  %1130 = vmatprep.subr.bf16.mxu1 %v1554_v54  ;;  %v1647_v53 = vld [vmem:[%s2230_s1 + $0x384] ss:$16 sps:$4 sm:$0xff]   ;;  %v1650_v54 = vld [vmem:[%s2230_s1 + $0x38c] ss:$16 sps:$4 sm:$0xff]  }
  0x37   :  { %972 = vmatpush1.bf16.msra.mxu0 %v1556_v55  ;;  %1131 = vmatpush1.bf16.msra.mxu1 %v1557_v56  ;;  %v1645_v55 = vld [vmem:[%s2230_s1 + $0x380] ss:$16 sps:$4 sm:$0xff]   ;;  %v1648_v56 = vld [vmem:[%s2230_s1 + $0x388] ss:$16 sps:$4 sm:$0xff]  }
  0x38   :  { %973 = vmatprep.subr.bf16.mxu0 %v1558_v57  ;;  %1132 = vmatprep.subr.bf16.mxu1 %v1560_v58  ;;  %v1653_v57 = vld [vmem:[%s2230_s1 + $0x3a4] ss:$16 sps:$4 sm:$0xff]   ;;  %v1656_v58 = vld [vmem:[%s2230_s1 + $0x3ac] ss:$16 sps:$4 sm:$0xff]  }
  0x3b   :  { %974 = vmatpush1.bf16.msra.mxu0 %v1562_v59  ;;  %1133 = vmatpush1.bf16.msra.mxu1 %v1563_v60  ;;  %v1651_v59 = vld [vmem:[%s2230_s1 + $0x3a0] ss:$16 sps:$4 sm:$0xff]   ;;  %v1654_v60 = vld [vmem:[%s2230_s1 + $0x3a8] ss:$16 sps:$4 sm:$0xff]  }
  0x3c   :  { %975 = vmatprep.subr.bf16.mxu0 %v1564_v61  ;;  %1134 = vmatprep.subr.bf16.mxu1 %v1566_v62  ;;  %v1662_v61 = vld [vmem:[%s2230_s1 + $0x3c4] ss:$16 sps:$4 sm:$0xff]   ;;  %v1665_v62 = vld [vmem:[%s2230_s1 + $0x3cc] ss:$16 sps:$4 sm:$0xff]  }
  0x3f   :  { %976 = vmatpush1.bf16.msra.mxu0 %v1568_v63  ;;  %1135 = vmatpush1.bf16.msra.mxu1 %v1569_v0  ;;  %v1660_v63 = vld [vmem:[%s2230_s1 + $0x3c0] ss:$16 sps:$4 sm:$0xff]   ;;  %v1663_v0 = vld [vmem:[%s2230_s1 + $0x3c8] ss:$16 sps:$4 sm:$0xff]  }
  0x40   :  { %998 = vmatprep.subr.bf16.mxu0 %v1575_v1  ;;  %1157 = vmatprep.subr.bf16.mxu1 %v1578_v2  ;;  %v1668_v1 = vld [vmem:[%s2230_s1 + $0x3e4] ss:$16 sps:$4 sm:$0xff]   ;;  %v1671_v2 = vld [vmem:[%s2230_s1 + $0x3ec] ss:$16 sps:$4 sm:$0xff]  }
  0x42   :  { %978 = vmatmul.mubr.bf16.vlgmr.msra.gmra.mrb[0].mxu0 %v1570_v3  ;;  %1137 = vmatmul.mubr.bf16.vlgmr.msra.gmra.mrb[0].mxu1 %v1570_v3  ;;  %v1666_v3 = vld [vmem:[%s2230_s1 + $0x3e0] ss:$16 sps:$4 sm:$0xff]  }
  0x43   :  { %999 = vmatpush1.bf16.msra.mxu0 %v1573_v4  ;;  %1158 = vmatpush1.bf16.msra.mxu1 %v1576_v5  ;;  %v1669_v4 = vld [vmem:[%s2230_s1 + $0x3e8] ss:$16 sps:$4 sm:$0xff]   ;;  %v1677_v5 = vld [vmem:[%s2230_s1 + $0x404] ss:$16 sps:$4 sm:$0xff]  }
  0x44   :  { %1000 = vmatprep.subr.bf16.mxu0 %v1581_v6  ;;  %1159 = vmatprep.subr.bf16.mxu1 %v1584_v7  ;;  %v1680_v6 = vld [vmem:[%s2230_s1 + $0x40c] ss:$16 sps:$4 sm:$0xff]  }
  0x45   :  { %987 = vmatprep.mubr.bf16.mxu0 %v1657_v25  ;;  %1146 = vmatprep.mubr.bf16.mxu1 %v1657_v25  ;;  %v1672_v7 = vld [vmem:[%s2231_s0 + $0x8] ss:$20 sps:$4 sm:$0xff]   ;;  %v1702_v25 = vld [vmem:[%s2231_s0 + $0x10] ss:$20 sps:$4 sm:$0xff]  }
  0x47   :  { %1001 = vmatpush1.bf16.msra.mxu0 %v1579_v8  ;;  %1160 = vmatpush1.bf16.msra.mxu1 %v1582_v9  ;;  %v1675_v8 = vld [vmem:[%s2230_s1 + $0x400] ss:$16 sps:$4 sm:$0xff]   ;;  %v1678_v9 = vld [vmem:[%s2230_s1 + $0x408] ss:$16 sps:$4 sm:$0xff]  }
  0x48   :  { %1002 = vmatprep.subr.bf16.mxu0 %v1587_v10  ;;  %1161 = vmatprep.subr.bf16.mxu1 %v1590_v11  ;;  %v1683_v10 = vld [vmem:[%s2230_s1 + $0x424] ss:$16 sps:$4 sm:$0xff]   ;;  %v1686_v11 = vld [vmem:[%s2230_s1 + $0x42c] ss:$16 sps:$4 sm:$0xff]  }
  0x4a   :  { %988 = vmatmul.mubr.bf16.gmra.mrb[4].mxu0 %v1659_v27  ;;  %1147 = vmatmul.mubr.bf16.gmra.mrb[4].mxu1 %v1659_v27 }
  0x4b   :  { %1003 = vmatpush1.bf16.msra.mxu0 %v1585_v12  ;;  %1162 = vmatpush1.bf16.msra.mxu1 %v1588_v13  ;;  %v1687_v12 = vld [vmem:[%s2231_s0 + $0x34] ss:$20 sps:$4 sm:$0xff]   ;;  %v1681_v13 = vld [vmem:[%s2230_s1 + $0x420] ss:$16 sps:$4 sm:$0xff]  }
  0x4c   :  { %1004 = vmatprep.subr.bf16.mxu0 %v1593_v14  ;;  %1163 = vmatprep.subr.bf16.mxu1 %v1596_v15  ;;  %v1684_v14 = vld [vmem:[%s2230_s1 + $0x428] ss:$16 sps:$4 sm:$0xff]   ;;  %v1692_v15 = vld [vmem:[%s2230_s1 + $0x444] ss:$16 sps:$4 sm:$0xff]  }
  0x4d   :  { %1030 = vmatprep.mubr.bf16.mxu0 %v1674_v34  ;;  %1189 = vmatprep.mubr.bf16.mxu1 %v1674_v34 }
  0x4f   :  { %1005 = vmatpush1.bf16.msra.mxu0 %v1591_v16  ;;  %1164 = vmatpush1.bf16.msra.mxu1 %v1594_v17  ;;  %v1695_v16 = vld [vmem:[%s2230_s1 + $0x44c] ss:$16 sps:$4 sm:$0xff]   ;;  %v1689_v17 = vld [vmem:[%s2231_s0 + $0x30] ss:$20 sps:$4 sm:$0xff]  }
  0x50   :  { %1006 = vmatprep.subr.bf16.mxu0 %v1599_v18  ;;  %1165 = vmatprep.subr.bf16.mxu1 %v1602_v19  ;;  %v1690_v18 = vld [vmem:[%s2230_s1 + $0x440] ss:$16 sps:$4 sm:$0xff]   ;;  %v1693_v19 = vld [vmem:[%s2230_s1 + $0x448] ss:$16 sps:$4 sm:$0xff]  }
  0x53   :  { %1007 = vmatpush1.bf16.msra.mxu0 %v1597_v20  ;;  %1166 = vmatpush1.bf16.msra.mxu1 %v1600_v21  ;;  %v1698_v20 = vld [vmem:[%s2230_s1 + $0x464] ss:$16 sps:$4 sm:$0xff]   ;;  %v1701_v21 = vld [vmem:[%s2230_s1 + $0x46c] ss:$16 sps:$4 sm:$0xff]  }
  0x54   :  { %1008 = vmatprep.subr.bf16.mxu0 %v1605_v22  ;;  %1167 = vmatprep.subr.bf16.mxu1 %v1608_v23  ;;  %v1696_v22 = vld [vmem:[%s2230_s1 + $0x460] ss:$16 sps:$4 sm:$0xff]   ;;  %v1699_v23 = vld [vmem:[%s2230_s1 + $0x468] ss:$16 sps:$4 sm:$0xff]  }
  0x57   :  { %1009 = vmatpush1.bf16.msra.mxu0 %v1603_v24  ;;  %1168 = vmatpush1.bf16.msra.mxu1 %v1606_v26  ;;  %v1704_v24 = vmov 0   ;;  %v1703_v26 = vld [vmem:[%s2231_s0 + $0x38] ss:$20 sps:$4 sm:$0xff]  }
  0x58   :  { %1010 = vmatprep.subr.bf16.mxu0 %v1611_v28  ;;  %1169 = vmatprep.subr.bf16.mxu1 %v1614_v29 }
  0x5b   :  { %1011 = vmatpush1.bf16.msra.mxu0 %v1609_v30  ;;  %1170 = vmatpush1.bf16.msra.mxu1 %v1612_v31 }
  0x5c   :  { %1012 = vmatprep.subr.bf16.mxu0 %v1617_v32  ;;  %1171 = vmatprep.subr.bf16.mxu1 %v1620_v33 }
  0x5f   :  { %1013 = vmatpush1.bf16.msra.mxu0 %v1615_v35  ;;  %1172 = vmatpush1.bf16.msra.mxu1 %v1618_v36 }
  0x60   :  { %1014 = vmatprep.subr.bf16.mxu0 %v1623_v37  ;;  %1173 = vmatprep.subr.bf16.mxu1 %v1626_v38 }
  0x63   :  { %1015 = vmatpush1.bf16.msra.mxu0 %v1621_v39  ;;  %1174 = vmatpush1.bf16.msra.mxu1 %v1624_v40 }
  0x64   :  { %1016 = vmatprep.subr.bf16.mxu0 %v1629_v41  ;;  %1175 = vmatprep.subr.bf16.mxu1 %v1632_v42 }
  0x67   :  { %1017 = vmatpush1.bf16.msra.mxu0 %v1627_v43  ;;  %1176 = vmatpush1.bf16.msra.mxu1 %v1630_v44 }
  0x68   :  { %1018 = vmatprep.subr.bf16.mxu0 %v1635_v45  ;;  %1177 = vmatprep.subr.bf16.mxu1 %v1638_v46 }
  0x6b   :  { %1019 = vmatpush1.bf16.msra.mxu0 %v1633_v47  ;;  %1178 = vmatpush1.bf16.msra.mxu1 %v1636_v48 }
  0x6c   :  { %1020 = vmatprep.subr.bf16.mxu0 %v1641_v49  ;;  %1179 = vmatprep.subr.bf16.mxu1 %v1644_v50 }
  0x6f   :  { %1021 = vmatpush1.bf16.msra.mxu0 %v1639_v51  ;;  %1180 = vmatpush1.bf16.msra.mxu1 %v1642_v52 }
  0x70   :  { %1022 = vmatprep.subr.bf16.mxu0 %v1647_v53  ;;  %1181 = vmatprep.subr.bf16.mxu1 %v1650_v54 }
  0x73   :  { %1023 = vmatpush1.bf16.msra.mxu0 %v1645_v55  ;;  %1182 = vmatpush1.bf16.msra.mxu1 %v1648_v56 }
  0x74   :  { %1024 = vmatprep.subr.bf16.mxu0 %v1653_v57  ;;  %1183 = vmatprep.subr.bf16.mxu1 %v1656_v58 }
  0x77   :  { %1025 = vmatpush1.bf16.msra.mxu0 %v1651_v59  ;;  %1184 = vmatpush1.bf16.msra.mxu1 %v1654_v60 }
  0x78   :  { %1026 = vmatprep.subr.bf16.mxu0 %v1662_v61  ;;  %1185 = vmatprep.subr.bf16.mxu1 %v1665_v62 }
  0x7b   :  { %1027 = vmatpush1.bf16.msra.mxu0 %v1660_v63  ;;  %1186 = vmatpush1.bf16.msra.mxu1 %v1663_v0 }
  0x7c   :  { %1028 = vmatprep.subr.bf16.mxu0 %v1668_v1  ;;  %1187 = vmatprep.subr.bf16.mxu1 %v1671_v2 }
  0x7f   :  { %1029 = vmatpush1.bf16.msra.mxu0 %v1666_v3  ;;  %1188 = vmatpush1.bf16.msra.mxu1 %v1669_v4 }
  0x80   :  { %1051 = vmatprep.subr.bf16.mxu0 %v1677_v5  ;;  %1210 = vmatprep.subr.bf16.mxu1 %v1680_v6 }
  0x82   :  { %1031 = vmatmul.mubr.bf16.vlgmr.msra.gmra.mrb[0].mxu0 %v1672_v7  ;;  %1190 = vmatmul.mubr.bf16.vlgmr.msra.gmra.mrb[0].mxu1 %v1672_v7 }
  0x83   :  { %1052 = vmatpush1.bf16.msra.mxu0 %v1675_v8  ;;  %1211 = vmatpush1.bf16.msra.mxu1 %v1678_v9 }
  0x84   :  { %1053 = vmatprep.subr.bf16.mxu0 %v1683_v10  ;;  %1212 = vmatprep.subr.bf16.mxu1 %v1686_v11 }
  0x85   :  { %1040 = vmatprep.mubr.bf16.mxu0 %v1687_v12  ;;  %1199 = vmatprep.mubr.bf16.mxu1 %v1687_v12 }
  0x87   :  { %1054 = vmatpush1.bf16.msra.mxu0 %v1681_v13  ;;  %1213 = vmatpush1.bf16.msra.mxu1 %v1684_v14 }
  0x88   :  { %1055 = vmatprep.subr.bf16.mxu0 %v1692_v15  ;;  %1214 = vmatprep.subr.bf16.mxu1 %v1695_v16 }
  0x8a   :  { %1041 = vmatmul.mubr.bf16.gmra.mrb[4].mxu0 %v1689_v17  ;;  %1200 = vmatmul.mubr.bf16.gmra.mrb[4].mxu1 %v1689_v17 }
  0x8b   :  { %1056 = vmatpush1.bf16.msra.mxu0 %v1690_v18  ;;  %1215 = vmatpush1.bf16.msra.mxu1 %v1693_v19 }
  0x8c   :  { %1057 = vmatprep.subr.bf16.mxu0 %v1698_v20  ;;  %1216 = vmatprep.subr.bf16.mxu1 %v1701_v21 }
  0x8d   :  { %1083 = vmatprep.mubr.bf16.mxu0 %v1704_v24  ;;  %1242 = vmatprep.mubr.bf16.mxu1 %v1704_v24 }
  0x8f   :  { %1058 = vmatpush1.bf16.msra.mxu0 %v1696_v22  ;;  %1217 = vmatpush1.bf16.msra.mxu1 %v1699_v23 }
  0x92   :  { %1437 = vmatmul.mubr.msk.bf16.vlgmr.msra.gmra.mrb[0].mxu0 %vm938_vm0, %v1702_v25  ;;  %1439 = vmatmul.mubr.msk.bf16.vlgmr.msra.gmra.mrb[0].mxu1 %vm938_vm0, %v1702_v25 }
  0x93   :  { %1093 = vmatprep.mubr.bf16.mxu0 %v1704_v24  ;;  %1252 = vmatprep.mubr.bf16.mxu1 %v1704_v24 }
  0x9a   :  { %1438 = vmatmul.mubr.msk.bf16.gmra.mrb[4].mxu0 %vm938_vm0, %v1703_v26  ;;  %1440 = vmatmul.mubr.msk.bf16.gmra.mrb[4].mxu1 %vm938_vm0, %v1703_v26 }
 0x165   :  { %v1085_v27 = vpop.f32.mrb[0].mxu0  ;;  %v1244_v28 = vpop.f32.mrb[0].mxu1 }
 0x166   :  { %1263 = vst [vmem:[%s2232_s2] sm:$0xff] %v1085_v27  ;;  %1265 = vst [vmem:[%s2232_s2 + $0x10] sm:$0xff] %v1244_v28  ;;  %v1087_v29 = vpop.f32.mrb[1].mxu0  ;;  %v1246_v30 = vpop.f32.mrb[1].mxu1 }
 0x167   :  { %1264 = vst [vmem:[%s2232_s2 + $0x8] sm:$0xff] %v1087_v29  ;;  %1266 = vst [vmem:[%s2232_s2 + $0x18] sm:$0xff] %v1246_v30  ;;  %v1089_v31 = vpop.f32.mrb[2].mxu0  ;;  %v1248_v32 = vpop.f32.mrb[2].mxu1 }
 0x168   :  { %1267 = vst [vmem:[%s2232_s2 + $0x20] sm:$0xff] %v1089_v31  ;;  %1269 = vst [vmem:[%s2232_s2 + $0x30] sm:$0xff] %v1248_v32  ;;  %v1091_v33 = vpop.f32.mrb[3].mxu0  ;;  %v1250_v34 = vpop.f32.mrb[3].mxu1 }
 0x169   :  { %1268 = vst [vmem:[%s2232_s2 + $0x28] sm:$0xff] %v1091_v33  ;;  %1270 = vst [vmem:[%s2232_s2 + $0x38] sm:$0xff] %v1250_v34 }
 0x16d   :  { %v1095_v35 = vpop.f32.mrb[4].mxu0  ;;  %v1254_v36 = vpop.f32.mrb[4].mxu1 }
 0x16e   :  { %1271 = vst [vmem:[%s2232_s2 + $0x40] sm:$0xff] %v1095_v35  ;;  %1273 = vst [vmem:[%s2232_s2 + $0x50] sm:$0xff] %v1254_v36  ;;  %v1097_v37 = vpop.f32.mrb[5].mxu0  ;;  %v1256_v38 = vpop.f32.mrb[5].mxu1 }
 0x16f   :  { %1272 = vst [vmem:[%s2232_s2 + $0x48] sm:$0xff] %v1097_v37  ;;  %1274 = vst [vmem:[%s2232_s2 + $0x58] sm:$0xff] %v1256_v38  ;;  %v1099_v39 = vpop.f32.mrb[6].mxu0  ;;  %v1258_v40 = vpop.f32.mrb[6].mxu1 }
 0x170   :  { %1275 = vst [vmem:[%s2232_s2 + $0x60] sm:$0xff] %v1099_v39  ;;  %1277 = vst [vmem:[%s2232_s2 + $0x70] sm:$0xff] %v1258_v40  ;;  %v1101_v41 = vpop.f32.mrb[7].mxu0  ;;  %v1260_v42 = vpop.f32.mrb[7].mxu1 }
 0x171   :  { %1276 = vst [vmem:[%s2232_s2 + $0x68] sm:$0xff] %v1101_v41  ;;  %1278 = vst [vmem:[%s2232_s2 + $0x78] sm:$0xff] %v1260_v42 }

// kernel: n2_apply.40
= control target key start
LH: loop header
LB: loop body
LE: loop exit
PB: predicated region body
PF: predicated region fallthrough
CT: control target
= control target key end

     0   :  { %s414_s0 = inlined_call_operand.vmem [shape: f32[16,1024], index: 0, kind: input, shape index: {}]   ;;  %s415_s1 = inlined_call_operand.vmem [shape: f32[16,1024], index: 1, kind: input, shape index: {}]   ;;  %s416_s2 = inlined_call_operand.vmem [shape: f32[16,1024], index: 2, kind: input, shape index: {}]   ;;  %s417_s3 = inlined_call_operand.vmem [shape: f32[16,1024], index: 3, kind: input, shape index: {}]   ;;  %s418_s4 = inlined_call_operand.vmem [shape: f32[16,1024], index: 4, kind: output, shape index: {}]  }
   0x1   :  { %v17_v0 = vld [vmem:[%s414_s0] sm:$0xff]  ;;  %v18_v5 = vld [vmem:[%s414_s0 + $0x8] sm:$0xff]  ;;  %v19_v11 = vld [vmem:[%s414_s0 + $0x10] sm:$0xff] }
   0x2   :  { %v33_v1 = vld [vmem:[%s416_s2] sm:$0xff]  ;;  %v34_v6 = vld [vmem:[%s416_s2 + $0x8] sm:$0xff]  ;;  %v35_v13 = vld [vmem:[%s416_s2 + $0x10] sm:$0xff] }
   0x3   :  { %v65_v2 = vld [vmem:[%s415_s1] sm:$0xff]  ;;  %v49_v3 = vmul.f32 %v33_v1, %v17_v0  ;;  %v50_v8 = vmul.f32 %v34_v6, %v18_v5  ;;  %v66_v9 = vld [vmem:[%s415_s1 + $0x8] sm:$0xff]  ;;  %v67_v14 = vld [vmem:[%s415_s1 + $0x10] sm:$0xff]  ;;  %v51_v17 = vmul.f32 %v35_v13, %v19_v11 }
   0x4   :  { %v81_v4 = vld [vmem:[%s417_s3] sm:$0xff]  ;;  %v82_v10 = vld [vmem:[%s417_s3 + $0x8] sm:$0xff]  ;;  %v83_v15 = vld [vmem:[%s417_s3 + $0x10] sm:$0xff] }
   0x5   :  { %v97_v7 = vmul.f32 %v81_v4, %v65_v2  ;;  %v98_v12 = vmul.f32 %v82_v10, %v66_v9  ;;  %v99_v18 = vmul.f32 %v83_v15, %v67_v14  ;;  %v20_v19 = vld [vmem:[%s414_s0 + $0x18] sm:$0xff]  ;;  %v21_v25 = vld [vmem:[%s414_s0 + $0x20] sm:$0xff]  ;;  %v22_v32 = vld [vmem:[%s414_s0 + $0x28] sm:$0xff] }
   0x6   :  { %v36_v20 = vld [vmem:[%s416_s2 + $0x18] sm:$0xff]  ;;  %v37_v26 = vld [vmem:[%s416_s2 + $0x20] sm:$0xff]  ;;  %v38_v34 = vld [vmem:[%s416_s2 + $0x28] sm:$0xff] }
   0x7   :  { %v113_v16 = vadd.f32 %v97_v7, %v49_v3  ;;  %v68_v21 = vld [vmem:[%s415_s1 + $0x18] sm:$0xff]  ;;  %v114_v22 = vadd.f32 %v98_v12, %v50_v8  ;;  %v52_v23 = vmul.f32 %v36_v20, %v20_v19  ;;  %v115_v27 = vadd.f32 %v99_v18, %v51_v17  ;;  %v69_v30 = vld [vmem:[%s415_s1 + $0x20] sm:$0xff]  ;;  %v70_v35 = vld [vmem:[%s415_s1 + $0x28] sm:$0xff] }
   0x8   :  { %v84_v24 = vld [vmem:[%s417_s3 + $0x18] sm:$0xff]  ;;  %v53_v29 = vmul.f32 %v37_v26, %v21_v25  ;;  %v85_v31 = vld [vmem:[%s417_s3 + $0x20] sm:$0xff]  ;;  %v86_v36 = vld [vmem:[%s417_s3 + $0x28] sm:$0xff]  ;;  %v54_v38 = vmul.f32 %v38_v34, %v22_v32 }
   0x9   :  { %129 = vst [vmem:[%s418_s4] sm:$0xff] %v113_v16  ;;  %v100_v28 = vmul.f32 %v84_v24, %v68_v21  ;;  %130 = vst [vmem:[%s418_s4 + $0x8] sm:$0xff] %v114_v22  ;;  %v101_v33 = vmul.f32 %v85_v31, %v69_v30  ;;  %v102_v39 = vmul.f32 %v86_v36, %v70_v35  ;;  %v23_v40 = vld [vmem:[%s414_s0 + $0x30] sm:$0xff]  ;;  %v24_v46 = vld [vmem:[%s414_s0 + $0x38] sm:$0xff] }
   0xa   :  { %131 = vst [vmem:[%s418_s4 + $0x10] sm:$0xff] %v115_v27  ;;  %v39_v41 = vld [vmem:[%s416_s2 + $0x30] sm:$0xff]  ;;  %v40_v47 = vld [vmem:[%s416_s2 + $0x38] sm:$0xff]  ;;  %v25_v53 = vld [vmem:[%s414_s0 + $0x40] sm:$0xff] }
   0xb   :  { %v116_v37 = vadd.f32 %v100_v28, %v52_v23  ;;  %v71_v42 = vld [vmem:[%s415_s1 + $0x30] sm:$0xff]  ;;  %v117_v43 = vadd.f32 %v101_v33, %v53_v29  ;;  %v55_v44 = vmul.f32 %v39_v41, %v23_v40  ;;  %v118_v48 = vadd.f32 %v102_v39, %v54_v38  ;;  %v72_v51 = vld [vmem:[%s415_s1 + $0x38] sm:$0xff]  ;;  %v41_v55 = vld [vmem:[%s416_s2 + $0x40] sm:$0xff] }
   0xc   :  { %v87_v45 = vld [vmem:[%s417_s3 + $0x30] sm:$0xff]  ;;  %v56_v50 = vmul.f32 %v40_v47, %v24_v46  ;;  %v88_v52 = vld [vmem:[%s417_s3 + $0x38] sm:$0xff]  ;;  %v73_v56 = vld [vmem:[%s415_s1 + $0x40] sm:$0xff]  ;;  %v57_v59 = vmul.f32 %v41_v55, %v25_v53 }
   0xd   :  { %132 = vst [vmem:[%s418_s4 + $0x18] sm:$0xff] %v116_v37  ;;  %v103_v49 = vmul.f32 %v87_v45, %v71_v42  ;;  %133 = vst [vmem:[%s418_s4 + $0x20] sm:$0xff] %v117_v43  ;;  %v104_v54 = vmul.f32 %v88_v52, %v72_v51  ;;  %v89_v57 = vld [vmem:[%s417_s3 + $0x40] sm:$0xff]  ;;  %v26_v61 = vld [vmem:[%s414_s0 + $0x48] sm:$0xff] }
   0xe   :  { %134 = vst [vmem:[%s418_s4 + $0x28] sm:$0xff] %v118_v48  ;;  %v105_v60 = vmul.f32 %v89_v57, %v73_v56  ;;  %v42_v62 = vld [vmem:[%s416_s2 + $0x48] sm:$0xff]  ;;  %v27_v3 = vld [vmem:[%s414_s0 + $0x50] sm:$0xff]  ;;  %v28_v10 = vld [vmem:[%s414_s0 + $0x58] sm:$0xff] }
   0xf   :  { %v119_v58 = vadd.f32 %v103_v49, %v55_v44  ;;  %v74_v63 = vld [vmem:[%s415_s1 + $0x48] sm:$0xff]  ;;  %v120_v0 = vadd.f32 %v104_v54, %v56_v50  ;;  %v58_v1 = vmul.f32 %v42_v62, %v26_v61  ;;  %v43_v4 = vld [vmem:[%s416_s2 + $0x50] sm:$0xff]  ;;  %v44_v12 = vld [vmem:[%s416_s2 + $0x58] sm:$0xff] }
  0x10   :  { %v90_v2 = vld [vmem:[%s417_s3 + $0x48] sm:$0xff]  ;;  %v121_v5 = vadd.f32 %v105_v60, %v57_v59  ;;  %v59_v7 = vmul.f32 %v43_v4, %v27_v3  ;;  %v75_v8 = vld [vmem:[%s415_s1 + $0x50] sm:$0xff]  ;;  %v76_v13 = vld [vmem:[%s415_s1 + $0x58] sm:$0xff]  ;;  %v60_v16 = vmul.f32 %v44_v12, %v28_v10 }
  0x11   :  { %135 = vst [vmem:[%s418_s4 + $0x30] sm:$0xff] %v119_v58  ;;  %v106_v6 = vmul.f32 %v90_v2, %v74_v63  ;;  %v91_v9 = vld [vmem:[%s417_s3 + $0x50] sm:$0xff]  ;;  %136 = vst [vmem:[%s418_s4 + $0x38] sm:$0xff] %v120_v0  ;;  %v92_v14 = vld [vmem:[%s417_s3 + $0x58] sm:$0xff] }
  0x12   :  { %v107_v11 = vmul.f32 %v91_v9, %v75_v8  ;;  %137 = vst [vmem:[%s418_s4 + $0x40] sm:$0xff] %v121_v5  ;;  %v108_v17 = vmul.f32 %v92_v14, %v76_v13  ;;  %v29_v18 = vld [vmem:[%s414_s0 + $0x60] sm:$0xff]  ;;  %v30_v24 = vld [vmem:[%s414_s0 + $0x68] sm:$0xff]  ;;  %v31_v31 = vld [vmem:[%s414_s0 + $0x70] sm:$0xff] }
  0x13   :  { %v122_v15 = vadd.f32 %v106_v6, %v58_v1  ;;  %v45_v19 = vld [vmem:[%s416_s2 + $0x60] sm:$0xff]  ;;  %v46_v25 = vld [vmem:[%s416_s2 + $0x68] sm:$0xff]  ;;  %v47_v33 = vld [vmem:[%s416_s2 + $0x70] sm:$0xff] }
  0x14   :  { %v77_v20 = vld [vmem:[%s415_s1 + $0x60] sm:$0xff]  ;;  %v123_v21 = vadd.f32 %v107_v11, %v59_v7  ;;  %v61_v22 = vmul.f32 %v45_v19, %v29_v18  ;;  %v124_v26 = vadd.f32 %v108_v17, %v60_v16  ;;  %v62_v28 = vmul.f32 %v46_v25, %v30_v24  ;;  %v78_v29 = vld [vmem:[%s415_s1 + $0x68] sm:$0xff]  ;;  %v79_v34 = vld [vmem:[%s415_s1 + $0x70] sm:$0xff] }
  0x15   :  { %v93_v23 = vld [vmem:[%s417_s3 + $0x60] sm:$0xff]  ;;  %138 = vst [vmem:[%s418_s4 + $0x48] sm:$0xff] %v122_v15  ;;  %v94_v30 = vld [vmem:[%s417_s3 + $0x68] sm:$0xff]  ;;  %v95_v35 = vld [vmem:[%s417_s3 + $0x70] sm:$0xff]  ;;  %v63_v37 = vmul.f32 %v47_v33, %v31_v31 }
  0x16   :  { %v109_v27 = vmul.f32 %v93_v23, %v77_v20  ;;  %139 = vst [vmem:[%s418_s4 + $0x50] sm:$0xff] %v123_v21  ;;  %v110_v32 = vmul.f32 %v94_v30, %v78_v29  ;;  %140 = vst [vmem:[%s418_s4 + $0x58] sm:$0xff] %v124_v26  ;;  %v111_v38 = vmul.f32 %v95_v35, %v79_v34  ;;  %v32_v39 = vld [vmem:[%s414_s0 + $0x78] sm:$0xff] }
  0x17   :  { %v48_v40 = vld [vmem:[%s416_s2 + $0x78] sm:$0xff] }
  0x18   :  { %v125_v36 = vadd.f32 %v109_v27, %v61_v22  ;;  %v80_v41 = vld [vmem:[%s415_s1 + $0x78] sm:$0xff]  ;;  %v126_v42 = vadd.f32 %v110_v32, %v62_v28  ;;  %v64_v43 = vmul.f32 %v48_v40, %v32_v39  ;;  %v127_v45 = vadd.f32 %v111_v38, %v63_v37 }
  0x19   :  { %v96_v44 = vld [vmem:[%s417_s3 + $0x78] sm:$0xff] }
  0x1a   :  { %141 = vst [vmem:[%s418_s4 + $0x60] sm:$0xff] %v125_v36  ;;  %v112_v46 = vmul.f32 %v96_v44, %v80_v41  ;;  %142 = vst [vmem:[%s418_s4 + $0x68] sm:$0xff] %v126_v42 }
  0x1b   :  { %143 = vst [vmem:[%s418_s4 + $0x70] sm:$0xff] %v127_v45 }
  0x1c   :  { %v128_v47 = vadd.f32 %v112_v46, %v64_v43 }
  0x1e   :  { %144 = vst [vmem:[%s418_s4 + $0x78] sm:$0xff] %v128_v47 }

// kernel: n2_apply.41
= control target key start
LH: loop header
LB: loop body
LE: loop exit
PB: predicated region body
PF: predicated region fallthrough
CT: control target
= control target key end

     0   :  { %v843_v1 = vmov 0   ;;  %vm465_vm0 = vcmask 261120   ;;  %s1104_s1 = inlined_call_operand.vmem [shape: bf16[288,512], index: 1, kind: input, shape index: {}]   ;;  %s1105_s0 = inlined_call_operand.vmem [shape: bf16[8,288], index: 0, kind: input, shape index: {}]   ;;  %s1106_s2 = inlined_call_operand.vmem [shape: f32[8,1], index: 2, kind: input, shape index: {}]   ;;  %s1107_s3 = inlined_call_operand.vmem [shape: f32[8,512], index: 3, kind: output, shape index: {}]  }
   0x1   :  { %v732_v0 = vld [vmem:[%s1104_s1 + $0x4] ss:$16 sps:$4 sm:$0xff]   ;;  %731 = vset.pattern.permute.xlu0 %v843_v1  ;;  %v734_v2 = vld [vmem:[%s1104_s1 + $0xc] ss:$16 sps:$4 sm:$0xff]   ;;  %v736_v3 = vld [vmem:[%s1104_s1] ss:$16 sps:$4 sm:$0xff]  }
   0x2   :  { %469 = vmatprep.subr.bf16.mxu0 %v732_v0  ;;  %v737_v4 = vld [vmem:[%s1104_s1 + $0x8] ss:$16 sps:$4 sm:$0xff]   ;;  %551 = vmatprep.subr.bf16.mxu1 %v734_v2  ;;  %v738_v5 = vld [vmem:[%s1104_s1 + $0x24] ss:$16 sps:$4 sm:$0xff]   ;;  %v740_v6 = vld [vmem:[%s1104_s1 + $0x2c] ss:$16 sps:$4 sm:$0xff]  }
   0x3   :  { %470 = vmatpush1.bf16.msra.mxu0 %v736_v3  ;;  %552 = vmatpush1.bf16.msra.mxu1 %v737_v4  ;;  %v742_v7 = vld [vmem:[%s1104_s1 + $0x20] ss:$16 sps:$4 sm:$0xff]   ;;  %v743_v8 = vld [vmem:[%s1104_s1 + $0x28] ss:$16 sps:$4 sm:$0xff]   ;;  %v744_v9 = vld [vmem:[%s1104_s1 + $0x44] ss:$16 sps:$4 sm:$0xff]  }
   0x4   :  { %471 = vmatprep.subr.bf16.mxu0 %v738_v5  ;;  %553 = vmatprep.subr.bf16.mxu1 %v740_v6  ;;  %v746_v10 = vld [vmem:[%s1104_s1 + $0x4c] ss:$16 sps:$4 sm:$0xff]   ;;  %v748_v11 = vld [vmem:[%s1104_s1 + $0x40] ss:$16 sps:$4 sm:$0xff]   ;;  %v749_v12 = vld [vmem:[%s1104_s1 + $0x48] ss:$16 sps:$4 sm:$0xff]  }
   0x5   :  { %v750_v13 = vld [vmem:[%s1104_s1 + $0x64] ss:$16 sps:$4 sm:$0xff]   ;;  %v752_v14 = vld [vmem:[%s1104_s1 + $0x6c] ss:$16 sps:$4 sm:$0xff]   ;;  %v754_v15 = vld [vmem:[%s1104_s1 + $0x60] ss:$16 sps:$4 sm:$0xff]  }
   0x6   :  { %v755_v16 = vld [vmem:[%s1104_s1 + $0x68] ss:$16 sps:$4 sm:$0xff]   ;;  %v756_v17 = vld [vmem:[%s1104_s1 + $0x84] ss:$16 sps:$4 sm:$0xff]   ;;  %v758_v18 = vld [vmem:[%s1104_s1 + $0x8c] ss:$16 sps:$4 sm:$0xff]  }
   0x7   :  { %472 = vmatpush1.bf16.msra.mxu0 %v742_v7  ;;  %554 = vmatpush1.bf16.msra.mxu1 %v743_v8  ;;  %v760_v19 = vld [vmem:[%s1104_s1 + $0x80] ss:$16 sps:$4 sm:$0xff]   ;;  %v761_v20 = vld [vmem:[%s1104_s1 + $0x88] ss:$16 sps:$4 sm:$0xff]   ;;  %v762_v21 = vld [vmem:[%s1104_s1 + $0xa4] ss:$16 sps:$4 sm:$0xff]  }
   0x8   :  { %473 = vmatprep.subr.bf16.mxu0 %v744_v9  ;;  %555 = vmatprep.subr.bf16.mxu1 %v746_v10  ;;  %v764_v22 = vld [vmem:[%s1104_s1 + $0xac] ss:$16 sps:$4 sm:$0xff]   ;;  %v766_v23 = vld [vmem:[%s1104_s1 + $0xa0] ss:$16 sps:$4 sm:$0xff]   ;;  %v767_v24 = vld [vmem:[%s1104_s1 + $0xa8] ss:$16 sps:$4 sm:$0xff]  }
   0x9   :  { %v768_v25 = vld [vmem:[%s1104_s1 + $0xc4] ss:$16 sps:$4 sm:$0xff]   ;;  %v770_v26 = vld [vmem:[%s1104_s1 + $0xcc] ss:$16 sps:$4 sm:$0xff]   ;;  %v772_v27 = vld [vmem:[%s1104_s1 + $0xc0] ss:$16 sps:$4 sm:$0xff]  }
   0xa   :  { %v773_v28 = vld [vmem:[%s1104_s1 + $0xc8] ss:$16 sps:$4 sm:$0xff]   ;;  %v774_v29 = vld [vmem:[%s1104_s1 + $0xe4] ss:$16 sps:$4 sm:$0xff]   ;;  %v776_v30 = vld [vmem:[%s1104_s1 + $0xec] ss:$16 sps:$4 sm:$0xff]  }
   0xb   :  { %474 = vmatpush1.bf16.msra.mxu0 %v748_v11  ;;  %556 = vmatpush1.bf16.msra.mxu1 %v749_v12  ;;  %v778_v31 = vld [vmem:[%s1104_s1 + $0xe0] ss:$16 sps:$4 sm:$0xff]   ;;  %v779_v32 = vld [vmem:[%s1104_s1 + $0xe8] ss:$16 sps:$4 sm:$0xff]   ;;  %v780_v33 = vld [vmem:[%s1104_s1 + $0x104] ss:$16 sps:$4 sm:$0xff]  }
   0xc   :  { %475 = vmatprep.subr.bf16.mxu0 %v750_v13  ;;  %557 = vmatprep.subr.bf16.mxu1 %v752_v14  ;;  %v782_v34 = vld [vmem:[%s1104_s1 + $0x10c] ss:$16 sps:$4 sm:$0xff]   ;;  %v784_v35 = vld [vmem:[%s1104_s1 + $0x100] ss:$16 sps:$4 sm:$0xff]   ;;  %v785_v36 = vld [vmem:[%s1104_s1 + $0x108] ss:$16 sps:$4 sm:$0xff]  }
   0xd   :  { %v786_v37 = vld [vmem:[%s1104_s1 + $0x124] ss:$16 sps:$4 sm:$0xff]   ;;  %v788_v38 = vld [vmem:[%s1104_s1 + $0x12c] ss:$16 sps:$4 sm:$0xff]   ;;  %v790_v39 = vld [vmem:[%s1104_s1 + $0x120] ss:$16 sps:$4 sm:$0xff]  }
   0xe   :  { %v791_v40 = vld [vmem:[%s1104_s1 + $0x128] ss:$16 sps:$4 sm:$0xff]   ;;  %v792_v41 = vld [vmem:[%s1104_s1 + $0x144] ss:$16 sps:$4 sm:$0xff]   ;;  %v794_v42 = vld [vmem:[%s1104_s1 + $0x14c] ss:$16 sps:$4 sm:$0xff]  }
   0xf   :  { %476 = vmatpush1.bf16.msra.mxu0 %v754_v15  ;;  %558 = vmatpush1.bf16.msra.mxu1 %v755_v16  ;;  %v796_v43 = vld [vmem:[%s1104_s1 + $0x140] ss:$16 sps:$4 sm:$0xff]   ;;  %v797_v44 = vld [vmem:[%s1104_s1 + $0x148] ss:$16 sps:$4 sm:$0xff]   ;;  %v798_v45 = vld [vmem:[%s1104_s1 + $0x164] ss:$16 sps:$4 sm:$0xff]  }
  0x10   :  { %477 = vmatprep.subr.bf16.mxu0 %v756_v17  ;;  %559 = vmatprep.subr.bf16.mxu1 %v758_v18  ;;  %v800_v46 = vld [vmem:[%s1104_s1 + $0x16c] ss:$16 sps:$4 sm:$0xff]   ;;  %v15_v47 = vld [vmem:[%s1105_s0] sm:$0xff]  ;;  %v803_v50 = vld [vmem:[%s1104_s1 + $0x168] ss:$16 sps:$4 sm:$0xff]  }
  0x11   :  { %v802_v48 = vld [vmem:[%s1104_s1 + $0x160] ss:$16 sps:$4 sm:$0xff]   ;;  %v642_v49 = vcombine.high %v15_v47, %v15_v47  ;;  %v804_v51 = vld [vmem:[%s1104_s1 + $0x184] ss:$16 sps:$4 sm:$0xff]   ;;  %v806_v52 = vld [vmem:[%s1104_s1 + $0x18c] ss:$16 sps:$4 sm:$0xff]   ;;  %v641_v7 = vcombine.low %v15_v47, %v15_v47 }
  0x12   :  { %v808_v53 = vld [vmem:[%s1104_s1 + $0x180] ss:$16 sps:$4 sm:$0xff]   ;;  %v809_v54 = vld [vmem:[%s1104_s1 + $0x188] ss:$16 sps:$4 sm:$0xff]   ;;  %v810_v55 = vld [vmem:[%s1104_s1 + $0x1a4] ss:$16 sps:$4 sm:$0xff]  }
  0x13   :  { %478 = vmatpush1.bf16.msra.mxu0 %v760_v19  ;;  %560 = vmatpush1.bf16.msra.mxu1 %v761_v20  ;;  %v812_v56 = vld [vmem:[%s1104_s1 + $0x1ac] ss:$16 sps:$4 sm:$0xff]   ;;  %v89_v57 = vld [vmem:[%s1106_s2] sm:$0xff]  ;;  %v815_v59 = vld [vmem:[%s1104_s1 + $0x1a8] ss:$16 sps:$4 sm:$0xff]  }
  0x14   :  { %479 = vmatprep.subr.bf16.mxu0 %v762_v21  ;;  %561 = vmatprep.subr.bf16.mxu1 %v764_v22  ;;  %v814_v58 = vld [vmem:[%s1104_s1 + $0x1a0] ss:$16 sps:$4 sm:$0xff]   ;;  %v816_v60 = vld [vmem:[%s1104_s1 + $0x1c4] ss:$16 sps:$4 sm:$0xff]   ;;  %v818_v61 = vld [vmem:[%s1104_s1 + $0x1cc] ss:$16 sps:$4 sm:$0xff]  }
  0x15   :  { %501 = vmatprep.mubr.bf16.mxu0 %v642_v49  ;;  %583 = vmatprep.mubr.bf16.mxu1 %v642_v49  ;;  %v820_v62 = vld [vmem:[%s1104_s1 + $0x1c0] ss:$16 sps:$4 sm:$0xff]   ;;  %v821_v63 = vld [vmem:[%s1104_s1 + $0x1c8] ss:$16 sps:$4 sm:$0xff]   ;;  %v822_v0 = vld [vmem:[%s1104_s1 + $0x1e4] ss:$16 sps:$4 sm:$0xff]  }
  0x16   :  { %92 = vperm.xlu0 %731, %v89_v57   ;;  %v824_v2 = vld [vmem:[%s1104_s1 + $0x1ec] ss:$16 sps:$4 sm:$0xff]   ;;  %v826_v3 = vld [vmem:[%s1104_s1 + $0x1e0] ss:$16 sps:$4 sm:$0xff]   ;;  %v827_v4 = vld [vmem:[%s1104_s1 + $0x1e8] ss:$16 sps:$4 sm:$0xff]  }
  0x17   :  { %480 = vmatpush1.bf16.msra.mxu0 %v766_v23  ;;  %562 = vmatpush1.bf16.msra.mxu1 %v767_v24  ;;  %v833_v5 = vld [vmem:[%s1104_s1 + $0x204] ss:$16 sps:$4 sm:$0xff]   ;;  %v836_v6 = vld [vmem:[%s1104_s1 + $0x20c] ss:$16 sps:$4 sm:$0xff]   ;;  %v831_v8 = vld [vmem:[%s1104_s1 + $0x200] ss:$16 sps:$4 sm:$0xff]  }
  0x18   :  { %481 = vmatprep.subr.bf16.mxu0 %v768_v25  ;;  %563 = vmatprep.subr.bf16.mxu1 %v770_v26  ;;  %v834_v9 = vld [vmem:[%s1104_s1 + $0x208] ss:$16 sps:$4 sm:$0xff]   ;;  %v839_v10 = vld [vmem:[%s1104_s1 + $0x224] ss:$16 sps:$4 sm:$0xff]   ;;  %v842_v11 = vld [vmem:[%s1104_s1 + $0x22c] ss:$16 sps:$4 sm:$0xff]  }
  0x19   :  { %v837_v12 = vld [vmem:[%s1104_s1 + $0x220] ss:$16 sps:$4 sm:$0xff]   ;;  %v840_v13 = vld [vmem:[%s1104_s1 + $0x228] ss:$16 sps:$4 sm:$0xff]  }
  0x1a   :  { %v830_v14 = vld [vmem:[%s1105_s0 + $0x8] ss:$0 sps:$4 sm:$0xff]  }
  0x1b   :  { %482 = vmatpush1.bf16.msra.mxu0 %v772_v27  ;;  %564 = vmatpush1.bf16.msra.mxu1 %v773_v28 }
  0x1c   :  { %483 = vmatprep.subr.bf16.mxu0 %v774_v29  ;;  %565 = vmatprep.subr.bf16.mxu1 %v776_v30 }
  0x1f   :  { %484 = vmatpush1.bf16.msra.mxu0 %v778_v31  ;;  %566 = vmatpush1.bf16.msra.mxu1 %v779_v32 }
  0x20   :  { %485 = vmatprep.subr.bf16.mxu0 %v780_v33  ;;  %567 = vmatprep.subr.bf16.mxu1 %v782_v34 }
  0x23   :  { %486 = vmatpush1.bf16.msra.mxu0 %v784_v35  ;;  %568 = vmatpush1.bf16.msra.mxu1 %v785_v36 }
  0x24   :  { %487 = vmatprep.subr.bf16.mxu0 %v786_v37  ;;  %569 = vmatprep.subr.bf16.mxu1 %v788_v38 }
  0x27   :  { %488 = vmatpush1.bf16.msra.mxu0 %v790_v39  ;;  %570 = vmatpush1.bf16.msra.mxu1 %v791_v40 }
  0x28   :  { %489 = vmatprep.subr.bf16.mxu0 %v792_v41  ;;  %571 = vmatprep.subr.bf16.mxu1 %v794_v42 }
  0x2b   :  { %490 = vmatpush1.bf16.msra.mxu0 %v796_v43  ;;  %572 = vmatpush1.bf16.msra.mxu1 %v797_v44 }
  0x2c   :  { %491 = vmatprep.subr.bf16.mxu0 %v798_v45  ;;  %573 = vmatprep.subr.bf16.mxu1 %v800_v46 }
  0x2f   :  { %492 = vmatpush1.bf16.msra.mxu0 %v802_v48  ;;  %574 = vmatpush1.bf16.msra.mxu1 %v803_v50 }
  0x30   :  { %493 = vmatprep.subr.bf16.mxu0 %v804_v51  ;;  %575 = vmatprep.subr.bf16.mxu1 %v806_v52 }
  0x33   :  { %494 = vmatpush1.bf16.msra.mxu0 %v808_v53  ;;  %576 = vmatpush1.bf16.msra.mxu1 %v809_v54 }
  0x34   :  { %495 = vmatprep.subr.bf16.mxu0 %v810_v55  ;;  %577 = vmatprep.subr.bf16.mxu1 %v812_v56 }
  0x37   :  { %496 = vmatpush1.bf16.msra.mxu0 %v814_v58  ;;  %578 = vmatpush1.bf16.msra.mxu1 %v815_v59 }
  0x38   :  { %497 = vmatprep.subr.bf16.mxu0 %v816_v60  ;;  %579 = vmatprep.subr.bf16.mxu1 %v818_v61 }
  0x3b   :  { %498 = vmatpush1.bf16.msra.mxu0 %v820_v62  ;;  %580 = vmatpush1.bf16.msra.mxu1 %v821_v63 }
  0x3c   :  { %499 = vmatprep.subr.bf16.mxu0 %v822_v0  ;;  %581 = vmatprep.subr.bf16.mxu1 %v824_v2 }
  0x3f   :  { %500 = vmatpush1.bf16.msra.mxu0 %v826_v3  ;;  %582 = vmatpush1.bf16.msra.mxu1 %v827_v4 }
  0x40   :  { %510 = vmatprep.subr.bf16.mxu0 %v833_v5  ;;  %592 = vmatprep.subr.bf16.mxu1 %v836_v6 }
  0x42   :  { %502 = vmatmul.mubr.bf16.vlgmr.msra.gmra.mrb[0].mxu0 %v641_v7  ;;  %584 = vmatmul.mubr.bf16.vlgmr.msra.gmra.mrb[0].mxu1 %v641_v7 }
  0x43   :  { %511 = vmatpush1.bf16.msra.mxu0 %v831_v8  ;;  %593 = vmatpush1.bf16.msra.mxu1 %v834_v9 }
  0x44   :  { %512 = vmatprep.subr.bf16.mxu0 %v839_v10  ;;  %594 = vmatprep.subr.bf16.mxu1 %v842_v11 }
  0x45   :  { %542 = vmatprep.mubr.bf16.mxu0 %v843_v1  ;;  %624 = vmatprep.mubr.bf16.mxu1 %v843_v1 }
  0x47   :  { %513 = vmatpush1.bf16.msra.mxu0 %v837_v12  ;;  %595 = vmatpush1.bf16.msra.mxu1 %v840_v13 }
  0x4e   :  { %716 = vmatmul.mubr.msk.bf16.vlgmr.msra.gmra.mrb[0].mxu0 %vm465_vm0, %v830_v14  ;;  %717 = vmatmul.mubr.msk.bf16.vlgmr.msra.gmra.mrb[0].mxu1 %vm465_vm0, %v830_v14 }
  0x95   :  { %v93_v15 = vpop.permute.xlu0 %92 }
 0x121   :  { %v544_v16 = vpop.f32.mrb[0].mxu0  ;;  %v626_v17 = vpop.f32.mrb[0].mxu1 }
 0x122   :  { %v718_v18 = vadd.f32 %v544_v16, %v93_v15  ;;  %v720_v19 = vadd.f32 %v626_v17, %v93_v15  ;;  %v546_v20 = vpop.f32.mrb[1].mxu0  ;;  %v628_v21 = vpop.f32.mrb[1].mxu1 }
 0x123   :  { %v719_v22 = vadd.f32 %v546_v20, %v93_v15  ;;  %v721_v23 = vadd.f32 %v628_v21, %v93_v15  ;;  %v548_v24 = vpop.f32.mrb[2].mxu0  ;;  %v630_v1 = vpop.f32.mrb[2].mxu1 }
 0x124   :  { %633 = vst [vmem:[%s1107_s3] sm:$0xff] %v718_v18  ;;  %635 = vst [vmem:[%s1107_s3 + $0x10] sm:$0xff] %v720_v19  ;;  %v549_v25 = vpop.f32.mrb[3].mxu0  ;;  %v631_v26 = vpop.f32.mrb[3].mxu1 }
 0x125   :  { %634 = vst [vmem:[%s1107_s3 + $0x8] sm:$0xff] %v719_v22  ;;  %636 = vst [vmem:[%s1107_s3 + $0x18] sm:$0xff] %v721_v23 }

</bundles_post_ra>
